<compile_context>
chip_gen: v7x
topology: tpu7x:2x2x1
jax: 0.10.0
libtpu: 0.0.40
codegen_flags: <defaults>
</compile_context>

<pallas_src>
import jax
import jax.numpy as jnp
from jax import lax
from jax.experimental import pallas as pl
from jax.experimental.pallas import tpu as pltpu

C = 128  # channel count fixed by the module: Conv3d(128, 128, ...)


def _conv3x3x3_relu(src_ref, w_ref, b_ref, d0, d_out, H, W):
    """3x3x3 conv (stride 1, halos already present in src_ref) + bias + ReLU.

    src_ref: (>= d0 + d_out + 2, H+2, W+2, C) bf16 ref; output row j reads
             src depth rows d0+j .. d0+j+2.
    w_ref:   (3, 3, 3*C, C) bf16 ref, indexed [kd, kh, kw*C + cin, cout].
    b_ref:   (1, C) f32 ref.
    returns  (d_out*H*W, C) float32.
    """
    # kw-only im2col: 3 sublane shifts; channel axis becomes 3*C = 384.
    cols = [src_ref[d0:d0 + d_out + 2, :, kw:kw + W, :] for kw in range(3)]
    xs = jnp.concatenate(cols, axis=-1)           # (d_out+2, H+2, W, 3C) bf16

    acc = None
    for kd in range(3):
        for kh in range(3):
            # kd/kh are non-tiled (outer) dims -> these slices are free; the
            # reshape keeps W on sublanes and 3C on lanes.
            x = xs[kd:kd + d_out, kh:kh + H].reshape(d_out * H * W, 3 * C)
            p = jnp.dot(x, w_ref[kd, kh], preferred_element_type=jnp.float32)
            acc = (p + b_ref[...]) if acc is None else acc + p
    return jnp.maximum(acc, 0.0)


def disentangle2_kernel(x_hbm, w1_ref, b1_ref, w2_ref, b2_ref, w3_ref, b3_ref,
                        out_ref, scr, xin):
    TD, H, W, _ = out_ref.shape
    n = pl.program_id(0)
    t = pl.program_id(1)
    n_t = pl.num_programs(1)
    zf = scr.dtype

    # Zero the 4 H/W halo faces (all depth rows, corners included).  The D
    # halo rows carry real data (neighbour-tile input / wrapper zero D-pad).
    scr[:, 0:1] = jnp.zeros((TD + 4, 1, W + 2, C), zf)
    scr[:, H + 1:H + 2] = jnp.zeros((TD + 4, 1, W + 2, C), zf)
    scr[:, 1:H + 1, 0:1] = jnp.zeros((TD + 4, H, 1, C), zf)
    scr[:, 1:H + 1, W + 1:W + 2] = jnp.zeros((TD + 4, H, 1, C), zf)

    # Fetch the overlapping (TD+4)-deep input window (input was zero-padded
    # by 2 along D in the wrapper, so the window size is static) and place it
    # in the H/W interior of the padded scratch.
    pltpu.sync_copy(x_hbm.at[n, pl.ds(t * TD, TD + 4)], xin)
    scr[:, 1:H + 1, 1:W + 1, :] = xin[...]

    # Conv1 (3x3x3, pad=1) + ReLU on TD+2 rows: the +/-1 intermediate halo is
    # recomputed from the overlapping input window.
    y1 = _conv3x3x3_relu(scr, w1_ref, b1_ref, 0, TD + 2, H, W)
    scr[1:TD + 3, 1:H + 1, 1:W + 1, :] = (
        y1.reshape(TD + 2, H, W, C).astype(zf))

    # Intermediate halo rows that fall outside the real volume are conv2's
    # zero padding, not conv1 applied to the zero-padded input.
    @pl.when(t == 0)
    def _():
        scr[1:2, 1:H + 1, 1:W + 1, :] = jnp.zeros((1, H, W, C), zf)

    @pl.when(t == n_t - 1)
    def _():
        scr[TD + 2:TD + 3, 1:H + 1, 1:W + 1, :] = jnp.zeros((1, H, W, C), zf)

    # Conv2 (3x3x3, pad=1) + ReLU on the TD output rows.
    y2 = _conv3x3x3_relu(scr, w2_ref, b2_ref, 1, TD, H, W)

    # Conv3 (1x1x1) + ReLU == channel matmul.
    y3 = jnp.dot(y2.astype(jnp.bfloat16), w3_ref[...],
                 preferred_element_type=jnp.float32) + b3_ref[...]
    out_ref[...] = jnp.maximum(y3, 0.0).reshape(TD, H, W, C).astype(out_ref.dtype)


def disentangle2_forward(x_ncdhw, params, *, d_tile=None):
    """Forward pass matching disentangle2.forward (device movement is a no-op)."""
    w1, b1, w2, b2, w3, b3 = params
    N, Cin, D, H, W = x_ncdhw.shape
    assert Cin == C

    td = d_tile if d_tile is not None else min(D, 8)
    assert D % td == 0, "D must be divisible by the D-tile"
    n_dt = D // td

    # NCDHW -> NDHWC, cast bf16, zero-pad only the D axis by 2 (recompute
    # halo for conv1+conv2).  The fully padded tensor is never materialised
    # in HBM; transpose+cast+pad are left to a single XLA fusion.
    x = jnp.transpose(x_ncdhw, (0, 2, 3, 4, 1)).astype(jnp.bfloat16)
    x = jnp.pad(x, ((0, 0), (2, 2), (0, 0), (0, 0), (0, 0)))

    # PyTorch conv weights are (O, I, kd, kh, kw) -> (kd, kh, kw*C + ci, co).
    def taps(w):
        return (jnp.transpose(w, (2, 3, 4, 1, 0))
                .reshape(3, 3, 3 * C, C).astype(jnp.bfloat16))

    w1t, w2t = taps(w1), taps(w2)
    w3t = jnp.transpose(w3.reshape(C, C), (1, 0)).astype(jnp.bfloat16)  # (I, O)
    b1r = b1.reshape(1, C).astype(jnp.float32)
    b2r = b2.reshape(1, C).astype(jnp.float32)
    b3r = b3.reshape(1, C).astype(jnp.float32)

    # Derive the scoped-VMEM cap per generation (~40 MiB on v7x's 64 MiB,
    # ~80 MiB on v5e/v6e's 128 MiB).
    try:
        vmem_cap = pltpu.get_tpu_info().vmem_capacity_bytes
    except Exception:
        vmem_cap = 128 * 1024 * 1024
    vmem_limit = int(min(vmem_cap * 5 // 8, 100 * 1024 * 1024))

    out = pl.pallas_call(
        disentangle2_kernel,
        out_shape=jax.ShapeDtypeStruct((N, D, H, W, C), jnp.float32),
        grid_spec=pltpu.PrefetchScalarGridSpec(
            num_scalar_prefetch=0,
            grid=(N, n_dt),
            in_specs=[
                pl.BlockSpec(memory_space=pl.ANY),          # x stays in HBM
                pl.BlockSpec((3, 3, 3 * C, C), lambda n, t: (0, 0, 0, 0)),
                pl.BlockSpec((1, C), lambda n, t: (0, 0)),
                pl.BlockSpec((3, 3, 3 * C, C), lambda n, t: (0, 0, 0, 0)),
                pl.BlockSpec((1, C), lambda n, t: (0, 0)),
                pl.BlockSpec((C, C), lambda n, t: (0, 0)),
                pl.BlockSpec((1, C), lambda n, t: (0, 0)),
            ],
            out_specs=pl.BlockSpec((None, td, H, W, C),
                                   lambda n, t: (n, t, 0, 0, 0)),
            scratch_shapes=[
                pltpu.VMEM((td + 4, H + 2, W + 2, C), jnp.bfloat16),  # padded
                pltpu.VMEM((td + 4, H, W, C), jnp.bfloat16),          # DMA dst
            ],
        ),
        compiler_params=pltpu.CompilerParams(
            dimension_semantics=("parallel", "parallel"),
            vmem_limit_bytes=vmem_limit),
    )(x, w1t, b1r, w2t, b2r, w3t, b3r)

    # Back to PyTorch's NCDHW output layout (f32, matching the module).
    return jnp.transpose(out, (0, 4, 1, 2, 3))


def reference(x, params):
    """Pure-JAX reference of the PyTorch module (lax conv, NCDHW, f32)."""
    w1, b1, w2, b2, w3, b3 = params
    dn = lax.conv_dimension_numbers(x.shape, w1.shape,
                                    ('NCDHW', 'OIDHW', 'NCDHW'))

    def conv_relu(x, w, b, pad):
        y = lax.conv_general_dilated(x, w, (1, 1, 1), [(pad, pad)] * 3,
                                     dimension_numbers=dn)
        return jax.nn.relu(y + b.reshape(1, -1, 1, 1, 1))

    y = conv_relu(x, w1, b1, 1)
    y = conv_relu(y, w2, b2, 1)
    y = conv_relu(y, w3, b3, 0)
    return y


if __name__ == "__main__":
    key = jax.random.PRNGKey(0)
    ks = jax.random.split(key, 7)

    N, D, H, W = 2, 4, 4, 8
    x = jax.random.normal(ks[0], (N, C, D, H, W), dtype=jnp.float32)

    # Deterministic synthetic parameters with PyTorch Conv3d shapes.
    scale = 0.03
    w1 = scale * jax.random.normal(ks[1], (C, C, 3, 3, 3), jnp.float32)
    b1 = scale * jax.random.normal(ks[2], (C,), jnp.float32)
    w2 = scale * jax.random.normal(ks[3], (C, C, 3, 3, 3), jnp.float32)
    b2 = scale * jax.random.normal(ks[4], (C,), jnp.float32)
    w3 = scale * jax.random.normal(ks[5], (C, C, 1, 1, 1), jnp.float32)
    b3 = scale * jax.random.normal(ks[6], (C,), jnp.float32)
    params = (w1, b1, w2, b2, w3, b3)

    # d_tile=2 exercises the multi-tile path (first/last boundary handling).
    out = jax.block_until_ready(disentangle2_forward(x, params, d_tile=2))

    ref = jax.block_until_ready(reference(x, params))
    max_err = float(jnp.max(jnp.abs(out - ref)))
    # bf16 operands / f32 accumulation: allow 3e-2 relative-to-max tolerance.
    tol = 3e-2 * max(float(jnp.max(jnp.abs(ref))), 1.0)
    assert out.shape == (N, C, D, H, W), out.shape
    assert max_err < tol, f"max abs err {max_err} > tol {tol}"

    print("KERNEL_OK")
</pallas_src>

<mosaic_0001>
module attributes {stable_mosaic.version = 11 : i64} {
  func.func @disentangle2_kernel(%arg0: i32, %arg1: i32, %arg2: memref<2x8x4x8x128xbf16, #tpu.memory_space<any>>, %arg3: memref<3x3x384x128xbf16, #tpu.memory_space<vmem>>, %arg4: memref<1x128xf32, #tpu.memory_space<vmem>>, %arg5: memref<3x3x384x128xbf16, #tpu.memory_space<vmem>>, %arg6: memref<1x128xf32, #tpu.memory_space<vmem>>, %arg7: memref<128x128xbf16, #tpu.memory_space<vmem>>, %arg8: memref<1x128xf32, #tpu.memory_space<vmem>>, %arg9: memref<1x2x4x8x128xf32, #tpu.memory_space<vmem>>, %arg10: memref<6x6x10x128xbf16, #tpu.memory_space<vmem>>, %arg11: memref<6x4x8x128xbf16, #tpu.memory_space<vmem>>) attributes {dimension_semantics = [#tpu.dimension_semantics<parallel>, #tpu.dimension_semantics<parallel>], iteration_bounds = array<i64: 2, 2>, scalar_prefetch = 0 : i64, scratch_operands = 2 : i64, tpu.core_type = #tpu.core_type<tc>, window_params = [{}, {pipeline_mode = #tpu.pipeline_mode<synchronous>, transform_indices = @transform_1, window_bounds = array<i64: 3, 3, 384, 128>}, {pipeline_mode = #tpu.pipeline_mode<synchronous>, transform_indices = @transform_2, window_bounds = array<i64: 1, 128>}, {pipeline_mode = #tpu.pipeline_mode<synchronous>, transform_indices = @transform_3, window_bounds = array<i64: 3, 3, 384, 128>}, {pipeline_mode = #tpu.pipeline_mode<synchronous>, transform_indices = @transform_4, window_bounds = array<i64: 1, 128>}, {pipeline_mode = #tpu.pipeline_mode<synchronous>, transform_indices = @transform_5, window_bounds = array<i64: 128, 128>}, {pipeline_mode = #tpu.pipeline_mode<synchronous>, transform_indices = @transform_6, window_bounds = array<i64: 1, 128>}, {transform_indices = @transform_7, window_bounds = array<i64: 1, 2, 4, 8, 128>}]} {
    %cst = arith.constant 0.000000e+00 : bf16
    %0 = vector.broadcast %cst : bf16 to vector<6x1x10x128xbf16>
    %c0 = arith.constant 0 : index
    %c0_0 = arith.constant 0 : index
    %c0_1 = arith.constant 0 : index
    %c0_2 = arith.constant 0 : index
    %1 = vector.load %arg10[%c0, %c0_0, %c0_1, %c0_2] : memref<6x6x10x128xbf16, #tpu.memory_space<vmem>>, vector<6x1x10x128xbf16>
    tpu.vector_store %arg10[%c0, %c0_0, %c0_1, %c0_2], %0 {strides = array<i32>} : memref<6x6x10x128xbf16, #tpu.memory_space<vmem>>, vector<6x1x10x128xbf16>,
    %cst_3 = arith.constant 0.000000e+00 : bf16
    %2 = vector.broadcast %cst_3 : bf16 to vector<6x1x10x128xbf16>
    %c0_4 = arith.constant 0 : index
    %c5 = arith.constant 5 : index
    %c0_5 = arith.constant 0 : index
    %c0_6 = arith.constant 0 : index
    %3 = vector.load %arg10[%c0_4, %c5, %c0_5, %c0_6] : memref<6x6x10x128xbf16, #tpu.memory_space<vmem>>, vector<6x1x10x128xbf16>
    tpu.vector_store %arg10[%c0_4, %c5, %c0_5, %c0_6], %2 {strides = array<i32>} : memref<6x6x10x128xbf16, #tpu.memory_space<vmem>>, vector<6x1x10x128xbf16>,
    %cst_7 = arith.constant 0.000000e+00 : bf16
    %4 = vector.broadcast %cst_7 : bf16 to vector<6x4x1x128xbf16>
    %c0_8 = arith.constant 0 : index
    %c1 = arith.constant 1 : index
    %c0_9 = arith.constant 0 : index
    %c0_10 = arith.constant 0 : index
    %5 = vector.load %arg10[%c0_8, %c1, %c0_9, %c0_10] : memref<6x6x10x128xbf16, #tpu.memory_space<vmem>>, vector<6x4x1x128xbf16>
    tpu.vector_store %arg10[%c0_8, %c1, %c0_9, %c0_10], %4 {strides = array<i32>} : memref<6x6x10x128xbf16, #tpu.memory_space<vmem>>, vector<6x4x1x128xbf16>,
    %cst_11 = arith.constant 0.000000e+00 : bf16
    %6 = vector.broadcast %cst_11 : bf16 to vector<6x4x1x128xbf16>
    %c0_12 = arith.constant 0 : index
    %c1_13 = arith.constant 1 : index
    %c9 = arith.constant 9 : index
    %c0_14 = arith.constant 0 : index
    %7 = vector.load %arg10[%c0_12, %c1_13, %c9, %c0_14] : memref<6x6x10x128xbf16, #tpu.memory_space<vmem>>, vector<6x4x1x128xbf16>
    tpu.vector_store %arg10[%c0_12, %c1_13, %c9, %c0_14], %6 {strides = array<i32>} : memref<6x6x10x128xbf16, #tpu.memory_space<vmem>>, vector<6x4x1x128xbf16>,
    %c2_i32 = arith.constant 2 : i32
    %8 = arith.muli %arg1, %c2_i32 : i32
    "tpu.region"() ({
      %156 = tpu.sem_alloc : memref<!tpu.dma_semaphore, #tpu.memory_space<semaphore_mem>>
      %c0_i32_159 = arith.constant 0 : i32
      %c0_i32_160 = arith.constant 0 : i32
      %c0_i32_161 = arith.constant 0 : i32
      %157 = tpu.memref_slice %arg2[%arg0, %8, %c0_i32_159, %c0_i32_160, %c0_i32_161] : memref<2x8x4x8x128xbf16, #tpu.memory_space<any>> -> memref<1x6x4x8x128xbf16, #tpu.memory_space<any>>
      %158 = tpu.memref_squeeze %157 : memref<1x6x4x8x128xbf16, #tpu.memory_space<any>> -> memref<6x4x8x128xbf16, #tpu.memory_space<any>>
      tpu.enqueue_dma source(%158 : memref<6x4x8x128xbf16, #tpu.memory_space<any>>) target(%arg11 : memref<6x4x8x128xbf16, #tpu.memory_space<vmem>>) target_semaphore(%156 : memref<!tpu.dma_semaphore, #tpu.memory_space<semaphore_mem>>)
      %c0_i32_162 = arith.constant 0 : i32
      %c0_i32_163 = arith.constant 0 : i32
      %c0_i32_164 = arith.constant 0 : i32
      %159 = tpu.memref_slice %arg2[%arg0, %8, %c0_i32_162, %c0_i32_163, %c0_i32_164] : memref<2x8x4x8x128xbf16, #tpu.memory_space<any>> -> memref<1x6x4x8x128xbf16, #tpu.memory_space<any>>
      %160 = tpu.memref_squeeze %159 : memref<1x6x4x8x128xbf16, #tpu.memory_space<any>> -> memref<6x4x8x128xbf16, #tpu.memory_space<any>>
      tpu.wait_dma2 semaphore(%156 : memref<!tpu.dma_semaphore, #tpu.memory_space<semaphore_mem>>) src(%160 : memref<6x4x8x128xbf16, #tpu.memory_space<any>>) dst(%arg11 : memref<6x4x8x128xbf16, #tpu.memory_space<vmem>>)
      tpu.yield
    }) : () -> ()
    %c0_15 = arith.constant 0 : index
    %c0_16 = arith.constant 0 : index
    %c0_17 = arith.constant 0 : index
    %c0_18 = arith.constant 0 : index
    %9 = vector.load %arg11[%c0_15, %c0_16, %c0_17, %c0_18] : memref<6x4x8x128xbf16, #tpu.memory_space<vmem>>, vector<6x4x8x128xbf16>
    %c0_19 = arith.constant 0 : index
    %c1_20 = arith.constant 1 : index
    %c1_21 = arith.constant 1 : index
    %c0_22 = arith.constant 0 : index
    %10 = vector.load %arg10[%c0_19, %c1_20, %c1_21, %c0_22] : memref<6x6x10x128xbf16, #tpu.memory_space<vmem>>, vector<6x4x8x128xbf16>
    tpu.vector_store %arg10[%c0_19, %c1_20, %c1_21, %c0_22], %9 {strides = array<i32>} : memref<6x6x10x128xbf16, #tpu.memory_space<vmem>>, vector<6x4x8x128xbf16>,
    %c0_23 = arith.constant 0 : index
    %c0_24 = arith.constant 0 : index
    %c0_25 = arith.constant 0 : index
    %c0_26 = arith.constant 0 : index
    %11 = vector.load %arg10[%c0_23, %c0_24, %c0_25, %c0_26] : memref<6x6x10x128xbf16, #tpu.memory_space<vmem>>, vector<6x6x8x128xbf16>
    %c0_27 = arith.constant 0 : index
    %c0_28 = arith.constant 0 : index
    %c1_29 = arith.constant 1 : index
    %c0_30 = arith.constant 0 : index
    %12 = vector.load %arg10[%c0_27, %c0_28, %c1_29, %c0_30] : memref<6x6x10x128xbf16, #tpu.memory_space<vmem>>, vector<6x6x8x128xbf16>
    %c0_31 = arith.constant 0 : index
    %c0_32 = arith.constant 0 : index
    %c2 = arith.constant 2 : index
    %c0_33 = arith.constant 0 : index
    %13 = vector.load %arg10[%c0_31, %c0_32, %c2, %c0_33] : memref<6x6x10x128xbf16, #tpu.memory_space<vmem>>, vector<6x6x8x128xbf16>
    %14 = tpu.concatenate %11, %12, %13 in 3 : vector<6x6x8x128xbf16>, vector<6x6x8x128xbf16>, vector<6x6x8x128xbf16> -> vector<6x6x8x384xbf16>
    %15 = vector.extract_strided_slice %14 {offsets = [0, 0, 0, 0], sizes = [4, 4, 8, 384], strides = [1, 1, 1, 1]} : vector<6x6x8x384xbf16> to vector<4x4x8x384xbf16>
    %16 = vector.shape_cast %15 : vector<4x4x8x384xbf16> to vector<128x384xbf16>
    %c0_34 = arith.constant 0 : index
    %c0_35 = arith.constant 0 : index
    %c0_36 = arith.constant 0 : index
    %c0_37 = arith.constant 0 : index
    %17 = vector.load %arg3[%c0_34, %c0_35, %c0_36, %c0_37] : memref<3x3x384x128xbf16, #tpu.memory_space<vmem>>, vector<1x1x384x128xbf16>
    %18 = vector.shape_cast %17 : vector<1x1x384x128xbf16> to vector<384x128xbf16>
    %cst_38 = arith.constant dense<0.000000e+00> : vector<128x128xf32>
    %19 = tpu.matmul %16, %18, %cst_38 {dimension_numbers = #tpu.dot_dimension_numbers<[1], [0], [0], [1], [0, 0, 1, 1], [], []>} : vector<128x384xbf16>, vector<384x128xbf16>, vector<128x128xf32> -> vector<128x128xf32>
    %c0_39 = arith.constant 0 : index
    %c0_40 = arith.constant 0 : index
    %20 = vector.load %arg4[%c0_39, %c0_40] : memref<1x128xf32, #tpu.memory_space<vmem>>, vector<1x128xf32>
    %21 = vector.broadcast %20 : vector<1x128xf32> to vector<128x128xf32>
    %22 = arith.addf %19, %21 : vector<128x128xf32>
    %23 = vector.extract_strided_slice %14 {offsets = [0, 1, 0, 0], sizes = [4, 4, 8, 384], strides = [1, 1, 1, 1]} : vector<6x6x8x384xbf16> to vector<4x4x8x384xbf16>
    %24 = vector.shape_cast %23 : vector<4x4x8x384xbf16> to vector<128x384xbf16>
    %c0_41 = arith.constant 0 : index
    %c1_42 = arith.constant 1 : index
    %c0_43 = arith.constant 0 : index
    %c0_44 = arith.constant 0 : index
    %25 = vector.load %arg3[%c0_41, %c1_42, %c0_43, %c0_44] : memref<3x3x384x128xbf16, #tpu.memory_space<vmem>>, vector<1x1x384x128xbf16>
    %26 = vector.shape_cast %25 : vector<1x1x384x128xbf16> to vector<384x128xbf16>
    %cst_45 = arith.constant dense<0.000000e+00> : vector<128x128xf32>
    %27 = tpu.matmul %24, %26, %cst_45 {dimension_numbers = #tpu.dot_dimension_numbers<[1], [0], [0], [1], [0, 0, 1, 1], [], []>} : vector<128x384xbf16>, vector<384x128xbf16>, vector<128x128xf32> -> vector<128x128xf32>
    %28 = arith.addf %22, %27 : vector<128x128xf32>
    %29 = vector.extract_strided_slice %14 {offsets = [0, 2, 0, 0], sizes = [4, 4, 8, 384], strides = [1, 1, 1, 1]} : vector<6x6x8x384xbf16> to vector<4x4x8x384xbf16>
    %30 = vector.shape_cast %29 : vector<4x4x8x384xbf16> to vector<128x384xbf16>
    %c0_46 = arith.constant 0 : index
    %c2_47 = arith.constant 2 : index
    %c0_48 = arith.constant 0 : index
    %c0_49 = arith.constant 0 : index
    %31 = vector.load %arg3[%c0_46, %c2_47, %c0_48, %c0_49] : memref<3x3x384x128xbf16, #tpu.memory_space<vmem>>, vector<1x1x384x128xbf16>
    %32 = vector.shape_cast %31 : vector<1x1x384x128xbf16> to vector<384x128xbf16>
    %cst_50 = arith.constant dense<0.000000e+00> : vector<128x128xf32>
    %33 = tpu.matmul %30, %32, %cst_50 {dimension_numbers = #tpu.dot_dimension_numbers<[1], [0], [0], [1], [0, 0, 1, 1], [], []>} : vector<128x384xbf16>, vector<384x128xbf16>, vector<128x128xf32> -> vector<128x128xf32>
    %34 = arith.addf %28, %33 : vector<128x128xf32>
    %35 = vector.extract_strided_slice %14 {offsets = [1, 0, 0, 0], sizes = [4, 4, 8, 384], strides = [1, 1, 1, 1]} : vector<6x6x8x384xbf16> to vector<4x4x8x384xbf16>
    %36 = vector.shape_cast %35 : vector<4x4x8x384xbf16> to vector<128x384xbf16>
    %c1_51 = arith.constant 1 : index
    %c0_52 = arith.constant 0 : index
    %c0_53 = arith.constant 0 : index
    %c0_54 = arith.constant 0 : index
    %37 = vector.load %arg3[%c1_51, %c0_52, %c0_53, %c0_54] : memref<3x3x384x128xbf16, #tpu.memory_space<vmem>>, vector<1x1x384x128xbf16>
    %38 = vector.shape_cast %37 : vector<1x1x384x128xbf16> to vector<384x128xbf16>
    %cst_55 = arith.constant dense<0.000000e+00> : vector<128x128xf32>
    %39 = tpu.matmul %36, %38, %cst_55 {dimension_numbers = #tpu.dot_dimension_numbers<[1], [0], [0], [1], [0, 0, 1, 1], [], []>} : vector<128x384xbf16>, vector<384x128xbf16>, vector<128x128xf32> -> vector<128x128xf32>
    %40 = arith.addf %34, %39 : vector<128x128xf32>
    %41 = vector.extract_strided_slice %14 {offsets = [1, 1, 0, 0], sizes = [4, 4, 8, 384], strides = [1, 1, 1, 1]} : vector<6x6x8x384xbf16> to vector<4x4x8x384xbf16>
    %42 = vector.shape_cast %41 : vector<4x4x8x384xbf16> to vector<128x384xbf16>
    %c1_56 = arith.constant 1 : index
    %c1_57 = arith.constant 1 : index
    %c0_58 = arith.constant 0 : index
    %c0_59 = arith.constant 0 : index
    %43 = vector.load %arg3[%c1_56, %c1_57, %c0_58, %c0_59] : memref<3x3x384x128xbf16, #tpu.memory_space<vmem>>, vector<1x1x384x128xbf16>
    %44 = vector.shape_cast %43 : vector<1x1x384x128xbf16> to vector<384x128xbf16>
    %cst_60 = arith.constant dense<0.000000e+00> : vector<128x128xf32>
    %45 = tpu.matmul %42, %44, %cst_60 {dimension_numbers = #tpu.dot_dimension_numbers<[1], [0], [0], [1], [0, 0, 1, 1], [], []>} : vector<128x384xbf16>, vector<384x128xbf16>, vector<128x128xf32> -> vector<128x128xf32>
    %46 = arith.addf %40, %45 : vector<128x128xf32>
    %47 = vector.extract_strided_slice %14 {offsets = [1, 2, 0, 0], sizes = [4, 4, 8, 384], strides = [1, 1, 1, 1]} : vector<6x6x8x384xbf16> to vector<4x4x8x384xbf16>
    %48 = vector.shape_cast %47 : vector<4x4x8x384xbf16> to vector<128x384xbf16>
    %c1_61 = arith.constant 1 : index
    %c2_62 = arith.constant 2 : index
    %c0_63 = arith.constant 0 : index
    %c0_64 = arith.constant 0 : index
    %49 = vector.load %arg3[%c1_61, %c2_62, %c0_63, %c0_64] : memref<3x3x384x128xbf16, #tpu.memory_space<vmem>>, vector<1x1x384x128xbf16>
    %50 = vector.shape_cast %49 : vector<1x1x384x128xbf16> to vector<384x128xbf16>
    %cst_65 = arith.constant dense<0.000000e+00> : vector<128x128xf32>
    %51 = tpu.matmul %48, %50, %cst_65 {dimension_numbers = #tpu.dot_dimension_numbers<[1], [0], [0], [1], [0, 0, 1, 1], [], []>} : vector<128x384xbf16>, vector<384x128xbf16>, vector<128x128xf32> -> vector<128x128xf32>
    %52 = arith.addf %46, %51 : vector<128x128xf32>
    %53 = vector.extract_strided_slice %14 {offsets = [2, 0, 0, 0], sizes = [4, 4, 8, 384], strides = [1, 1, 1, 1]} : vector<6x6x8x384xbf16> to vector<4x4x8x384xbf16>
    %54 = vector.shape_cast %53 : vector<4x4x8x384xbf16> to vector<128x384xbf16>
    %c2_66 = arith.constant 2 : index
    %c0_67 = arith.constant 0 : index
    %c0_68 = arith.constant 0 : index
    %c0_69 = arith.constant 0 : index
    %55 = vector.load %arg3[%c2_66, %c0_67, %c0_68, %c0_69] : memref<3x3x384x128xbf16, #tpu.memory_space<vmem>>, vector<1x1x384x128xbf16>
    %56 = vector.shape_cast %55 : vector<1x1x384x128xbf16> to vector<384x128xbf16>
    %cst_70 = arith.constant dense<0.000000e+00> : vector<128x128xf32>
    %57 = tpu.matmul %54, %56, %cst_70 {dimension_numbers = #tpu.dot_dimension_numbers<[1], [0], [0], [1], [0, 0, 1, 1], [], []>} : vector<128x384xbf16>, vector<384x128xbf16>, vector<128x128xf32> -> vector<128x128xf32>
    %58 = arith.addf %52, %57 : vector<128x128xf32>
    %59 = vector.extract_strided_slice %14 {offsets = [2, 1, 0, 0], sizes = [4, 4, 8, 384], strides = [1, 1, 1, 1]} : vector<6x6x8x384xbf16> to vector<4x4x8x384xbf16>
    %60 = vector.shape_cast %59 : vector<4x4x8x384xbf16> to vector<128x384xbf16>
    %c2_71 = arith.constant 2 : index
    %c1_72 = arith.constant 1 : index
    %c0_73 = arith.constant 0 : index
    %c0_74 = arith.constant 0 : index
    %61 = vector.load %arg3[%c2_71, %c1_72, %c0_73, %c0_74] : memref<3x3x384x128xbf16, #tpu.memory_space<vmem>>, vector<1x1x384x128xbf16>
    %62 = vector.shape_cast %61 : vector<1x1x384x128xbf16> to vector<384x128xbf16>
    %cst_75 = arith.constant dense<0.000000e+00> : vector<128x128xf32>
    %63 = tpu.matmul %60, %62, %cst_75 {dimension_numbers = #tpu.dot_dimension_numbers<[1], [0], [0], [1], [0, 0, 1, 1], [], []>} : vector<128x384xbf16>, vector<384x128xbf16>, vector<128x128xf32> -> vector<128x128xf32>
    %64 = arith.addf %58, %63 : vector<128x128xf32>
    %65 = vector.extract_strided_slice %14 {offsets = [2, 2, 0, 0], sizes = [4, 4, 8, 384], strides = [1, 1, 1, 1]} : vector<6x6x8x384xbf16> to vector<4x4x8x384xbf16>
    %66 = vector.shape_cast %65 : vector<4x4x8x384xbf16> to vector<128x384xbf16>
    %c2_76 = arith.constant 2 : index
    %c2_77 = arith.constant 2 : index
    %c0_78 = arith.constant 0 : index
    %c0_79 = arith.constant 0 : index
    %67 = vector.load %arg3[%c2_76, %c2_77, %c0_78, %c0_79] : memref<3x3x384x128xbf16, #tpu.memory_space<vmem>>, vector<1x1x384x128xbf16>
    %68 = vector.shape_cast %67 : vector<1x1x384x128xbf16> to vector<384x128xbf16>
    %cst_80 = arith.constant dense<0.000000e+00> : vector<128x128xf32>
    %69 = tpu.matmul %66, %68, %cst_80 {dimension_numbers = #tpu.dot_dimension_numbers<[1], [0], [0], [1], [0, 0, 1, 1], [], []>} : vector<128x384xbf16>, vector<384x128xbf16>, vector<128x128xf32> -> vector<128x128xf32>
    %70 = arith.addf %64, %69 : vector<128x128xf32>
    %cst_81 = arith.constant 0.000000e+00 : f32
    %71 = vector.broadcast %cst_81 : f32 to vector<128x128xf32>
    %72 = arith.maximumf %70, %71 : vector<128x128xf32>
    %73 = vector.shape_cast %72 : vector<128x128xf32> to vector<4x4x8x128xf32>
    %74 = arith.truncf %73 : vector<4x4x8x128xf32> to vector<4x4x8x128xbf16>
    %c1_82 = arith.constant 1 : index
    %c1_83 = arith.constant 1 : index
    %c1_84 = arith.constant 1 : index
    %c0_85 = arith.constant 0 : index
    %75 = vector.load %arg10[%c1_82, %c1_83, %c1_84, %c0_85] : memref<6x6x10x128xbf16, #tpu.memory_space<vmem>>, vector<4x4x8x128xbf16>
    tpu.vector_store %arg10[%c1_82, %c1_83, %c1_84, %c0_85], %74 {strides = array<i32>} : memref<6x6x10x128xbf16, #tpu.memory_space<vmem>>, vector<4x4x8x128xbf16>,
    %c0_i32 = arith.constant 0 : i32
    %76 = arith.cmpi eq, %arg1, %c0_i32 : i32
    %77 = arith.extui %76 : i1 to i32
    %c0_i32_86 = arith.constant 0 : i32
    %78 = arith.cmpi ne, %77, %c0_i32_86 : i32
    scf.if %78 {
      %cst_159 = arith.constant 0.000000e+00 : bf16
      %156 = vector.broadcast %cst_159 : bf16 to vector<1x4x8x128xbf16>
      %c1_160 = arith.constant 1 : index
      %c1_161 = arith.constant 1 : index
      %c1_162 = arith.constant 1 : index
      %c0_163 = arith.constant 0 : index
      %157 = vector.load %arg10[%c1_160, %c1_161, %c1_162, %c0_163] : memref<6x6x10x128xbf16, #tpu.memory_space<vmem>>, vector<1x4x8x128xbf16>
      tpu.vector_store %arg10[%c1_160, %c1_161, %c1_162, %c0_163], %156 {strides = array<i32>} : memref<6x6x10x128xbf16, #tpu.memory_space<vmem>>, vector<1x4x8x128xbf16>,
    } else {
    }
    %c1_i32 = arith.constant 1 : i32
    %79 = arith.cmpi eq, %arg1, %c1_i32 : i32
    %80 = arith.extui %79 : i1 to i32
    %c0_i32_87 = arith.constant 0 : i32
    %81 = arith.cmpi ne, %80, %c0_i32_87 : i32
    scf.if %81 {
      %cst_159 = arith.constant 0.000000e+00 : bf16
      %156 = vector.broadcast %cst_159 : bf16 to vector<1x4x8x128xbf16>
      %c4 = arith.constant 4 : index
      %c1_160 = arith.constant 1 : index
      %c1_161 = arith.constant 1 : index
      %c0_162 = arith.constant 0 : index
      %157 = vector.load %arg10[%c4, %c1_160, %c1_161, %c0_162] : memref<6x6x10x128xbf16, #tpu.memory_space<vmem>>, vector<1x4x8x128xbf16>
      tpu.vector_store %arg10[%c4, %c1_160, %c1_161, %c0_162], %156 {strides = array<i32>} : memref<6x6x10x128xbf16, #tpu.memory_space<vmem>>, vector<1x4x8x128xbf16>,
    } else {
    }
    %c1_88 = arith.constant 1 : index
    %c0_89 = arith.constant 0 : index
    %c0_90 = arith.constant 0 : index
    %c0_91 = arith.constant 0 : index
    %82 = vector.load %arg10[%c1_88, %c0_89, %c0_90, %c0_91] : memref<6x6x10x128xbf16, #tpu.memory_space<vmem>>, vector<4x6x8x128xbf16>
    %c1_92 = arith.constant 1 : index
    %c0_93 = arith.constant 0 : index
    %c1_94 = arith.constant 1 : index
    %c0_95 = arith.constant 0 : index
    %83 = vector.load %arg10[%c1_92, %c0_93, %c1_94, %c0_95] : memref<6x6x10x128xbf16, #tpu.memory_space<vmem>>, vector<4x6x8x128xbf16>
    %c1_96 = arith.constant 1 : index
    %c0_97 = arith.constant 0 : index
    %c2_98 = arith.constant 2 : index
    %c0_99 = arith.constant 0 : index
    %84 = vector.load %arg10[%c1_96, %c0_97, %c2_98, %c0_99] : memref<6x6x10x128xbf16, #tpu.memory_space<vmem>>, vector<4x6x8x128xbf16>
    %85 = tpu.concatenate %82, %83, %84 in 3 : vector<4x6x8x128xbf16>, vector<4x6x8x128xbf16>, vector<4x6x8x128xbf16> -> vector<4x6x8x384xbf16>
    %86 = vector.extract_strided_slice %85 {offsets = [0, 0, 0, 0], sizes = [2, 4, 8, 384], strides = [1, 1, 1, 1]} : vector<4x6x8x384xbf16> to vector<2x4x8x384xbf16>
    %87 = vector.shape_cast %86 : vector<2x4x8x384xbf16> to vector<64x384xbf16>
    %c0_100 = arith.constant 0 : index
    %c0_101 = arith.constant 0 : index
    %c0_102 = arith.constant 0 : index
    %c0_103 = arith.constant 0 : index
    %88 = vector.load %arg5[%c0_100, %c0_101, %c0_102, %c0_103] : memref<3x3x384x128xbf16, #tpu.memory_space<vmem>>, vector<1x1x384x128xbf16>
    %89 = vector.shape_cast %88 : vector<1x1x384x128xbf16> to vector<384x128xbf16>
    %cst_104 = arith.constant dense<0.000000e+00> : vector<64x128xf32>
    %90 = tpu.matmul %87, %89, %cst_104 {dimension_numbers = #tpu.dot_dimension_numbers<[1], [0], [0], [1], [0, 0, 1, 1], [], []>} : vector<64x384xbf16>, vector<384x128xbf16>, vector<64x128xf32> -> vector<64x128xf32>
    %c0_105 = arith.constant 0 : index
    %c0_106 = arith.constant 0 : index
    %91 = vector.load %arg6[%c0_105, %c0_106] : memref<1x128xf32, #tpu.memory_space<vmem>>, vector<1x128xf32>
    %92 = vector.broadcast %91 : vector<1x128xf32> to vector<64x128xf32>
    %93 = arith.addf %90, %92 : vector<64x128xf32>
    %94 = vector.extract_strided_slice %85 {offsets = [0, 1, 0, 0], sizes = [2, 4, 8, 384], strides = [1, 1, 1, 1]} : vector<4x6x8x384xbf16> to vector<2x4x8x384xbf16>
    %95 = vector.shape_cast %94 : vector<2x4x8x384xbf16> to vector<64x384xbf16>
    %c0_107 = arith.constant 0 : index
    %c1_108 = arith.constant 1 : index
    %c0_109 = arith.constant 0 : index
    %c0_110 = arith.constant 0 : index
    %96 = vector.load %arg5[%c0_107, %c1_108, %c0_109, %c0_110] : memref<3x3x384x128xbf16, #tpu.memory_space<vmem>>, vector<1x1x384x128xbf16>
    %97 = vector.shape_cast %96 : vector<1x1x384x128xbf16> to vector<384x128xbf16>
    %cst_111 = arith.constant dense<0.000000e+00> : vector<64x128xf32>
    %98 = tpu.matmul %95, %97, %cst_111 {dimension_numbers = #tpu.dot_dimension_numbers<[1], [0], [0], [1], [0, 0, 1, 1], [], []>} : vector<64x384xbf16>, vector<384x128xbf16>, vector<64x128xf32> -> vector<64x128xf32>
    %99 = arith.addf %93, %98 : vector<64x128xf32>
    %100 = vector.extract_strided_slice %85 {offsets = [0, 2, 0, 0], sizes = [2, 4, 8, 384], strides = [1, 1, 1, 1]} : vector<4x6x8x384xbf16> to vector<2x4x8x384xbf16>
    %101 = vector.shape_cast %100 : vector<2x4x8x384xbf16> to vector<64x384xbf16>
    %c0_112 = arith.constant 0 : index
    %c2_113 = arith.constant 2 : index
    %c0_114 = arith.constant 0 : index
    %c0_115 = arith.constant 0 : index
    %102 = vector.load %arg5[%c0_112, %c2_113, %c0_114, %c0_115] : memref<3x3x384x128xbf16, #tpu.memory_space<vmem>>, vector<1x1x384x128xbf16>
    %103 = vector.shape_cast %102 : vector<1x1x384x128xbf16> to vector<384x128xbf16>
    %cst_116 = arith.constant dense<0.000000e+00> : vector<64x128xf32>
    %104 = tpu.matmul %101, %103, %cst_116 {dimension_numbers = #tpu.dot_dimension_numbers<[1], [0], [0], [1], [0, 0, 1, 1], [], []>} : vector<64x384xbf16>, vector<384x128xbf16>, vector<64x128xf32> -> vector<64x128xf32>
    %105 = arith.addf %99, %104 : vector<64x128xf32>
    %106 = vector.extract_strided_slice %85 {offsets = [1, 0, 0, 0], sizes = [2, 4, 8, 384], strides = [1, 1, 1, 1]} : vector<4x6x8x384xbf16> to vector<2x4x8x384xbf16>
    %107 = vector.shape_cast %106 : vector<2x4x8x384xbf16> to vector<64x384xbf16>
    %c1_117 = arith.constant 1 : index
    %c0_118 = arith.constant 0 : index
    %c0_119 = arith.constant 0 : index
    %c0_120 = arith.constant 0 : index
    %108 = vector.load %arg5[%c1_117, %c0_118, %c0_119, %c0_120] : memref<3x3x384x128xbf16, #tpu.memory_space<vmem>>, vector<1x1x384x128xbf16>
    %109 = vector.shape_cast %108 : vector<1x1x384x128xbf16> to vector<384x128xbf16>
    %cst_121 = arith.constant dense<0.000000e+00> : vector<64x128xf32>
    %110 = tpu.matmul %107, %109, %cst_121 {dimension_numbers = #tpu.dot_dimension_numbers<[1], [0], [0], [1], [0, 0, 1, 1], [], []>} : vector<64x384xbf16>, vector<384x128xbf16>, vector<64x128xf32> -> vector<64x128xf32>
    %111 = arith.addf %105, %110 : vector<64x128xf32>
    %112 = vector.extract_strided_slice %85 {offsets = [1, 1, 0, 0], sizes = [2, 4, 8, 384], strides = [1, 1, 1, 1]} : vector<4x6x8x384xbf16> to vector<2x4x8x384xbf16>
    %113 = vector.shape_cast %112 : vector<2x4x8x384xbf16> to vector<64x384xbf16>
    %c1_122 = arith.constant 1 : index
    %c1_123 = arith.constant 1 : index
    %c0_124 = arith.constant 0 : index
    %c0_125 = arith.constant 0 : index
    %114 = vector.load %arg5[%c1_122, %c1_123, %c0_124, %c0_125] : memref<3x3x384x128xbf16, #tpu.memory_space<vmem>>, vector<1x1x384x128xbf16>
    %115 = vector.shape_cast %114 : vector<1x1x384x128xbf16> to vector<384x128xbf16>
    %cst_126 = arith.constant dense<0.000000e+00> : vector<64x128xf32>
    %116 = tpu.matmul %113, %115, %cst_126 {dimension_numbers = #tpu.dot_dimension_numbers<[1], [0], [0], [1], [0, 0, 1, 1], [], []>} : vector<64x384xbf16>, vector<384x128xbf16>, vector<64x128xf32> -> vector<64x128xf32>
    %117 = arith.addf %111, %116 : vector<64x128xf32>
    %118 = vector.extract_strided_slice %85 {offsets = [1, 2, 0, 0], sizes = [2, 4, 8, 384], strides = [1, 1, 1, 1]} : vector<4x6x8x384xbf16> to vector<2x4x8x384xbf16>
    %119 = vector.shape_cast %118 : vector<2x4x8x384xbf16> to vector<64x384xbf16>
    %c1_127 = arith.constant 1 : index
    %c2_128 = arith.constant 2 : index
    %c0_129 = arith.constant 0 : index
    %c0_130 = arith.constant 0 : index
    %120 = vector.load %arg5[%c1_127, %c2_128, %c0_129, %c0_130] : memref<3x3x384x128xbf16, #tpu.memory_space<vmem>>, vector<1x1x384x128xbf16>
    %121 = vector.shape_cast %120 : vector<1x1x384x128xbf16> to vector<384x128xbf16>
    %cst_131 = arith.constant dense<0.000000e+00> : vector<64x128xf32>
    %122 = tpu.matmul %119, %121, %cst_131 {dimension_numbers = #tpu.dot_dimension_numbers<[1], [0], [0], [1], [0, 0, 1, 1], [], []>} : vector<64x384xbf16>, vector<384x128xbf16>, vector<64x128xf32> -> vector<64x128xf32>
    %123 = arith.addf %117, %122 : vector<64x128xf32>
    %124 = vector.extract_strided_slice %85 {offsets = [2, 0, 0, 0], sizes = [2, 4, 8, 384], strides = [1, 1, 1, 1]} : vector<4x6x8x384xbf16> to vector<2x4x8x384xbf16>
    %125 = vector.shape_cast %124 : vector<2x4x8x384xbf16> to vector<64x384xbf16>
    %c2_132 = arith.constant 2 : index
    %c0_133 = arith.constant 0 : index
    %c0_134 = arith.constant 0 : index
    %c0_135 = arith.constant 0 : index
    %126 = vector.load %arg5[%c2_132, %c0_133, %c0_134, %c0_135] : memref<3x3x384x128xbf16, #tpu.memory_space<vmem>>, vector<1x1x384x128xbf16>
    %127 = vector.shape_cast %126 : vector<1x1x384x128xbf16> to vector<384x128xbf16>
    %cst_136 = arith.constant dense<0.000000e+00> : vector<64x128xf32>
    %128 = tpu.matmul %125, %127, %cst_136 {dimension_numbers = #tpu.dot_dimension_numbers<[1], [0], [0], [1], [0, 0, 1, 1], [], []>} : vector<64x384xbf16>, vector<384x128xbf16>, vector<64x128xf32> -> vector<64x128xf32>
    %129 = arith.addf %123, %128 : vector<64x128xf32>
    %130 = vector.extract_strided_slice %85 {offsets = [2, 1, 0, 0], sizes = [2, 4, 8, 384], strides = [1, 1, 1, 1]} : vector<4x6x8x384xbf16> to vector<2x4x8x384xbf16>
    %131 = vector.shape_cast %130 : vector<2x4x8x384xbf16> to vector<64x384xbf16>
    %c2_137 = arith.constant 2 : index
    %c1_138 = arith.constant 1 : index
    %c0_139 = arith.constant 0 : index
    %c0_140 = arith.constant 0 : index
    %132 = vector.load %arg5[%c2_137, %c1_138, %c0_139, %c0_140] : memref<3x3x384x128xbf16, #tpu.memory_space<vmem>>, vector<1x1x384x128xbf16>
    %133 = vector.shape_cast %132 : vector<1x1x384x128xbf16> to vector<384x128xbf16>
    %cst_141 = arith.constant dense<0.000000e+00> : vector<64x128xf32>
    %134 = tpu.matmul %131, %133, %cst_141 {dimension_numbers = #tpu.dot_dimension_numbers<[1], [0], [0], [1], [0, 0, 1, 1], [], []>} : vector<64x384xbf16>, vector<384x128xbf16>, vector<64x128xf32> -> vector<64x128xf32>
    %135 = arith.addf %129, %134 : vector<64x128xf32>
    %136 = vector.extract_strided_slice %85 {offsets = [2, 2, 0, 0], sizes = [2, 4, 8, 384], strides = [1, 1, 1, 1]} : vector<4x6x8x384xbf16> to vector<2x4x8x384xbf16>
    %137 = vector.shape_cast %136 : vector<2x4x8x384xbf16> to vector<64x384xbf16>
    %c2_142 = arith.constant 2 : index
    %c2_143 = arith.constant 2 : index
    %c0_144 = arith.constant 0 : index
    %c0_145 = arith.constant 0 : index
    %138 = vector.load %arg5[%c2_142, %c2_143, %c0_144, %c0_145] : memref<3x3x384x128xbf16, #tpu.memory_space<vmem>>, vector<1x1x384x128xbf16>
    %139 = vector.shape_cast %138 : vector<1x1x384x128xbf16> to vector<384x128xbf16>
    %cst_146 = arith.constant dense<0.000000e+00> : vector<64x128xf32>
    %140 = tpu.matmul %137, %139, %cst_146 {dimension_numbers = #tpu.dot_dimension_numbers<[1], [0], [0], [1], [0, 0, 1, 1], [], []>} : vector<64x384xbf16>, vector<384x128xbf16>, vector<64x128xf32> -> vector<64x128xf32>
    %141 = arith.addf %135, %140 : vector<64x128xf32>
    %cst_147 = arith.constant 0.000000e+00 : f32
    %142 = vector.broadcast %cst_147 : f32 to vector<64x128xf32>
    %143 = arith.maximumf %141, %142 : vector<64x128xf32>
    %144 = arith.truncf %143 : vector<64x128xf32> to vector<64x128xbf16>
    %c0_148 = arith.constant 0 : index
    %c0_149 = arith.constant 0 : index
    %145 = vector.load %arg7[%c0_148, %c0_149] : memref<128x128xbf16, #tpu.memory_space<vmem>>, vector<128x128xbf16>
    %cst_150 = arith.constant dense<0.000000e+00> : vector<64x128xf32>
    %146 = tpu.matmul %144, %145, %cst_150 {dimension_numbers = #tpu.dot_dimension_numbers<[1], [0], [0], [1], [0, 0, 1, 1], [], []>} : vector<64x128xbf16>, vector<128x128xbf16>, vector<64x128xf32> -> vector<64x128xf32>
    %c0_151 = arith.constant 0 : index
    %c0_152 = arith.constant 0 : index
    %147 = vector.load %arg8[%c0_151, %c0_152] : memref<1x128xf32, #tpu.memory_space<vmem>>, vector<1x128xf32>
    %148 = vector.broadcast %147 : vector<1x128xf32> to vector<64x128xf32>
    %149 = arith.addf %146, %148 : vector<64x128xf32>
    %cst_153 = arith.constant 0.000000e+00 : f32
    %150 = vector.broadcast %cst_153 : f32 to vector<64x128xf32>
    %151 = arith.maximumf %149, %150 : vector<64x128xf32>
    %152 = vector.shape_cast %151 : vector<64x128xf32> to vector<2x4x8x128xf32>
    %c0_154 = arith.constant 0 : index
    %c0_155 = arith.constant 0 : index
    %c0_156 = arith.constant 0 : index
    %c0_157 = arith.constant 0 : index
    %c0_158 = arith.constant 0 : index
    %153 = vector.load %arg9[%c0_154, %c0_155, %c0_156, %c0_157, %c0_158] : memref<1x2x4x8x128xf32, #tpu.memory_space<vmem>>, vector<1x2x4x8x128xf32>
    %154 = vector.shape_cast %153 : vector<1x2x4x8x128xf32> to vector<2x4x8x128xf32>
    %155 = vector.shape_cast %152 : vector<2x4x8x128xf32> to vector<1x2x4x8x128xf32>
    tpu.vector_store %arg9[%c0_154, %c0_155, %c0_156, %c0_157, %c0_158], %155 {strides = array<i32>} : memref<1x2x4x8x128xf32, #tpu.memory_space<vmem>>, vector<1x2x4x8x128xf32>,
    return
  }
  func.func @transform_1(%arg0: i32, %arg1: i32) -> (i32, i32, i32, i32) {
    %c0_i32 = arith.constant 0 : i32
    %c0_i32_0 = arith.constant 0 : i32
    %c0_i32_1 = arith.constant 0 : i32
    %c0_i32_2 = arith.constant 0 : i32
    %c0_i32_3 = arith.constant 0 : i32
    return %c0_i32, %c0_i32_0, %c0_i32_1, %c0_i32_2 : i32, i32, i32, i32
  }
  func.func @transform_2(%arg0: i32, %arg1: i32) -> (i32, i32) {
    %c0_i32 = arith.constant 0 : i32
    %c0_i32_0 = arith.constant 0 : i32
    %c0_i32_1 = arith.constant 0 : i32
    return %c0_i32, %c0_i32_0 : i32, i32
  }
  func.func @transform_3(%arg0: i32, %arg1: i32) -> (i32, i32, i32, i32) {
    %c0_i32 = arith.constant 0 : i32
    %c0_i32_0 = arith.constant 0 : i32
    %c0_i32_1 = arith.constant 0 : i32
    %c0_i32_2 = arith.constant 0 : i32
    %c0_i32_3 = arith.constant 0 : i32
    return %c0_i32, %c0_i32_0, %c0_i32_1, %c0_i32_2 : i32, i32, i32, i32
  }
  func.func @transform_4(%arg0: i32, %arg1: i32) -> (i32, i32) {
    %c0_i32 = arith.constant 0 : i32
    %c0_i32_0 = arith.constant 0 : i32
    %c0_i32_1 = arith.constant 0 : i32
    return %c0_i32, %c0_i32_0 : i32, i32
  }
  func.func @transform_5(%arg0: i32, %arg1: i32) -> (i32, i32) {
    %c0_i32 = arith.constant 0 : i32
    %c0_i32_0 = arith.constant 0 : i32
    %c0_i32_1 = arith.constant 0 : i32
    return %c0_i32, %c0_i32_0 : i32, i32
  }
  func.func @transform_6(%arg0: i32, %arg1: i32) -> (i32, i32) {
    %c0_i32 = arith.constant 0 : i32
    %c0_i32_0 = arith.constant 0 : i32
    %c0_i32_1 = arith.constant 0 : i32
    return %c0_i32, %c0_i32_0 : i32, i32
  }
  func.func @transform_7(%arg0: i32, %arg1: i32) -> (i32, i32, i32, i32, i32) {
    %c0_i32 = arith.constant 0 : i32
    %c0_i32_0 = arith.constant 0 : i32
    %c0_i32_1 = arith.constant 0 : i32
    %c0_i32_2 = arith.constant 0 : i32
    return %arg0, %arg1, %c0_i32, %c0_i32_0, %c0_i32_1 : i32, i32, i32, i32, i32
  }
}

</mosaic_0001>

<bundles_post_ra>
// kernel: tpu_custom_call.1
= control target key start
LH: loop header
LB: loop body
LE: loop exit
PB: predicated region body
PF: predicated region fallthrough
CT: control target
= control target key end

     0   :  { %s16011_s0 = inlined_call_operand.hbm [shape: bf16[2,8,4,8,128], index: 0, kind: input, shape index: {}]   ;;  %s16012_s1 = inlined_call_operand.hbm [shape: bf16[3,3,384,128], index: 1, kind: input, shape index: {}]   ;;  %s16013_s2 = inlined_call_operand.hbm [shape: f32[1,128], index: 2, kind: input, shape index: {}]   ;;  %s16014_s3 = inlined_call_operand.hbm [shape: bf16[3,3,384,128], index: 3, kind: input, shape index: {}]   ;;  %s16015_s4 = inlined_call_operand.hbm [shape: f32[1,128], index: 4, kind: input, shape index: {}]   ;;  %s16016_s5 = inlined_call_operand.hbm [shape: bf16[128,128], index: 5, kind: input, shape index: {}]   ;;  %s16017_s6 = inlined_call_operand.hbm [shape: f32[1,128], index: 6, kind: input, shape index: {}]   ;;  %s16018_s7 = inlined_call_operand.hbm [shape: f32[2,4,4,8,128], index: 7, kind: output, shape index: {}]  }
   0x1   :  { %16089 = sst [smem:[#allocation65_spill]] %s16013_s2 }
   0x2   :  { %16090 = sst [smem:[#allocation66_spill]] %s16015_s4 }
   0x3   :  { %12 = vsyncpa [#allocation5], 0 }
   0x4   :  { %13 = vsyncpa [#allocation8], 0 }
   0x5   :  { %14 = vsyncpa [#allocation11], 0 }
   0x6   :  { %15 = vsyncpa [#allocation14], 0 }
   0x7   :  { %16 = vsyncpa [#allocation6], 0 }
   0x8   :  { %18 = vsyncpa [#allocation6 + $0x1], 0  ;;  %s13807_s24 = smov 0   ;;  %s13809_s25 = smov 0  }
   0x9   :  { %s13811_s26 = smov 0   ;;  %s13813_s27 = smov 0  }
   0xa   :  { %s13815_s28 = smov 0   ;;  %s13817_s29 = smov 0  }
   0xb   :  { %s13819_s30 = smov 0   ;;  %s13821_s8 = smov 0  }
   0xc LB: > { %16091 = sst [smem:[#allocation27_spill]] %s13732_s26  ;;  %s9796_s9 = sadd.s32 4294967295, %s13752_s8   ;;  %s13752_s8 = sphi %s13821_s8, %s24_s8   ;;  %s13748_s30 = sphi %s13819_s30, %s16215_s30   ;;  %s13744_s29 = sphi %s13817_s29, %s16214_s29   ;;  %s13740_s28 = sphi %s13815_s28, %s16213_s28   ;;  %s13736_s27 = sphi %s13813_s27, %s16212_s27   ;;  %s13732_s26 = sphi %s13811_s26, %s16211_s26   ;;  %s13728_s25 = sphi %s13809_s25, %s16217_s25   ;;  %s13724_s24 = sphi %s13807_s24, %s16216_s24  }
   0xd   : > { %16092 = sst [smem:[#allocation28_spill]] %s13744_s29  ;;  %s9797_s10 = sadd.s32 4294967294, %s13752_s8  }
   0xe   : > { %16093 = sst [smem:[#allocation29_spill]] %s13748_s30  ;;  %s33_s11 = sadd.s32 1, %s13744_s29 }
   0xf   : > { %s36_s12 = sadd.s32 1, %s13748_s30  ;;  %p34_p0 = scmp.ge.s32.totalorder %s33_s11, 2 }
  0x10   : > { %s171_s13 = sadd.s32 1, %s13732_s26  ;;  %p181_p1 = scmp.ne.s32.totalorder %s13732_s26, %s13728_s25 }
  0x11   : > { %p182_p2 = scmp.eq.s32.totalorder %s9796_s9, 3  ;;  %s16219_s11 = smov (%p34_p0, %s33_s11), 0 }
  0x12   : > { %16094 = sst [smem:[#allocation30_spill]] %s16219_s11  ;;  %s16221_s12 = smov (!%p34_p0, %s36_s12), %s13748_s30 }
  0x13   : > { %s167_s14 = ssub.s32 %s13744_s29, %s16219_s11  ;;  %p13859_p3 = por %p182_p2, %p181_p1 }
  0x14   : > { %p38_p4 = scmp.ge.s32.totalorder %s16221_s12, 2  ;;  %p187_p5 = scmp.ne.s32.totalorder %s13728_s25, %s13724_s24 }
  0x15   : > { %s16095_s15 = scalar_select %p13859_p3, 1, 0 }
  0x16   : > { %p188_p6 = scmp.eq.s32.totalorder %s9797_s10, 3  ;;  %p9798_p7 = scmp.ge.s32.totalorder %s13752_s8, 1 }
  0x17   : > { %s16223_s12 = smov (%p38_p4, %s16221_s12), 0  ;;  %p195_p9 = scmp.lt.s32.totalorder %s13752_s8, 5 }
  0x18   : > { %16096 = sst [smem:[#allocation31_spill]] %s16223_s12  ;;  %p13868_p8 = por %p188_p6, %p187_p5 }
  0x19   : > { %s166_s17 = ssub.s32 %s13748_s30, %s16223_s12  ;;  %p13875_p10 = pnand %p9798_p7, %p195_p9 }
  0x1a   : > { %s16097_s16 = scalar_select %p13868_p8, 1, 0 }
  0x1b   : > { %s168_s18 = sor.u32 %s167_s14, %s166_s17  ;;  %p13879_p12 = scmp.eq.s32.totalorder %s9796_s9, 0 }
  0x1c   : > { %s16098_s19 = scalar_select %p13875_p10, 1, 0 }
  0x1d   : > { %p169_p11 = scmp.eq.s32.totalorder %s168_s18, 0  ;;  %p12735_p13 = pneg %p13875_p10 }
  0x1e   : > { %s16099_s20 = scalar_select %p13879_p12, 1, 0 }
  0x1f   : > { %s13886_s21 = scalar_select %p169_p11, %s13732_s26, %s171_s13  }
  0x20   : > { %p13890_p0 = pnand %p13879_p12, %p12735_p13  ;;  %s13754_s23 = smov [#allocation7]  }
  0x21   : > { %16100 = sst [smem:[#allocation32_spill]] %s13886_s21  ;;  %s221_s10 = sshll.u32 %s13754_s23, 4  ;;  %s222_s10 = int_to_ptr.vmem [resolvable:$true] %s221_s10 }
  0x22   : > { %s13755_s14 = smov [#allocation10]   ;;  %s16102_s2 = sld [smem:[#allocation65_spill]] }
  0x23   : > { %s245_s17 = sshll.u32 %s13755_s14, 4  ;;  %p13902_p2 = pneg %p13890_p0  ;;  %s246_s17 = int_to_ptr.vmem [resolvable:$true] %s245_s17 }
  0x28   : > { %s13448_s12 = scalar_lea.hbm %s16102_s2, 16 }
  0x29   : > { %p13449_p1 = scmp.ne.s32.totalorder %s16102_s2, %s13448_s12  ;;  %p13455_p6 = scmp.lt.u32.totalorder %s13448_s12, %s16102_s2 }
  0x2b   : > { %p13451_p4 = pnand %p13902_p2, %p13449_p1 }
  0x2d   : > { %p13452_p5 = pneg %p13451_p4 }
  0x2f   : > { %p13457_p7 = pnand %p13455_p6, %p13452_p5 }
  0x31   : > { %13460 = shalt.err (!%p13457_p7)
}
  0x32   : > { %s13461_s14 = scalar_lea.vmem %s222_s10, 16  ;;  %s13468_s30 = scalar_lea.vmem %s222_s10, 32 }
  0x33   : > { %p13462_p9 = scmp.ne.s32.totalorder %s222_s10, %s13461_s14  ;;  %p13469_p8 = scmp.lt.s32.totalorder %s222_s10, %s222_s10 }
  0x34   : > { %p13470_p3 = scmp.lt.s32.totalorder %s13468_s30, %s13461_s14 }
  0x35   : > { %p13464_p11 = pnand %p13462_p9, %p13902_p2 }
  0x36   : > { %p13471_p12 = por %p13470_p3, %p13469_p8 }
  0x37   : > { %p13465_p13 = pneg %p13464_p11 }
  0x39   : > { %p13472_p10 = pnand %p13471_p12, %p13465_p13 }
  0x3b   : > { %13475 = shalt.err (!%p13472_p10)
}
  0x3c   : > { %12741 = dma.hbm_to_vmem [thread:$0]  (!%p13890_p0), %s16102_s2, 16, %s222_s10, [#allocation8]  }
  0x3d   : > { %s16104_s4 = sld [smem:[#allocation66_spill]] }
  0x43   : > { %s13476_s18 = scalar_lea.hbm %s16104_s4, 16 }
  0x44   : > { %p13477_p1 = scmp.ne.s32.totalorder %s16104_s4, %s13476_s18  ;;  %p13483_p10 = scmp.lt.u32.totalorder %s13476_s18, %s16104_s4 }
  0x46   : > { %p13479_p3 = pnand %p13477_p1, %p13902_p2 }
  0x48   : > { %p13480_p8 = pneg %p13479_p3 }
  0x4a   : > { %p13485_p12 = pnand %p13483_p10, %p13480_p8 }
  0x4c   : > { %13488 = shalt.err (!%p13485_p12)
}
  0x4d   : > { %s13489_s11 = scalar_lea.vmem %s246_s17, 16  ;;  %s13496_s10 = scalar_lea.vmem %s246_s17, 32 }
  0x4e   : > { %p13490_p4 = scmp.ne.s32.totalorder %s246_s17, %s13489_s11  ;;  %p13497_p7 = scmp.lt.s32.totalorder %s246_s17, %s246_s17 }
  0x4f   : > { %p13498_p9 = scmp.lt.s32.totalorder %s13496_s10, %s13489_s11 }
  0x50   : > { %p13492_p5 = pnand %p13490_p4, %p13902_p2 }
  0x51   : > { %p13499_p11 = por %p13498_p9, %p13497_p7 }
  0x52   : > { %p13493_p6 = pneg %p13492_p5 }
  0x54   : > { %p13500_p13 = pnand %p13499_p11, %p13493_p6 }
  0x56   : > { %13503 = shalt.err (!%p13500_p13)
}
  0x57   : > { %12747 = dma.hbm_to_vmem [thread:$0]  (!%p13890_p0), %s16104_s4, 16, %s246_s17, [#allocation11]  }
  0x58   : > { %s13756_s29 = smov [#allocation4]   ;;  %s13504_s14 = scalar_lea.hbm %s16012_s1, 27648 }
  0x59   : > { %s207_s12 = sshll.u32 %s13756_s29, 4  ;;  %p13505_p1 = scmp.ne.s32.totalorder %s16012_s1, %s13504_s14  ;;  %s208_s12 = int_to_ptr.vmem [resolvable:$true] %s207_s12 }
  0x5a   : > { %p13511_p10 = scmp.lt.u32.totalorder %s13504_s14, %s16012_s1 }
  0x5b   : > { %p13507_p3 = pnand %p13505_p1, %p13902_p2 }
  0x5d   : > { %p13508_p8 = pneg %p13507_p3 }
  0x5f   : > { %p13513_p12 = pnand %p13511_p10, %p13508_p8 }
  0x61   : > { %13516 = shalt.err (!%p13513_p12)
}
  0x62   : > { %s13517_s17 = scalar_lea.vmem %s208_s12, 27648  ;;  %p13525_p7 = scmp.lt.s32.totalorder %s208_s12, %s208_s12 }
  0x63   : > { %p13518_p4 = scmp.ne.s32.totalorder %s208_s12, %s13517_s17  ;;  %p13526_p9 = scmp.lt.s32.totalorder %s13517_s17, %s13517_s17 }
  0x65   : > { %p13520_p5 = pnand %p13518_p4, %p13902_p2  ;;  %p13527_p11 = por %p13526_p9, %p13525_p7 }
  0x67   : > { %p13521_p6 = pneg %p13520_p5 }
  0x69   : > { %p13528_p13 = pnand %p13527_p11, %p13521_p6 }
  0x6b   : > { %13531 = shalt.err (!%p13528_p13)
}
  0x6c   : > { %s13757_s2 = smov 64   ;;  %s13758_s21 = smov 4  }
  0x6d   : > { %12738 = dma.hbm_to_vmem [thread:$0]  (!%p13890_p0), %s16012_s1, 27648, %s208_s12, [#allocation5], %s13757_s2, %s13757_s2, %s13758_s21  }
  0x6e   : > { %s13759_s18 = smov [#allocation9]   ;;  %s13760_s14 = smov [#allocation12]  }
  0x6f   : > { %s231_s23 = sshll.u32 %s13759_s18, 4  ;;  %s255_s30 = sshll.u32 %s13760_s14, 4  ;;  %s232_s23 = int_to_ptr.vmem [resolvable:$true] %s231_s23  ;;  %s13957_s30 = int_to_ptr.vmem [resolvable:$true] %s255_s30 }
  0x70   : > { %s13532_s17 = scalar_lea.hbm %s16014_s3, 27648 }
  0x71   : > { %p13533_p1 = scmp.ne.s32.totalorder %s16014_s3, %s13532_s17  ;;  %p13539_p10 = scmp.lt.u32.totalorder %s13532_s17, %s16014_s3 }
  0x73   : > { %p13535_p3 = pnand %p13533_p1, %p13902_p2 }
  0x75   : > { %p13536_p8 = pneg %p13535_p3 }
  0x77   : > { %p13541_p12 = pnand %p13539_p10, %p13536_p8 }
  0x79   : > { %13544 = shalt.err (!%p13541_p12)
}
  0x7a   : > { %s13545_s29 = scalar_lea.vmem %s232_s23, 27648  ;;  %p13553_p7 = scmp.lt.s32.totalorder %s232_s23, %s232_s23 }
  0x7b   : > { %p13546_p4 = scmp.ne.s32.totalorder %s232_s23, %s13545_s29  ;;  %p13554_p9 = scmp.lt.s32.totalorder %s13545_s29, %s13545_s29 }
  0x7d   : > { %p13548_p5 = pnand %p13546_p4, %p13902_p2  ;;  %p13555_p11 = por %p13554_p9, %p13553_p7 }
  0x7f   : > { %p13549_p6 = pneg %p13548_p5 }
  0x81   : > { %p13556_p13 = pnand %p13555_p11, %p13549_p6 }
  0x83   : > { %13559 = shalt.err (!%p13556_p13)
}
  0x84   : > { %12744 = dma.hbm_to_vmem [thread:$0]  (!%p13890_p0), %s16014_s3, 27648, %s232_s23, [#allocation8], %s13757_s2, %s13757_s2, %s13758_s21  }
  0x85   : > { %s13560_s11 = scalar_lea.hbm %s16016_s5, 1024 }
  0x86   : > { %p13561_p1 = scmp.ne.s32.totalorder %s16016_s5, %s13560_s11  ;;  %p13567_p10 = scmp.lt.u32.totalorder %s13560_s11, %s16016_s5 }
  0x88   : > { %p13563_p3 = pnand %p13561_p1, %p13902_p2 }
  0x8a   : > { %p13564_p8 = pneg %p13563_p3 }
  0x8c   : > { %p13569_p12 = pnand %p13567_p10, %p13564_p8 }
  0x8e   : > { %13572 = shalt.err (!%p13569_p12)
}
  0x8f   : > { %s13573_s23 = scalar_lea.vmem %s13957_s30, 1024  ;;  %p13581_p7 = scmp.lt.s32.totalorder %s13957_s30, %s13957_s30 }
  0x90   : > { %p13574_p4 = scmp.ne.s32.totalorder %s13957_s30, %s13573_s23  ;;  %p13582_p9 = scmp.lt.s32.totalorder %s13573_s23, %s13573_s23 }
  0x92   : > { %p13576_p5 = pnand %p13574_p4, %p13902_p2  ;;  %p13583_p11 = por %p13582_p9, %p13581_p7 }
  0x94   : > { %p13577_p6 = pneg %p13576_p5 }
  0x96   : > { %p13584_p13 = pnand %p13583_p11, %p13577_p6 }
  0x98   : > { %13587 = shalt.err (!%p13584_p13)
}
  0x99   : > { %12750 = dma.hbm_to_vmem [thread:$0]  (!%p13890_p0), %s16016_s5, 1024, %s13957_s30, [#allocation11], %s13757_s2, %s13757_s2, %s13758_s21  }
  0x9a   : > { %s13761_s26 = smov [#allocation13]   ;;  %s13588_s10 = scalar_lea.hbm %s16017_s6, 16 }
  0x9b   : > { %s269_s18 = sshll.u32 %s13761_s26, 4  ;;  %p13589_p1 = scmp.ne.s32.totalorder %s16017_s6, %s13588_s10  ;;  %s270_s18 = int_to_ptr.vmem [resolvable:$true] %s269_s18 }
  0x9c   : > { %p13595_p10 = scmp.lt.u32.totalorder %s13588_s10, %s16017_s6 }
  0x9d   : > { %p13591_p3 = pnand %p13589_p1, %p13902_p2 }
  0x9f   : > { %p13592_p8 = pneg %p13591_p3 }
  0xa1   : > { %p13597_p12 = pnand %p13595_p10, %p13592_p8 }
  0xa3   : > { %13600 = shalt.err (!%p13597_p12)
}
  0xa4   : > { %s13601_s2 = scalar_lea.vmem %s270_s18, 16  ;;  %s13608_s21 = scalar_lea.vmem %s270_s18, 32 }
  0xa5   : > { %p13602_p4 = scmp.ne.s32.totalorder %s270_s18, %s13601_s2  ;;  %p13609_p7 = scmp.lt.s32.totalorder %s270_s18, %s270_s18 }
  0xa6   : > { %p13610_p9 = scmp.lt.s32.totalorder %s13608_s21, %s13601_s2 }
  0xa7   : > { %p13604_p5 = pnand %p13602_p4, %p13902_p2 }
  0xa8   : > { %p13611_p11 = por %p13610_p9, %p13609_p7 }
  0xa9   : > { %p13605_p6 = pneg %p13604_p5 }
  0xab   : > { %p13612_p13 = pnand %p13611_p11, %p13605_p6 }
  0xad   : > { %13615 = shalt.err (!%p13612_p13)
}
  0xae   : > { %12753 = dma.hbm_to_vmem [thread:$0]  (!%p13890_p0), %s16017_s6, 16, %s270_s18, [#allocation14]  }
  0xaf   : > { %p16105_p1 = scmp.ne.s32.totalorder %s16098_s19, 0 }
  0xb1   : > { %282 = sbr.rel (%p16105_p1) target bundleno = 1771 (0x6eb), region = 44 }
  0xb8   : > { %p16106_p3 = scmp.ne.s32.totalorder %s16099_s20, 0 }
  0xba   : > { %13701 = dma.done.wait (%p16106_p3), [#allocation5], 27648  }
  0xbb   : > { %13703 = vsyncadd (%p16106_p3), [#allocation5], 4294939648 }
  0xbc   : > { %13705 = dma.done.wait (%p16106_p3), [#allocation8], 27664  }
  0xbd   : > { %13707 = vsyncadd (%p16106_p3), [#allocation8], 4294939632 }
  0xbe   : > { %13709 = dma.done.wait (%p16106_p3), [#allocation11], 1040  }
  0xbf   : > { %13711 = vsyncadd (%p16106_p3), [#allocation11], 4294966256 }
  0xc0   : > { %13713 = dma.done.wait (%p16106_p3), [#allocation14], 16  }
  0xc1   : > { %13715 = vsyncadd (%p16106_p3), [#allocation14], 4294967280  ;;  %s324_s19 = sand.u32 1, %s13728_s25   ;;  %v13762_v0 = vmov 0   ;;  %vm355_vm0 = vcmask 1040384   ;;  %v16107_v1 = vmov 0 }
  0xc2   : > { %s14045_s22 = sshll.u32 %s324_s19, 6  ;;  %329 = vst [vmem:[#allocation2] sm:$0xf] %v13762_v0  ;;  %330 = vst [vmem:[#allocation2 + $0x4] sm:$0x1] %v13762_v0 }
  0xc3   : > { %331 = vst [vmem:[#allocation2 + $0x30] sm:$0xf] %v13762_v0  ;;  %332 = vst [vmem:[#allocation2 + $0x34] sm:$0x1] %v13762_v0  ;;  %vm356_vm1 = vsmask.f32 256 }
  0xc4   : > { %333 = vst [vmem:[#allocation2 + $0x60] sm:$0xf] %v13762_v0  ;;  %334 = vst [vmem:[#allocation2 + $0x64] sm:$0x1] %v13762_v0  ;;  %vm430_vm3 = vsmask.f32 7938 }
  0xc5   : > { %335 = vst [vmem:[#allocation2 + $0x90] sm:$0xf] %v13762_v0  ;;  %336 = vst [vmem:[#allocation2 + $0x94] sm:$0x1] %v13762_v0  ;;  %v358_v2 = vld [vmem:[#allocation2 + $0x8] sm:$0x1] }
  0xc6   : > { %337 = vst [vmem:[#allocation2 + $0xc0] sm:$0xf] %v13762_v0  ;;  %338 = vst [vmem:[#allocation2 + $0xc4] sm:$0x1] %v13762_v0  ;;  %v361_v3 = vld [vmem:[#allocation2 + $0x10] sm:$0x1] }
  0xc7   : > { %339 = vst [vmem:[#allocation2 + $0xf0] sm:$0xf] %v13762_v0  ;;  %340 = vst [vmem:[#allocation2 + $0xf4] sm:$0x1] %v13762_v0  ;;  %v364_v4 = vld [vmem:[#allocation2 + $0x18] sm:$0x1] }
  0xc8   : > { %342 = vst [vmem:[#allocation2 + $0x28] sm:$0xf] %v13762_v0  ;;  %343 = vst [vmem:[#allocation2 + $0x2c] sm:$0x1] %v13762_v0  ;;  %v367_v8 = vld [vmem:[#allocation2 + $0x20] sm:$0x1] }
  0xc9   : > { %344 = vst [vmem:[#allocation2 + $0x58] sm:$0xf] %v13762_v0  ;;  %345 = vst [vmem:[#allocation2 + $0x5c] sm:$0x1] %v13762_v0  ;;  %v370_v10 = vld [vmem:[#allocation2 + $0x38] sm:$0x1] }
  0xca   : > { %346 = vst [vmem:[#allocation2 + $0x88] sm:$0xf] %v13762_v0  ;;  %347 = vst [vmem:[#allocation2 + $0x8c] sm:$0x1] %v13762_v0  ;;  %v373_v11 = vld [vmem:[#allocation2 + $0x40] sm:$0x1] }
  0xcb   : > { %348 = vst [vmem:[#allocation2 + $0xb8] sm:$0xf] %v13762_v0  ;;  %349 = vst [vmem:[#allocation2 + $0xbc] sm:$0x1] %v13762_v0  ;;  %v376_v14 = vld [vmem:[#allocation2 + $0x48] sm:$0x1] }
  0xcc   : > { %350 = vst [vmem:[#allocation2 + $0xe8] sm:$0xf] %v13762_v0  ;;  %351 = vst [vmem:[#allocation2 + $0xec] sm:$0x1] %v13762_v0  ;;  %v379_v15 = vld [vmem:[#allocation2 + $0x50] sm:$0x1] }
  0xcd   : > { %352 = vst [vmem:[#allocation2 + $0x118] sm:$0xf] %v13762_v0  ;;  %353 = vst [vmem:[#allocation2 + $0x11c] sm:$0x1] %v13762_v0  ;;  %v382_v18 = vld [vmem:[#allocation2 + $0x68] sm:$0x1] }
  0xce   : > { %vm14048_vm2 = vmand %vm355_vm0, %vm356_vm1  ;;  %v385_v19 = vld [vmem:[#allocation2 + $0x70] sm:$0x1]  ;;  %v388_v22 = vld [vmem:[#allocation2 + $0x78] sm:$0x1]  ;;  %s14155_s20 = scalar_lea.vmem [#allocation15], %s14045_s22 }
  0xcf   : > { %v16108_v1 = vsel %vm14048_vm2, 4294967295, %v16107_v1  ;;  %v359_v5 = vsel %vm14048_vm2, 0, %v358_v2  ;;  %v362_v6 = vsel %vm14048_vm2, 0, %v361_v3  ;;  %v365_v7 = vsel %vm14048_vm2, 0, %v364_v4  ;;  %v391_v23 = vld [vmem:[#allocation2 + $0x80] sm:$0x1]  ;;  %vm14094_vm4 = vmand %vm355_vm0, %vm430_vm3 }
  0xd0   : > { %16109 = vst [vmem:[#allocation33_spill] sm:$0xff] %v16108_v1  ;;  %360 = vst [vmem:[#allocation2 + $0x8] sm:$0x1] %v359_v5  ;;  %v368_v9 = vsel %vm14048_vm2, 0, %v367_v8  ;;  %v371_v12 = vsel %vm14048_vm2, 0, %v370_v10  ;;  %v374_v13 = vsel %vm14048_vm2, 0, %v373_v11 }
  0xd1   : > { %363 = vst [vmem:[#allocation2 + $0x10] sm:$0x1] %v362_v6  ;;  %366 = vst [vmem:[#allocation2 + $0x18] sm:$0x1] %v365_v7  ;;  %v377_v16 = vsel %vm14048_vm2, 0, %v376_v14  ;;  %v380_v17 = vsel %vm14048_vm2, 0, %v379_v15 }
  0xd2   : > { %369 = vst [vmem:[#allocation2 + $0x20] sm:$0x1] %v368_v9  ;;  %372 = vst [vmem:[#allocation2 + $0x38] sm:$0x1] %v371_v12  ;;  %v383_v20 = vsel %vm14048_vm2, 0, %v382_v18  ;;  %v386_v21 = vsel %vm14048_vm2, 0, %v385_v19 }
  0xd3   : > { %375 = vst [vmem:[#allocation2 + $0x40] sm:$0x1] %v374_v13  ;;  %378 = vst [vmem:[#allocation2 + $0x48] sm:$0x1] %v377_v16  ;;  %v389_v24 = vsel %vm14048_vm2, 0, %v388_v22  ;;  %v392_v25 = vsel %vm14048_vm2, 0, %v391_v23 }
  0xd4   : > { %381 = vst [vmem:[#allocation2 + $0x50] sm:$0x1] %v380_v17  ;;  %384 = vst [vmem:[#allocation2 + $0x68] sm:$0x1] %v383_v20  ;;  %v394_v26 = vld [vmem:[#allocation2 + $0x98] sm:$0x1] }
  0xd5   : > { %387 = vst [vmem:[#allocation2 + $0x70] sm:$0x1] %v386_v21  ;;  %v397_v27 = vld [vmem:[#allocation2 + $0xa0] sm:$0x1]  ;;  %390 = vst [vmem:[#allocation2 + $0x78] sm:$0x1] %v389_v24 }
  0xd6   : > { %393 = vst [vmem:[#allocation2 + $0x80] sm:$0x1] %v392_v25  ;;  %v395_v28 = vsel %vm14048_vm2, 0, %v394_v26  ;;  %v398_v29 = vsel %vm14048_vm2, 0, %v397_v27  ;;  %v400_v30 = vld [vmem:[#allocation2 + $0xa8] sm:$0x1] }
  0xd7   : > { %v403_v31 = vld [vmem:[#allocation2 + $0xb0] sm:$0x1]  ;;  %396 = vst [vmem:[#allocation2 + $0x98] sm:$0x1] %v395_v28  ;;  %399 = vst [vmem:[#allocation2 + $0xa0] sm:$0x1] %v398_v29 }
  0xd8   : > { %v401_v32 = vsel %vm14048_vm2, 0, %v400_v30  ;;  %v404_v33 = vsel %vm14048_vm2, 0, %v403_v31  ;;  %v406_v34 = vld [vmem:[#allocation2 + $0xc8] sm:$0x1]  ;;  %v409_v35 = vld [vmem:[#allocation2 + $0xd0] sm:$0x1] }
  0xd9   : > { %402 = vst [vmem:[#allocation2 + $0xa8] sm:$0x1] %v401_v32  ;;  %405 = vst [vmem:[#allocation2 + $0xb0] sm:$0x1] %v404_v33  ;;  %v407_v36 = vsel %vm14048_vm2, 0, %v406_v34  ;;  %v410_v37 = vsel %vm14048_vm2, 0, %v409_v35 }
  0xda   : > { %v412_v38 = vld [vmem:[#allocation2 + $0xd8] sm:$0x1]  ;;  %v415_v39 = vld [vmem:[#allocation2 + $0xe0] sm:$0x1]  ;;  %408 = vst [vmem:[#allocation2 + $0xc8] sm:$0x1] %v407_v36 }
  0xdb   : > { %411 = vst [vmem:[#allocation2 + $0xd0] sm:$0x1] %v410_v37  ;;  %v413_v40 = vsel %vm14048_vm2, 0, %v412_v38  ;;  %v416_v41 = vsel %vm14048_vm2, 0, %v415_v39  ;;  %v418_v42 = vld [vmem:[#allocation2 + $0xf8] sm:$0x1] }
  0xdc   : > { %v421_v43 = vld [vmem:[#allocation2 + $0x100] sm:$0x1]  ;;  %414 = vst [vmem:[#allocation2 + $0xd8] sm:$0x1] %v413_v40  ;;  %417 = vst [vmem:[#allocation2 + $0xe0] sm:$0x1] %v416_v41 }
  0xdd   : > { %v419_v45 = vsel %vm14048_vm2, 0, %v418_v42  ;;  %v422_v46 = vsel %vm14048_vm2, 0, %v421_v43  ;;  %v424_v47 = vld [vmem:[#allocation2 + $0x108] sm:$0x1]  ;;  %v427_v48 = vld [vmem:[#allocation2 + $0x110] sm:$0x1] }
  0xde   : > { %420 = vst [vmem:[#allocation2 + $0xf8] sm:$0x1] %v419_v45  ;;  %423 = vst [vmem:[#allocation2 + $0x100] sm:$0x1] %v422_v46  ;;  %v425_v49 = vsel %vm14048_vm2, 0, %v424_v47  ;;  %v428_v50 = vsel %vm14048_vm2, 0, %v427_v48 }
  0xdf   : > { %v432_v51 = vld [vmem:[#allocation2 + $0xc] sm:$0x1]  ;;  %v435_v52 = vld [vmem:[#allocation2 + $0x14] sm:$0x1]  ;;  %426 = vst [vmem:[#allocation2 + $0x108] sm:$0x1] %v425_v49 }
  0xe0   : > { %429 = vst [vmem:[#allocation2 + $0x110] sm:$0x1] %v428_v50  ;;  %v433_v53 = vsel %vm14094_vm4, 0, %v432_v51  ;;  %v436_v54 = vsel %vm14094_vm4, 0, %v435_v52  ;;  %v438_v55 = vld [vmem:[#allocation2 + $0x1c] sm:$0x1] }
  0xe1   : > { %v441_v56 = vld [vmem:[#allocation2 + $0x24] sm:$0x1]  ;;  %434 = vst [vmem:[#allocation2 + $0xc] sm:$0x1] %v433_v53  ;;  %437 = vst [vmem:[#allocation2 + $0x14] sm:$0x1] %v436_v54 }
  0xe2   : > { %v439_v57 = vsel %vm14094_vm4, 0, %v438_v55  ;;  %v442_v58 = vsel %vm14094_vm4, 0, %v441_v56  ;;  %v444_v59 = vld [vmem:[#allocation2 + $0x3c] sm:$0x1]  ;;  %v447_v60 = vld [vmem:[#allocation2 + $0x44] sm:$0x1] }
  0xe3   : > { %440 = vst [vmem:[#allocation2 + $0x1c] sm:$0x1] %v439_v57  ;;  %443 = vst [vmem:[#allocation2 + $0x24] sm:$0x1] %v442_v58  ;;  %v445_v61 = vsel %vm14094_vm4, 0, %v444_v59  ;;  %v448_v62 = vsel %vm14094_vm4, 0, %v447_v60 }
  0xe4   : > { %v450_v63 = vld [vmem:[#allocation2 + $0x4c] sm:$0x1]  ;;  %v453_v0 = vld [vmem:[#allocation2 + $0x54] sm:$0x1]  ;;  %446 = vst [vmem:[#allocation2 + $0x3c] sm:$0x1] %v445_v61 }
  0xe5   : > { %449 = vst [vmem:[#allocation2 + $0x44] sm:$0x1] %v448_v62  ;;  %v451_v2 = vsel %vm14094_vm4, 0, %v450_v63  ;;  %v454_v3 = vsel %vm14094_vm4, 0, %v453_v0  ;;  %v456_v4 = vld [vmem:[#allocation2 + $0x6c] sm:$0x1] }
  0xe6   : > { %v459_v5 = vld [vmem:[#allocation2 + $0x74] sm:$0x1]  ;;  %452 = vst [vmem:[#allocation2 + $0x4c] sm:$0x1] %v451_v2  ;;  %455 = vst [vmem:[#allocation2 + $0x54] sm:$0x1] %v454_v3 }
  0xe7   : > { %v457_v6 = vsel %vm14094_vm4, 0, %v456_v4  ;;  %v460_v7 = vsel %vm14094_vm4, 0, %v459_v5  ;;  %v462_v8 = vld [vmem:[#allocation2 + $0x7c] sm:$0x1]  ;;  %v465_v9 = vld [vmem:[#allocation2 + $0x84] sm:$0x1] }
  0xe8   : > { %458 = vst [vmem:[#allocation2 + $0x6c] sm:$0x1] %v457_v6  ;;  %461 = vst [vmem:[#allocation2 + $0x74] sm:$0x1] %v460_v7  ;;  %v463_v10 = vsel %vm14094_vm4, 0, %v462_v8  ;;  %v466_v11 = vsel %vm14094_vm4, 0, %v465_v9 }
  0xe9   : > { %v468_v12 = vld [vmem:[#allocation2 + $0x9c] sm:$0x1]  ;;  %v471_v13 = vld [vmem:[#allocation2 + $0xa4] sm:$0x1]  ;;  %464 = vst [vmem:[#allocation2 + $0x7c] sm:$0x1] %v463_v10 }
  0xea   : > { %467 = vst [vmem:[#allocation2 + $0x84] sm:$0x1] %v466_v11  ;;  %v469_v14 = vsel %vm14094_vm4, 0, %v468_v12  ;;  %v472_v15 = vsel %vm14094_vm4, 0, %v471_v13  ;;  %v474_v16 = vld [vmem:[#allocation2 + $0xac] sm:$0x1] }
  0xeb   : > { %v477_v17 = vld [vmem:[#allocation2 + $0xb4] sm:$0x1]  ;;  %470 = vst [vmem:[#allocation2 + $0x9c] sm:$0x1] %v469_v14  ;;  %473 = vst [vmem:[#allocation2 + $0xa4] sm:$0x1] %v472_v15 }
  0xec   : > { %v475_v18 = vsel %vm14094_vm4, 0, %v474_v16  ;;  %v478_v19 = vsel %vm14094_vm4, 0, %v477_v17  ;;  %v480_v20 = vld [vmem:[#allocation2 + $0xcc] sm:$0x1]  ;;  %v483_v21 = vld [vmem:[#allocation2 + $0xd4] sm:$0x1] }
  0xed   : > { %476 = vst [vmem:[#allocation2 + $0xac] sm:$0x1] %v475_v18  ;;  %479 = vst [vmem:[#allocation2 + $0xb4] sm:$0x1] %v478_v19  ;;  %v481_v22 = vsel %vm14094_vm4, 0, %v480_v20  ;;  %v484_v23 = vsel %vm14094_vm4, 0, %v483_v21 }
  0xee   : > { %v486_v24 = vld [vmem:[#allocation2 + $0xdc] sm:$0x1]  ;;  %v489_v25 = vld [vmem:[#allocation2 + $0xe4] sm:$0x1]  ;;  %482 = vst [vmem:[#allocation2 + $0xcc] sm:$0x1] %v481_v22 }
  0xef   : > { %485 = vst [vmem:[#allocation2 + $0xd4] sm:$0x1] %v484_v23  ;;  %v487_v26 = vsel %vm14094_vm4, 0, %v486_v24  ;;  %v490_v27 = vsel %vm14094_vm4, 0, %v489_v25  ;;  %v492_v28 = vld [vmem:[#allocation2 + $0xfc] sm:$0x1] }
  0xf0   : > { %v495_v29 = vld [vmem:[#allocation2 + $0x104] sm:$0x1]  ;;  %488 = vst [vmem:[#allocation2 + $0xdc] sm:$0x1] %v487_v26  ;;  %491 = vst [vmem:[#allocation2 + $0xe4] sm:$0x1] %v490_v27 }
  0xf1   : > { %v493_v30 = vsel %vm14094_vm4, 0, %v492_v28  ;;  %v496_v31 = vsel %vm14094_vm4, 0, %v495_v29  ;;  %v498_v32 = vld [vmem:[#allocation2 + $0x10c] sm:$0x1]  ;;  %v501_v33 = vld [vmem:[#allocation2 + $0x114] sm:$0x1] }
  0xf2   : > { %494 = vst [vmem:[#allocation2 + $0xfc] sm:$0x1] %v493_v30  ;;  %497 = vst [vmem:[#allocation2 + $0x104] sm:$0x1] %v496_v31  ;;  %v499_v34 = vsel %vm14094_vm4, 0, %v498_v32  ;;  %v502_v35 = vsel %vm14094_vm4, 0, %v501_v33 }
  0xf3   : > { %500 = vst [vmem:[#allocation2 + $0x10c] sm:$0x1] %v499_v34  ;;  %503 = vst [vmem:[#allocation2 + $0x114] sm:$0x1] %v502_v35 }
  0xf4   : > { %s10555_s13 = sshll.u32 %s13736_s27, 3  ;;  %s9815_s4 = sshll.u32 %s13740_s28, 5 }
  0xf5   : > { %s507_s26 = sadd.s32 %s10555_s13, %s9815_s4  ;;  %s13763_s14 = smov [#allocation3]  }
  0xf6   : > { %s9816_s18 = sshll.u32 %s507_s26, 6  ;;  %s517_s11 = sshll.u32 %s13763_s14, 4  ;;  %s518_s11 = int_to_ptr.vmem [resolvable:$true] %s517_s11 }
  0xf7   : > { %s509_s9 = scalar_lea.hbm %s16011_s0, %s9816_s18  ;;  %s13618_s21 = scalar_lea.hbm %s16011_s0, 4096 }
  0xf8   : > { %s13616_s12 = scalar_lea.hbm %s509_s9, 1536  ;;  %p13619_p2 = scmp.lt.u32.totalorder %s509_s9, %s16011_s0 }
  0xf9   : > { %p13617_p0 = scmp.ne.s32.totalorder %s509_s9, %s13616_s12  ;;  %p13620_p8 = scmp.lt.u32.totalorder %s13618_s21, %s13616_s12 }
  0xfa   : > { %p13622_p12 = scmp.lt.u32.totalorder %s13616_s12, %s509_s9 }
  0xfb   : > { %p13621_p10 = por %p13620_p8, %p13619_p2 }
  0xfd   : > { %p13623_p4 = por %p13622_p12, %p13621_p10 }
  0xff   : > { %p13624_p5 = pnand %p13623_p4, %p13617_p0 }
 0x101   : > { %13627 = shalt.err (!%p13624_p5)  }
 0x102   : > { %s13628_s22 = scalar_lea.vmem %s518_s11, 1536  ;;  %p13633_p7 = scmp.lt.s32.totalorder %s518_s11, %s518_s11 }
 0x103   : > { %p13629_p6 = scmp.ne.s32.totalorder %s518_s11, %s13628_s22  ;;  %p13634_p9 = scmp.lt.s32.totalorder %s13628_s22, %s13628_s22 }
 0x105   : > { %p13635_p11 = por %p13634_p9, %p13633_p7 }
 0x107   : > { %p13636_p13 = pnand %p13635_p11, %p13629_p6 }
 0x109   : > { %13639 = shalt.err (!%p13636_p13)  }
 0x10a   : > { %520 = dma.hbm_to_vmem [thread:$0]  %s509_s9, 1536, %s518_s11, [#allocation16] }
 0x10b   : > { %13716 = dma.done.wait [#allocation16], 1536 }
 0x10c   : > { %13717 = vsyncadd [#allocation16], 4294965760  ;;  %v12847_v36 = vld [vmem:[#allocation4 + $0x40] sm:$0xff]   ;;  %v12850_v39 = vld [vmem:[#allocation4 + $0x48] sm:$0xff]   ;;  %vm791_vm5 = vcmask 1043456   ;;  %v16112_v6 = vmov 0 }
 0x10d   : > { %v12848_v37 = vld [vmem:[#allocation4 + $0x80] sm:$0xff]   ;;  %10573 = vmatprep.subr.bf16.mxu0 %v12847_v36  ;;  %v12851_v40 = vld [vmem:[#allocation4 + $0x88] sm:$0xff]   ;;  %v12853_v42 = vld [vmem:[#allocation4 + $0x50] sm:$0xff]   ;;  %p10212_p1 = scmp.ne.s32.totalorder %s13736_s27, 0 }
 0x10e   : > { %v12849_v38 = vld [vmem:[#allocation4] sm:$0xff]   ;;  %11773 = vmatprep.subr.bf16.mxu1 %v12848_v37  ;;  %v12852_v41 = vld [vmem:[#allocation4 + $0x8] sm:$0xff]   ;;  %v12854_v43 = vld [vmem:[#allocation4 + $0x90] sm:$0xff]  }
 0x10f   : > { %10574 = vmatpush3.bf16.msra.mxu0 %v12849_v38  ;;  %11774 = vmatpush3.bf16.msra.mxu1 %v12848_v37  ;;  %v12855_v44 = vld [vmem:[#allocation4 + $0x10] sm:$0xff]   ;;  %v12856_v45 = vld [vmem:[#allocation4 + $0x58] sm:$0xff]   ;;  %v12859_v48 = vld [vmem:[#allocation4 + $0x60] sm:$0xff]  }
 0x110   : > { %10575 = vmatprep.subr.bf16.mxu0 %v12850_v39  ;;  %11775 = vmatprep.subr.bf16.mxu1 %v12851_v40  ;;  %v12857_v46 = vld [vmem:[#allocation4 + $0x98] sm:$0xff]   ;;  %v12860_v49 = vld [vmem:[#allocation4 + $0xa0] sm:$0xff]   ;;  %v12862_v51 = vld [vmem:[#allocation4 + $0x68] sm:$0xff]  }
 0x111   : > { %v12858_v47 = vld [vmem:[#allocation4 + $0x18] sm:$0xff]   ;;  %v12861_v50 = vld [vmem:[#allocation4 + $0x20] sm:$0xff]   ;;  %v12863_v52 = vld [vmem:[#allocation4 + $0xa8] sm:$0xff]  }
 0x112   : > { %v12864_v53 = vld [vmem:[#allocation4 + $0x28] sm:$0xff]   ;;  %v12865_v54 = vld [vmem:[#allocation4 + $0x70] sm:$0xff]   ;;  %v527_v57 = vld [vmem:[#allocation3] sm:$0xf] }
 0x113   : > { %10576 = vmatpush3.bf16.msra.mxu0 %v12852_v41  ;;  %11776 = vmatpush3.bf16.msra.mxu1 %v12851_v40  ;;  %v12866_v55 = vld [vmem:[#allocation4 + $0xb0] sm:$0xff]   ;;  %v528_v58 = vld [vmem:[#allocation3 + $0x4] sm:$0xf]  ;;  %v12868_v59 = vld [vmem:[#allocation4 + $0x78] sm:$0xff]   ;;  %v552_v61 = vshrl.u32 %v527_v57, 16  ;;  %v555_v62 = vshll.u32 %v527_v57, 16 }
 0x114   : > { %10577 = vmatprep.subr.bf16.mxu0 %v12853_v42  ;;  %11777 = vmatprep.subr.bf16.mxu1 %v12854_v43  ;;  %v12867_v56 = vld [vmem:[#allocation4 + $0x30] sm:$0xff]   ;;  %v12869_v60 = vld [vmem:[#allocation4 + $0xb8] sm:$0xff]   ;;  %v560_v63 = vshrl.u32 %v528_v58, 16  ;;  %v563_v0 = vshll.u32 %v528_v58, 16  ;;  %v14170_v3 = vld [vmem:[#allocation2] sm:$0xf] }
 0x115   : > { %v12870_v2 = vld [vmem:[#allocation4 + $0x38] sm:$0xff]   ;;  %v554_v4 = vrot.slane %v552_v61, 7  ;;  %vm14173_vm6 = vmand %vm791_vm5, %vm430_vm3  ;;  %v793_v7 = vld [vmem:[#allocation2 + $0x8] sm:$0xf] }
 0x116   : > { %v562_v5 = vrot.slane %v560_v63, 7  ;;  %v16113_v6 = vsel %vm14173_vm6, 4294967295, %v16112_v6  ;;  %v14177_v8 = vld [vmem:[#allocation2 + $0x4] sm:$0x1]  ;;  %v796_v9 = vld [vmem:[#allocation2 + $0xc] sm:$0x1] }
 0x117   : > { %10578 = vmatpush3.bf16.msra.mxu0 %v12855_v44  ;;  %11778 = vmatpush3.bf16.msra.mxu1 %v12854_v43  ;;  %16114 = vst [vmem:[#allocation34_spill] sm:$0xff] %v16113_v6  ;;  %v799_v10 = vld [vmem:[#allocation2 + $0x10] sm:$0xf]  ;;  %v14181_v11 = vcombine.low %v14170_v3, %v14177_v8  ;;  %v529_v12 = vld [vmem:[#allocation3 + $0x8] sm:$0xf]  ;;  %v557_v13 = vor.u32 %v555_v62, %v554_v4  ;;  %v558_v14 = vrot.slane %v554_v4, 4 }
 0x118   : > { %10579 = vmatprep.subr.bf16.mxu0 %v12856_v45  ;;  %11779 = vmatprep.subr.bf16.mxu1 %v12857_v46  ;;  %v565_v15 = vor.u32 %v563_v0, %v562_v5  ;;  %v530_v16 = vld [vmem:[#allocation3 + $0xc] sm:$0xf]  ;;  %v566_v17 = vrot.slane %v562_v5, 4  ;;  %v568_v18 = vshrl.u32 %v529_v12, 16  ;;  %v802_v19 = vld [vmem:[#allocation2 + $0x14] sm:$0x1] }
 0x119   : > { %v794_v20 = vsel %vm14173_vm6, %v557_v13, %v793_v7  ;;  %v797_v21 = vsel %vm14048_vm2, %v558_v14, %v796_v9  ;;  %v571_v23 = vshll.u32 %v529_v12, 16  ;;  %v805_v24 = vld [vmem:[#allocation2 + $0x18] sm:$0xf]  ;;  %v808_v25 = vld [vmem:[#allocation2 + $0x1c] sm:$0x1]  ;;  %v12881_v26 = vld [vmem:[#allocation4 + $0x100] sm:$0xff]  }
 0x11a   : > { %v800_v22 = vsel %vm14173_vm6, %v565_v15, %v799_v10  ;;  %795 = vst [vmem:[#allocation2 + $0x8] sm:$0xf] %v794_v20  ;;  %798 = vst [vmem:[#allocation2 + $0xc] sm:$0x1] %v797_v21  ;;  %v1009_v27 = vld [vmem:[#allocation2] sm:$0xe]  ;;  %v803_v32 = vsel %vm14048_vm2, %v566_v17, %v802_v19 }
 0x11b   : > { %10580 = vmatpush3.bf16.msra.mxu0 %v12858_v47  ;;  %11780 = vmatpush3.bf16.msra.mxu1 %v12857_v46  ;;  %801 = vst [vmem:[#allocation2 + $0x10] sm:$0xf] %v800_v22  ;;  %v570_v28 = vrot.slane %v568_v18, 7  ;;  %v576_v29 = vshrl.u32 %v530_v16, 16  ;;  %v579_v30 = vshll.u32 %v530_v16, 16  ;;  %v1228_v31 = vshll.u32 %v14181_v11, 16 }
 0x11c   : > { %10581 = vmatprep.subr.bf16.mxu0 %v12859_v48  ;;  %11781 = vmatprep.subr.bf16.mxu1 %v12860_v49  ;;  %v811_v33 = vld [vmem:[#allocation2 + $0x20] sm:$0xf]  ;;  %804 = vst [vmem:[#allocation2 + $0x14] sm:$0x1] %v803_v32  ;;  %v814_v38 = vld [vmem:[#allocation2 + $0x24] sm:$0x1]  ;;  %v9853_v43 = vcombine.low %v1009_v27, %v14177_v8 }
 0x11d   : > { %v12882_v34 = vld [vmem:[#allocation4 + $0x1c0] sm:$0xff]   ;;  %v573_v35 = vor.u32 %v571_v23, %v570_v28  ;;  %v574_v36 = vrot.slane %v570_v28, 4  ;;  %v578_v37 = vrot.slane %v576_v29, 7  ;;  %v1226_v44 = vshrl.u32 %v14181_v11, 16  ;;  %v531_v48 = vld [vmem:[#allocation3 + $0x10] sm:$0xf] }
 0x11e   : > { %v1230_v45 = vrot.slane %v1228_v31, 1  ;;  %v1585_v57 = vrot.slane %v9853_v43, 1  ;;  %v979_v0 = vld [vmem:[#allocation2 + $0x34] sm:$0x1]  ;;  %v817_v7 = vld [vmem:[#allocation2 + $0x38] sm:$0xf] }
 0x11f   : > { %10582 = vmatpush3.bf16.msra.mxu0 %v12861_v50  ;;  %11782 = vmatpush3.bf16.msra.mxu1 %v12860_v49  ;;  %v581_v39 = vor.u32 %v579_v30, %v578_v37  ;;  %v582_v40 = vrot.slane %v578_v37, 4  ;;  %v806_v41 = vsel %vm14173_vm6, %v573_v35, %v805_v24  ;;  %v809_v42 = vsel %vm14048_vm2, %v574_v36, %v808_v25  ;;  %v820_v8 = vld [vmem:[#allocation2 + $0x3c] sm:$0x1]  ;;  %v1015_v9 = vld [vmem:[#allocation2 + $0x30] sm:$0xe] }
 0x120   : > { %10583 = vmatprep.subr.bf16.mxu0 %v12862_v51  ;;  %11783 = vmatprep.subr.bf16.mxu1 %v12863_v52  ;;  %807 = vst [vmem:[#allocation2 + $0x18] sm:$0xf] %v806_v41  ;;  %810 = vst [vmem:[#allocation2 + $0x1c] sm:$0x1] %v809_v42  ;;  %v9859_v15 = vcombine.low %v1015_v9, %v979_v0  ;;  %v14218_v21 = vld [vmem:[#allocation2 + $0x30] sm:$0xf] }
 0x121   : > { %v812_v46 = vsel %vm14173_vm6, %v581_v39, %v811_v33  ;;  %v815_v47 = vsel %vm14048_vm2, %v582_v40, %v814_v38  ;;  %v14202_v49 = vld [vmem:[#allocation2 + $0x8] sm:$0xf]  ;;  %v974_v51 = vld [vmem:[#allocation2 + $0xc] sm:$0x1]  ;;  %v532_v31 = vld [vmem:[#allocation3 + $0x14] sm:$0xf]  ;;  %v14237_v43 = vcombine.low %v14218_v21, %v979_v0 }
 0x122   : > { %v14204_v50 = vld [vmem:[#allocation2 + $0x10] sm:$0xf]  ;;  %813 = vst [vmem:[#allocation2 + $0x20] sm:$0xf] %v812_v46  ;;  %816 = vst [vmem:[#allocation2 + $0x24] sm:$0x1] %v815_v47  ;;  %v9890_v11 = vcombine.low %v14170_v3, %v14202_v49 }
 0x123   : > { %10584 = vmatpush3.bf16.msra.mxu0 %v12864_v53  ;;  %11784 = vmatpush3.bf16.msra.mxu1 %v12863_v52  ;;  %v9818_v52 = vcombine.low %v14202_v49, %v974_v51  ;;  %v1010_v53 = vld [vmem:[#allocation2 + $0x8] sm:$0xe]  ;;  %v975_v58 = vld [vmem:[#allocation2 + $0x14] sm:$0x1]  ;;  %v533_v37 = vld [vmem:[#allocation3 + $0x18] sm:$0xf] }
 0x124   : > { %10585 = vmatprep.subr.bf16.mxu0 %v12865_v54  ;;  %11785 = vmatprep.subr.bf16.mxu1 %v12866_v55  ;;  %v1011_v54 = vld [vmem:[#allocation2 + $0x10] sm:$0xe]  ;;  %v9819_v62 = vcombine.low %v14204_v50, %v975_v58  ;;  %v12883_v39 = vld [vmem:[#allocation4 + $0xc0] sm:$0xff]   ;;  %v12885_v40 = vld [vmem:[#allocation4 + $0x108] sm:$0xff]   ;;  %v592_v46 = vshrl.u32 %v532_v31, 16  ;;  %v595_v47 = vshll.u32 %v532_v31, 16 }
 0x125   : > { %v1235_v61 = vshll.u32 %v9818_v52, 16  ;;  %v9855_v63 = vcombine.low %v1011_v54, %v975_v58  ;;  %v600_v54 = vshrl.u32 %v533_v37, 16  ;;  %v1591_v58 = vrot.slane %v9859_v15, 1 }
 0x126   : > { %v1240_v19 = vshrl.u32 %v9819_v62, 16  ;;  %v1242_v20 = vshll.u32 %v9819_v62, 16  ;;  %v12892_v62 = vld [vmem:[#allocation4 + $0x110] sm:$0xff]   ;;  %v1268_v9 = vshrl.u32 %v14237_v43, 16 }
 0x127   : > { %10586 = vmatpush3.bf16.msra.mxu0 %v12867_v56  ;;  %11786 = vmatpush3.bf16.msra.mxu1 %v12866_v55  ;;  %v584_v55 = vshrl.u32 %v531_v48, 16  ;;  %v9854_v56 = vcombine.low %v1010_v53, %v974_v51  ;;  %v1237_v10 = vrot.slane %v1235_v61, 1  ;;  %v14212_v12 = vld [vmem:[#allocation2 + $0x18] sm:$0xf]  ;;  %v976_v13 = vld [vmem:[#allocation2 + $0x1c] sm:$0x1] }
 0x128   : > { %10587 = vmatprep.subr.bf16.mxu0 %v12868_v59  ;;  %11787 = vmatprep.subr.bf16.mxu1 %v12869_v60  ;;  %v587_v59 = vshll.u32 %v531_v48, 16  ;;  %v14214_v14 = vrot.slane %v9855_v63, 1  ;;  %v1012_v17 = vld [vmem:[#allocation2 + $0x18] sm:$0xe]  ;;  %v9820_v18 = vcombine.low %v14212_v12, %v976_v13  ;;  %v1244_v28 = vrot.slane %v1242_v20, 1  ;;  %v12895_v48 = vld [vmem:[#allocation4 + $0x188] sm:$0xff]  }
 0x129   : > { %v14208_v4 = vrot.slane %v9854_v56, 1  ;;  %v586_v5 = vrot.slane %v584_v55, 7  ;;  %v14222_v23 = vld [vmem:[#allocation2 + $0x24] sm:$0x1]  ;;  %v1013_v3 = vld [vmem:[#allocation2 + $0x20] sm:$0xe]  ;;  %v9856_v24 = vcombine.low %v1012_v17, %v976_v13 }
 0x12a   : > { %v9857_v27 = vcombine.low %v1013_v3, %v14222_v23  ;;  %v1247_v29 = vshrl.u32 %v9820_v18, 16  ;;  %v1249_v30 = vshll.u32 %v9820_v18, 16  ;;  %v14234_v41 = vor.u32 %v1244_v28, %v1240_v19  ;;  %v823_v56 = vld [vmem:[#allocation2 + $0x40] sm:$0xf]  ;;  %v832_v61 = vld [vmem:[#allocation2 + $0x4c] sm:$0x1] }
 0x12b   : > { %10588 = vmatpush3.bf16.msra.mxu0 %v12870_v2  ;;  %11788 = vmatpush3.bf16.msra.mxu1 %v12869_v60  ;;  %v1233_v60 = vshrl.u32 %v9818_v52, 16  ;;  %v1231_v2 = vor.u32 %v1230_v45, %v1226_v44  ;;  %v9892_v16 = vcombine.low %v1585_v57, %v14208_v4  ;;  %v589_v25 = vor.u32 %v587_v59, %v586_v5  ;;  %v12893_v44 = vld [vmem:[#allocation4 + $0x1c8] sm:$0xff]   ;;  %v826_v57 = vld [vmem:[#allocation2 + $0x44] sm:$0x1]  ;;  %v535_v28 = vld [vmem:[#allocation3 + $0x20] sm:$0xf] }
 0x12c   : > { %10653 = vmatprep.subr.bf16.mxu1 %v12881_v26  ;;  %10733 = vmatprep.subr.bf16.mxu0 %v12882_v34  ;;  %v590_v26 = vrot.slane %v586_v5, 4  ;;  %v14226_v33 = vrot.slane %v9856_v24, 1  ;;  %v12884_v34 = vld [vmem:[#allocation4 + $0x180] sm:$0xff]   ;;  %v14232_v38 = vrot.slane %v9857_v27, 1  ;;  %v1251_v42 = vrot.slane %v1249_v30, 1  ;;  %v12886_v52 = vld [vmem:[#allocation4 + $0xc8] sm:$0xff]  }
 0x12d   : > { %v14220_v22 = vor.u32 %v1237_v10, %v1233_v60  ;;  %11789 = vmatprep.mubr.bf16.mxu1 %v9892_v16  ;;  %v818_v35 = vsel %vm14173_vm6, %v589_v25, %v817_v7  ;;  %v603_v55 = vshll.u32 %v533_v37, 16  ;;  %v594_v59 = vrot.slane %v592_v46, 7  ;;  %v829_v60 = vld [vmem:[#allocation2 + $0x48] sm:$0xf]  ;;  %v12905_v46 = vld [vmem:[#allocation4 + $0x120] sm:$0xff]  }
 0x12e   : > { %v821_v36 = vsel %vm14048_vm2, %v590_v26, %v820_v8  ;;  %819 = vst [vmem:[#allocation2 + $0x38] sm:$0xf] %v818_v35  ;;  %v14241_v45 = vcombine.low %v14214_v14, %v14226_v33  ;;  %v14245_v53 = vor.u32 %v1251_v42, %v1247_v29  ;;  %v1270_v5 = vshll.u32 %v14237_v43, 16  ;;  %v12894_v26 = vld [vmem:[#allocation4 + $0xd0] sm:$0xff]   ;;  %v12896_v29 = vld [vmem:[#allocation4 + $0x118] sm:$0xff]  }
 0x12f   : > { %v9891_v32 = vcombine.low %v1231_v2, %v14220_v22  ;;  %822 = vst [vmem:[#allocation2 + $0x3c] sm:$0x1] %v821_v36  ;;  %v602_v2 = vrot.slane %v600_v54, 7  ;;  %v597_v7 = vor.u32 %v595_v47, %v594_v59  ;;  %v598_v8 = vrot.slane %v594_v59, 4  ;;  %v841_v37 = vld [vmem:[#allocation2 + $0x68] sm:$0xf] }
 0x130   : > { %16115 = vst [vmem:[#allocation35_spill] sm:$0xff] %v14241_v45  ;;  %11790 = vmatmul.mubr.bf16.vlgmr.msra.gmra.mrb[0].mxu1 %v14241_v45  ;;  %v14252_v0 = vcombine.low %v14234_v41, %v14245_v53  ;;  %v14259_v10 = vcombine.low %v14204_v50, %v14212_v12  ;;  %v1272_v15 = vrot.slane %v1270_v5, 1  ;;  %v616_v30 = vshrl.u32 %v535_v28, 16  ;;  %v536_v43 = vld [vmem:[#allocation3 + $0x24] sm:$0xf] }
 0x131   : > { %1932 = vmatprep.mubr.bf16.mxu0 %v9891_v32  ;;  %10654 = vmatpush3.bf16.msra.mxu1 %v12883_v39  ;;  %v606_v13 = vrot.slane %v602_v2, 4  ;;  %v824_v18 = vsel %vm14173_vm6, %v597_v7, %v823_v56  ;;  %v827_v19 = vsel %vm14048_vm2, %v598_v8, %v826_v57  ;;  %v619_v31 = vshll.u32 %v535_v28, 16  ;;  %v12906_v39 = vld [vmem:[#allocation4 + $0x1d0] sm:$0xff]   ;;  %v853_v7 = vld [vmem:[#allocation2 + $0x78] sm:$0xf] }
 0x132   : > { %1933 = vmatmul.mubr.bf16.vlgmr.msra.gmra.mrb[0].mxu0 %v9890_v11  ;;  %10655 = vmatprep.subr.bf16.mxu1 %v12885_v40  ;;  %v605_v11 = vor.u32 %v603_v55, %v602_v2  ;;  %825 = vst [vmem:[#allocation2 + $0x40] sm:$0xf] %v824_v18  ;;  %828 = vst [vmem:[#allocation2 + $0x44] sm:$0x1] %v827_v19  ;;  %v1273_v40 = vor.u32 %v1272_v15, %v1268_v9  ;;  %v618_v42 = vrot.slane %v616_v30, 7  ;;  %v12908_v56 = vld [vmem:[#allocation4 + $0x190] sm:$0xff]  }
 0x133   : > { %10734 = vmatpush3.bf16.msra.mxu0 %v12884_v34  ;;  %1940 = vmatprep.mubr.bf16.mxu0 %v14252_v0  ;;  %v833_v25 = vsel %vm14048_vm2, %v606_v13, %v832_v61  ;;  %v12897_v34 = vld [vmem:[#allocation4 + $0xd8] sm:$0xff]   ;;  %v624_v54 = vshrl.u32 %v536_v43, 16  ;;  %v627_v55 = vshll.u32 %v536_v43, 16  ;;  %v847_v61 = vld [vmem:[#allocation2 + $0x70] sm:$0xf]  ;;  %v12909_v30 = vld [vmem:[#allocation4 + $0x128] sm:$0xff]  }
 0x134   : > { %10735 = vmatprep.subr.bf16.mxu0 %v12893_v44  ;;  %v830_v24 = vsel %vm14173_vm6, %v605_v11, %v829_v60  ;;  %834 = vst [vmem:[#allocation2 + $0x4c] sm:$0x1] %v833_v25  ;;  %v537_v44 = vld [vmem:[#allocation3 + $0x28] sm:$0xf]  ;;  %v621_v57 = vor.u32 %v619_v31, %v618_v42  ;;  %v622_v59 = vrot.slane %v618_v42, 4 }
 0x135   : > { %v1016_v17 = vld [vmem:[#allocation2 + $0x38] sm:$0xe]  ;;  %10656 = vmatpush3.bf16.msra.mxu1 %v12886_v52  ;;  %831 = vst [vmem:[#allocation2 + $0x48] sm:$0xf] %v830_v24  ;;  %v844_v52 = vld [vmem:[#allocation2 + $0x6c] sm:$0x1] }
 0x136   : > { %v980_v16 = vld [vmem:[#allocation2 + $0x3c] sm:$0x1]  ;;  %v14265_v20 = vld [vmem:[#allocation2 + $0x38] sm:$0xf]  ;;  %10657 = vmatprep.subr.bf16.mxu1 %v12892_v62  ;;  %v632_v60 = vshrl.u32 %v537_v44, 16  ;;  %v626_v5 = vrot.slane %v624_v54, 7  ;;  %v842_v13 = vsel %vm14173_vm6, %v621_v57, %v841_v37  ;;  %v845_v15 = vsel %vm14048_vm2, %v622_v59, %v844_v52 }
 0x137   : > { %10736 = vmatpush3.bf16.msra.mxu0 %v12895_v48  ;;  %v9860_v3 = vcombine.low %v1016_v17, %v980_v16  ;;  %v9824_v27 = vcombine.low %v14265_v20, %v980_v16  ;;  %v850_v62 = vld [vmem:[#allocation2 + $0x74] sm:$0x1]  ;;  %v856_v8 = vld [vmem:[#allocation2 + $0x7c] sm:$0x1]  ;;  %v14285_v16 = vld [vmem:[#allocation2 + $0x64] sm:$0x1]  ;;  %v14289_v18 = vcombine.low %v14218_v21, %v14265_v20 }
 0x138   : > { %10737 = vmatprep.subr.bf16.mxu0 %v12906_v39  ;;  %v1021_v17 = vld [vmem:[#allocation2 + $0x60] sm:$0xe]  ;;  %v634_v19 = vrot.slane %v632_v60, 7  ;;  %843 = vst [vmem:[#allocation2 + $0x68] sm:$0xf] %v842_v13  ;;  %v629_v28 = vor.u32 %v627_v55, %v626_v5  ;;  %v12920_v21 = vld [vmem:[#allocation4 + $0x1d8] sm:$0xff]  }
 0x139   : > { %v14272_v32 = vrot.slane %v9860_v3, 1  ;;  %v1275_v35 = vshrl.u32 %v9824_v27, 16  ;;  %v1277_v36 = vshll.u32 %v9824_v27, 16  ;;  %10658 = vmatpush3.bf16.msra.mxu1 %v12894_v26  ;;  %v981_v9 = vld [vmem:[#allocation2 + $0x44] sm:$0x1]  ;;  %16117 = vst [vmem:[#allocation37_spill] sm:$0xff] %v14289_v18  ;;  %v9865_v52 = vcombine.low %v1021_v17, %v14285_v16 }
 0x13a   : > { %1941 = vmatmul.mubr.bf16.gmra.mrb[4].mxu0 %v14259_v10  ;;  %10659 = vmatprep.subr.bf16.mxu1 %v12896_v29  ;;  %v1017_v11 = vld [vmem:[#allocation2 + $0x40] sm:$0xe]  ;;  %846 = vst [vmem:[#allocation2 + $0x6c] sm:$0x1] %v845_v15  ;;  %v630_v29 = vrot.slane %v626_v5, 4  ;;  %v848_v39 = vsel %vm14173_vm6, %v629_v28, %v847_v61  ;;  %v12921_v13 = vld [vmem:[#allocation4 + $0xf0] sm:$0xff]  }
 0x13b   : > { %v14276_v47 = vcombine.low %v1591_v58, %v14272_v32  ;;  %v1279_v48 = vrot.slane %v1277_v36, 1  ;;  %v635_v58 = vshll.u32 %v537_v44, 16  ;;  %10738 = vmatpush3.bf16.msra.mxu0 %v12908_v56  ;;  %v12907_v3 = vld [vmem:[#allocation4 + $0xe0] sm:$0xff]   ;;  %v982_v24 = vld [vmem:[#allocation2 + $0x4c] sm:$0x1]  ;;  %v9861_v26 = vcombine.low %v1017_v11, %v981_v9 }
 0x13c   : > { %v1018_v25 = vld [vmem:[#allocation2 + $0x48] sm:$0xe]  ;;  %v638_v36 = vrot.slane %v634_v19, 4  ;;  %849 = vst [vmem:[#allocation2 + $0x70] sm:$0xf] %v848_v39  ;;  %10739 = vmatprep.subr.bf16.mxu0 %v12920_v21 }
 0x13d   : > { %16116 = vst [vmem:[#allocation36_spill] sm:$0xff] %v14276_v47  ;;  %11793 = vmatprep.mubr.bf16.mxu1 %v14276_v47  ;;  %v14279_v2 = vor.u32 %v1279_v48, %v1275_v35  ;;  %10660 = vmatpush3.bf16.msra.mxu1 %v12897_v34  ;;  %v9862_v31 = vcombine.low %v1018_v25, %v982_v24  ;;  %v1593_v37 = vrot.slane %v9861_v26, 1  ;;  %v12922_v48 = vld [vmem:[#allocation4 + $0x198] sm:$0xff]   ;;  %v14313_v56 = vld [vmem:[#allocation2 + $0x60] sm:$0xf] }
 0x13e   : > { %v637_v35 = vor.u32 %v635_v58, %v634_v19  ;;  %10661 = vmatprep.subr.bf16.mxu1 %v12905_v46  ;;  %v851_v34 = vsel %vm14048_vm2, %v630_v29, %v850_v62  ;;  %v857_v44 = vsel %vm14048_vm2, %v638_v36, %v856_v8  ;;  %v12919_v46 = vld [vmem:[#allocation4 + $0x130] sm:$0xff]   ;;  %v14315_v57 = vld [vmem:[#allocation2 + $0x40] sm:$0xf]  ;;  %v14317_v59 = vld [vmem:[#allocation2 + $0x48] sm:$0xf]  ;;  %v1597_v8 = vrot.slane %v9865_v52, 1 }
 0x13f   : > { %v14292_v27 = vcombine.low %v1273_v40, %v14279_v2  ;;  %v12910_v40 = vld [vmem:[#allocation4 + $0xe8] sm:$0xff]   ;;  %v14299_v42 = vrot.slane %v9862_v31, 1  ;;  %852 = vst [vmem:[#allocation2 + $0x74] sm:$0x1] %v851_v34  ;;  %858 = vst [vmem:[#allocation2 + $0x7c] sm:$0x1] %v857_v44  ;;  %v14308_v54 = vcombine.low %v14272_v32, %v1593_v37  ;;  %10740 = vmatpush3.bf16.msra.mxu0 %v12922_v48 }
 0x140   : > { %v854_v43 = vsel %vm14173_vm6, %v637_v35, %v853_v7  ;;  %v539_v60 = vld [vmem:[#allocation3 + $0x30] sm:$0xf]  ;;  %v1022_v62 = vld [vmem:[#allocation2 + $0x68] sm:$0xe]  ;;  %v9825_v32 = vcombine.low %v14315_v57, %v981_v9  ;;  %v9826_v5 = vcombine.low %v14317_v59, %v982_v24  ;;  %v865_v25 = vld [vmem:[#allocation2 + $0x98] sm:$0xf]  ;;  %v14329_v9 = vcombine.low %v14313_v56, %v14285_v16 }
 0x141   : > { %16118 = vst [vmem:[#allocation38_spill] sm:$0xff] %v14292_v27  ;;  %1948 = vmatprep.mubr.bf16.mxu0 %v14292_v27  ;;  %855 = vst [vmem:[#allocation2 + $0x78] sm:$0xf] %v854_v43  ;;  %10662 = vmatpush3.bf16.msra.mxu1 %v12907_v3  ;;  %v14311_v55 = vcombine.low %v1593_v37, %v14299_v42  ;;  %v14320_v61 = vld [vmem:[#allocation2 + $0x6c] sm:$0x1]  ;;  %v648_v58 = vshrl.u32 %v539_v60, 16  ;;  %v14338_v34 = vcombine.low %v14315_v57, %v14317_v59 }
 0x142   : > { %1949 = vmatmul.mubr.bf16.gmra.mrb[8].mxu0 %v14289_v18  ;;  %10663 = vmatprep.subr.bf16.mxu1 %v12909_v30  ;;  %v9866_v7 = vcombine.low %v1022_v62, %v14320_v61  ;;  %v651_v11 = vshll.u32 %v539_v60, 16  ;;  %v1282_v15 = vshrl.u32 %v9825_v32, 16  ;;  %v1284_v17 = vshll.u32 %v9825_v32, 16  ;;  %v868_v26 = vld [vmem:[#allocation2 + $0x9c] sm:$0x1] }
 0x143   : > { %16119 = vst [vmem:[#allocation39_spill] sm:$0xff] %v14311_v55  ;;  %11794 = vmatmul.mubr.bf16.gmra.mrb[4].mxu1 %v14311_v55  ;;  %v1289_v19 = vshrl.u32 %v9826_v5, 16  ;;  %v1291_v3 = vshll.u32 %v9826_v5, 16  ;;  %v14325_v28 = vld [vmem:[#allocation2 + $0x94] sm:$0x1]  ;;  %v650_v31 = vrot.slane %v648_v58, 7 }
 0x144   : > { %v1598_v24 = vrot.slane %v9866_v7, 1  ;;  %v1023_v30 = vld [vmem:[#allocation2 + $0x70] sm:$0xe]  ;;  %v1286_v37 = vrot.slane %v1284_v17, 1  ;;  %v540_v48 = vld [vmem:[#allocation3 + $0x34] sm:$0xf] }
 0x145   : > { %10664 = vmatpush3.bf16.msra.mxu1 %v12910_v40  ;;  %v1293_v39 = vrot.slane %v1291_v3, 1  ;;  %v653_v43 = vor.u32 %v651_v11, %v650_v31  ;;  %v654_v44 = vrot.slane %v650_v31, 4  ;;  %v12923_v52 = vld [vmem:[#allocation4 + $0x138] sm:$0xff]   ;;  %v656_v17 = vshrl.u32 %v540_v48, 16  ;;  %v871_v31 = vld [vmem:[#allocation2 + $0xa0] sm:$0xf] }
 0x146   : > { %10665 = vmatprep.subr.bf16.mxu1 %v12919_v46  ;;  %v14331_v29 = vld [vmem:[#allocation2 + $0x74] sm:$0x1]  ;;  %v14333_v35 = vld [vmem:[#allocation2 + $0x7c] sm:$0x1]  ;;  %v14340_v40 = vcombine.low %v1597_v8, %v1598_v24  ;;  %v1027_v46 = vld [vmem:[#allocation2 + $0x90] sm:$0xe]  ;;  %v14343_v62 = vor.u32 %v1286_v37, %v1282_v15 }
 0x147   : > { %v9867_v21 = vcombine.low %v1023_v30, %v14331_v29  ;;  %v14345_v32 = vor.u32 %v1293_v39, %v1289_v19  ;;  %v9871_v5 = vcombine.low %v1027_v46, %v14325_v28  ;;  %v541_v58 = vld [vmem:[#allocation3 + $0x38] sm:$0xf]  ;;  %v866_v11 = vsel %vm14173_vm6, %v653_v43, %v865_v25  ;;  %v835_v18 = vld [vmem:[#allocation2 + $0x50] sm:$0xf] }
 0x148   : > { %v1024_v36 = vld [vmem:[#allocation2 + $0x78] sm:$0xe]  ;;  %16120 = vst [vmem:[#allocation40_spill] sm:$0xff] %v14340_v40  ;;  %11797 = vmatprep.mubr.bf16.mxu1 %v14340_v40  ;;  %867 = vst [vmem:[#allocation2 + $0x98] sm:$0xf] %v866_v11  ;;  %v659_v3 = vshll.u32 %v540_v48, 16 }
 0x149   : > { %v9868_v16 = vcombine.low %v1024_v36, %v14333_v35  ;;  %10666 = vmatpush3.bf16.msra.mxu1 %v12921_v13  ;;  %v1599_v60 = vrot.slane %v9867_v21, 1  ;;  %v12924_v7 = vld [vmem:[#allocation4 + $0xf8] sm:$0xff]   ;;  %v869_v13 = vsel %vm14048_vm2, %v654_v44, %v868_v26  ;;  %v14357_v15 = vcombine.low %v14343_v62, %v14345_v32  ;;  %v874_v36 = vld [vmem:[#allocation2 + $0xa4] sm:$0x1]  ;;  %v877_v26 = vld [vmem:[#allocation2 + $0xa8] sm:$0xf] }
 0x14a   : > { %10667 = vmatprep.subr.bf16.mxu1 %v12923_v52  ;;  %870 = vst [vmem:[#allocation2 + $0x9c] sm:$0x1] %v869_v13  ;;  %v1603_v19 = vrot.slane %v9871_v5, 1  ;;  %v664_v30 = vshrl.u32 %v541_v58, 16  ;;  %v12927_v21 = vld [vmem:[#allocation4 + $0x1e0] sm:$0xff]   ;;  %v658_v25 = vrot.slane %v656_v17, 7 }
 0x14b   : > { %v14349_v8 = vrot.slane %v9868_v16, 1  ;;  %v667_v39 = vshll.u32 %v541_v58, 16  ;;  %v880_v16 = vld [vmem:[#allocation2 + $0xac] sm:$0x1]  ;;  %1956 = vmatprep.mubr.bf16.mxu0 %v14357_v15  ;;  %v1310_v44 = vshrl.u32 %v14329_v9, 16  ;;  %10741 = vmatprep.subr.bf16.mxu0 %v12927_v21  ;;  %v14364_v46 = vcombine.low %v1598_v24, %v1599_v60  ;;  %v12928_v13 = vld [vmem:[#allocation4 + $0x1a0] sm:$0xff]  }
 0x14c   : > { %v666_v43 = vrot.slane %v664_v30, 7  ;;  %1957 = vmatmul.mubr.bf16.gmra.mrb[12].mxu0 %v14338_v34  ;;  %v661_v48 = vor.u32 %v659_v3, %v658_v25  ;;  %v662_v52 = vrot.slane %v658_v25, 4  ;;  %v1312_v5 = vshll.u32 %v14329_v9, 16  ;;  %v14369_v58 = vld [vmem:[#allocation2 + $0x90] sm:$0xf]  ;;  %v12934_v21 = vld [vmem:[#allocation4 + $0x1e8] sm:$0xff]  }
 0x14d   : > { %v14360_v37 = vcombine.low %v1599_v60, %v14349_v8  ;;  %10668 = vmatpush3.bf16.msra.mxu1 %v12924_v7  ;;  %16122 = vst [vmem:[#allocation42_spill] sm:$0xff] %v14364_v46  ;;  %v14379_v9 = vld [vmem:[#allocation2 + $0x68] sm:$0xf]  ;;  %10742 = vmatpush3.bf16.msra.mxu0 %v12928_v13 }
 0x14e   : > { %v669_v11 = vor.u32 %v667_v39, %v666_v43  ;;  %v670_v7 = vrot.slane %v666_v43, 4  ;;  %v872_v17 = vsel %vm14173_vm6, %v661_v48, %v871_v31  ;;  %v875_v24 = vsel %vm14048_vm2, %v662_v52, %v874_v36  ;;  %10743 = vmatprep.subr.bf16.mxu0 %v12934_v21  ;;  %v14387_v52 = vld [vmem:[#allocation2 + $0x78] sm:$0xf]  ;;  %v12935_v13 = vld [vmem:[#allocation4 + $0x1a8] sm:$0xff]  }
 0x14f   : > { %16121 = vst [vmem:[#allocation41_spill] sm:$0xff] %v14360_v37  ;;  %11798 = vmatmul.mubr.bf16.gmra.mrb[8].mxu1 %v14360_v37  ;;  %873 = vst [vmem:[#allocation2 + $0xa0] sm:$0xf] %v872_v17  ;;  %v1314_v30 = vrot.slane %v1312_v5, 1  ;;  %v1028_v39 = vld [vmem:[#allocation2 + $0x98] sm:$0xe]  ;;  %v9830_v31 = vcombine.low %v14379_v9, %v14320_v61 }
 0x150   : > { %876 = vst [vmem:[#allocation2 + $0xa4] sm:$0x1] %v875_v24  ;;  %v878_v60 = vsel %vm14173_vm6, %v669_v11, %v877_v26  ;;  %v881_v3 = vsel %vm14048_vm2, %v670_v7, %v880_v16  ;;  %v9835_v26 = vcombine.low %v14369_v58, %v14325_v28  ;;  %v14385_v16 = vld [vmem:[#allocation2 + $0x70] sm:$0xf]  ;;  %v9832_v7 = vcombine.low %v14387_v52, %v14333_v35  ;;  %v14395_v61 = vld [vmem:[#allocation2 + $0x20] sm:$0xf] }
 0x151   : > { %v992_v25 = vld [vmem:[#allocation2 + $0x9c] sm:$0x1]  ;;  %879 = vst [vmem:[#allocation2 + $0xa8] sm:$0xf] %v878_v60  ;;  %882 = vst [vmem:[#allocation2 + $0xac] sm:$0x1] %v881_v3  ;;  %v9831_v11 = vcombine.low %v14385_v16, %v14331_v29  ;;  %v1315_v17 = vor.u32 %v1314_v30, %v1310_v44  ;;  %v9821_v28 = vcombine.low %v14395_v61, %v14222_v23  ;;  %10744 = vmatpush3.bf16.msra.mxu0 %v12935_v13 }
 0x152   : > { %v9872_v36 = vcombine.low %v1028_v39, %v992_v25  ;;  %v1317_v43 = vshrl.u32 %v9830_v31, 16  ;;  %v1319_v48 = vshll.u32 %v9830_v31, 16  ;;  %v1352_v60 = vshrl.u32 %v9835_v26, 16  ;;  %v12939_v29 = vld [vmem:[#allocation4 + $0x1f0] sm:$0xff]  }
 0x153   : > { %v1324_v21 = vshrl.u32 %v9831_v11, 16  ;;  %v1326_v39 = vshll.u32 %v9831_v11, 16  ;;  %v1331_v31 = vshrl.u32 %v9832_v7, 16  ;;  %v1333_v63 = vshll.u32 %v9832_v7, 16  ;;  %10745 = vmatprep.subr.bf16.mxu0 %v12939_v29 }
 0x154   : > { %v14389_v5 = vrot.slane %v9872_v36, 1  ;;  %v1321_v24 = vrot.slane %v1319_v48, 1  ;;  %v1254_v40 = vshrl.u32 %v9821_v28, 16  ;;  %v1256_v11 = vshll.u32 %v9821_v28, 16 }
 0x155   : > { %v1328_v48 = vrot.slane %v1326_v39, 1  ;;  %v1354_v7 = vshll.u32 %v9835_v26, 16  ;;  %v12940_v39 = vld [vmem:[#allocation4 + $0x1b0] sm:$0xff]  }
 0x156   : > { %v14400_v3 = vcombine.low %v1603_v19, %v14389_v5  ;;  %v1029_v51 = vld [vmem:[#allocation2 + $0xa0] sm:$0xe]  ;;  %v14402_v35 = vor.u32 %v1321_v24, %v1317_v43  ;;  %v14407_v19 = vcombine.low %v14313_v56, %v14379_v9  ;;  %v1335_v43 = vrot.slane %v1333_v63, 1  ;;  %v14412_v24 = vld [vmem:[#allocation2 + $0x98] sm:$0xf]  ;;  %10746 = vmatpush3.bf16.msra.mxu0 %v12940_v39 }
 0x157   : > { %v993_v36 = vld [vmem:[#allocation2 + $0xa4] sm:$0x1]  ;;  %v1258_v55 = vrot.slane %v1256_v11, 1  ;;  %v1356_v28 = vrot.slane %v1354_v7, 1  ;;  %v9939_v63 = vcombine.low %v14220_v22, %v14234_v41  ;;  %v14425_v29 = vld [vmem:[#allocation2 + $0xa0] sm:$0xf] }
 0x158   : > { %16123 = vst [vmem:[#allocation43_spill] sm:$0xff] %v14400_v3  ;;  %11801 = vmatprep.mubr.bf16.mxu1 %v14400_v3  ;;  %v994_v44 = vld [vmem:[#allocation2 + $0xac] sm:$0x1]  ;;  %v1030_v30 = vld [vmem:[#allocation2 + $0xa8] sm:$0xe]  ;;  %v9873_v23 = vcombine.low %v1029_v51, %v993_v36  ;;  %16124 = vst [vmem:[#allocation44_spill] sm:$0xff] %v14407_v19  ;;  %v14410_v47 = vcombine.low %v1315_v17, %v14402_v35  ;;  %v14414_v3 = vor.u32 %v1328_v48, %v1324_v21 }
 0x159   : > { %v9874_v13 = vcombine.low %v1030_v30, %v994_v44  ;;  %v9836_v51 = vcombine.low %v14412_v24, %v992_v25  ;;  %v14420_v56 = vor.u32 %v1335_v43, %v1331_v31  ;;  %v12945_v17 = vld [vmem:[#allocation4 + $0x1f8] sm:$0xff]   ;;  %v14427_v30 = vld [vmem:[#allocation2 + $0xa8] sm:$0xf]  ;;  %v9837_v22 = vcombine.low %v14425_v29, %v993_v36  ;;  %v838_v39 = vld [vmem:[#allocation2 + $0x54] sm:$0x1] }
 0x15a   : > { %16125 = vst [vmem:[#allocation45_spill] sm:$0xff] %v14410_v47  ;;  %v1605_v37 = vrot.slane %v9873_v23, 1  ;;  %1964 = vmatprep.mubr.bf16.mxu0 %v14410_v47  ;;  %v14438_v23 = vcombine.low %v14385_v16, %v14387_v52  ;;  %v534_v41 = vld [vmem:[#allocation3 + $0x1c] sm:$0xf]  ;;  %v1357_v48 = vor.u32 %v1356_v28, %v1352_v60  ;;  %10747 = vmatprep.subr.bf16.mxu0 %v12945_v17 }
 0x15b   : > { %v14417_v45 = vrot.slane %v9874_v13, 1  ;;  %1965 = vmatmul.mubr.bf16.gmra.mrb[16].mxu0 %v14407_v19  ;;  %v1359_v26 = vshrl.u32 %v9836_v51, 16  ;;  %v1361_v21 = vshll.u32 %v9836_v51, 16  ;;  %v14434_v31 = vcombine.low %v14414_v3, %v14420_v56 }
 0x15c   : > { %16129 = vst [vmem:[#allocation49_spill] sm:$0xff] %v14438_v23  ;;  %v9838_v13 = vcombine.low %v14427_v30, %v994_v44  ;;  %v608_v43 = vshrl.u32 %v534_v41, 16  ;;  %v14444_v7 = vor.u32 %v1258_v55, %v1254_v40  ;;  %v1366_v51 = vshrl.u32 %v9837_v22, 16 }
 0x15d   : > { %16126 = vst [vmem:[#allocation46_spill] sm:$0xff] %v14417_v45  ;;  %v14430_v25 = vcombine.low %v1605_v37, %v14417_v45  ;;  %16128 = vst [vmem:[#allocation48_spill] sm:$0xff] %v14434_v31  ;;  %v1363_v11 = vrot.slane %v1361_v21, 1  ;;  %1972 = vmatprep.mubr.bf16.mxu0 %v14434_v31  ;;  %v1368_v19 = vshll.u32 %v9837_v22, 16  ;;  %v611_v47 = vshll.u32 %v534_v41, 16  ;;  %v12946_v45 = vld [vmem:[#allocation4 + $0x1b8] sm:$0xff]  }
 0x15e   : > { %v1373_v60 = vshrl.u32 %v9838_v13, 16  ;;  %v1375_v28 = vshll.u32 %v9838_v13, 16  ;;  %v610_v44 = vrot.slane %v608_v43, 7  ;;  %v12948_v21 = vld [vmem:[#allocation4 + $0x140] sm:$0xff]   ;;  %10748 = vmatpush3.bf16.msra.mxu0 %v12946_v45  ;;  %v14449_v27 = vcombine.low %v14389_v5, %v1605_v37 }
 0x15f   : > { %16127 = vst [vmem:[#allocation47_spill] sm:$0xff] %v14430_v25  ;;  %11802 = vmatmul.mubr.bf16.gmra.mrb[12].mxu1 %v14430_v25  ;;  %v14446_v36 = vor.u32 %v1363_v11, %v1359_v26  ;;  %v1370_v17 = vrot.slane %v1368_v19, 1  ;;  %v12949_v25 = vld [vmem:[#allocation4 + $0x280] sm:$0xff]   ;;  %11805 = vmatprep.subr.bf16.mxu1 %v12948_v21  ;;  %v9942_v26 = vcombine.low %v14245_v53, %v14444_v7  ;;  %v1014_v11 = vld [vmem:[#allocation2 + $0x28] sm:$0xe] }
 0x160   : > { %2375 = vmatprep.mubr.bf16.mxu1 %v9939_v63  ;;  %16130 = vst [vmem:[#allocation50_spill] sm:$0xff] %v14449_v27  ;;  %v1377_v40 = vrot.slane %v1375_v28, 1  ;;  %v613_v22 = vor.u32 %v611_v47, %v610_v44  ;;  %v614_v41 = vrot.slane %v610_v44, 4  ;;  %v9938_v63 = vcombine.low %v14202_v49, %v14204_v50  ;;  %10813 = vmatprep.subr.bf16.mxu0 %v12949_v25  ;;  %v12951_v49 = vld [vmem:[#allocation4 + $0x148] sm:$0xff]   ;;  %v12955_v44 = vld [vmem:[#allocation4 + $0x150] sm:$0xff]  }
 0x161   : > { %v14452_v55 = vcombine.low %v1357_v48, %v14446_v36  ;;  %v14464_v47 = vor.u32 %v1370_v17, %v1366_v51  ;;  %v538_v50 = vld [vmem:[#allocation3 + $0x2c] sm:$0xf]  ;;  %v14468_v25 = vld [vmem:[#allocation2 + $0x28] sm:$0xf]  ;;  %v14472_v13 = vcombine.low %v14369_v58, %v14412_v24  ;;  %v9941_v58 = vcombine.low %v14212_v12, %v14395_v61 }
 0x162   : > { %v836_v45 = vsel %vm14173_vm6, %v613_v22, %v835_v18  ;;  %v839_v37 = vsel %vm14048_vm2, %v614_v41, %v838_v39  ;;  %v14466_v5 = vor.u32 %v1377_v40, %v1373_v60  ;;  %v640_v19 = vshrl.u32 %v538_v50, 16  ;;  %v978_v48 = vld [vmem:[#allocation2 + $0x2c] sm:$0x1]  ;;  %v859_v18 = vld [vmem:[#allocation2 + $0x80] sm:$0xf] }
 0x163   : > { %1973 = vmatmul.mubr.bf16.gmra.mrb[20].mxu0 %v14438_v23  ;;  %837 = vst [vmem:[#allocation2 + $0x50] sm:$0xf] %v836_v45  ;;  %840 = vst [vmem:[#allocation2 + $0x54] sm:$0x1] %v839_v37  ;;  %v643_v53 = vshll.u32 %v538_v50, 16  ;;  %v9858_v51 = vcombine.low %v1014_v11, %v978_v48  ;;  %v9822_v28 = vcombine.low %v14468_v25, %v978_v48  ;;  %v12959_v37 = vld [vmem:[#allocation4 + $0x158] sm:$0xff]  }
 0x164   : > { %1980 = vmatprep.mubr.bf16.mxu0 %v14452_v55  ;;  %v642_v43 = vrot.slane %v640_v19, 7  ;;  %v14476_v39 = vcombine.low %v14464_v47, %v14466_v5  ;;  %v862_v60 = vld [vmem:[#allocation2 + $0x84] sm:$0x1]  ;;  %v14504_v19 = vcombine.low %v14425_v29, %v14427_v30  ;;  %v542_v48 = vld [vmem:[#allocation3 + $0x3c] sm:$0xf]  ;;  %v12957_v12 = vld [vmem:[#allocation4 + $0x288] sm:$0xff]  }
 0x165   : > { %v14479_v22 = vrot.slane %v9858_v51, 1  ;;  %v672_v51 = vshrl.u32 %v542_v48, 16 }
 0x166   : > { %16131 = vst [vmem:[#allocation51_spill] sm:$0xff] %v14476_v39  ;;  %v645_v17 = vor.u32 %v643_v53, %v642_v43  ;;  %v646_v40 = vrot.slane %v642_v43, 4  ;;  %16132 = vst [vmem:[#allocation52_spill] sm:$0xff] %v14504_v19  ;;  %v1261_v53 = vshrl.u32 %v9822_v28, 16  ;;  %v12961_v43 = vld [vmem:[#allocation4 + $0x160] sm:$0xff]  }
 0x167   : > { %2376 = vmatmul.mubr.bf16.vlgmr.msra.gmra.mrb[16].mxu1 %v9938_v63 }
 0x168   : > { %2383 = vmatprep.mubr.bf16.mxu1 %v9942_v26  ;;  %11806 = vmatpush3.bf16.msra.mxu1 %v12948_v21  ;;  %v14485_v21 = vcombine.low %v14279_v2, %v14343_v62  ;;  %v860_v26 = vsel %vm14173_vm6, %v645_v17, %v859_v18  ;;  %v863_v45 = vsel %vm14048_vm2, %v646_v40, %v862_v60  ;;  %v1263_v62 = vshll.u32 %v9822_v28, 16  ;;  %v886_v17 = vld [vmem:[#allocation2 + $0xb4] sm:$0x1]  ;;  %v14506_v40 = vld [vmem:[#allocation2 + $0x58] sm:$0xf] }
 0x169   : > { %11807 = vmatprep.subr.bf16.mxu1 %v12951_v49  ;;  %861 = vst [vmem:[#allocation2 + $0x80] sm:$0xf] %v860_v26  ;;  %864 = vst [vmem:[#allocation2 + $0x84] sm:$0x1] %v863_v45  ;;  %v675_v60 = vshll.u32 %v542_v48, 16  ;;  %v14512_v26 = vcombine.low %v14265_v20, %v14315_v57  ;;  %v674_v28 = vrot.slane %v672_v51, 7 }
 0x16a   : > { %v14488_v41 = vld [vmem:[#allocation2 + $0x50] sm:$0xf]  ;;  %v14490_v63 = vld [vmem:[#allocation2 + $0x54] sm:$0x1]  ;;  %v1265_v11 = vrot.slane %v1263_v62, 1  ;;  %v12950_v51 = vld [vmem:[#allocation4 + $0x240] sm:$0xff]  }
 0x16b   : > { %1981 = vmatmul.mubr.bf16.gmra.mrb[24].mxu0 %v14472_v13  ;;  %v9827_v2 = vcombine.low %v14488_v41, %v14490_v63  ;;  %v678_v48 = vrot.slane %v674_v28, 4 }
 0x16c   : > { %11808 = vmatpush3.bf16.msra.mxu1 %v12951_v49  ;;  %1988 = vmatprep.mubr.bf16.mxu0 %v14476_v39  ;;  %v1266_v57 = vor.u32 %v1265_v11, %v1261_v53 }
 0x16d   : > { %11809 = vmatprep.subr.bf16.mxu1 %v12955_v44  ;;  %v1296_v49 = vshrl.u32 %v9827_v2, 16  ;;  %v1298_v50 = vshll.u32 %v9827_v2, 16 }
 0x16e   : > { %v9987_v11 = vcombine.low %v14444_v7, %v1266_v57  ;;  %v12971_v7 = vld [vmem:[#allocation4 + $0x178] sm:$0xff]   ;;  %v12962_v57 = vld [vmem:[#allocation4 + $0x290] sm:$0xff]  }
 0x16f   : > { %2384 = vmatmul.mubr.bf16.gmra.mrb[20].mxu1 %v9941_v58  ;;  %v1300_v18 = vrot.slane %v1298_v50, 1  ;;  %v14508_v58 = vld [vmem:[#allocation2 + $0x5c] sm:$0x1] }
 0x170   : > { %2391 = vmatprep.mubr.bf16.mxu1 %v14485_v21  ;;  %11810 = vmatpush3.bf16.msra.mxu1 %v12955_v44  ;;  %v883_v44 = vld [vmem:[#allocation2 + $0xb0] sm:$0xf]  ;;  %v14517_v2 = vld [vmem:[#allocation2 + $0x80] sm:$0xf]  ;;  %v14519_v62 = vld [vmem:[#allocation2 + $0x84] sm:$0x1] }
 0x171   : > { %11811 = vmatprep.subr.bf16.mxu1 %v12959_v37  ;;  %v14514_v45 = vor.u32 %v1300_v18, %v1296_v49  ;;  %v9833_v20 = vcombine.low %v14517_v2, %v14519_v62  ;;  %v12964_v49 = vld [vmem:[#allocation4 + $0x168] sm:$0xff]   ;;  %v677_v18 = vor.u32 %v675_v60, %v674_v28  ;;  %v12967_v60 = vld [vmem:[#allocation4 + $0x170] sm:$0xff]  }
 0x172   : > { %v12958_v28 = vld [vmem:[#allocation4 + $0x248] sm:$0xff]  }
 0x173   : > { %1989 = vmatmul.mubr.bf16.gmra.mrb[28].mxu0 %v14504_v19  ;;  %v14523_v50 = vcombine.low %v14345_v32, %v14514_v45  ;;  %v9828_v32 = vcombine.low %v14506_v40, %v14508_v58  ;;  %v884_v53 = vsel %vm14173_vm6, %v677_v18, %v883_v44 }
 0x174   : > { %11812 = vmatpush3.bf16.msra.mxu1 %v12959_v37  ;;  %2810 = vmatprep.mubr.bf16.mxu0 %v14252_v0  ;;  %v887_v37 = vsel %vm14048_vm2, %v678_v48, %v886_v17  ;;  %v1340_v0 = vshll.u32 %v9833_v20, 16  ;;  %885 = vst [vmem:[#allocation2 + $0xb0] sm:$0xf] %v884_v53  ;;  %v14539_v17 = vcombine.low %v14317_v59, %v14488_v41  ;;  %v12963_v59 = vld [vmem:[#allocation4 + $0x250] sm:$0xff]   ;;  %v12973_v53 = vld [vmem:[#allocation4 + $0x2a0] sm:$0xff]  }
 0x175   : > { %16133 = vst [vmem:[#allocation53_spill] sm:$0xff] %v14523_v50  ;;  %11813 = vmatprep.subr.bf16.mxu1 %v12961_v43  ;;  %888 = vst [vmem:[#allocation2 + $0xb4] sm:$0x1] %v887_v37  ;;  %v1305_v48 = vshll.u32 %v9828_v32, 16  ;;  %v1303_v18 = vshrl.u32 %v9828_v32, 16 }
 0x176   : > { %v1342_v44 = vrot.slane %v1340_v0, 1  ;;  %v12970_v0 = vld [vmem:[#allocation4 + $0x258] sm:$0xff]  }
 0x177   : > { %2392 = vmatmul.mubr.bf16.gmra.mrb[24].mxu1 %v14512_v26 }
 0x178   : > { %2399 = vmatprep.mubr.bf16.mxu1 %v14523_v50  ;;  %11814 = vmatpush3.bf16.msra.mxu1 %v12961_v43  ;;  %v14543_v50 = vcombine.low %v14402_v35, %v14414_v3  ;;  %v1338_v43 = vshrl.u32 %v9833_v20, 16  ;;  %v1307_v35 = vrot.slane %v1305_v48, 1  ;;  %v12969_v20 = vld [vmem:[#allocation4 + $0x298] sm:$0xff]   ;;  %v12980_v48 = vld [vmem:[#allocation4 + $0x2a8] sm:$0xff]  }
 0x179   : > { %11815 = vmatprep.subr.bf16.mxu1 %v12964_v49 }
 0x17a   : > { %v14548_v37 = vor.u32 %v1342_v44, %v1338_v43  ;;  %v14580_v43 = vcombine.low %v14387_v52, %v14517_v2  ;;  %v14584_v44 = vcombine.low %v14446_v36, %v14464_v47  ;;  %v14592_v36 = vcombine.low %v14488_v41, %v14506_v40  ;;  %v12993_v40 = vld [vmem:[#allocation4 + $0x278] sm:$0xff]  }
 0x17b   : > { %2811 = vmatmul.mubr.bf16.vlgmr.msra.gmra.mrb[32].mxu0 %v14259_v10  ;;  %v9986_v10 = vcombine.low %v14395_v61, %v14468_v25  ;;  %v1308_v25 = vor.u32 %v1307_v35, %v1303_v18  ;;  %v12985_v18 = vld [vmem:[#allocation4 + $0x2b0] sm:$0xff]  }
 0x17c   : > { %11816 = vmatpush3.bf16.msra.mxu1 %v12964_v49  ;;  %10814 = vmatpush3.bf16.msra.mxu0 %v12950_v51  ;;  %v14552_v3 = vld [vmem:[#allocation2 + $0xb4] sm:$0x1]  ;;  %v14554_v49 = vld [vmem:[#allocation4 + $0x200] sm:$0xff]   ;;  %v14560_v51 = vcombine.low %v14379_v9, %v14385_v16  ;;  %v14564_v32 = vcombine.low %v14420_v56, %v14548_v37  ;;  %v954_v9 = vld [vmem:[#allocation2 + $0x88] sm:$0xf] }
 0x17d   : > { %2818 = vmatprep.mubr.bf16.mxu0 %v9987_v11  ;;  %10815 = vmatprep.subr.bf16.mxu0 %v12957_v12  ;;  %v14556_v12 = vld [vmem:[#allocation2 + $0xb0] sm:$0xf]  ;;  %v14570_v16 = vld [vmem:[#allocation2 + $0x8c] sm:$0x1]  ;;  %v14575_v11 = vcombine.low %v14514_v45, %v1308_v25 }
 0x17e   : > { %11817 = vmatprep.subr.bf16.mxu1 %v12967_v60  ;;  %v9839_v61 = vcombine.low %v14556_v12, %v14552_v3  ;;  %v12986_v35 = vld [vmem:[#allocation4 + $0x270] sm:$0xff]  }
 0x17f   : > { %2400 = vmatmul.mubr.bf16.gmra.mrb[28].mxu1 %v14539_v17 }
 0x180   : > { %2407 = vmatprep.mubr.bf16.mxu1 %v14543_v50  ;;  %11818 = vmatpush3.bf16.msra.mxu1 %v12967_v60  ;;  %v1382_v56 = vshll.u32 %v9839_v61, 16  ;;  %v12974_v60 = vld [vmem:[#allocation4 + $0x260] sm:$0xff]  }
 0x181   : > { %10816 = vmatpush3.bf16.msra.mxu0 %v12958_v28  ;;  %11819 = vmatprep.subr.bf16.mxu1 %v12971_v7  ;;  %v9834_v28 = vcombine.low %v954_v9, %v14570_v16 }
 0x182   : > { %10817 = vmatprep.subr.bf16.mxu0 %v12962_v57  ;;  %v1384_v57 = vrot.slane %v1382_v56, 1  ;;  %v12996_v56 = vld [vmem:[#allocation4 + $0x340] sm:$0xff]  }
 0x183   : > { %2819 = vmatmul.mubr.bf16.gmra.mrb[36].mxu0 %v9986_v10  ;;  %v1347_v45 = vshll.u32 %v9834_v28, 16  ;;  %v1345_v47 = vshrl.u32 %v9834_v28, 16  ;;  %v1019_v28 = vld [vmem:[#allocation2 + $0x50] sm:$0xe] }
 0x184   : > { %11820 = vmatpush3.bf16.msra.mxu1 %v12971_v7  ;;  %2826 = vmatprep.mubr.bf16.mxu0 %v14357_v15  ;;  %v1380_v7 = vshrl.u32 %v9839_v61, 16  ;;  %v14596_v61 = vcombine.low %v14412_v24, %v14425_v29 }
 0x185   : > { %10818 = vmatpush3.bf16.msra.mxu0 %v12963_v59  ;;  %11837 = vmatprep.subr.bf16.mxu1 %v14554_v49  ;;  %v12981_v59 = vld [vmem:[#allocation4 + $0x268] sm:$0xff]   ;;  %v1349_v10 = vrot.slane %v1347_v45, 1  ;;  %v1025_v45 = vld [vmem:[#allocation2 + $0x80] sm:$0xe] }
 0x186   : > { %10819 = vmatprep.subr.bf16.mxu0 %v12969_v20  ;;  %v1385_v52 = vor.u32 %v1384_v57, %v1380_v7  ;;  %v12992_v20 = vld [vmem:[#allocation4 + $0x2b8] sm:$0xff]  }
 0x187   : > { %2408 = vmatmul.mubr.bf16.gmra.mrb[32].mxu1 %v14560_v51  ;;  %v1350_v41 = vor.u32 %v1349_v10, %v1345_v47  ;;  %v12975_v10 = vld [vmem:[#allocation4 + $0x208] sm:$0xff]  }
 0x188   : > { %2415 = vmatprep.mubr.bf16.mxu1 %v14564_v32  ;;  %v14599_v25 = vcombine.low %v14466_v5, %v1385_v52  ;;  %v14616_v5 = vcombine.low %v14427_v30, %v14556_v12  ;;  %v9863_v30 = vcombine.low %v1019_v28, %v14490_v63  ;;  %v892_v63 = vld [vmem:[#allocation2 + $0xcc] sm:$0x1]  ;;  %v544_v28 = vld [vmem:[#allocation3 + $0x44] sm:$0xf] }
 0x189   : > { %10820 = vmatpush3.bf16.msra.mxu0 %v12970_v0  ;;  %v14602_v0 = vld [vmem:[#allocation2 + $0xb8] sm:$0xf]  ;;  %v14610_v24 = vcombine.low %v14548_v37, %v1350_v41  ;;  %v16135_v37 = vcombine.low %v14208_v4, %v14214_v14  ;;  %v9869_v14 = vcombine.low %v1025_v45, %v14519_v62 }
 0x18a   : > { %10821 = vmatprep.subr.bf16.mxu0 %v12973_v53  ;;  %v14604_v53 = vld [vmem:[#allocation2 + $0xbc] sm:$0x1]  ;;  %v14630_v4 = vrot.slane %v9863_v30, 1 }
 0x18b   : > { %2827 = vmatmul.mubr.bf16.gmra.mrb[40].mxu0 %v14338_v34  ;;  %16134 = vst [vmem:[#allocation54_spill] sm:$0xff] %v14610_v24  ;;  %v9840_v29 = vcombine.low %v14602_v0, %v14604_v53  ;;  %v14644_v62 = vrot.slane %v9869_v14, 1  ;;  %v12984_v14 = vld [vmem:[#allocation4 + $0x220] sm:$0xff]  }
 0x18c   : > { %2834 = vmatprep.mubr.bf16.mxu0 %v14575_v11 }
 0x18d   : > { %10822 = vmatpush3.bf16.msra.mxu0 %v12974_v60  ;;  %v1389_v60 = vshll.u32 %v9840_v29, 16  ;;  %v1387_v7 = vshrl.u32 %v9840_v29, 16 }
 0x18e   : > { %10823 = vmatprep.subr.bf16.mxu0 %v12980_v48  ;;  %v14625_v48 = vcombine.low %v14517_v2, %v954_v9  ;;  %v16137_v9 = vcombine.low %v14226_v33, %v14232_v38 }
 0x18f   : > { %2416 = vmatmul.mubr.bf16.gmra.mrb[36].mxu1 %v14580_v43  ;;  %v1391_v57 = vrot.slane %v1389_v60, 1  ;;  %v14642_v60 = vcombine.low %v14299_v42, %v14630_v4  ;;  %v895_v42 = vld [vmem:[#allocation2 + $0xd0] sm:$0xf] }
 0x190   : > { %2423 = vmatprep.mubr.bf16.mxu1 %v14584_v44  ;;  %16136 = vst [vmem:[#allocation55_spill] sm:$0xff] %v14625_v48 }
 0x191   : > { %10824 = vmatpush3.bf16.msra.mxu0 %v12981_v59  ;;  %v543_v59 = vld [vmem:[#allocation3 + $0x40] sm:$0xf] }
 0x192   : > { %10825 = vmatprep.subr.bf16.mxu0 %v12985_v18  ;;  %v680_v18 = vshrl.u32 %v543_v59, 16  ;;  %v683_v47 = vshll.u32 %v543_v59, 16  ;;  %v898_v59 = vld [vmem:[#allocation2 + $0xd4] sm:$0x1] }
 0x193   : > { %2835 = vmatmul.mubr.bf16.gmra.mrb[44].mxu0 %v14592_v36 }
 0x194   : > { %2842 = vmatprep.mubr.bf16.mxu0 %v14434_v31  ;;  %v682_v2 = vrot.slane %v680_v18, 7  ;;  %v901_v18 = vld [vmem:[#allocation2 + $0xd8] sm:$0xf] }
 0x195   : > { %10826 = vmatpush3.bf16.msra.mxu0 %v12986_v35  ;;  %v1392_v35 = vor.u32 %v1391_v57, %v1387_v7  ;;  %v12982_v7 = vld [vmem:[#allocation4 + $0x218] sm:$0xff]   ;;  %v688_v57 = vshrl.u32 %v544_v28, 16 }
 0x196   : > { %10827 = vmatprep.subr.bf16.mxu0 %v12992_v20  ;;  %v889_v20 = vld [vmem:[#allocation2 + $0xc8] sm:$0xf]  ;;  %v685_v41 = vor.u32 %v683_v47, %v682_v2 }
 0x197   : > { %2424 = vmatmul.mubr.bf16.gmra.mrb[40].mxu1 %v14596_v61  ;;  %v14638_v29 = vcombine.low %v1385_v52, %v1392_v35  ;;  %v691_v52 = vshll.u32 %v544_v28, 16  ;;  %v690_v47 = vrot.slane %v688_v57, 7  ;;  %v16141_v57 = vld [vmem:[#allocation38_spill] sm:$0xff] }
 0x198   : > { %2431 = vmatprep.mubr.bf16.mxu1 %v14599_v25  ;;  %v890_v33 = vsel %vm14173_vm6, %v685_v41, %v889_v20  ;;  %v904_v20 = vld [vmem:[#allocation2 + $0xdc] sm:$0x1] }
 0x199   : > { %10828 = vmatpush3.bf16.msra.mxu0 %v12993_v40  ;;  %v686_v40 = vrot.slane %v682_v2, 4  ;;  %16138 = vst [vmem:[#allocation56_spill] sm:$0xff] %v14638_v29  ;;  %891 = vst [vmem:[#allocation2 + $0xc8] sm:$0xf] %v890_v33  ;;  %v693_v2 = vor.u32 %v691_v52, %v690_v47 }
 0x19a   : > { %10893 = vmatprep.subr.bf16.mxu0 %v12996_v56  ;;  %v12979_v56 = vld [vmem:[#allocation4 + $0x210] sm:$0xff]  }
 0x19b   : > { %2843 = vmatmul.mubr.bf16.gmra.mrb[48].mxu0 %v14438_v23  ;;  %v896_v33 = vsel %vm14173_vm6, %v693_v2, %v895_v42  ;;  %v16144_v42 = vld [vmem:[#allocation37_spill] sm:$0xff]  ;;  %v13007_v2 = vld [vmem:[#allocation4 + $0x310] sm:$0xff]  }
 0x19c   : > { %2850 = vmatprep.mubr.bf16.mxu0 %v14610_v24  ;;  %897 = vst [vmem:[#allocation2 + $0xd0] sm:$0xf] %v896_v33  ;;  %v13012_v33 = vld [vmem:[#allocation4 + $0x318] sm:$0xff]  }
 0x19f   : > { %2432 = vmatmul.mubr.bf16.gmra.mrb[44].mxu1 %v14616_v5 }
 0x1a0   : > { %11821 = vmatprep.mubr.bf16.mxu1 %v16135_v37  ;;  %v545_v37 = vld [vmem:[#allocation3 + $0x48] sm:$0xf] }
 0x1a1   : > { %v696_v30 = vshrl.u32 %v545_v37, 16  ;;  %v699_v45 = vshll.u32 %v545_v37, 16  ;;  %v12987_v37 = vld [vmem:[#allocation4 + $0x228] sm:$0xff]  }
 0x1a3   : > { %2851 = vmatmul.mubr.bf16.gmra.mrb[52].mxu0 %v14625_v48  ;;  %v698_v35 = vrot.slane %v696_v30, 7  ;;  %v12991_v30 = vld [vmem:[#allocation4 + $0x230] sm:$0xff]  }
 0x1a4   : > { %2858 = vmatprep.mubr.bf16.mxu0 %v14476_v39 }
 0x1a5   : > { %v702_v41 = vrot.slane %v698_v35, 4 }
 0x1a7   : > { %11822 = vmatmul.mubr.bf16.vlgmr.msra.gmra.mrb[0].mxu1 %v16137_v9  ;;  %v694_v9 = vrot.slane %v690_v47, 4  ;;  %v13006_v47 = vld [vmem:[#allocation4 + $0x350] sm:$0xff]  }
 0x1a8   : > { %11838 = vmatpush3.bf16.msra.mxu1 %v14554_v49  ;;  %11825 = vmatprep.mubr.bf16.mxu1 %v14308_v54  ;;  %v893_v49 = vsel %vm14048_vm2, %v686_v40, %v892_v63  ;;  %v701_v63 = vor.u32 %v699_v45, %v698_v35  ;;  %v14656_v40 = vcombine.low %v14556_v12, %v14602_v0  ;;  %v13001_v45 = vld [vmem:[#allocation4 + $0x348] sm:$0xff]   ;;  %v1020_v35 = vld [vmem:[#allocation2 + $0x58] sm:$0xe] }
 0x1a9   : > { %11839 = vmatprep.subr.bf16.mxu1 %v12975_v10  ;;  %894 = vst [vmem:[#allocation2 + $0xcc] sm:$0x1] %v893_v49  ;;  %v899_v49 = vsel %vm14048_vm2, %v694_v9, %v898_v59  ;;  %v14668_v12 = vcombine.low %v14349_v8, %v14644_v62  ;;  %v12997_v8 = vld [vmem:[#allocation4 + $0x300] sm:$0xff]   ;;  %v12994_v59 = vld [vmem:[#allocation4 + $0x238] sm:$0xff]   ;;  %v9864_v9 = vcombine.low %v1020_v35, %v14508_v58  ;;  %v14700_v35 = vld [vmem:[#allocation2 + $0xc8] sm:$0xf] }
 0x1aa   : > { %16139 = vst [vmem:[#allocation57_spill] sm:$0xff] %v14656_v40  ;;  %v902_v28 = vsel %vm14173_vm6, %v701_v63, %v901_v18  ;;  %900 = vst [vmem:[#allocation2 + $0xd4] sm:$0x1] %v899_v49  ;;  %v13002_v18 = vld [vmem:[#allocation4 + $0x308] sm:$0xff]   ;;  %v13011_v63 = vld [vmem:[#allocation4 + $0x358] sm:$0xff]   ;;  %v16147_v49 = vcombine.low %v14232_v38, %v14479_v22 }
 0x1ab   : > { %2859 = vmatmul.mubr.bf16.gmra.mrb[56].mxu0 %v14504_v19  ;;  %903 = vst [vmem:[#allocation2 + $0xd8] sm:$0xf] %v902_v28  ;;  %16140 = vst [vmem:[#allocation58_spill] sm:$0xff] %v14668_v12  ;;  %v1596_v28 = vrot.slane %v9864_v9, 1  ;;  %v16148_v58 = vld [vmem:[#allocation39_spill] sm:$0xff] }
 0x1ac   : > { %11840 = vmatpush3.bf16.msra.mxu1 %v12975_v10  ;;  %2866 = vmatprep.mubr.bf16.mxu0 %v14638_v29  ;;  %v1031_v10 = vld [vmem:[#allocation2 + $0xb0] sm:$0xe]  ;;  %v14694_v38 = vld [vmem:[#allocation2 + $0xc4] sm:$0x1] }
 0x1ad   : > { %11841 = vmatprep.subr.bf16.mxu1 %v12979_v56  ;;  %v9875_v0 = vcombine.low %v1031_v10, %v14552_v3  ;;  %v16142_v3 = vld [vmem:[#allocation46_spill] sm:$0xff]  ;;  %v16146_v10 = vld [vmem:[#allocation45_spill] sm:$0xff] }
 0x1af   : > { %11826 = vmatmul.mubr.bf16.gmra.mrb[4].mxu1 %v14642_v60  ;;  %v14674_v52 = vrot.slane %v9875_v0, 1  ;;  %v546_v0 = vld [vmem:[#allocation3 + $0x4c] sm:$0xf] }
 0x1b0   : > { %11842 = vmatpush3.bf16.msra.mxu1 %v12979_v56  ;;  %11829 = vmatprep.mubr.bf16.mxu1 %v14364_v46  ;;  %v905_v56 = vsel %vm14048_vm2, %v702_v41, %v904_v20  ;;  %v16145_v20 = vld [vmem:[#allocation35_spill] sm:$0xff]  ;;  %v12998_v41 = vld [vmem:[#allocation4 + $0x2c8] sm:$0xff]  }
 0x1b1   : > { %11843 = vmatprep.subr.bf16.mxu1 %v12982_v7  ;;  %906 = vst [vmem:[#allocation2 + $0xdc] sm:$0x1] %v905_v56  ;;  %v13014_v56 = vld [vmem:[#allocation4 + $0x360] sm:$0xff]  }
 0x1b3   : > { %2867 = vmatmul.mubr.bf16.gmra.mrb[60].mxu0 %v14656_v40 }
 0x1b4   : > { %11844 = vmatpush3.bf16.msra.mxu1 %v12982_v7  ;;  %3233 = vmatprep.mubr.bf16.mxu0 %v16141_v57  ;;  %v14679_v7 = vcombine.low %v16142_v3, %v14674_v52  ;;  %v1026_v57 = vld [vmem:[#allocation2 + $0x88] sm:$0xe]  ;;  %v907_v3 = vld [vmem:[#allocation2 + $0xe0] sm:$0xf] }
 0x1b5   : > { %11845 = vmatprep.subr.bf16.mxu1 %v12984_v14 }
 0x1b6   : > { %16143 = vst [vmem:[#allocation38_spill] sm:$0xff] %v14679_v7 }
 0x1b7   : > { %11830 = vmatmul.mubr.bf16.gmra.mrb[8].mxu1 %v14668_v12 }
 0x1b8   : > { %11846 = vmatpush3.bf16.msra.mxu1 %v12984_v14  ;;  %11833 = vmatprep.mubr.bf16.mxu1 %v14449_v27  ;;  %v12995_v14 = vld [vmem:[#allocation4 + $0x2c0] sm:$0xff]  }
 0x1b9   : > { %11847 = vmatprep.subr.bf16.mxu1 %v12987_v37 }
 0x1bb   : > { %3234 = vmatmul.mubr.bf16.vlgmr.msra.gmra.mrb[64].mxu0 %v16144_v42  ;;  %v13018_v42 = vld [vmem:[#allocation4 + $0x368] sm:$0xff]  }
 0x1bc   : > { %11848 = vmatpush3.bf16.msra.mxu1 %v12987_v37  ;;  %10894 = vmatpush3.bf16.msra.mxu0 %v12997_v8  ;;  %v13000_v37 = vld [vmem:[#allocation4 + $0x2d0] sm:$0xff]   ;;  %v704_v8 = vshrl.u32 %v546_v0, 16 }
 0x1bd   : > { %11849 = vmatprep.subr.bf16.mxu1 %v12991_v30  ;;  %3241 = vmatprep.mubr.bf16.mxu0 %v14357_v15 }
 0x1be   : > { %10895 = vmatprep.subr.bf16.mxu0 %v13001_v45  ;;  %v707_v45 = vshll.u32 %v546_v0, 16  ;;  %v706_v22 = vrot.slane %v704_v8, 7  ;;  %v16151_v0 = vld [vmem:[#allocation41_spill] sm:$0xff] }
 0x1bf   : > { %11834 = vmatmul.mubr.bf16.gmra.mrb[12].mxu1 %v14679_v7  ;;  %v13005_v8 = vld [vmem:[#allocation4 + $0x2e0] sm:$0xff]  }
 0x1c0   : > { %11850 = vmatpush3.bf16.msra.mxu1 %v12991_v30  ;;  %11853 = vmatprep.mubr.bf16.mxu1 %v16145_v20  ;;  %v13016_v30 = vld [vmem:[#allocation4 + $0x320] sm:$0xff]   ;;  %v709_v9 = vor.u32 %v707_v45, %v706_v22  ;;  %v13027_v45 = vld [vmem:[#allocation4 + $0x330] sm:$0xff]  }
 0x1c1   : > { %11851 = vmatprep.subr.bf16.mxu1 %v12994_v59  ;;  %10896 = vmatpush3.bf16.msra.mxu0 %v13002_v18  ;;  %v14697_v18 = vcombine.low %v14630_v4, %v1596_v28  ;;  %v910_v20 = vld [vmem:[#allocation2 + $0xe4] sm:$0x1]  ;;  %v13020_v4 = vld [vmem:[#allocation4 + $0x328] sm:$0xff]  }
 0x1c2   : > { %10897 = vmatprep.subr.bf16.mxu0 %v13006_v47  ;;  %v9870_v47 = vcombine.low %v1026_v57, %v14570_v16  ;;  %v908_v16 = vsel %vm14173_vm6, %v709_v9, %v907_v3  ;;  %v1032_v57 = vld [vmem:[#allocation2 + $0xb8] sm:$0xe] }
 0x1c3   : > { %3242 = vmatmul.mubr.bf16.gmra.mrb[68].mxu0 %v14338_v34  ;;  %16149 = vst [vmem:[#allocation46_spill] sm:$0xff] %v14697_v18  ;;  %909 = vst [vmem:[#allocation2 + $0xe0] sm:$0xf] %v908_v16  ;;  %v13038_v9 = vld [vmem:[#allocation4 + $0x338] sm:$0xff]  }
 0x1c4   : > { %11852 = vmatpush3.bf16.msra.mxu1 %v12994_v59  ;;  %3249 = vmatprep.mubr.bf16.mxu0 %v16146_v10  ;;  %v14692_v59 = vld [vmem:[#allocation2 + $0xc0] sm:$0xf]  ;;  %v14728_v16 = vld [vmem:[#allocation2 + $0xdc] sm:$0x1] }
 0x1c5   : > { %11869 = vmatprep.subr.bf16.mxu1 %v12995_v14  ;;  %10898 = vmatpush3.bf16.msra.mxu0 %v13007_v2  ;;  %v16150_v2 = vld [vmem:[#allocation44_spill] sm:$0xff]  ;;  %v9841_v28 = vcombine.low %v14692_v59, %v14694_v38 }
 0x1c6   : > { %10899 = vmatprep.subr.bf16.mxu0 %v13011_v63  ;;  %v710_v63 = vrot.slane %v706_v22, 4  ;;  %v9876_v22 = vcombine.low %v1032_v57, %v14604_v53  ;;  %v13010_v57 = vld [vmem:[#allocation4 + $0x2f0] sm:$0xff]  }
 0x1c7   : > { %11854 = vmatmul.mubr.bf16.vlgmr.msra.gmra.mrb[0].mxu1 %v16147_v49 }
 0x1c8   : > { %11870 = vmatpush3.bf16.msra.mxu1 %v12995_v14  ;;  %11857 = vmatprep.mubr.bf16.mxu1 %v16148_v58  ;;  %v13003_v14 = vld [vmem:[#allocation4 + $0x2d8] sm:$0xff]   ;;  %v911_v49 = vsel %vm14048_vm2, %v710_v63, %v910_v20  ;;  %v14722_v63 = vld [vmem:[#allocation2 + $0xd0] sm:$0xf]  ;;  %v1608_v53 = vrot.slane %v9876_v22, 1 }
 0x1c9   : > { %11871 = vmatprep.subr.bf16.mxu1 %v12998_v41  ;;  %10900 = vmatpush3.bf16.msra.mxu0 %v13012_v33  ;;  %v14704_v33 = vld [vmem:[#allocation2 + $0xcc] sm:$0x1]  ;;  %912 = vst [vmem:[#allocation2 + $0xe4] sm:$0x1] %v911_v49  ;;  %v13036_v20 = vld [vmem:[#allocation4 + $0x378] sm:$0xff]  }
 0x1ca   : > { %10901 = vmatprep.subr.bf16.mxu0 %v13014_v56  ;;  %v13025_v56 = vld [vmem:[#allocation4 + $0x370] sm:$0xff]   ;;  %v14737_v22 = vcombine.low %v14674_v52, %v1608_v53 }
 0x1cb   : > { %3250 = vmatmul.mubr.bf16.gmra.mrb[72].mxu0 %v16150_v2  ;;  %v16153_v49 = vld [vmem:[#allocation47_spill] sm:$0xff] }
 0x1cc   : > { %11872 = vmatpush3.bf16.msra.mxu1 %v12998_v41  ;;  %3257 = vmatprep.mubr.bf16.mxu0 %v14434_v31  ;;  %v1602_v41 = vrot.slane %v9870_v47, 1  ;;  %v1396_v47 = vshll.u32 %v9841_v28, 16  ;;  %16154 = vst [vmem:[#allocation35_spill] sm:$0xff] %v14737_v22 }
 0x1cd   : > { %11873 = vmatprep.subr.bf16.mxu1 %v13000_v37  ;;  %10902 = vmatpush3.bf16.msra.mxu0 %v13016_v30  ;;  %v9842_v30 = vcombine.low %v14700_v35, %v14704_v33 }
 0x1ce   : > { %10903 = vmatprep.subr.bf16.mxu0 %v13018_v42  ;;  %v14717_v3 = vcombine.low %v14644_v62, %v1602_v41  ;;  %v13008_v42 = vld [vmem:[#allocation4 + $0x2e8] sm:$0xff]   ;;  %v14726_v62 = vld [vmem:[#allocation2 + $0xd4] sm:$0x1]  ;;  %v1394_v41 = vshrl.u32 %v9841_v28, 16 }
 0x1cf   : > { %11858 = vmatmul.mubr.bf16.gmra.mrb[4].mxu1 %v14697_v18  ;;  %v1401_v18 = vshrl.u32 %v9842_v30, 16  ;;  %v9843_v40 = vcombine.low %v14722_v63, %v14726_v62 }
 0x1d0   : > { %11874 = vmatpush3.bf16.msra.mxu1 %v13000_v37  ;;  %11861 = vmatprep.mubr.bf16.mxu1 %v16151_v0  ;;  %16152 = vst [vmem:[#allocation37_spill] sm:$0xff] %v14717_v3  ;;  %v1403_v37 = vshll.u32 %v9842_v30, 16 }
 0x1d1   : > { %11875 = vmatprep.subr.bf16.mxu1 %v13003_v14  ;;  %10904 = vmatpush3.bf16.msra.mxu0 %v13020_v4  ;;  %v14724_v4 = vld [vmem:[#allocation2 + $0xd8] sm:$0xf]  ;;  %v1408_v52 = vshrl.u32 %v9843_v40, 16 }
 0x1d2   : > { %10905 = vmatprep.subr.bf16.mxu0 %v13025_v56  ;;  %v1398_v56 = vrot.slane %v1396_v47, 1  ;;  %v9844_v29 = vcombine.low %v14724_v4, %v14728_v16  ;;  %v1410_v47 = vshll.u32 %v9843_v40, 16  ;;  %v16157_v40 = vld [vmem:[#allocation40_spill] sm:$0xff] }
 0x1d3   : > { %3258 = vmatmul.mubr.bf16.gmra.mrb[76].mxu0 %v14438_v23 }
 0x1d4   : > { %11876 = vmatpush3.bf16.msra.mxu1 %v13003_v14  ;;  %3265 = vmatprep.mubr.bf16.mxu0 %v14452_v55  ;;  %v13041_v14 = vld [vmem:[#allocation4 + $0x4c0] sm:$0xff]   ;;  %v1399_v28 = vor.u32 %v1398_v56, %v1394_v41  ;;  %v1415_v53 = vshrl.u32 %v9844_v29, 16 }
 0x1d5   : > { %11877 = vmatprep.subr.bf16.mxu1 %v13005_v8  ;;  %10906 = vmatpush3.bf16.msra.mxu0 %v13027_v45  ;;  %v1405_v45 = vrot.slane %v1403_v37, 1  ;;  %v13015_v37 = vld [vmem:[#allocation4 + $0x380] sm:$0xff]  }
 0x1d6   : > { %10907 = vmatprep.subr.bf16.mxu0 %v13036_v20  ;;  %v1417_v20 = vshll.u32 %v9844_v29, 16  ;;  %v13019_v29 = vld [vmem:[#allocation4 + $0x390] sm:$0xff]  }
 0x1d7   : > { %11862 = vmatmul.mubr.bf16.gmra.mrb[8].mxu1 %v14717_v3  ;;  %v14741_v30 = vor.u32 %v1405_v45, %v1401_v18  ;;  %v13017_v18 = vld [vmem:[#allocation4 + $0x388] sm:$0xff]   ;;  %v1033_v45 = vld [vmem:[#allocation2 + $0xc0] sm:$0xe] }
 0x1d8   : > { %11878 = vmatpush3.bf16.msra.mxu1 %v13005_v8  ;;  %11865 = vmatprep.mubr.bf16.mxu1 %v16153_v49  ;;  %v13013_v8 = vld [vmem:[#allocation4 + $0x2f8] sm:$0xff]   ;;  %v1419_v3 = vrot.slane %v1417_v20, 1 }
 0x1d9   : > { %11879 = vmatprep.subr.bf16.mxu1 %v13008_v42  ;;  %10908 = vmatpush3.bf16.msra.mxu0 %v13038_v9  ;;  %v16155_v9 = vld [vmem:[#allocation36_spill] sm:$0xff] }
 0x1da   : > { %11053 = vmatprep.subr.bf16.mxu0 %v13041_v14  ;;  %v1412_v14 = vrot.slane %v1410_v47, 1  ;;  %v14752_v56 = vor.u32 %v1419_v3, %v1415_v53  ;;  %v13021_v3 = vld [vmem:[#allocation4 + $0x398] sm:$0xff]   ;;  %v9877_v47 = vcombine.low %v1033_v45, %v14694_v38  ;;  %v13026_v38 = vld [vmem:[#allocation4 + $0x3a0] sm:$0xff]  }
 0x1db   : > { %3266 = vmatmul.mubr.bf16.gmra.mrb[80].mxu0 %v14472_v13 }
 0x1dc   : > { %11880 = vmatpush3.bf16.msra.mxu1 %v13008_v42  ;;  %3273 = vmatprep.mubr.bf16.mxu0 %v14476_v39  ;;  %v14746_v42 = vcombine.low %v1399_v28, %v14741_v30  ;;  %v14750_v41 = vor.u32 %v1412_v14, %v1408_v52  ;;  %v1034_v28 = vld [vmem:[#allocation2 + $0xc8] sm:$0xe]  ;;  %v1609_v52 = vrot.slane %v9877_v47, 1  ;;  %v14774_v14 = vcombine.low %v14722_v63, %v14724_v4 }
 0x1dd   : > { %11881 = vmatprep.subr.bf16.mxu1 %v13010_v57  ;;  %v9878_v20 = vcombine.low %v1034_v28, %v14704_v33  ;;  %v547_v33 = vld [vmem:[#allocation3 + $0x50] sm:$0xf] }
 0x1de   : > { %16156 = vst [vmem:[#allocation45_spill] sm:$0xff] %v14746_v42  ;;  %16160 = vst [vmem:[#allocation36_spill] sm:$0xff] %v14774_v14  ;;  %v712_v28 = vshrl.u32 %v547_v33, 16 }
 0x1df   : > { %11866 = vmatmul.mubr.bf16.gmra.mrb[12].mxu1 %v14737_v22  ;;  %v14770_v53 = vrot.slane %v9878_v20, 1  ;;  %v913_v22 = vld [vmem:[#allocation2 + $0xf8] sm:$0xf] }
 0x1e0   : > { %11882 = vmatpush3.bf16.msra.mxu1 %v13010_v57  ;;  %11885 = vmatprep.mubr.bf16.mxu1 %v16155_v9  ;;  %v14758_v57 = vcombine.low %v14692_v59, %v14700_v35  ;;  %v1035_v59 = vld [vmem:[#allocation2 + $0xd0] sm:$0xe]  ;;  %v16159_v9 = vld [vmem:[#allocation43_spill] sm:$0xff]  ;;  %v714_v20 = vrot.slane %v712_v28, 7 }
 0x1e1   : > { %11883 = vmatprep.subr.bf16.mxu1 %v13013_v8  ;;  %v14779_v47 = vcombine.low %v1609_v52, %v14770_v53 }
 0x1e2   : > { %16158 = vst [vmem:[#allocation44_spill] sm:$0xff] %v14758_v57 }
 0x1e3   : > { %3274 = vmatmul.mubr.bf16.gmra.mrb[84].mxu0 %v14504_v19  ;;  %16161 = vst [vmem:[#allocation59_spill] sm:$0xff] %v14779_v47 }
 0x1e4   : > { %11884 = vmatpush3.bf16.msra.mxu1 %v13013_v8  ;;  %3281 = vmatprep.mubr.bf16.mxu0 %v14746_v42  ;;  %v14762_v8 = vcombine.low %v14750_v41, %v14752_v56  ;;  %v13053_v42 = vld [vmem:[#allocation4 + $0x4d0] sm:$0xff]  }
 0x1e5   : > { %11901 = vmatprep.subr.bf16.mxu1 %v13015_v37 }
 0x1e7   : > { %11886 = vmatmul.mubr.bf16.vlgmr.msra.gmra.mrb[0].mxu1 %v16148_v58 }
 0x1e8   : > { %11902 = vmatpush3.bf16.msra.mxu1 %v13015_v37  ;;  %11889 = vmatprep.mubr.bf16.mxu1 %v16157_v40  ;;  %v1036_v37 = vld [vmem:[#allocation2 + $0xd8] sm:$0xe]  ;;  %v715_v40 = vshll.u32 %v547_v33, 16 }
 0x1e9   : > { %11903 = vmatprep.subr.bf16.mxu1 %v13017_v18  ;;  %v9880_v45 = vcombine.low %v1036_v37, %v14728_v16  ;;  %v549_v37 = vld [vmem:[#allocation3 + $0x58] sm:$0xf] }
 0x1ea   : > { %v717_v16 = vor.u32 %v715_v40, %v714_v20  ;;  %v728_v28 = vshrl.u32 %v549_v37, 16 }
 0x1eb   : > { %3282 = vmatmul.mubr.bf16.gmra.mrb[88].mxu0 %v14758_v57  ;;  %v922_v57 = vld [vmem:[#allocation2 + $0x104] sm:$0x1] }
 0x1ec   : > { %11904 = vmatpush3.bf16.msra.mxu1 %v13017_v18  ;;  %3289 = vmatprep.mubr.bf16.mxu0 %v14762_v8  ;;  %v9879_v18 = vcombine.low %v1035_v59, %v14726_v62  ;;  %v14785_v62 = vrot.slane %v9880_v45, 1  ;;  %v718_v59 = vrot.slane %v714_v20, 4  ;;  %v914_v52 = vsel %vm14173_vm6, %v717_v16, %v913_v22  ;;  %v13043_v45 = vld [vmem:[#allocation4 + $0x480] sm:$0xff]   ;;  %v925_v16 = vld [vmem:[#allocation2 + $0x108] sm:$0xf] }
 0x1ed   : > { %11905 = vmatprep.subr.bf16.mxu1 %v13019_v29  ;;  %915 = vst [vmem:[#allocation2 + $0xf8] sm:$0xf] %v914_v52  ;;  %v731_v20 = vshll.u32 %v549_v37, 16  ;;  %v730_v22 = vrot.slane %v728_v28, 7 }
 0x1ef   : > { %11890 = vmatmul.mubr.bf16.gmra.mrb[4].mxu1 %v16151_v0  ;;  %v14783_v0 = vrot.slane %v9879_v18, 1  ;;  %v13037_v18 = vld [vmem:[#allocation4 + $0x3b0] sm:$0xff]   ;;  %v733_v37 = vor.u32 %v731_v20, %v730_v22 }
 0x1f0   : > { %11906 = vmatpush3.bf16.msra.mxu1 %v13019_v29  ;;  %11893 = vmatprep.mubr.bf16.mxu1 %v16159_v9  ;;  %v13028_v29 = vld [vmem:[#allocation4 + $0x3a8] sm:$0xff]   ;;  %v916_v9 = vld [vmem:[#allocation2 + $0xfc] sm:$0x1] }
 0x1f1   : > { %11907 = vmatprep.subr.bf16.mxu1 %v13021_v3 }
 0x1f3   : > { %3290 = vmatmul.mubr.bf16.gmra.mrb[92].mxu0 %v14774_v14  ;;  %v16162_v14 = vld [vmem:[#allocation53_spill] sm:$0xff] }
 0x1f4   : > { %11908 = vmatpush3.bf16.msra.mxu1 %v13021_v3  ;;  %3650 = vmatprep.mubr.bf16.mxu0 %v14485_v21  ;;  %v548_v3 = vld [vmem:[#allocation3 + $0x54] sm:$0xf]  ;;  %v917_v21 = vsel %vm14048_vm2, %v718_v59, %v916_v9  ;;  %v928_v9 = vld [vmem:[#allocation2 + $0x10c] sm:$0x1]  ;;  %v13039_v59 = vld [vmem:[#allocation4 + $0x3b8] sm:$0xff]  }
 0x1f5   : > { %11909 = vmatprep.subr.bf16.mxu1 %v13026_v38  ;;  %v720_v33 = vshrl.u32 %v548_v3, 16  ;;  %918 = vst [vmem:[#allocation2 + $0xfc] sm:$0x1] %v917_v21  ;;  %v723_v40 = vshll.u32 %v548_v3, 16  ;;  %v13049_v3 = vld [vmem:[#allocation4 + $0x488] sm:$0xff]  }
 0x1f7   : > { %11894 = vmatmul.mubr.bf16.gmra.mrb[8].mxu1 %v16153_v49  ;;  %v13047_v49 = vld [vmem:[#allocation4 + $0x4c8] sm:$0xff]   ;;  %v722_v58 = vrot.slane %v720_v33, 7  ;;  %v734_v33 = vrot.slane %v730_v22, 4 }
 0x1f8   : > { %11910 = vmatpush3.bf16.msra.mxu1 %v13026_v38  ;;  %11897 = vmatprep.mubr.bf16.mxu1 %v14779_v47  ;;  %v919_v38 = vld [vmem:[#allocation2 + $0x100] sm:$0xf]  ;;  %v14795_v47 = vcombine.low %v14783_v0, %v14785_v62 }
 0x1f9   : > { %11911 = vmatprep.subr.bf16.mxu1 %v13028_v29  ;;  %v725_v52 = vor.u32 %v723_v40, %v722_v58  ;;  %v726_v21 = vrot.slane %v722_v58, 4  ;;  %v929_v58 = vsel %vm14048_vm2, %v734_v33, %v928_v9  ;;  %v13062_v9 = vld [vmem:[#allocation4 + $0x498] sm:$0xff]  }
 0x1fa   : > { %930 = vst [vmem:[#allocation2 + $0x10c] sm:$0x1] %v929_v58 }
 0x1fb   : > { %3651 = vmatmul.mubr.bf16.vlgmr.msra.gmra.mrb[96].mxu0 %v14512_v26  ;;  %v920_v28 = vsel %vm14173_vm6, %v725_v52, %v919_v38  ;;  %v926_v26 = vsel %vm14173_vm6, %v733_v37, %v925_v16  ;;  %v13042_v38 = vld [vmem:[#allocation4 + $0x3c0] sm:$0xff]   ;;  %v13060_v16 = vld [vmem:[#allocation4 + $0x4d8] sm:$0xff]   ;;  %v13045_v52 = vld [vmem:[#allocation4 + $0x3c8] sm:$0xff]  }
 0x1fc   : > { %11912 = vmatpush3.bf16.msra.mxu1 %v13028_v29  ;;  %11054 = vmatpush3.bf16.msra.mxu0 %v13043_v45  ;;  %v923_v29 = vsel %vm14048_vm2, %v726_v21, %v922_v57  ;;  %921 = vst [vmem:[#allocation2 + $0x100] sm:$0xf] %v920_v28  ;;  %927 = vst [vmem:[#allocation2 + $0x108] sm:$0xf] %v926_v26  ;;  %v13055_v45 = vld [vmem:[#allocation4 + $0x490] sm:$0xff]   ;;  %v13066_v28 = vld [vmem:[#allocation4 + $0x4a0] sm:$0xff]  }
 0x1fd   : > { %11913 = vmatprep.subr.bf16.mxu1 %v13037_v18  ;;  %3658 = vmatprep.mubr.bf16.mxu0 %v16162_v14  ;;  %924 = vst [vmem:[#allocation2 + $0x104] sm:$0x1] %v923_v29  ;;  %v13040_v14 = vld [vmem:[#allocation4 + $0x400] sm:$0xff]   ;;  %v13067_v26 = vld [vmem:[#allocation4 + $0x4e8] sm:$0xff]  }
 0x1fe   : > { %11055 = vmatprep.subr.bf16.mxu0 %v13047_v49 }
 0x1ff   : > { %11898 = vmatmul.mubr.bf16.gmra.mrb[12].mxu1 %v14795_v47 }
 0x200   : > { %11914 = vmatpush3.bf16.msra.mxu1 %v13037_v18  ;;  %11917 = vmatprep.mubr.bf16.mxu1 %v14308_v54  ;;  %v13044_v54 = vld [vmem:[#allocation4 + $0x408] sm:$0xff]  }
 0x201   : > { %11915 = vmatprep.subr.bf16.mxu1 %v13039_v59  ;;  %11056 = vmatpush3.bf16.msra.mxu0 %v13049_v3  ;;  %v13048_v3 = vld [vmem:[#allocation4 + $0x3d0] sm:$0xff]  }
 0x202   : > { %11057 = vmatprep.subr.bf16.mxu0 %v13053_v42  ;;  %v13065_v42 = vld [vmem:[#allocation4 + $0x4e0] sm:$0xff]  }
 0x203   : > { %3659 = vmatmul.mubr.bf16.gmra.mrb[100].mxu0 %v14539_v17 }
 0x204   : > { %11916 = vmatpush3.bf16.msra.mxu1 %v13039_v59  ;;  %3666 = vmatprep.mubr.bf16.mxu0 %v14543_v50  ;;  %v13046_v59 = vld [vmem:[#allocation4 + $0x410] sm:$0xff]  }
 0x205   : > { %v10589_v49 = vpop.f32.mrb[0].mxu0  ;;  %10973 = vmatprep.subr.bf16.mxu1 %v13040_v14  ;;  %11058 = vmatpush3.bf16.msra.mxu0 %v13055_v45  ;;  %v13051_v14 = vld [vmem:[#allocation4 + $0x3d8] sm:$0xff]   ;;  %v1001_v45 = vld [vmem:[#allocation2 + $0xe4] sm:$0x1] }
 0x206   : > { %v10590_v57 = vpop.f32.mrb[1].mxu0  ;;  %11059 = vmatprep.subr.bf16.mxu0 %v13060_v16  ;;  %v13054_v16 = vld [vmem:[#allocation4 + $0x3e0] sm:$0xff]  }
 0x207   : > { %v14809_v40 = vadd.f32 %v10590_v57, %v10589_v49  ;;  %v10592_v20 = vpop.f32.mrb[2].mxu0  ;;  %11918 = vmatmul.mubr.bf16.vlgmr.msra.gmra.mrb[0].mxu1 %v14642_v60  ;;  %v13050_v60 = vld [vmem:[#allocation4 + $0x418] sm:$0xff]   ;;  %v13068_v49 = vld [vmem:[#allocation4 + $0x4a8] sm:$0xff]   ;;  %v13069_v57 = vld [vmem:[#allocation4 + $0x4f0] sm:$0xff]  }
 0x208   : > { %v10593_v22 = vpop.f32.mrb[3].mxu0  ;;  %10974 = vmatpush3.bf16.msra.mxu1 %v13042_v38  ;;  %11921 = vmatprep.mubr.bf16.mxu1 %v14364_v46  ;;  %v13052_v38 = vld [vmem:[#allocation4 + $0x420] sm:$0xff]  }
 0x209   : > { %v14812_v18 = vadd.f32 %v10593_v22, %v10592_v20  ;;  %10975 = vmatprep.subr.bf16.mxu1 %v13044_v54  ;;  %11060 = vmatpush3.bf16.msra.mxu0 %v13062_v9  ;;  %v1037_v20 = vld [vmem:[#allocation2 + $0xe0] sm:$0xe]  ;;  %v13070_v9 = vld [vmem:[#allocation4 + $0x4b0] sm:$0xff]  }
 0x20a   : > { %11061 = vmatprep.subr.bf16.mxu0 %v13065_v42  ;;  %v9881_v42 = vcombine.low %v1037_v20, %v1001_v45  ;;  %v13061_v20 = vld [vmem:[#allocation4 + $0x3f0] sm:$0xff]  }
 0x20b   : > { %3667 = vmatmul.mubr.bf16.gmra.mrb[104].mxu0 %v14560_v51 }
 0x20c   : > { %10976 = vmatpush3.bf16.msra.mxu1 %v13045_v52  ;;  %3674 = vmatprep.mubr.bf16.mxu0 %v14564_v32 }
 0x20d   : > { %v10595_v21 = vpop.f32.mrb[4].mxu0  ;;  %10977 = vmatprep.subr.bf16.mxu1 %v13046_v59  ;;  %11062 = vmatpush3.bf16.msra.mxu0 %v13066_v28  ;;  %v13072_v59 = vld [vmem:[#allocation4 + $0x4f8] sm:$0xff]   ;;  %v14832_v28 = vld [vmem:[#allocation2 + $0xe0] sm:$0xf] }
 0x20e   : > { %v10596_v17 = vpop.f32.mrb[5].mxu0  ;;  %11063 = vmatprep.subr.bf16.mxu0 %v13067_v26  ;;  %v13073_v26 = vld [vmem:[#allocation4 + $0x4b8] sm:$0xff]  }
 0x20f   : > { %v14817_v37 = vadd.f32 %v10596_v17, %v10595_v21  ;;  %v10598_v33 = vpop.f32.mrb[6].mxu0  ;;  %11922 = vmatmul.mubr.bf16.gmra.mrb[4].mxu1 %v14668_v12  ;;  %v13056_v17 = vld [vmem:[#allocation4 + $0x428] sm:$0xff]  }
 0x210   : > { %v10599_v29 = vpop.f32.mrb[7].mxu0  ;;  %10978 = vmatpush3.bf16.msra.mxu1 %v13048_v3  ;;  %11925 = vmatprep.mubr.bf16.mxu1 %v14449_v27  ;;  %v14829_v3 = vcombine.low %v14770_v53, %v14783_v0  ;;  %v13057_v0 = vld [vmem:[#allocation4 + $0x3e8] sm:$0xff]   ;;  %v13059_v53 = vld [vmem:[#allocation4 + $0x430] sm:$0xff]  }
 0x211   : > { %v14820_v58 = vadd.f32 %v10599_v29, %v10598_v33  ;;  %10979 = vmatprep.subr.bf16.mxu1 %v13050_v60  ;;  %11064 = vmatpush3.bf16.msra.mxu0 %v13068_v49  ;;  %v14838_v60 = vrot.slane %v9881_v42, 1  ;;  %v13075_v49 = vld [vmem:[#allocation4 + $0x580] sm:$0xff]   ;;  %v14852_v42 = vcombine.low %v14741_v30, %v14750_v41 }
 0x212   : > { %11065 = vmatprep.subr.bf16.mxu0 %v13069_v57  ;;  %16163 = vst [vmem:[#allocation53_spill] sm:$0xff] %v14829_v3 }
 0x213   : > { %3675 = vmatmul.mubr.bf16.gmra.mrb[108].mxu0 %v14580_v43  ;;  %v14844_v57 = vcombine.low %v14785_v62, %v14838_v60  ;;  %v13074_v62 = vld [vmem:[#allocation4 + $0x440] sm:$0xff]  }
 0x214   : > { %10980 = vmatpush3.bf16.msra.mxu1 %v13051_v14  ;;  %3682 = vmatprep.mubr.bf16.mxu0 %v14584_v44  ;;  %v9845_v14 = vcombine.low %v14832_v28, %v1001_v45 }
 0x215   : > { %v10601_v22 = vpop.f32.mrb[8].mxu0  ;;  %10981 = vmatprep.subr.bf16.mxu1 %v13052_v38  ;;  %11066 = vmatpush3.bf16.msra.mxu0 %v13070_v9  ;;  %16164 = vst [vmem:[#allocation60_spill] sm:$0xff] %v14844_v57  ;;  %v13063_v38 = vld [vmem:[#allocation4 + $0x438] sm:$0xff]  }
 0x216   : > { %v10602_v54 = vpop.f32.mrb[9].mxu0  ;;  %11067 = vmatprep.subr.bf16.mxu0 %v13072_v59 }
 0x217   : > { %v14825_v52 = vadd.f32 %v10602_v54, %v10601_v22  ;;  %v10604_v21 = vpop.f32.mrb[10].mxu0  ;;  %11926 = vmatmul.mubr.bf16.gmra.mrb[8].mxu1 %v14679_v7  ;;  %v1424_v22 = vshll.u32 %v9845_v14, 16  ;;  %v1422_v54 = vshrl.u32 %v9845_v14, 16  ;;  %v14866_v14 = vcombine.low %v14700_v35, %v14722_v63  ;;  %v13081_v35 = vld [vmem:[#allocation4 + $0x458] sm:$0xff]  }
 0x218   : > { %v10605_v33 = vpop.f32.mrb[11].mxu0  ;;  %10982 = vmatpush3.bf16.msra.mxu1 %v13054_v16  ;;  %11929 = vmatprep.mubr.bf16.mxu1 %v14829_v3  ;;  %v13064_v16 = vld [vmem:[#allocation4 + $0x3f8] sm:$0xff]  }
 0x219   : > { %v14835_v29 = vadd.f32 %v10605_v33, %v10604_v21  ;;  %10983 = vmatprep.subr.bf16.mxu1 %v13056_v17  ;;  %11068 = vmatpush3.bf16.msra.mxu0 %v13073_v26  ;;  %v1426_v21 = vrot.slane %v1424_v22, 1  ;;  %16165 = vst [vmem:[#allocation61_spill] sm:$0xff] %v14866_v14 }
 0x21a   : > { %11133 = vmatprep.subr.bf16.mxu0 %v13075_v49 }
 0x21b   : > { %3683 = vmatmul.mubr.bf16.gmra.mrb[112].mxu0 %v14596_v61  ;;  %v14860_v49 = vor.u32 %v1426_v21, %v1422_v54  ;;  %v934_v54 = vld [vmem:[#allocation2 + $0x114] sm:$0x1] }
 0x21c   : > { %10984 = vmatpush3.bf16.msra.mxu1 %v13057_v0  ;;  %3690 = vmatprep.mubr.bf16.mxu0 %v14599_v25  ;;  %v13077_v0 = vld [vmem:[#allocation4 + $0x448] sm:$0xff]  }
 0x21d   : > { %10985 = vmatprep.subr.bf16.mxu1 %v13059_v53 }
 0x21f   : > { %11930 = vmatmul.mubr.bf16.gmra.mrb[12].mxu1 %v14844_v57  ;;  %v10607_v45 = vpop.f32.mrb[12].mxu0 }
 0x220   : > { %10986 = vmatpush3.bf16.msra.mxu1 %v13061_v20  ;;  %4061 = vmatprep.mubr.bf16.mxu1 %v14357_v15  ;;  %v10608_v9 = vpop.f32.mrb[13].mxu0  ;;  %v550_v15 = vld [vmem:[#allocation3 + $0x5c] sm:$0xf]  ;;  %v14870_v20 = vcombine.low %v14752_v56, %v14860_v49 }
 0x221   : > { %10987 = vmatprep.subr.bf16.mxu1 %v13063_v38  ;;  %v14854_v59 = vadd.f32 %v10608_v9, %v10607_v45  ;;  %v10610_v17 = vpop.f32.mrb[14].mxu0  ;;  %v736_v53 = vshrl.u32 %v550_v15, 16  ;;  %v739_v41 = vshll.u32 %v550_v15, 16  ;;  %v13078_v38 = vld [vmem:[#allocation4 + $0x450] sm:$0xff]  }
 0x222   : > { %v10611_v33 = vpop.f32.mrb[15].mxu0  ;;  %16166 = vst [vmem:[#allocation62_spill] sm:$0xff] %v14870_v20  ;;  %v931_v45 = vld [vmem:[#allocation2 + $0x110] sm:$0xf] }
 0x223   : > { %3691 = vmatmul.mubr.bf16.gmra.mrb[116].mxu0 %v14616_v5  ;;  %v14857_v26 = vadd.f32 %v10611_v33, %v10610_v17  ;;  %v738_v30 = vrot.slane %v736_v53, 7  ;;  %v13082_v17 = vld [vmem:[#allocation4 + $0x460] sm:$0xff]   ;;  %v13085_v53 = vld [vmem:[#allocation4 + $0x468] sm:$0xff]  }
 0x224   : > { %10988 = vmatpush3.bf16.msra.mxu1 %v13064_v16  ;;  %3698 = vmatprep.mubr.bf16.mxu0 %v14852_v42 }
 0x225   : > { %11933 = vmatprep.subr.bf16.mxu1 %v13074_v62  ;;  %v741_v22 = vor.u32 %v739_v41, %v738_v30  ;;  %v742_v16 = vrot.slane %v738_v30, 4 }
 0x227   : > { %4062 = vmatmul.mubr.bf16.vlgmr.msra.gmra.mrb[48].mxu1 %v14338_v34  ;;  %v932_v34 = vsel %vm14173_vm6, %v741_v22, %v931_v45  ;;  %v13076_v45 = vld [vmem:[#allocation4 + $0x540] sm:$0xff]  }
 0x228   : > { %4069 = vmatprep.mubr.bf16.mxu1 %v14575_v11  ;;  %11934 = vmatpush3.bf16.msra.mxu1 %v13074_v62  ;;  %v935_v11 = vsel %vm14048_vm2, %v742_v16, %v934_v54  ;;  %933 = vst [vmem:[#allocation2 + $0x110] sm:$0xf] %v932_v34  ;;  %v14882_v62 = vcombine.low %v14724_v4, %v14832_v28 }
 0x229   : > { %11935 = vmatprep.subr.bf16.mxu1 %v13077_v0  ;;  %936 = vst [vmem:[#allocation2 + $0x114] sm:$0x1] %v935_v11  ;;  %v13079_v11 = vld [vmem:[#allocation4 + $0x588] sm:$0xff]  }
 0x22a   : > { %16167 = vst [vmem:[#allocation63_spill] sm:$0xff] %v14882_v62 }
 0x22b   : > { %3699 = vmatmul.mubr.bf16.gmra.mrb[120].mxu0 %v14866_v14 }
 0x22c   : > { %11936 = vmatpush3.bf16.msra.mxu1 %v13077_v0  ;;  %3706 = vmatprep.mubr.bf16.mxu0 %v14870_v20  ;;  %v14888_v0 = vld [vmem:[#allocation2 + $0xf8] sm:$0xf] }
 0x22d   : > { %11937 = vmatprep.subr.bf16.mxu1 %v13078_v38 }
 0x22e   : > { %v10613_v63 = vpop.f32.mrb[16].mxu0 }
 0x22f   : > { %4070 = vmatmul.mubr.bf16.gmra.mrb[52].mxu1 %v14592_v36  ;;  %v10614_v56 = vpop.f32.mrb[17].mxu0  ;;  %v14890_v36 = vld [vmem:[#allocation2 + $0x100] sm:$0xf] }
 0x230   : > { %4077 = vmatprep.mubr.bf16.mxu1 %v14434_v31  ;;  %11938 = vmatpush3.bf16.msra.mxu1 %v13078_v38  ;;  %v14884_v9 = vadd.f32 %v10614_v56, %v10613_v63  ;;  %v10616_v21 = vpop.f32.mrb[18].mxu0  ;;  %v14898_v38 = vld [vmem:[#allocation7] ss:$0 sm:$0xff] }
 0x231   : > { %11939 = vmatprep.subr.bf16.mxu1 %v13081_v35  ;;  %v10617_v33 = vpop.f32.mrb[19].mxu0  ;;  %v1935_v56 = vadd.f32 %v14809_v40, %v14898_v38  ;;  %v1938_v4 = vadd.f32 %v14812_v18, %v14898_v38  ;;  %v1959_v7 = vadd.f32 %v14854_v59, %v14898_v38 }
 0x232   : > { %v14886_v15 = vadd.f32 %v10617_v33, %v10616_v21 }
 0x233   : > { %3707 = vmatmul.mubr.bf16.gmra.mrb[124].mxu0 %v14882_v62  ;;  %v16171_v62 = vld [vmem:[#allocation45_spill] sm:$0xff] }
 0x234   : > { %11940 = vmatpush3.bf16.msra.mxu1 %v13081_v35  ;;  %4484 = vmatprep.mubr.bf16.mxu0 %v16146_v10  ;;  %v13088_v10 = vld [vmem:[#allocation4 + $0x470] sm:$0xff]  }
 0x235   : > { %11941 = vmatprep.subr.bf16.mxu1 %v13082_v17 }
 0x236   : > { %v10619_v30 = vpop.f32.mrb[20].mxu0 }
 0x237   : > { %4078 = vmatmul.mubr.bf16.gmra.mrb[56].mxu1 %v14438_v23  ;;  %v10620_v41 = vpop.f32.mrb[21].mxu0 }
 0x238   : > { %4085 = vmatprep.mubr.bf16.mxu1 %v14610_v24  ;;  %11942 = vmatpush3.bf16.msra.mxu1 %v13082_v17  ;;  %v14900_v22 = vadd.f32 %v10620_v41, %v10619_v30  ;;  %v10622_v16 = vpop.f32.mrb[22].mxu0  ;;  %v13080_v30 = vld [vmem:[#allocation4 + $0x548] sm:$0xff]   ;;  %v13091_v41 = vld [vmem:[#allocation4 + $0x478] sm:$0xff]  }
 0x239   : > { %11943 = vmatprep.subr.bf16.mxu1 %v13085_v53  ;;  %v10623_v34 = vpop.f32.mrb[23].mxu0  ;;  %v16168_v24 = vld [vmem:[#allocation56_spill] sm:$0xff] }
 0x23a   : > { %v10669_v54 = vpop.f32.mrb[16].mxu1  ;;  %v14902_v63 = vadd.f32 %v10623_v34, %v10622_v16  ;;  %v13083_v34 = vld [vmem:[#allocation4 + $0x590] sm:$0xff]  }
 0x23b   : > { %v10670_v35 = vpop.f32.mrb[17].mxu1  ;;  %4485 = vmatmul.mubr.bf16.vlgmr.msra.gmra.mrb[128].mxu0 %v16150_v2 }
 0x23c   : > { %v10671_v21 = vadd.f32 %v10670_v35, %v10669_v54  ;;  %v10672_v33 = vpop.f32.mrb[18].mxu1  ;;  %11944 = vmatpush3.bf16.msra.mxu1 %v13085_v53  ;;  %11134 = vmatpush3.bf16.msra.mxu0 %v13076_v45  ;;  %v14916_v45 = vld [vmem:[#allocation2 + $0xe8] sm:$0xf]  ;;  %v14918_v54 = vld [vmem:[#allocation2 + $0xec] sm:$0x1] }
 0x23d   : > { %v10673_v17 = vpop.f32.mrb[19].mxu1  ;;  %4492 = vmatprep.mubr.bf16.mxu0 %v14434_v31  ;;  %11135 = vmatprep.subr.bf16.mxu0 %v13079_v11  ;;  %v13084_v11 = vld [vmem:[#allocation4 + $0x550] sm:$0xff]   ;;  %v9846_v6 = vcombine.low %v14916_v45, %v14918_v54 }
 0x23e   : > { %v14910_v1 = vadd.f32 %v10671_v21, %v1935_v56  ;;  %v10674_v16 = vadd.f32 %v10673_v17, %v10672_v33  ;;  %11945 = vmatprep.subr.bf16.mxu1 %v13088_v10  ;;  %v10625_v40 = vpop.f32.mrb[24].mxu0  ;;  %v13089_v33 = vld [vmem:[#allocation4 + $0x598] sm:$0xff]  }
 0x23f   : > { %4086 = vmatmul.mubr.bf16.gmra.mrb[60].mxu1 %v14625_v48  ;;  %v10626_v53 = vpop.f32.mrb[25].mxu0  ;;  %v1429_v57 = vshrl.u32 %v9846_v6, 16 }
 0x240   : > { %v14913_v2 = vadd.f32 %v10674_v16, %v1938_v4  ;;  %4093 = vmatprep.mubr.bf16.mxu1 %v14476_v39  ;;  %11946 = vmatpush3.bf16.msra.mxu1 %v13088_v10  ;;  %v14920_v18 = vadd.f32 %v10626_v53, %v10625_v40  ;;  %v10628_v35 = vpop.f32.mrb[26].mxu0  ;;  %v14922_v4 = vld [vmem:[#allocation4 + $0x500] sm:$0xff]   ;;  %v1943_v10 = vadd.f32 %v14817_v37, %v14898_v38 }
 0x241   : > { %11136 = vmatpush3.bf16.msra.mxu0 %v13080_v30  ;;  %11947 = vmatprep.subr.bf16.mxu1 %v13091_v41  ;;  %v10629_v21 = vpop.f32.mrb[27].mxu0  ;;  %v13093_v37 = vld [vmem:[#allocation4 + $0x5a0] sm:$0xff]  }
 0x242   : > { %v10675_v56 = vpop.f32.mrb[20].mxu1  ;;  %11137 = vmatprep.subr.bf16.mxu0 %v13083_v34  ;;  %v14924_v16 = vadd.f32 %v10629_v21, %v10628_v35  ;;  %v13090_v34 = vld [vmem:[#allocation4 + $0x558] sm:$0xff]   ;;  %v1946_v35 = vadd.f32 %v14820_v58, %v14898_v38  ;;  %v13094_v58 = vld [vmem:[#allocation4 + $0x560] sm:$0xff]  }
 0x243   : > { %v10676_v17 = vpop.f32.mrb[21].mxu1  ;;  %4493 = vmatmul.mubr.bf16.gmra.mrb[132].mxu0 %v14438_v23 }
 0x244   : > { %v10677_v40 = vadd.f32 %v10676_v17, %v10675_v56  ;;  %v10678_v53 = vpop.f32.mrb[22].mxu1  ;;  %11948 = vmatpush3.bf16.msra.mxu1 %v13091_v41  ;;  %4500 = vmatprep.mubr.bf16.mxu0 %v14452_v55  ;;  %v1431_v17 = vshll.u32 %v9846_v6, 16  ;;  %v1954_v6 = vadd.f32 %v14835_v29, %v14898_v38 }
 0x245   : > { %v10679_v30 = vpop.f32.mrb[23].mxu1  ;;  %11138 = vmatpush3.bf16.msra.mxu0 %v13084_v11  ;;  %11965 = vmatprep.subr.bf16.mxu1 %v14922_v4 }
 0x246   : > { %v14934_v21 = vadd.f32 %v10677_v40, %v1943_v10  ;;  %v10680_v48 = vadd.f32 %v10679_v30, %v10678_v53  ;;  %11139 = vmatprep.subr.bf16.mxu0 %v13089_v33  ;;  %v10631_v56 = vpop.f32.mrb[28].mxu0  ;;  %v13097_v33 = vld [vmem:[#allocation4 + $0x5a8] sm:$0xff]   ;;  %v1433_v31 = vrot.slane %v1431_v17, 1 }
 0x247   : > { %4094 = vmatmul.mubr.bf16.gmra.mrb[64].mxu1 %v14504_v19  ;;  %v10632_v55 = vpop.f32.mrb[29].mxu0 }
 0x248   : > { %v14938_v41 = vadd.f32 %v10680_v48, %v1946_v35  ;;  %4101 = vmatprep.mubr.bf16.mxu1 %v16168_v24  ;;  %v14941_v11 = vadd.f32 %v10632_v55, %v10631_v56  ;;  %v10634_v23 = vpop.f32.mrb[30].mxu0  ;;  %v1951_v48 = vadd.f32 %v14825_v52, %v14898_v38  ;;  %v14948_v56 = vld [vmem:[#allocation2 + $0xf0] sm:$0xf]  ;;  %v14951_v55 = vld [vmem:[#allocation2 + $0xf4] sm:$0x1] }
 0x249   : > { %11140 = vmatpush3.bf16.msra.mxu0 %v13090_v34  ;;  %v10635_v40 = vpop.f32.mrb[31].mxu0 }
 0x24a   : > { %v10681_v10 = vpop.f32.mrb[24].mxu1  ;;  %11141 = vmatprep.subr.bf16.mxu0 %v13093_v37  ;;  %v14943_v30 = vadd.f32 %v10635_v40, %v10634_v23  ;;  %v13098_v37 = vld [vmem:[#allocation4 + $0x568] sm:$0xff]   ;;  %v14953_v23 = vld [vmem:[#allocation2 + $0xfc] sm:$0x1] }
 0x24b   : > { %v10682_v53 = vpop.f32.mrb[25].mxu1  ;;  %4501 = vmatmul.mubr.bf16.gmra.mrb[136].mxu0 %v14472_v13  ;;  %v16169_v13 = vld [vmem:[#allocation57_spill] sm:$0xff]  ;;  %v9848_v29 = vcombine.low %v14888_v0, %v14953_v23 }
 0x24c   : > { %v10683_v35 = vadd.f32 %v10682_v53, %v10681_v10  ;;  %v10684_v24 = vpop.f32.mrb[26].mxu1  ;;  %4508 = vmatprep.mubr.bf16.mxu0 %v14476_v39  ;;  %v13104_v10 = vld [vmem:[#allocation4 + $0x5b0] sm:$0xff]   ;;  %v1434_v53 = vor.u32 %v1433_v31, %v1429_v57  ;;  %v9847_v39 = vcombine.low %v14948_v56, %v14951_v55 }
 0x24d   : > { %v10685_v34 = vpop.f32.mrb[27].mxu1  ;;  %11142 = vmatpush3.bf16.msra.mxu0 %v13094_v58 }
 0x24e   : > { %v14957_v17 = vadd.f32 %v10683_v35, %v1951_v48  ;;  %v10686_v52 = vadd.f32 %v10685_v34, %v10684_v24  ;;  %11143 = vmatprep.subr.bf16.mxu0 %v13097_v33  ;;  %v10749_v40 = vpop.f32.mrb[32].mxu0  ;;  %v13105_v24 = vld [vmem:[#allocation4 + $0x570] sm:$0xff]  }
 0x24f   : > { %4102 = vmatmul.mubr.bf16.gmra.mrb[68].mxu1 %v16169_v13  ;;  %v10750_v58 = vpop.f32.mrb[33].mxu0  ;;  %v13112_v13 = vld [vmem:[#allocation4 + $0x5b8] sm:$0xff]  }
 0x250   : > { %v14960_v3 = vadd.f32 %v10686_v52, %v1954_v6  ;;  %4109 = vmatprep.mubr.bf16.mxu1 %v14762_v8  ;;  %v10751_v48 = vadd.f32 %v10750_v58, %v10749_v40  ;;  %v10752_v35 = vpop.f32.mrb[34].mxu0  ;;  %v14971_v52 = vcombine.low %v14860_v49, %v1434_v53  ;;  %v1445_v58 = vshll.u32 %v9848_v29, 16  ;;  %v13113_v49 = vld [vmem:[#allocation4 + $0x578] sm:$0xff]  }
 0x251   : > { %11144 = vmatpush3.bf16.msra.mxu0 %v13098_v37  ;;  %v10753_v34 = vpop.f32.mrb[35].mxu0  ;;  %v1438_v37 = vshll.u32 %v9847_v39, 16  ;;  %v1962_v53 = vadd.f32 %v14857_v26, %v14898_v38  ;;  %v1443_v26 = vshrl.u32 %v9848_v29, 16 }
 0x252   : > { %v10687_v33 = vpop.f32.mrb[28].mxu1  ;;  %11145 = vmatprep.subr.bf16.mxu0 %v13104_v10  ;;  %v14968_v57 = vadd.f32 %v14910_v1, %v10751_v48  ;;  %v10754_v6 = vadd.f32 %v10753_v34, %v10752_v35  ;;  %16170 = vst [vmem:[#allocation64_spill] sm:$0xff] %v14971_v52  ;;  %v14980_v1 = vld [vmem:[#allocation2 + $0x104] sm:$0x1]  ;;  %v14986_v35 = vld [vmem:[#allocation2 + $0x108] sm:$0xf] }
 0x253   : > { %v10688_v31 = vpop.f32.mrb[29].mxu1  ;;  %4509 = vmatmul.mubr.bf16.gmra.mrb[140].mxu0 %v14504_v19  ;;  %v13116_v34 = vld [vmem:[#allocation4 + $0x640] sm:$0xff]   ;;  %v1440_v19 = vrot.slane %v1438_v37, 1 }
 0x254   : > { %v10689_v27 = vadd.f32 %v10688_v31, %v10687_v33  ;;  %v10690_v40 = vpop.f32.mrb[30].mxu1  ;;  %v14977_v10 = vadd.f32 %v14913_v2, %v10754_v6  ;;  %4516 = vmatprep.mubr.bf16.mxu0 %v16171_v62  ;;  %v14988_v33 = vld [vmem:[#allocation2 + $0x10c] sm:$0x1]  ;;  %v16172_v2 = vld [vmem:[#allocation36_spill] sm:$0xff]  ;;  %v1436_v62 = vshrl.u32 %v9847_v39, 16 }
 0x255   : > { %v10691_v12 = vpop.f32.mrb[31].mxu1  ;;  %11146 = vmatpush3.bf16.msra.mxu0 %v13105_v24 }
 0x256   : > { %v14984_v59 = vadd.f32 %v10689_v27, %v1959_v7  ;;  %v10692_v48 = vadd.f32 %v10691_v12, %v10690_v40  ;;  %11147 = vmatprep.subr.bf16.mxu0 %v13112_v13  ;;  %v10755_v31 = vpop.f32.mrb[36].mxu0  ;;  %v1447_v27 = vrot.slane %v1445_v58, 1  ;;  %v9849_v40 = vcombine.low %v14890_v36, %v14980_v1 }
 0x257   : > { %4110 = vmatmul.mubr.bf16.gmra.mrb[72].mxu1 %v16172_v2  ;;  %v10756_v6 = vpop.f32.mrb[37].mxu0  ;;  %v9850_v13 = vcombine.low %v14986_v35, %v14988_v33  ;;  %v1967_v58 = vadd.f32 %v14884_v9, %v14898_v38 }
 0x258   : > { %v14991_v24 = vadd.f32 %v10692_v48, %v1962_v53  ;;  %4117 = vmatprep.mubr.bf16.mxu1 %v14971_v52  ;;  %v10757_v7 = vadd.f32 %v10756_v6, %v10755_v31  ;;  %v10758_v12 = vpop.f32.mrb[38].mxu0  ;;  %v15000_v53 = vcombine.low %v14832_v28, %v14916_v45  ;;  %v16173_v6 = vld [vmem:[#allocation44_spill] sm:$0xff]  ;;  %v15008_v52 = vor.u32 %v1447_v27, %v1443_v26 }
 0x259   : > { %11148 = vmatpush3.bf16.msra.mxu0 %v13113_v49  ;;  %v10759_v20 = vpop.f32.mrb[39].mxu0  ;;  %v1441_v49 = vor.u32 %v1440_v19, %v1436_v62  ;;  %v1452_v28 = vshll.u32 %v9849_v40, 16  ;;  %v1459_v45 = vshll.u32 %v9850_v13, 16  ;;  %v16174_v62 = vld [vmem:[#allocation39_spill] sm:$0xff]  ;;  %v1450_v27 = vshrl.u32 %v9849_v40, 16 }
 0x25a   : > { %v10693_v46 = vpop.f32.mrb[32].mxu1  ;;  %11213 = vmatprep.subr.bf16.mxu0 %v13116_v34  ;;  %v15003_v29 = vadd.f32 %v14934_v21, %v10757_v7  ;;  %v10760_v37 = vadd.f32 %v10759_v20, %v10758_v12  ;;  %v1970_v20 = vadd.f32 %v14886_v15, %v14898_v38 }
 0x25b   : > { %v10694_v39 = vpop.f32.mrb[33].mxu1  ;;  %4517 = vmatmul.mubr.bf16.gmra.mrb[144].mxu0 %v16173_v6  ;;  %v1461_v6 = vrot.slane %v1459_v45, 1 }
 0x25c   : > { %v10695_v48 = vadd.f32 %v10694_v39, %v10693_v46  ;;  %v10696_v31 = vpop.f32.mrb[34].mxu1  ;;  %v15011_v14 = vadd.f32 %v14938_v41, %v10760_v37  ;;  %4524 = vmatprep.mubr.bf16.mxu0 %v14762_v8  ;;  %v10110_v41 = vcombine.low %v1441_v49, %v15008_v52  ;;  %v1454_v39 = vrot.slane %v1452_v28, 1  ;;  %v13095_v49 = vld [vmem:[#allocation4 + $0x508] sm:$0xff]  }
 0x25d   : > { %v10697_v34 = vpop.f32.mrb[35].mxu1  ;;  %v1457_v37 = vshrl.u32 %v9850_v13, 16 }
 0x25e   : > { %v15016_v21 = vadd.f32 %v10695_v48, %v1967_v58  ;;  %v10698_v46 = vadd.f32 %v10697_v34, %v10696_v31  ;;  %v10761_v9 = vpop.f32.mrb[40].mxu0  ;;  %v15032_v13 = vor.u32 %v1454_v39, %v1450_v27  ;;  %v10109_v27 = vcombine.low %v14948_v56, %v14888_v0  ;;  %v13096_v39 = vld [vmem:[#allocation4 + $0x510] sm:$0xff]  }
 0x25f   : > { %4118 = vmatmul.mubr.bf16.gmra.mrb[76].mxu1 %v15000_v53  ;;  %v10762_v26 = vpop.f32.mrb[41].mxu0  ;;  %v15034_v45 = vor.u32 %v1461_v6, %v1457_v37 }
 0x260   : > { %v15019_v19 = vadd.f32 %v10698_v46, %v1970_v20  ;;  %11949 = vmatprep.mubr.bf16.mxu1 %v16174_v62  ;;  %v10763_v7 = vadd.f32 %v10762_v26, %v10761_v9  ;;  %v10764_v12 = vpop.f32.mrb[42].mxu0  ;;  %v1975_v20 = vadd.f32 %v14900_v22, %v14898_v38  ;;  %v16175_v26 = vld [vmem:[#allocation46_spill] sm:$0xff] }
 0x261   : > { %v10765_v58 = vpop.f32.mrb[43].mxu0  ;;  %v15049_v6 = vcombine.low %v15032_v13, %v15034_v45 }
 0x262   : > { %v10699_v15 = vpop.f32.mrb[36].mxu1  ;;  %v15024_v31 = vadd.f32 %v14957_v17, %v10763_v7  ;;  %v10766_v34 = vadd.f32 %v10765_v58, %v10764_v12  ;;  %v1978_v17 = vadd.f32 %v14902_v63, %v14898_v38 }
 0x263   : > { %v10700_v48 = vpop.f32.mrb[37].mxu1  ;;  %4525 = vmatmul.mubr.bf16.gmra.mrb[148].mxu0 %v16172_v2 }
 0x264   : > { %v10701_v46 = vadd.f32 %v10700_v48, %v10699_v15  ;;  %v10702_v62 = vpop.f32.mrb[38].mxu1  ;;  %v15030_v28 = vadd.f32 %v14960_v3, %v10766_v34  ;;  %4532 = vmatprep.mubr.bf16.mxu0 %v10110_v41  ;;  %v16176_v3 = vld [vmem:[#allocation41_spill] sm:$0xff] }
 0x265   : > { %v10703_v40 = vpop.f32.mrb[39].mxu1 }
 0x266   : > { %v15038_v9 = vadd.f32 %v10701_v46, %v1975_v20  ;;  %v10704_v22 = vadd.f32 %v10703_v40, %v10702_v62  ;;  %v10767_v7 = vpop.f32.mrb[44].mxu0  ;;  %v1983_v20 = vadd.f32 %v14920_v18, %v14898_v38  ;;  %v13099_v40 = vld [vmem:[#allocation4 + $0x518] sm:$0xff]  }
 0x267   : > { %11950 = vmatmul.mubr.bf16.vlgmr.msra.gmra.mrb[0].mxu1 %v16175_v26  ;;  %v10768_v41 = vpop.f32.mrb[45].mxu0 }
 0x268   : > { %v15041_v12 = vadd.f32 %v10704_v22, %v1978_v17  ;;  %11966 = vmatpush3.bf16.msra.mxu1 %v14922_v4  ;;  %11953 = vmatprep.mubr.bf16.mxu1 %v16176_v3  ;;  %v10769_v37 = vadd.f32 %v10768_v41, %v10767_v7  ;;  %v10770_v63 = vpop.f32.mrb[46].mxu0  ;;  %v16177_v7 = vld [vmem:[#allocation37_spill] sm:$0xff] }
 0x269   : > { %11967 = vmatprep.subr.bf16.mxu1 %v13095_v49  ;;  %v10771_v58 = vpop.f32.mrb[47].mxu0 }
 0x26a   : > { %v10705_v15 = vpop.f32.mrb[40].mxu1  ;;  %v15052_v34 = vadd.f32 %v14984_v59, %v10769_v37  ;;  %v10772_v4 = vadd.f32 %v10771_v58, %v10770_v63  ;;  %v1986_v59 = vadd.f32 %v14924_v16, %v14898_v38  ;;  %v1038_v37 = vld [vmem:[#allocation2 + $0xe8] sm:$0xe]  ;;  %v13103_v63 = vld [vmem:[#allocation4 + $0x520] sm:$0xff]  }
 0x26b   : > { %v10706_v48 = vpop.f32.mrb[41].mxu1  ;;  %4533 = vmatmul.mubr.bf16.gmra.mrb[152].mxu0 %v10109_v27 }
 0x26c   : > { %v10707_v46 = vadd.f32 %v10706_v48, %v10705_v15  ;;  %v10708_v56 = vpop.f32.mrb[42].mxu1  ;;  %11968 = vmatpush3.bf16.msra.mxu1 %v13095_v49  ;;  %v15057_v17 = vadd.f32 %v14991_v24, %v10772_v4  ;;  %4540 = vmatprep.mubr.bf16.mxu0 %v15049_v6  ;;  %v16178_v49 = vld [vmem:[#allocation47_spill] sm:$0xff]  ;;  %v15070_v24 = vcombine.low %v14890_v36, %v14986_v35 }
 0x26d   : > { %v10709_v62 = vpop.f32.mrb[43].mxu1  ;;  %11969 = vmatprep.subr.bf16.mxu1 %v13096_v39 }
 0x26e   : > { %v15062_v22 = vadd.f32 %v10707_v46, %v1983_v20  ;;  %v10710_v26 = vadd.f32 %v10709_v62, %v10708_v56  ;;  %v10773_v18 = vpop.f32.mrb[48].mxu0  ;;  %v1991_v56 = vadd.f32 %v14941_v11, %v14898_v38  ;;  %v16179_v11 = vld [vmem:[#allocation35_spill] sm:$0xff] }
 0x26f   : > { %11954 = vmatmul.mubr.bf16.gmra.mrb[4].mxu1 %v16177_v7  ;;  %v10774_v27 = vpop.f32.mrb[49].mxu0 }
 0x270   : > { %v15065_v41 = vadd.f32 %v10710_v26, %v1986_v59  ;;  %11970 = vmatpush3.bf16.msra.mxu1 %v13096_v39  ;;  %11957 = vmatprep.mubr.bf16.mxu1 %v16178_v49  ;;  %v10775_v16 = vadd.f32 %v10774_v27, %v10773_v18  ;;  %v10776_v15 = vpop.f32.mrb[50].mxu0  ;;  %v9882_v39 = vcombine.low %v1038_v37, %v14918_v54  ;;  %v13106_v18 = vld [vmem:[#allocation4 + $0x528] sm:$0xff]  }
 0x271   : > { %11971 = vmatprep.subr.bf16.mxu1 %v13099_v40  ;;  %v10777_v48 = vpop.f32.mrb[51].mxu0 }
 0x272   : > { %v10711_v58 = vpop.f32.mrb[44].mxu1  ;;  %v15073_v20 = vadd.f32 %v15016_v21, %v10775_v16  ;;  %v10778_v46 = vadd.f32 %v10777_v48, %v10776_v15  ;;  %v1994_v21 = vadd.f32 %v14943_v30, %v14898_v38  ;;  %v1614_v16 = vrot.slane %v9882_v39, 1  ;;  %v13120_v38 = vld [vmem:[#allocation4 + $0x648] sm:$0xff]  }
 0x273   : > { %v10712_v4 = vpop.f32.mrb[45].mxu1  ;;  %4541 = vmatmul.mubr.bf16.gmra.mrb[156].mxu0 %v15070_v24 }
 0x274   : > { %v10713_v62 = vadd.f32 %v10712_v4, %v10711_v58  ;;  %v10714_v59 = vpop.f32.mrb[46].mxu1  ;;  %11972 = vmatpush3.bf16.msra.mxu1 %v13099_v40  ;;  %v15080_v27 = vadd.f32 %v15019_v19, %v10778_v46  ;;  %4901 = vmatprep.mubr.bf16.mxu0 %v14543_v50  ;;  %v13111_v19 = vld [vmem:[#allocation4 + $0x530] sm:$0xff]   ;;  %v13117_v4 = vld [vmem:[#allocation4 + $0x600] sm:$0xff]   ;;  %v15092_v30 = vcombine.low %v14838_v60, %v1614_v16 }
 0x275   : > { %v10715_v26 = vpop.f32.mrb[47].mxu1  ;;  %11973 = vmatprep.subr.bf16.mxu1 %v13103_v63  ;;  %v13125_v16 = vld [vmem:[#allocation4 + $0x610] sm:$0xff]  }
 0x276   : > { %v15085_v54 = vadd.f32 %v10713_v62, %v1991_v56  ;;  %v10716_v37 = vadd.f32 %v10715_v26, %v10714_v59  ;;  %v10779_v40 = vpop.f32.mrb[52].mxu0  ;;  %v13121_v59 = vld [vmem:[#allocation4 + $0x608] sm:$0xff]   ;;  %v13124_v26 = vld [vmem:[#allocation4 + $0x650] sm:$0xff]  }
 0x277   : > { %11958 = vmatmul.mubr.bf16.gmra.mrb[8].mxu1 %v16179_v11  ;;  %v10780_v58 = vpop.f32.mrb[53].mxu0 }
 0x278   : > { %v15088_v15 = vadd.f32 %v10716_v37, %v1994_v21  ;;  %11974 = vmatpush3.bf16.msra.mxu1 %v13103_v63  ;;  %11961 = vmatprep.mubr.bf16.mxu1 %v14795_v47  ;;  %v10781_v48 = vadd.f32 %v10780_v58, %v10779_v40  ;;  %v10782_v50 = vpop.f32.mrb[54].mxu0  ;;  %v13114_v63 = vld [vmem:[#allocation4 + $0x538] sm:$0xff]  }
 0x279   : > { %11975 = vmatprep.subr.bf16.mxu1 %v13106_v18  ;;  %v10783_v46 = vpop.f32.mrb[55].mxu0  ;;  %v13132_v58 = vld [vmem:[#allocation4 + $0x658] sm:$0xff]  }
 0x27a   : > { %v15095_v56 = vadd.f32 %v15038_v9, %v10781_v48  ;;  %v10784_v39 = vadd.f32 %v10783_v46, %v10782_v50  ;;  %v16180_v9 = vld [vmem:[#allocation40_spill] sm:$0xff]  ;;  %v16181_v46 = vld [vmem:[#allocation43_spill] sm:$0xff] }
 0x27b   : > { %4902 = vmatmul.mubr.bf16.vlgmr.msra.gmra.mrb[160].mxu0 %v14560_v51  ;;  %v13115_v51 = vld [vmem:[#allocation4 + $0x5c0] sm:$0xff]   ;;  %v13133_v50 = vld [vmem:[#allocation4 + $0x618] sm:$0xff]  }
 0x27c   : > { %11976 = vmatpush3.bf16.msra.mxu1 %v13106_v18  ;;  %v15099_v62 = vadd.f32 %v15041_v12, %v10784_v39  ;;  %11214 = vmatpush3.bf16.msra.mxu0 %v13117_v4 }
 0x27d   : > { %11977 = vmatprep.subr.bf16.mxu1 %v13111_v19  ;;  %4909 = vmatprep.mubr.bf16.mxu0 %v14564_v32 }
 0x27e   : > { %11215 = vmatprep.subr.bf16.mxu0 %v13120_v38  ;;  %v10785_v60 = vpop.f32.mrb[56].mxu0 }
 0x27f   : > { %11962 = vmatmul.mubr.bf16.gmra.mrb[12].mxu1 %v15092_v30  ;;  %v10786_v18 = vpop.f32.mrb[57].mxu0 }
 0x280   : > { %11978 = vmatpush3.bf16.msra.mxu1 %v13111_v19  ;;  %11981 = vmatprep.mubr.bf16.mxu1 %v16180_v9  ;;  %v10787_v21 = vadd.f32 %v10786_v18, %v10785_v60  ;;  %v10788_v37 = vpop.f32.mrb[58].mxu0  ;;  %v13118_v19 = vld [vmem:[#allocation4 + $0x5c8] sm:$0xff]  }
 0x281   : > { %11979 = vmatprep.subr.bf16.mxu1 %v13114_v63  ;;  %11216 = vmatpush3.bf16.msra.mxu0 %v13121_v59  ;;  %v10789_v12 = vpop.f32.mrb[59].mxu0  ;;  %v1039_v59 = vld [vmem:[#allocation2 + $0xf0] sm:$0xe]  ;;  %v13139_v18 = vld [vmem:[#allocation4 + $0x668] sm:$0xff]  }
 0x282   : > { %11217 = vmatprep.subr.bf16.mxu0 %v13124_v26  ;;  %v15105_v40 = vadd.f32 %v15062_v22, %v10787_v21  ;;  %v10790_v32 = vadd.f32 %v10789_v12, %v10788_v37  ;;  %v13135_v22 = vld [vmem:[#allocation4 + $0x660] sm:$0xff]   ;;  %v13122_v37 = vld [vmem:[#allocation4 + $0x5d8] sm:$0xff]  }
 0x283   : > { %4910 = vmatmul.mubr.bf16.gmra.mrb[164].mxu0 %v14580_v43  ;;  %v13119_v43 = vld [vmem:[#allocation4 + $0x5d0] sm:$0xff]  }
 0x284   : > { %11980 = vmatpush3.bf16.msra.mxu1 %v13114_v63  ;;  %v15109_v48 = vadd.f32 %v15065_v41, %v10790_v32  ;;  %4917 = vmatprep.mubr.bf16.mxu0 %v14584_v44  ;;  %v1040_v41 = vld [vmem:[#allocation2 + $0xf8] sm:$0xe]  ;;  %v13137_v44 = vld [vmem:[#allocation4 + $0x620] sm:$0xff]  }
 0x285   : > { %11997 = vmatprep.subr.bf16.mxu1 %v13115_v51  ;;  %11218 = vmatpush3.bf16.msra.mxu0 %v13125_v16  ;;  %v9884_v21 = vcombine.low %v1040_v41, %v14953_v23  ;;  %v1041_v32 = vld [vmem:[#allocation2 + $0x100] sm:$0xe] }
 0x286   : > { %v10791_v4 = vpop.f32.mrb[60].mxu0  ;;  %11219 = vmatprep.subr.bf16.mxu0 %v13132_v58  ;;  %v13143_v58 = vld [vmem:[#allocation4 + $0x670] sm:$0xff]  }
 0x287   : > { %11982 = vmatmul.mubr.bf16.vlgmr.msra.gmra.mrb[0].mxu1 %v16176_v3  ;;  %v10792_v38 = vpop.f32.mrb[61].mxu0 }
 0x288   : > { %11998 = vmatpush3.bf16.msra.mxu1 %v13115_v51  ;;  %11985 = vmatprep.mubr.bf16.mxu1 %v16181_v46  ;;  %v10793_v39 = vadd.f32 %v10792_v38, %v10791_v4  ;;  %v10794_v63 = vpop.f32.mrb[62].mxu0  ;;  %v9883_v51 = vcombine.low %v1039_v59, %v14951_v55  ;;  %v13145_v46 = vld [vmem:[#allocation4 + $0x630] sm:$0xff]   ;;  %v13149_v59 = vld [vmem:[#allocation4 + $0x678] sm:$0xff]  }
 0x289   : > { %11999 = vmatprep.subr.bf16.mxu1 %v13118_v19  ;;  %v10795_v26 = vpop.f32.mrb[63].mxu0  ;;  %11220 = vmatpush3.bf16.msra.mxu0 %v13133_v50  ;;  %v1042_v50 = vld [vmem:[#allocation2 + $0x108] sm:$0xe] }
 0x28a   : > { %v15115_v60 = vadd.f32 %v15085_v54, %v10793_v39  ;;  %v10796_v9 = vadd.f32 %v10795_v26, %v10794_v63  ;;  %11221 = vmatprep.subr.bf16.mxu0 %v13135_v22  ;;  %v13141_v54 = vld [vmem:[#allocation4 + $0x628] sm:$0xff]   ;;  %v1615_v23 = vrot.slane %v9883_v51, 1  ;;  %v9886_v63 = vcombine.low %v1042_v50, %v14988_v33  ;;  %v13151_v33 = vld [vmem:[#allocation4 + $0x638] sm:$0xff]   ;;  %v13131_v51 = vld [vmem:[#allocation4 + $0x5f0] sm:$0xff]  }
 0x28b   : > { %4918 = vmatmul.mubr.bf16.gmra.mrb[168].mxu0 %v14596_v61  ;;  %v16182_v61 = vld [vmem:[#allocation59_spill] sm:$0xff]  ;;  %v13126_v26 = vld [vmem:[#allocation4 + $0x5e8] sm:$0xff]  }
 0x28c   : > { %12000 = vmatpush3.bf16.msra.mxu1 %v13118_v19  ;;  %v15121_v12 = vadd.f32 %v15088_v15, %v10796_v9  ;;  %4925 = vmatprep.mubr.bf16.mxu0 %v14599_v25  ;;  %v15126_v19 = vrot.slane %v9884_v21, 1  ;;  %v13123_v15 = vld [vmem:[#allocation4 + $0x5e0] sm:$0xff]   ;;  %v16184_v50 = vld [vmem:[#allocation62_spill] sm:$0xff] }
 0x28d   : > { %12001 = vmatprep.subr.bf16.mxu1 %v13119_v43  ;;  %11222 = vmatpush3.bf16.msra.mxu0 %v13137_v44 }
 0x28e   : > { %v10829_v16 = vpop.f32.mrb[64].mxu0  ;;  %11223 = vmatprep.subr.bf16.mxu0 %v13139_v18  ;;  %v10111_v41 = vcombine.low %v1615_v23, %v15126_v19  ;;  %v15146_v18 = vrot.slane %v9886_v63, 1 }
 0x28f   : > { %11986 = vmatmul.mubr.bf16.gmra.mrb[4].mxu1 %v16178_v49  ;;  %v10830_v55 = vpop.f32.mrb[65].mxu0 }
 0x290   : > { %12002 = vmatpush3.bf16.msra.mxu1 %v13119_v43  ;;  %11989 = vmatprep.mubr.bf16.mxu1 %v16182_v61  ;;  %v10831_v4 = vadd.f32 %v10830_v55, %v10829_v16  ;;  %v10832_v25 = vpop.f32.mrb[66].mxu0  ;;  %v9885_v43 = vcombine.low %v1041_v32, %v14980_v1  ;;  %v15141_v1 = vld [vmem:[#allocation2 + $0x114] sm:$0x1]  ;;  %v16183_v61 = vld [vmem:[#allocation61_spill] sm:$0xff]  ;;  %v13134_v55 = vld [vmem:[#allocation4 + $0x5f8] sm:$0xff]  }
 0x291   : > { %12003 = vmatprep.subr.bf16.mxu1 %v13122_v37  ;;  %v10833_v22 = vpop.f32.mrb[67].mxu0  ;;  %11224 = vmatpush3.bf16.msra.mxu0 %v13141_v54 }
 0x292   : > { %v15129_v38 = vadd.f32 %v14968_v57, %v10831_v4  ;;  %v10834_v39 = vadd.f32 %v10833_v22, %v10832_v25  ;;  %11225 = vmatprep.subr.bf16.mxu0 %v13143_v58  ;;  %v15139_v57 = vld [vmem:[#allocation2 + $0x110] sm:$0xf]  ;;  %v15144_v9 = vrot.slane %v9885_v43, 1  ;;  %v13136_v22 = vld [vmem:[#allocation4 + $0x680] sm:$0xff]   ;;  %v10140_v43 = vcombine.low %v15008_v52, %v15032_v13 }
 0x293   : > { %4926 = vmatmul.mubr.bf16.gmra.mrb[172].mxu0 %v14616_v5  ;;  %v16185_v25 = vld [vmem:[#allocation42_spill] sm:$0xff] }
 0x294   : > { %12004 = vmatpush3.bf16.msra.mxu1 %v13122_v37  ;;  %v15136_v44 = vadd.f32 %v14977_v10, %v10834_v39  ;;  %4933 = vmatprep.mubr.bf16.mxu0 %v14852_v42  ;;  %v9851_v37 = vcombine.low %v15139_v57, %v15141_v1  ;;  %v15152_v16 = vcombine.low %v15144_v9, %v15146_v18  ;;  %v16188_v13 = vld [vmem:[#allocation50_spill] sm:$0xff] }
 0x295   : > { %12005 = vmatprep.subr.bf16.mxu1 %v13123_v15  ;;  %11226 = vmatpush3.bf16.msra.mxu0 %v13145_v46 }
 0x296   : > { %v10835_v5 = vpop.f32.mrb[68].mxu0  ;;  %11227 = vmatprep.subr.bf16.mxu0 %v13149_v59  ;;  %v1464_v63 = vshrl.u32 %v9851_v37, 16 }
 0x297   : > { %11990 = vmatmul.mubr.bf16.gmra.mrb[8].mxu1 %v14795_v47  ;;  %v10836_v10 = vpop.f32.mrb[69].mxu0 }
 0x298   : > { %12006 = vmatpush3.bf16.msra.mxu1 %v13123_v15  ;;  %11993 = vmatprep.mubr.bf16.mxu1 %v10111_v41  ;;  %v10837_v42 = vadd.f32 %v10836_v10, %v10835_v5  ;;  %v10838_v21 = vpop.f32.mrb[70].mxu0  ;;  %v1466_v15 = vshll.u32 %v9851_v37, 16  ;;  %v13138_v5 = vld [vmem:[#allocation4 + $0x688] sm:$0xff]  }
 0x299   : > { %12007 = vmatprep.subr.bf16.mxu1 %v13126_v26  ;;  %v10839_v54 = vpop.f32.mrb[71].mxu0  ;;  %11228 = vmatpush3.bf16.msra.mxu0 %v13151_v33  ;;  %v16186_v33 = vld [vmem:[#allocation63_spill] sm:$0xff] }
 0x29a   : > { %v15155_v32 = vadd.f32 %v15003_v29, %v10837_v42  ;;  %v10840_v58 = vadd.f32 %v10839_v54, %v10838_v21  ;;  %v16187_v42 = vld [vmem:[#allocation58_spill] sm:$0xff] }
 0x29b   : > { %4934 = vmatmul.mubr.bf16.gmra.mrb[176].mxu0 %v16183_v61  ;;  %v13140_v21 = vld [vmem:[#allocation4 + $0x690] sm:$0xff]  }
 0x29c   : > { %12008 = vmatpush3.bf16.msra.mxu1 %v13126_v26  ;;  %v15159_v23 = vadd.f32 %v15011_v14, %v10840_v58  ;;  %4941 = vmatprep.mubr.bf16.mxu0 %v16184_v50  ;;  %v1468_v14 = vrot.slane %v1466_v15, 1  ;;  %v16189_v50 = vcombine.low %v14888_v0, %v14890_v36  ;;  %v13142_v15 = vld [vmem:[#allocation4 + $0x698] sm:$0xff]   ;;  %v13144_v0 = vld [vmem:[#allocation4 + $0x6a0] sm:$0xff]  }
 0x29d   : > { %12009 = vmatprep.subr.bf16.mxu1 %v13131_v51 }
 0x29e   : > { %v10841_v4 = vpop.f32.mrb[72].mxu0 }
 0x29f   : > { %11994 = vmatmul.mubr.bf16.gmra.mrb[12].mxu1 %v15152_v16  ;;  %v10842_v29 = vpop.f32.mrb[73].mxu0 }
 0x2a0   : > { %12010 = vmatpush3.bf16.msra.mxu1 %v13131_v51  ;;  %12013 = vmatprep.mubr.bf16.mxu1 %v16185_v25  ;;  %v10843_v46 = vadd.f32 %v10842_v29, %v10841_v4  ;;  %v10844_v39 = vpop.f32.mrb[74].mxu0  ;;  %v15173_v51 = vor.u32 %v1468_v14, %v1464_v63  ;;  %v16190_v25 = vld [vmem:[#allocation38_spill] sm:$0xff] }
 0x2a1   : > { %12011 = vmatprep.subr.bf16.mxu1 %v13134_v55  ;;  %v10845_v59 = vpop.f32.mrb[75].mxu0 }
 0x2a2   : > { %v15167_v41 = vadd.f32 %v15024_v31, %v10843_v46  ;;  %v10846_v26 = vadd.f32 %v10845_v59, %v10844_v39  ;;  %v10143_v58 = vcombine.low %v15034_v45, %v15173_v51  ;;  %v16191_v45 = vld [vmem:[#allocation53_spill] sm:$0xff]  ;;  %v1043_v46 = vld [vmem:[#allocation2 + $0x110] sm:$0xe]  ;;  %v10141_v59 = vcombine.low %v15126_v19, %v15144_v9 }
 0x2a3   : > { %4942 = vmatmul.mubr.bf16.gmra.mrb[180].mxu0 %v16186_v33  ;;  %v9887_v14 = vcombine.low %v1043_v46, %v15141_v1  ;;  %v16192_v33 = vld [vmem:[#allocation48_spill] sm:$0xff] }
 0x2a4   : > { %12012 = vmatpush3.bf16.msra.mxu1 %v13134_v55  ;;  %v15171_v10 = vadd.f32 %v15030_v28, %v10846_v26  ;;  %4949 = vmatprep.mubr.bf16.mxu0 %v10140_v43  ;;  %v13146_v26 = vld [vmem:[#allocation4 + $0x6a8] sm:$0xff]  }
 0x2a5   : > { %12029 = vmatprep.subr.bf16.mxu1 %v13136_v22 }
 0x2a6   : > { %v10847_v52 = vpop.f32.mrb[76].mxu0 }
 0x2a7   : > { %12014 = vmatmul.mubr.bf16.vlgmr.msra.gmra.mrb[0].mxu1 %v16187_v42  ;;  %v10848_v31 = vpop.f32.mrb[77].mxu0  ;;  %v15203_v42 = vrot.slane %v9887_v14, 1  ;;  %v1008_v14 = vld [vmem:[#allocation2 + $0x11c] sm:$0x1] }
 0x2a8   : > { %12030 = vmatpush3.bf16.msra.mxu1 %v13136_v22  ;;  %12017 = vmatprep.mubr.bf16.mxu1 %v16188_v13  ;;  %v10849_v37 = vadd.f32 %v10848_v31, %v10847_v52  ;;  %v10850_v54 = vpop.f32.mrb[78].mxu0  ;;  %v10142_v22 = vcombine.low %v14986_v35, %v15139_v57  ;;  %v13150_v52 = vld [vmem:[#allocation4 + $0x6b0] sm:$0xff]  }
 0x2a9   : > { %12031 = vmatprep.subr.bf16.mxu1 %v13138_v5  ;;  %v10851_v61 = vpop.f32.mrb[79].mxu0  ;;  %v10144_v31 = vcombine.low %v15146_v18, %v15203_v42 }
 0x2aa   : > { %v15180_v28 = vadd.f32 %v15052_v34, %v10849_v37  ;;  %v10852_v55 = vadd.f32 %v10851_v61, %v10850_v54  ;;  %v16194_v37 = vld [vmem:[#allocation49_spill] sm:$0xff]  ;;  %v13152_v54 = vld [vmem:[#allocation4 + $0x6b8] sm:$0xff]   ;;  %v16195_v61 = vld [vmem:[#allocation54_spill] sm:$0xff] }
 0x2ab   : > { %4950 = vmatmul.mubr.bf16.gmra.mrb[184].mxu0 %v16189_v50 }
 0x2ac   : > { %12032 = vmatpush3.bf16.msra.mxu1 %v13138_v5  ;;  %v15186_v4 = vadd.f32 %v15057_v17, %v10852_v55  ;;  %4957 = vmatprep.mubr.bf16.mxu0 %v10143_v58  ;;  %v16193_v5 = vld [vmem:[#allocation60_spill] sm:$0xff] }
 0x2ad   : > { %12033 = vmatprep.subr.bf16.mxu1 %v13140_v21 }
 0x2ae   : > { %v10853_v29 = vpop.f32.mrb[80].mxu0 }
 0x2af   : > { %12018 = vmatmul.mubr.bf16.gmra.mrb[4].mxu1 %v16190_v25  ;;  %v10854_v34 = vpop.f32.mrb[81].mxu0 }
 0x2b0   : > { %12034 = vmatpush3.bf16.msra.mxu1 %v13140_v21  ;;  %12021 = vmatprep.mubr.bf16.mxu1 %v16191_v45  ;;  %v10855_v36 = vadd.f32 %v10854_v34, %v10853_v29  ;;  %v10856_v39 = vpop.f32.mrb[82].mxu0  ;;  %v16196_v45 = vld [vmem:[#allocation55_spill] sm:$0xff] }
 0x2b1   : > { %12035 = vmatprep.subr.bf16.mxu1 %v13142_v15  ;;  %v10857_v43 = vpop.f32.mrb[83].mxu0  ;;  %v16197_v34 = vld [vmem:[#allocation51_spill] sm:$0xff] }
 0x2b2   : > { %v15193_v17 = vadd.f32 %v15073_v20, %v10855_v36  ;;  %v10858_v63 = vadd.f32 %v10857_v43, %v10856_v39  ;;  %v16198_v43 = vld [vmem:[#allocation52_spill] sm:$0xff] }
 0x2b3   : > { %4958 = vmatmul.mubr.bf16.gmra.mrb[188].mxu0 %v10142_v22 }
 0x2b4   : > { %12036 = vmatpush3.bf16.msra.mxu1 %v13142_v15  ;;  %v15199_v35 = vadd.f32 %v15080_v27, %v10858_v63  ;;  %5312 = vmatprep.mubr.bf16.mxu0 %v16192_v33  ;;  %v16199_v63 = vld [vmem:[#allocation56_spill] sm:$0xff] }
 0x2b5   : > { %12037 = vmatprep.subr.bf16.mxu1 %v13144_v0 }
 0x2b6   : > { %v10859_v20 = vpop.f32.mrb[84].mxu0 }
 0x2b7   : > { %12022 = vmatmul.mubr.bf16.gmra.mrb[8].mxu1 %v16193_v5  ;;  %v10860_v1 = vpop.f32.mrb[85].mxu0 }
 0x2b8   : > { %12038 = vmatpush3.bf16.msra.mxu1 %v13144_v0  ;;  %12025 = vmatprep.mubr.bf16.mxu1 %v10141_v59  ;;  %v10861_v13 = vadd.f32 %v10860_v1, %v10859_v20  ;;  %v10862_v19 = vpop.f32.mrb[86].mxu0  ;;  %v1044_v59 = vld [vmem:[#allocation2 + $0x118] sm:$0xe] }
 0x2b9   : > { %12039 = vmatprep.subr.bf16.mxu1 %v13146_v26  ;;  %v10863_v9 = vpop.f32.mrb[87].mxu0  ;;  %v9888_v1 = vcombine.low %v1044_v59, %v1008_v14 }
 0x2ba   : > { %v15208_v27 = vadd.f32 %v15095_v56, %v10861_v13  ;;  %v10864_v21 = vadd.f32 %v10863_v9, %v10862_v19 }
 0x2bb   : > { %5313 = vmatmul.mubr.bf16.vlgmr.msra.gmra.mrb[192].mxu0 %v16194_v37 }
 0x2bc   : > { %12040 = vmatpush3.bf16.msra.mxu1 %v13146_v26  ;;  %v15212_v58 = vadd.f32 %v15099_v62, %v10864_v21  ;;  %5320 = vmatprep.mubr.bf16.mxu0 %v16195_v61 }
 0x2bd   : > { %12041 = vmatprep.subr.bf16.mxu1 %v13150_v52 }
 0x2be   : > { %v10865_v55 = vpop.f32.mrb[88].mxu0 }
 0x2bf   : > { %12026 = vmatmul.mubr.bf16.gmra.mrb[12].mxu1 %v10144_v31  ;;  %v10866_v18 = vpop.f32.mrb[89].mxu0 }
 0x2c0   : > { %12042 = vmatpush3.bf16.msra.mxu1 %v13150_v52  ;;  %12045 = vmatprep.mubr.bf16.mxu1 %v16176_v3  ;;  %v10867_v56 = vadd.f32 %v10866_v18, %v10865_v55  ;;  %v10868_v50 = vpop.f32.mrb[90].mxu0 }
 0x2c1   : > { %12043 = vmatprep.subr.bf16.mxu1 %v13152_v54  ;;  %v10869_v15 = vpop.f32.mrb[91].mxu0 }
 0x2c2   : > { %v15217_v25 = vadd.f32 %v15105_v40, %v10867_v56  ;;  %v10870_v29 = vadd.f32 %v10869_v15, %v10868_v50 }
 0x2c3   : > { %5321 = vmatmul.mubr.bf16.gmra.mrb[196].mxu0 %v16196_v45 }
 0x2c4   : > { %12044 = vmatpush3.bf16.msra.mxu1 %v13152_v54  ;;  %v15221_v62 = vadd.f32 %v15109_v48, %v10870_v29  ;;  %5328 = vmatprep.mubr.bf16.mxu0 %v16197_v34 }
 0x2c6   : > { %v10871_v3 = vpop.f32.mrb[92].mxu0 }
 0x2c7   : > { %12046 = vmatmul.mubr.bf16.vlgmr.msra.gmra.mrb[0].mxu1 %v16177_v7  ;;  %v10872_v22 = vpop.f32.mrb[93].mxu0 }
 0x2c8   : > { %12049 = vmatprep.mubr.bf16.mxu1 %v16178_v49  ;;  %v10873_v46 = vadd.f32 %v10872_v22, %v10871_v3  ;;  %v10874_v0 = vpop.f32.mrb[94].mxu0 }
 0x2c9   : > { %v10875_v36 = vpop.f32.mrb[95].mxu0 }
 0x2ca   : > { %v15227_v40 = vadd.f32 %v15115_v60, %v10873_v46  ;;  %v10876_v39 = vadd.f32 %v10875_v36, %v10874_v0 }
 0x2cb   : > { %5329 = vmatmul.mubr.bf16.gmra.mrb[200].mxu0 %v16198_v43 }
 0x2cc   : > { %v15231_v48 = vadd.f32 %v15121_v12, %v10876_v39  ;;  %5336 = vmatprep.mubr.bf16.mxu0 %v16199_v63  ;;  %v16200_v12 = vld [vmem:[#allocation57_spill] sm:$0xff] }
 0x2ce   : > { %v10909_v7 = vpop.f32.mrb[96].mxu0 }
 0x2cf   : > { %12050 = vmatmul.mubr.bf16.gmra.mrb[4].mxu1 %v16179_v11  ;;  %v10910_v49 = vpop.f32.mrb[97].mxu0  ;;  %v972_v11 = vld [vmem:[#allocation2 + $0x118] sm:$0xf] }
 0x2d0   : > { %12053 = vmatprep.mubr.bf16.mxu1 %v14795_v47  ;;  %v10911_v26 = vadd.f32 %v10910_v49, %v10909_v7  ;;  %v10912_v33 = vpop.f32.mrb[98].mxu0  ;;  %v1620_v47 = vrot.slane %v9888_v1, 1  ;;  %v9852_v9 = vcombine.low %v972_v11, %v1008_v14  ;;  %v10169_v39 = vcombine.low %v15139_v57, %v972_v11 }
 0x2d1   : > { %v10913_v60 = vpop.f32.mrb[99].mxu0 }
 0x2d2   : > { %v15237_v5 = vadd.f32 %v15129_v38, %v10911_v26  ;;  %v10914_v20 = vadd.f32 %v10913_v60, %v10912_v33  ;;  %v10171_v37 = vcombine.low %v15203_v42, %v1620_v47  ;;  %v1473_v61 = vshll.u32 %v9852_v9, 16 }
 0x2d3   : > { %5337 = vmatmul.mubr.bf16.gmra.mrb[204].mxu0 %v16200_v12  ;;  %v1471_v50 = vshrl.u32 %v9852_v9, 16 }
 0x2d4   : > { %v15241_v52 = vadd.f32 %v15136_v44, %v10914_v20  ;;  %5344 = vmatprep.mubr.bf16.mxu0 %v14762_v8  ;;  %v1475_v15 = vrot.slane %v1473_v61, 1 }
 0x2d6   : > { %v10915_v13 = vpop.f32.mrb[100].mxu0 }
 0x2d7   : > { %12054 = vmatmul.mubr.bf16.gmra.mrb[8].mxu1 %v15092_v30  ;;  %v10916_v19 = vpop.f32.mrb[101].mxu0  ;;  %v16201_v30 = vld [vmem:[#allocation64_spill] sm:$0xff] }
 0x2d8   : > { %12057 = vmatprep.mubr.bf16.mxu1 %v15152_v16  ;;  %v10917_v38 = vadd.f32 %v10916_v19, %v10915_v13  ;;  %v10918_v31 = vpop.f32.mrb[102].mxu0 }
 0x2d9   : > { %v10919_v21 = vpop.f32.mrb[103].mxu0 }
 0x2da   : > { %v15248_v54 = vadd.f32 %v15155_v32, %v10917_v38  ;;  %v10920_v44 = vadd.f32 %v10919_v21, %v10918_v31 }
 0x2db   : > { %5345 = vmatmul.mubr.bf16.gmra.mrb[208].mxu0 %v16172_v2 }
 0x2dc   : > { %v15252_v8 = vadd.f32 %v15159_v23, %v10920_v44  ;;  %5352 = vmatprep.mubr.bf16.mxu0 %v16201_v30  ;;  %v1476_v23 = vor.u32 %v1475_v15, %v1471_v50 }
 0x2de   : > { %v10921_v16 = vpop.f32.mrb[104].mxu0  ;;  %v10170_v46 = vcombine.low %v15173_v51, %v1476_v23 }
 0x2df   : > { %12058 = vmatmul.mubr.bf16.gmra.mrb[12].mxu1 %v10171_v37  ;;  %v10922_v55 = vpop.f32.mrb[105].mxu0 }
 0x2e0   : > { %v10923_v18 = vadd.f32 %v10922_v55, %v10921_v16  ;;  %v10924_v56 = vpop.f32.mrb[106].mxu0 }
 0x2e1   : > { %v10925_v42 = vpop.f32.mrb[107].mxu0 }
 0x2e2   : > { %v15256_v32 = vadd.f32 %v15167_v41, %v10923_v18  ;;  %v10926_v29 = vadd.f32 %v10925_v42, %v10924_v56 }
 0x2e3   : > { %5353 = vmatmul.mubr.bf16.gmra.mrb[212].mxu0 %v15000_v53 }
 0x2e4   : > { %v15260_v2 = vadd.f32 %v15171_v10, %v10926_v29  ;;  %5360 = vmatprep.mubr.bf16.mxu0 %v15049_v6 }
 0x2e6   : > { %v10927_v45 = vpop.f32.mrb[108].mxu0 }
 0x2e7   : > { %v10928_v34 = vpop.f32.mrb[109].mxu0 }
 0x2e8   : > { %v10929_v3 = vadd.f32 %v10928_v34, %v10927_v45  ;;  %v10930_v22 = vpop.f32.mrb[110].mxu0 }
 0x2e9   : > { %v10931_v0 = vpop.f32.mrb[111].mxu0 }
 0x2ea   : > { %v15265_v36 = vadd.f32 %v15180_v28, %v10929_v3  ;;  %v10932_v41 = vadd.f32 %v10931_v0, %v10930_v22 }
 0x2eb   : > { %5361 = vmatmul.mubr.bf16.gmra.mrb[216].mxu0 %v15070_v24 }
 0x2ec   : > { %v15269_v53 = vadd.f32 %v15186_v4, %v10932_v41  ;;  %5368 = vmatprep.mubr.bf16.mxu0 %v10170_v46 }
 0x2ee   : > { %v10933_v10 = vpop.f32.mrb[112].mxu0 }
 0x2ef   : > { %v10934_v6 = vpop.f32.mrb[113].mxu0 }
 0x2f0   : > { %v10935_v43 = vadd.f32 %v10934_v6, %v10933_v10  ;;  %v10936_v63 = vpop.f32.mrb[114].mxu0 }
 0x2f1   : > { %v10937_v7 = vpop.f32.mrb[115].mxu0 }
 0x2f2   : > { %v15273_v51 = vadd.f32 %v15193_v17, %v10935_v43  ;;  %v10938_v49 = vadd.f32 %v10937_v7, %v10936_v63 }
 0x2f3   : > { %5369 = vmatmul.mubr.bf16.gmra.mrb[220].mxu0 %v10169_v39 }
 0x2f4   : > { %v15276_v28 = vadd.f32 %v15199_v35, %v10938_v49 }
 0x2f6   : > { %v10939_v24 = vpop.f32.mrb[116].mxu0 }
 0x2f7   : > { %v10940_v14 = vpop.f32.mrb[117].mxu0 }
 0x2f8   : > { %v10941_v4 = vadd.f32 %v10940_v14, %v10939_v24  ;;  %v10942_v59 = vpop.f32.mrb[118].mxu0 }
 0x2f9   : > { %v10943_v33 = vpop.f32.mrb[119].mxu0 }
 0x2fa   : > { %v10989_v26 = vpop.f32.mrb[48].mxu1  ;;  %v15279_v57 = vadd.f32 %v15208_v27, %v10941_v4  ;;  %v10944_v20 = vadd.f32 %v10943_v33, %v10942_v59 }
 0x2fb   : > { %v10990_v60 = vpop.f32.mrb[49].mxu1 }
 0x2fc   : > { %v10991_v1 = vadd.f32 %v10990_v60, %v10989_v26  ;;  %v10992_v12 = vpop.f32.mrb[50].mxu1  ;;  %v15282_v11 = vadd.f32 %v15212_v58, %v10944_v20 }
 0x2fd   : > { %v10993_v17 = vpop.f32.mrb[51].mxu1 }
 0x2fe   : > { %v12314_v35 = vadd.f32 %v15237_v5, %v10991_v1  ;;  %v10994_v47 = vadd.f32 %v10993_v17, %v10992_v12  ;;  %v10945_v13 = vpop.f32.mrb[120].mxu0 }
 0x2ff   : > { %v10946_v9 = vpop.f32.mrb[121].mxu0 }
 0x300   : > { %v12332_v19 = vadd.f32 %v15241_v52, %v10994_v47  ;;  %v10947_v38 = vadd.f32 %v10946_v9, %v10945_v13  ;;  %v10948_v31 = vpop.f32.mrb[122].mxu0 }
 0x301   : > { %v10949_v37 = vpop.f32.mrb[123].mxu0 }
 0x302   : > { %v10995_v21 = vpop.f32.mrb[52].mxu1  ;;  %v15287_v44 = vadd.f32 %v15217_v25, %v10947_v38  ;;  %v10950_v30 = vadd.f32 %v10949_v37, %v10948_v31 }
 0x303   : > { %v10996_v27 = vpop.f32.mrb[53].mxu1 }
 0x304   : > { %v10997_v61 = vadd.f32 %v10996_v27, %v10995_v21  ;;  %v10998_v16 = vpop.f32.mrb[54].mxu1  ;;  %v15290_v55 = vadd.f32 %v15221_v62, %v10950_v30 }
 0x305   : > { %v10999_v58 = vpop.f32.mrb[55].mxu1 }
 0x306   : > { %v12305_v5 = vadd.f32 %v15248_v54, %v10997_v61  ;;  %v11000_v18 = vadd.f32 %v10999_v58, %v10998_v16  ;;  %v10951_v52 = vpop.f32.mrb[124].mxu0 }
 0x307   : > { %v10952_v50 = vpop.f32.mrb[125].mxu0 }
 0x308   : > { %v12323_v56 = vadd.f32 %v15252_v8, %v11000_v18  ;;  %v10953_v15 = vadd.f32 %v10952_v50, %v10951_v52  ;;  %v10954_v42 = vpop.f32.mrb[126].mxu0 }
 0x309   : > { %v10955_v23 = vpop.f32.mrb[127].mxu0 }
 0x30a   : > { %v11001_v29 = vpop.f32.mrb[56].mxu1  ;;  %v15295_v45 = vadd.f32 %v15227_v40, %v10953_v15  ;;  %v10956_v34 = vadd.f32 %v10955_v23, %v10954_v42 }
 0x30b   : > { %v11002_v25 = vpop.f32.mrb[57].mxu1 }
 0x30c   : > { %v11003_v3 = vadd.f32 %v11002_v25, %v11001_v29  ;;  %v11004_v22 = vpop.f32.mrb[58].mxu1  ;;  %v15298_v46 = vadd.f32 %v15231_v48, %v10956_v34 }
 0x30d   : > { %v11005_v62 = vpop.f32.mrb[59].mxu1 }
 0x30e   : > { %v12350_v54 = vadd.f32 %v15256_v32, %v11003_v3  ;;  %v11006_v0 = vadd.f32 %v11005_v62, %v11004_v22  ;;  %v11069_v8 = vpop.f32.mrb[128].mxu0 }
 0x30f   : > { %v11070_v10 = vpop.f32.mrb[129].mxu0 }
 0x310   : > { %v12368_v41 = vadd.f32 %v15260_v2, %v11006_v0  ;;  %v11071_v6 = vadd.f32 %v11070_v10, %v11069_v8  ;;  %v11072_v39 = vpop.f32.mrb[130].mxu0 }
 0x311   : > { %v11073_v63 = vpop.f32.mrb[131].mxu0 }
 0x312   : > { %v11007_v43 = vpop.f32.mrb[60].mxu1  ;;  %v15302_v7 = vadd.f32 %v12314_v35, %v11071_v6  ;;  %v11074_v49 = vadd.f32 %v11073_v63, %v11072_v39 }
 0x313   : > { %v11008_v40 = vpop.f32.mrb[61].mxu1 }
 0x314   : > { %v11009_v24 = vadd.f32 %v11008_v40, %v11007_v43  ;;  %v11010_v14 = vpop.f32.mrb[62].mxu1  ;;  %v15304_v48 = vadd.f32 %v12332_v19, %v11074_v49 }
 0x315   : > { %v11011_v4 = vpop.f32.mrb[63].mxu1 }
 0x316   : > { %v12341_v32 = vadd.f32 %v15265_v36, %v11009_v24  ;;  %v11012_v59 = vadd.f32 %v11011_v4, %v11010_v14  ;;  %v11075_v26 = vpop.f32.mrb[132].mxu0 }
 0x317   : > { %v11076_v33 = vpop.f32.mrb[133].mxu0 }
 0x318   : > { %v12359_v2 = vadd.f32 %v15269_v53, %v11012_v59  ;;  %v11077_v60 = vadd.f32 %v11076_v33, %v11075_v26  ;;  %v11078_v20 = vpop.f32.mrb[134].mxu0 }
 0x319   : > { %v11079_v12 = vpop.f32.mrb[135].mxu0 }
 0x31a   : > { %v11013_v1 = vpop.f32.mrb[64].mxu1  ;;  %v15308_v35 = vadd.f32 %v12305_v5, %v11077_v60  ;;  %v11080_v47 = vadd.f32 %v11079_v12, %v11078_v20 }
 0x31b   : > { %v11014_v17 = vpop.f32.mrb[65].mxu1 }
 0x31c   : > { %v11015_v13 = vadd.f32 %v11014_v17, %v11013_v1  ;;  %v11016_v9 = vpop.f32.mrb[66].mxu1  ;;  %v15310_v19 = vadd.f32 %v12323_v56, %v11080_v47 }
 0x31d   : > { %v11017_v38 = vpop.f32.mrb[67].mxu1 }
 0x31e   : > { %v12386_v36 = vadd.f32 %v15273_v51, %v11015_v13  ;;  %v11018_v31 = vadd.f32 %v11017_v38, %v11016_v9  ;;  %v11081_v21 = vpop.f32.mrb[136].mxu0 }
 0x31f   : > { %v11082_v37 = vpop.f32.mrb[137].mxu0 }
 0x320   : > { %v12404_v53 = vadd.f32 %v15276_v28, %v11018_v31  ;;  %v11083_v27 = vadd.f32 %v11082_v37, %v11081_v21  ;;  %v11084_v30 = vpop.f32.mrb[138].mxu0 }
 0x321   : > { %v11085_v16 = vpop.f32.mrb[139].mxu0 }
 0x322   : > { %v11019_v61 = vpop.f32.mrb[68].mxu1  ;;  %v15314_v5 = vadd.f32 %v12350_v54, %v11083_v27  ;;  %v11086_v18 = vadd.f32 %v11085_v16, %v11084_v30 }
 0x323   : > { %v11020_v58 = vpop.f32.mrb[69].mxu1 }
 0x324   : > { %v11021_v52 = vadd.f32 %v11020_v58, %v11019_v61  ;;  %v11022_v50 = vpop.f32.mrb[70].mxu1  ;;  %v15316_v56 = vadd.f32 %v12368_v41, %v11086_v18 }
 0x325   : > { %v11023_v15 = vpop.f32.mrb[71].mxu1 }
 0x326   : > { %v12377_v51 = vadd.f32 %v15279_v57, %v11021_v52  ;;  %v11024_v42 = vadd.f32 %v11023_v15, %v11022_v50  ;;  %v11087_v29 = vpop.f32.mrb[140].mxu0 }
 0x327   : > { %v11088_v23 = vpop.f32.mrb[141].mxu0 }
 0x328   : > { %v12395_v28 = vadd.f32 %v15282_v11, %v11024_v42  ;;  %v11089_v25 = vadd.f32 %v11088_v23, %v11087_v29  ;;  %v11090_v34 = vpop.f32.mrb[142].mxu0 }
 0x329   : > { %v11091_v22 = vpop.f32.mrb[143].mxu0 }
 0x32a   : > { %v11025_v3 = vpop.f32.mrb[72].mxu1  ;;  %v15320_v54 = vadd.f32 %v12341_v32, %v11089_v25  ;;  %v11092_v0 = vadd.f32 %v11091_v22, %v11090_v34 }
 0x32b   : > { %v11026_v62 = vpop.f32.mrb[73].mxu1 }
 0x32c   : > { %v11027_v8 = vadd.f32 %v11026_v62, %v11025_v3  ;;  %v11028_v10 = vpop.f32.mrb[74].mxu1  ;;  %v15322_v41 = vadd.f32 %v12359_v2, %v11092_v0 }
 0x32d   : > { %v11029_v6 = vpop.f32.mrb[75].mxu1 }
 0x32e   : > { %v12422_v57 = vadd.f32 %v15287_v44, %v11027_v8  ;;  %v11030_v39 = vadd.f32 %v11029_v6, %v11028_v10  ;;  %v11093_v43 = vpop.f32.mrb[144].mxu0 }
 0x32f   : > { %v11094_v63 = vpop.f32.mrb[145].mxu0 }
 0x330   : > { %v12440_v11 = vadd.f32 %v15290_v55, %v11030_v39  ;;  %v11095_v40 = vadd.f32 %v11094_v63, %v11093_v43  ;;  %v11096_v49 = vpop.f32.mrb[146].mxu0 }
 0x331   : > { %v11097_v14 = vpop.f32.mrb[147].mxu0 }
 0x332   : > { %v11031_v24 = vpop.f32.mrb[76].mxu1  ;;  %v15326_v32 = vadd.f32 %v12386_v36, %v11095_v40  ;;  %v11098_v59 = vadd.f32 %v11097_v14, %v11096_v49 }
 0x333   : > { %v11032_v4 = vpop.f32.mrb[77].mxu1 }
 0x334   : > { %v11033_v26 = vadd.f32 %v11032_v4, %v11031_v24  ;;  %v11034_v33 = vpop.f32.mrb[78].mxu1  ;;  %v15328_v2 = vadd.f32 %v12404_v53, %v11098_v59 }
 0x335   : > { %v11035_v60 = vpop.f32.mrb[79].mxu1 }
 0x336   : > { %v12413_v44 = vadd.f32 %v15295_v45, %v11033_v26  ;;  %v11036_v20 = vadd.f32 %v11035_v60, %v11034_v33  ;;  %v11099_v1 = vpop.f32.mrb[148].mxu0 }
 0x337   : > { %v11100_v12 = vpop.f32.mrb[149].mxu0 }
 0x338   : > { %v12431_v55 = vadd.f32 %v15298_v46, %v11036_v20  ;;  %v11101_v17 = vadd.f32 %v11100_v12, %v11099_v1  ;;  %v11102_v47 = vpop.f32.mrb[150].mxu0 }
 0x339   : > { %v11103_v13 = vpop.f32.mrb[151].mxu0 }
 0x33a   : > { %v15332_v9 = vadd.f32 %v12377_v51, %v11101_v17  ;;  %v11104_v38 = vadd.f32 %v11103_v13, %v11102_v47 }
 0x33c   : > { %v15334_v36 = vadd.f32 %v12395_v28, %v11104_v38 }
 0x33e   : > { %v11105_v31 = vpop.f32.mrb[152].mxu0 }
 0x33f   : > { %v11106_v21 = vpop.f32.mrb[153].mxu0 }
 0x340   : > { %v11107_v37 = vadd.f32 %v11106_v21, %v11105_v31  ;;  %v11108_v53 = vpop.f32.mrb[154].mxu0 }
 0x341   : > { %v11109_v27 = vpop.f32.mrb[155].mxu0 }
 0x342   : > { %v15336_v30 = vadd.f32 %v12422_v57, %v11107_v37  ;;  %v11110_v45 = vadd.f32 %v11109_v27, %v11108_v53 }
 0x344   : > { %v15338_v61 = vadd.f32 %v12440_v11, %v11110_v45 }
 0x346   : > { %v11111_v46 = vpop.f32.mrb[156].mxu0 }
 0x347   : > { %v11112_v16 = vpop.f32.mrb[157].mxu0 }
 0x348   : > { %v11113_v58 = vadd.f32 %v11112_v16, %v11111_v46  ;;  %v11114_v18 = vpop.f32.mrb[158].mxu0 }
 0x349   : > { %v11115_v52 = vpop.f32.mrb[159].mxu0 }
 0x34a   : > { %v15340_v50 = vadd.f32 %v12413_v44, %v11113_v58  ;;  %v11116_v15 = vadd.f32 %v11115_v52, %v11114_v18 }
 0x34c   : > { %v15342_v51 = vadd.f32 %v12431_v55, %v11116_v15 }
 0x34e   : > { %v11149_v42 = vpop.f32.mrb[160].mxu0 }
 0x34f   : > { %v11150_v29 = vpop.f32.mrb[161].mxu0 }
 0x350   : > { %v11151_v28 = vadd.f32 %v11150_v29, %v11149_v42  ;;  %v11152_v23 = vpop.f32.mrb[162].mxu0 }
 0x351   : > { %v11153_v25 = vpop.f32.mrb[163].mxu0 }
 0x352   : > { %v15345_v34 = vadd.f32 %v15302_v7, %v11151_v28  ;;  %v11154_v3 = vadd.f32 %v11153_v25, %v11152_v23 }
 0x354   : > { %v15348_v22 = vadd.f32 %v15304_v48, %v11154_v3 }
 0x356   : > { %v11155_v62 = vpop.f32.mrb[164].mxu0 }
 0x357   : > { %v11156_v0 = vpop.f32.mrb[165].mxu0 }
 0x358   : > { %v11157_v8 = vadd.f32 %v11156_v0, %v11155_v62  ;;  %v11158_v10 = vpop.f32.mrb[166].mxu0 }
 0x359   : > { %v11159_v6 = vpop.f32.mrb[167].mxu0 }
 0x35a   : > { %v15351_v57 = vadd.f32 %v15308_v35, %v11157_v8  ;;  %v11160_v39 = vadd.f32 %v11159_v6, %v11158_v10 }
 0x35c   : > { %v15354_v43 = vadd.f32 %v15310_v19, %v11160_v39 }
 0x35e   : > { %v11161_v11 = vpop.f32.mrb[168].mxu0 }
 0x35f   : > { %v11162_v63 = vpop.f32.mrb[169].mxu0 }
 0x360   : > { %v11163_v7 = vadd.f32 %v11162_v63, %v11161_v11  ;;  %v11164_v40 = vpop.f32.mrb[170].mxu0 }
 0x361   : > { %v11165_v49 = vpop.f32.mrb[171].mxu0 }
 0x362   : > { %v15357_v48 = vadd.f32 %v15314_v5, %v11163_v7  ;;  %v11166_v24 = vadd.f32 %v11165_v49, %v11164_v40 }
 0x364   : > { %v15360_v14 = vadd.f32 %v15316_v56, %v11166_v24 }
 0x366   : > { %v11167_v4 = vpop.f32.mrb[172].mxu0 }
 0x367   : > { %v11168_v59 = vpop.f32.mrb[173].mxu0 }
 0x368   : > { %v11169_v35 = vadd.f32 %v11168_v59, %v11167_v4  ;;  %v11170_v26 = vpop.f32.mrb[174].mxu0 }
 0x369   : > { %v11171_v33 = vpop.f32.mrb[175].mxu0 }
 0x36a   : > { %v15363_v19 = vadd.f32 %v15320_v54, %v11169_v35  ;;  %v11172_v60 = vadd.f32 %v11171_v33, %v11170_v26 }
 0x36c   : > { %v15366_v44 = vadd.f32 %v15322_v41, %v11172_v60 }
 0x36e   : > { %v11173_v20 = vpop.f32.mrb[176].mxu0 }
 0x36f   : > { %v11174_v1 = vpop.f32.mrb[177].mxu0 }
 0x370   : > { %v11175_v5 = vadd.f32 %v11174_v1, %v11173_v20  ;;  %v11176_v55 = vpop.f32.mrb[178].mxu0 }
 0x371   : > { %v11177_v12 = vpop.f32.mrb[179].mxu0 }
 0x372   : > { %v15369_v56 = vadd.f32 %v15326_v32, %v11175_v5  ;;  %v11178_v17 = vadd.f32 %v11177_v12, %v11176_v55 }
 0x374   : > { %v15372_v47 = vadd.f32 %v15328_v2, %v11178_v17 }
 0x376   : > { %v11179_v13 = vpop.f32.mrb[180].mxu0 }
 0x377   : > { %v11180_v38 = vpop.f32.mrb[181].mxu0 }
 0x378   : > { %v11181_v54 = vadd.f32 %v11180_v38, %v11179_v13  ;;  %v11182_v31 = vpop.f32.mrb[182].mxu0 }
 0x379   : > { %v11183_v21 = vpop.f32.mrb[183].mxu0 }
 0x37a   : > { %v15375_v41 = vadd.f32 %v15332_v9, %v11181_v54  ;;  %v11184_v37 = vadd.f32 %v11183_v21, %v11182_v31 }
 0x37c   : > { %v15378_v53 = vadd.f32 %v15334_v36, %v11184_v37 }
 0x37e   : > { %v11185_v27 = vpop.f32.mrb[184].mxu0 }
 0x37f   : > { %v11186_v45 = vpop.f32.mrb[185].mxu0 }
 0x380   : > { %v11187_v32 = vadd.f32 %v11186_v45, %v11185_v27  ;;  %v11188_v46 = vpop.f32.mrb[186].mxu0  ;;  %v5731_v27 = vld [vmem:[#allocation2 + $0x38] sm:$0xf] }
 0x381   : > { %v11189_v16 = vpop.f32.mrb[187].mxu0 }
 0x382   : > { %v15381_v2 = vadd.f32 %v15336_v30, %v11187_v32  ;;  %v11190_v58 = vadd.f32 %v11189_v16, %v11188_v46 }
 0x384   : > { %v15384_v18 = vadd.f32 %v15338_v61, %v11190_v58 }
 0x386   : > { %v11191_v52 = vpop.f32.mrb[188].mxu0 }
 0x387   : > { %v11192_v15 = vpop.f32.mrb[189].mxu0 }
 0x388   : > { %v11193_v9 = vadd.f32 %v11192_v15, %v11191_v52  ;;  %v11194_v42 = vpop.f32.mrb[190].mxu0  ;;  %v5734_v52 = vld [vmem:[#allocation2 + $0x3c] sm:$0x1] }
 0x389   : > { %v11195_v29 = vpop.f32.mrb[191].mxu0 }
 0x38a   : > { %v15387_v36 = vadd.f32 %v15340_v50, %v11193_v9  ;;  %v11196_v28 = vadd.f32 %v11195_v29, %v11194_v42 }
 0x38c   : > { %v15390_v23 = vadd.f32 %v15342_v51, %v11196_v28  ;;  %v5737_v28 = vld [vmem:[#allocation2 + $0x40] sm:$0xf] }
 0x38e   : > { %v11229_v25 = vpop.f32.mrb[192].mxu0 }
 0x38f   : > { %v11230_v3 = vpop.f32.mrb[193].mxu0 }
 0x390   : > { %v11231_v30 = vadd.f32 %v11230_v3, %v11229_v25  ;;  %v11232_v62 = vpop.f32.mrb[194].mxu0 }
 0x391   : > { %v11233_v0 = vpop.f32.mrb[195].mxu0 }
 0x392   : > { %v12317_v61 = vadd.f32 %v15345_v34, %v11231_v30  ;;  %v11234_v8 = vadd.f32 %v11233_v0, %v11232_v62 }
 0x394   : > { %v12335_v10 = vadd.f32 %v15348_v22, %v11234_v8 }
 0x396   : > { %v11235_v6 = vpop.f32.mrb[196].mxu0 }
 0x397   : > { %v11236_v39 = vpop.f32.mrb[197].mxu0 }
 0x398   : > { %v11237_v11 = vadd.f32 %v11236_v39, %v11235_v6  ;;  %v11238_v63 = vpop.f32.mrb[198].mxu0  ;;  %v5743_v6 = vld [vmem:[#allocation2 + $0x48] sm:$0xf]  ;;  %v5746_v39 = vld [vmem:[#allocation2 + $0x4c] sm:$0x1] }
 0x399   : > { %v11239_v7 = vpop.f32.mrb[199].mxu0 }
 0x39a   : > { %v12047_v50 = vpop.f32.mrb[0].mxu1  ;;  %v12308_v51 = vadd.f32 %v15351_v57, %v11237_v11  ;;  %v11240_v49 = vadd.f32 %v11239_v7, %v11238_v63  ;;  %v5740_v11 = vld [vmem:[#allocation2 + $0x44] sm:$0x1] }
 0x39b   : > { %v5411_v40 = vpop.f32.mrb[1].mxu1 }
 0x39c   : > { %v12318_v24 = vadd.f32 %v12317_v61, %v5411_v40  ;;  %v12048_v4 = vpop.f32.mrb[2].mxu1  ;;  %v12309_v35 = vadd.f32 %v12308_v51, %v12047_v50  ;;  %v12326_v26 = vadd.f32 %v15354_v43, %v11240_v49 }
 0x39d   : > { %v5414_v59 = vpop.f32.mrb[3].mxu1 }
 0x39e   : > { %v5490_v34 = vmax.f32 %v12318_v24, 0.0  ;;  %v12336_v33 = vadd.f32 %v12335_v10, %v5414_v59  ;;  %v5492_v60 = vmax.f32 %v12309_v35, 0.0  ;;  %v12327_v22 = vadd.f32 %v12326_v26, %v12048_v4  ;;  %v11241_v20 = vpop.f32.mrb[200].mxu0 }
 0x39f   : > { %v11242_v55 = vpop.f32.mrb[201].mxu0 }
 0x3a0   : > { %v10556_v1 = vpack.c.bf16 %v5490_v34, %v5490_v34  ;;  %v5491_v5 = vmax.f32 %v12336_v33, 0.0  ;;  %v10558_v12 = vpack.c.bf16 %v5492_v60, %v5492_v60  ;;  %v5493_v17 = vmax.f32 %v12327_v22, 0.0  ;;  %v11244_v38 = vpop.f32.mrb[202].mxu0  ;;  %v5749_v34 = vld [vmem:[#allocation2 + $0x50] sm:$0xf] }
 0x3a1   : > { %v11243_v13 = vadd.f32 %v11242_v55, %v11241_v20  ;;  %v11245_v37 = vpop.f32.mrb[203].mxu0  ;;  %v5752_v33 = vld [vmem:[#allocation2 + $0x54] sm:$0x1] }
 0x3a2   : > { %v5571_v57 = vshrl.u32 %v10556_v1, 16  ;;  %v5574_v54 = vshll.u32 %v10556_v1, 16  ;;  %v10557_v31 = vpack.c.bf16 %v5491_v5, %v5491_v5  ;;  %v15396_v21 = vpop.f32.mrb[4].mxu1  ;;  %v5587_v43 = vshrl.u32 %v10558_v12, 16 }
 0x3a3   : > { %v5590_v45 = vshll.u32 %v10558_v12, 16  ;;  %v5427_v32 = vpop.f32.mrb[5].mxu1  ;;  %v10559_v46 = vpack.c.bf16 %v5493_v17, %v5493_v17  ;;  %v12353_v16 = vadd.f32 %v15357_v48, %v11243_v13  ;;  %v11246_v29 = vadd.f32 %v11245_v37, %v11244_v38 }
 0x3a4   : > { %v5573_v58 = vrot.slane %v5571_v57, 7  ;;  %v5579_v15 = vshrl.u32 %v10557_v31, 16  ;;  %v5582_v9 = vshll.u32 %v10557_v31, 16  ;;  %v15399_v42 = vpop.f32.mrb[6].mxu1  ;;  %v5589_v25 = vrot.slane %v5587_v43, 7 }
 0x3a5   : > { %v5595_v3 = vshrl.u32 %v10559_v46, 16  ;;  %v5598_v30 = vshll.u32 %v10559_v46, 16  ;;  %v5430_v62 = vpop.f32.mrb[7].mxu1  ;;  %v12354_v0 = vadd.f32 %v12353_v16, %v5427_v32  ;;  %v12371_v48 = vadd.f32 %v15360_v14, %v11246_v29 }
 0x3a6   : > { %v5576_v61 = vor.u32 %v5574_v54, %v5573_v58  ;;  %v5577_v8 = vrot.slane %v5573_v58, 4  ;;  %v5581_v10 = vrot.slane %v5579_v15, 7  ;;  %v5592_v63 = vor.u32 %v5590_v45, %v5589_v25  ;;  %v11247_v51 = vpop.f32.mrb[204].mxu0 }
 0x3a7   : > { %v5593_v50 = vrot.slane %v5589_v25, 4  ;;  %v5597_v7 = vrot.slane %v5595_v3, 7  ;;  %v5494_v40 = vmax.f32 %v12354_v0, 0.0  ;;  %v11248_v60 = vpop.f32.mrb[205].mxu0  ;;  %v12372_v38 = vadd.f32 %v12371_v48, %v5430_v62  ;;  %v5758_v25 = vld [vmem:[#allocation2 + $0x6c] sm:$0x1] }
 0x3a8   : > { %v5732_v24 = vsel %vm14173_vm6, %v5576_v61, %v5731_v27  ;;  %v5735_v59 = vsel %vm14048_vm2, %v5577_v8, %v5734_v52  ;;  %v5584_v35 = vor.u32 %v5582_v9, %v5581_v10  ;;  %v5585_v26 = vrot.slane %v5581_v10, 4  ;;  %v11250_v5 = vpop.f32.mrb[206].mxu0 }
 0x3a9   : > { %5733 = vst [vmem:[#allocation2 + $0x38] sm:$0xf] %v5732_v24  ;;  %5736 = vst [vmem:[#allocation2 + $0x3c] sm:$0x1] %v5735_v59  ;;  %v5744_v14 = vsel %vm14173_vm6, %v5592_v63, %v5743_v6  ;;  %v5747_v22 = vsel %vm14048_vm2, %v5593_v50, %v5746_v39  ;;  %v5600_v20 = vor.u32 %v5598_v30, %v5597_v7  ;;  %v5601_v1 = vrot.slane %v5597_v7, 4  ;;  %v11251_v57 = vpop.f32.mrb[207].mxu0 }
 0x3aa   : > { %v5738_v55 = vsel %vm14173_vm6, %v5584_v35, %v5737_v28  ;;  %v5741_v12 = vsel %vm14048_vm2, %v5585_v26, %v5740_v11  ;;  %5745 = vst [vmem:[#allocation2 + $0x48] sm:$0xf] %v5744_v14  ;;  %5748 = vst [vmem:[#allocation2 + $0x4c] sm:$0x1] %v5747_v22  ;;  %v15414_v17 = vpop.f32.mrb[8].mxu1  ;;  %v10560_v13 = vpack.c.bf16 %v5494_v40, %v5494_v40  ;;  %v5495_v46 = vmax.f32 %v12372_v38, 0.0 }
 0x3ab   : > { %5739 = vst [vmem:[#allocation2 + $0x40] sm:$0xf] %v5738_v55  ;;  %5742 = vst [vmem:[#allocation2 + $0x44] sm:$0x1] %v5741_v12  ;;  %v5750_v54 = vsel %vm14173_vm6, %v5600_v20, %v5749_v34  ;;  %v5753_v31 = vsel %vm14048_vm2, %v5601_v1, %v5752_v33  ;;  %v5443_v37 = vpop.f32.mrb[9].mxu1  ;;  %v11249_v27 = vadd.f32 %v11248_v60, %v11247_v51 }
 0x3ac   : > { %v11252_v43 = vadd.f32 %v11251_v57, %v11250_v5  ;;  %5751 = vst [vmem:[#allocation2 + $0x50] sm:$0xf] %v5750_v54  ;;  %5754 = vst [vmem:[#allocation2 + $0x54] sm:$0x1] %v5753_v31  ;;  %v5603_v45 = vshrl.u32 %v10560_v13, 16  ;;  %v15420_v32 = vpop.f32.mrb[10].mxu1  ;;  %v10561_v29 = vpack.c.bf16 %v5495_v46, %v5495_v46 }
 0x3ad   : > { %v5446_v16 = vpop.f32.mrb[11].mxu1  ;;  %v12344_v58 = vadd.f32 %v15363_v19, %v11249_v27  ;;  %v5606_v9 = vshll.u32 %v10560_v13, 16  ;;  %v5755_v28 = vld [vmem:[#allocation2 + $0x68] sm:$0xf]  ;;  %v5761_v7 = vld [vmem:[#allocation2 + $0x70] sm:$0xf] }
 0x3ae   : > { %v12362_v52 = vadd.f32 %v15366_v44, %v11252_v43  ;;  %v5605_v15 = vrot.slane %v5603_v45, 7  ;;  %v11253_v62 = vpop.f32.mrb[208].mxu0  ;;  %v5611_v8 = vshrl.u32 %v10561_v29, 16  ;;  %v5614_v50 = vshll.u32 %v10561_v29, 16  ;;  %v5764_v40 = vld [vmem:[#allocation2 + $0x74] sm:$0x1] }
 0x3af   : > { %v12345_v3 = vadd.f32 %v12344_v58, %v15396_v21  ;;  %v11254_v10 = vpop.f32.mrb[209].mxu0  ;;  %v5767_v55 = vld [vmem:[#allocation2 + $0x78] sm:$0xf]  ;;  %v5770_v12 = vld [vmem:[#allocation2 + $0x7c] sm:$0x1] }
 0x3b0   : > { %v12363_v30 = vadd.f32 %v12362_v52, %v15399_v42  ;;  %v5608_v0 = vor.u32 %v5606_v9, %v5605_v15  ;;  %v5609_v61 = vrot.slane %v5605_v15, 4  ;;  %v11255_v48 = vadd.f32 %v11254_v10, %v11253_v62  ;;  %v11256_v19 = vpop.f32.mrb[210].mxu0  ;;  %v5773_v43 = vld [vmem:[#allocation2 + $0x80] sm:$0xf]  ;;  %v5776_v45 = vld [vmem:[#allocation2 + $0x84] sm:$0x1] }
 0x3b1   : > { %v5496_v6 = vmax.f32 %v12345_v3, 0.0  ;;  %v5613_v63 = vrot.slane %v5611_v8, 7  ;;  %v11257_v42 = vpop.f32.mrb[211].mxu0 }
 0x3b2   : > { %v5497_v39 = vmax.f32 %v12363_v30, 0.0  ;;  %v5756_v44 = vsel %vm14173_vm6, %v5608_v0, %v5755_v28  ;;  %v5759_v11 = vsel %vm14048_vm2, %v5609_v61, %v5758_v25  ;;  %v15430_v21 = vpop.f32.mrb[12].mxu1  ;;  %v12389_v35 = vadd.f32 %v15369_v56, %v11255_v48 }
 0x3b3   : > { %5757 = vst [vmem:[#allocation2 + $0x68] sm:$0xf] %v5756_v44  ;;  %5760 = vst [vmem:[#allocation2 + $0x6c] sm:$0x1] %v5759_v11  ;;  %v10562_v51 = vpack.c.bf16 %v5496_v6, %v5496_v6  ;;  %v15432_v24 = vpop.f32.mrb[13].mxu1  ;;  %v11258_v26 = vadd.f32 %v11257_v42, %v11256_v19  ;;  %v5616_v34 = vor.u32 %v5614_v50, %v5613_v63  ;;  %v5617_v33 = vrot.slane %v5613_v63, 4 }
 0x3b4   : > { %v10563_v59 = vpack.c.bf16 %v5497_v39, %v5497_v39  ;;  %v15435_v60 = vpop.f32.mrb[14].mxu1  ;;  %v12390_v13 = vadd.f32 %v12389_v35, %v5443_v37  ;;  %v5779_v63 = vld [vmem:[#allocation2 + $0x98] sm:$0xf]  ;;  %v5782_v50 = vld [vmem:[#allocation2 + $0x9c] sm:$0x1] }
 0x3b5   : > { %v5619_v14 = vshrl.u32 %v10562_v51, 16  ;;  %v15437_v20 = vpop.f32.mrb[15].mxu1  ;;  %v5762_v1 = vsel %vm14173_vm6, %v5616_v34, %v5761_v7  ;;  %v5765_v5 = vsel %vm14048_vm2, %v5617_v33, %v5764_v40  ;;  %v12407_v56 = vadd.f32 %v15372_v47, %v11258_v26  ;;  %v5785_v33 = vld [vmem:[#allocation2 + $0xa0] sm:$0xf] }
 0x3b6   : > { %v5627_v22 = vshrl.u32 %v10563_v59, 16  ;;  %5763 = vst [vmem:[#allocation2 + $0x70] sm:$0xf] %v5762_v1  ;;  %5766 = vst [vmem:[#allocation2 + $0x74] sm:$0x1] %v5765_v5  ;;  %v5622_v57 = vshll.u32 %v10562_v51, 16 }
 0x3b7   : > { %v5621_v38 = vrot.slane %v5619_v14, 7  ;;  %v5630_v31 = vshll.u32 %v10563_v59, 16  ;;  %v11259_v27 = vpop.f32.mrb[212].mxu0  ;;  %v5498_v46 = vmax.f32 %v12390_v13, 0.0  ;;  %v12408_v58 = vadd.f32 %v12407_v56, %v5446_v16  ;;  %v5788_v14 = vld [vmem:[#allocation2 + $0xa4] sm:$0x1] }
 0x3b8   : > { %v5629_v54 = vrot.slane %v5627_v22, 7  ;;  %v11260_v52 = vpop.f32.mrb[213].mxu0 }
 0x3b9   : > { %v5624_v15 = vor.u32 %v5622_v57, %v5621_v38  ;;  %v5625_v9 = vrot.slane %v5621_v38, 4  ;;  %v11262_v25 = vpop.f32.mrb[214].mxu0  ;;  %v10564_v37 = vpack.c.bf16 %v5498_v46, %v5498_v46  ;;  %v5499_v3 = vmax.f32 %v12408_v58, 0.0 }
 0x3ba   : > { %v5632_v29 = vor.u32 %v5630_v31, %v5629_v54  ;;  %v5633_v28 = vrot.slane %v5629_v54, 4  ;;  %v11261_v47 = vadd.f32 %v11260_v52, %v11259_v27  ;;  %v11263_v30 = vpop.f32.mrb[215].mxu0 }
 0x3bb   : > { %v5768_v62 = vsel %vm14173_vm6, %v5624_v15, %v5767_v55  ;;  %v5771_v0 = vsel %vm14048_vm2, %v5625_v9, %v5770_v12  ;;  %v5635_v8 = vshrl.u32 %v10564_v37, 16  ;;  %v10565_v10 = vpack.c.bf16 %v5499_v3, %v5499_v3  ;;  %v5791_v9 = vld [vmem:[#allocation2 + $0xa8] sm:$0xf] }
 0x3bc   : > { %v5774_v61 = vsel %vm14173_vm6, %v5632_v29, %v5773_v43  ;;  %v5777_v16 = vsel %vm14048_vm2, %v5633_v28, %v5776_v45  ;;  %5769 = vst [vmem:[#allocation2 + $0x78] sm:$0xf] %v5768_v62  ;;  %5772 = vst [vmem:[#allocation2 + $0x7c] sm:$0x1] %v5771_v0  ;;  %v12380_v6 = vadd.f32 %v15375_v41, %v11261_v47  ;;  %v5638_v19 = vshll.u32 %v10564_v37, 16 }
 0x3bd   : > { %5775 = vst [vmem:[#allocation2 + $0x80] sm:$0xf] %v5774_v61  ;;  %5778 = vst [vmem:[#allocation2 + $0x84] sm:$0x1] %v5777_v16  ;;  %v11264_v39 = vadd.f32 %v11263_v30, %v11262_v25  ;;  %v5637_v48 = vrot.slane %v5635_v8, 7  ;;  %v5643_v44 = vshrl.u32 %v10565_v10, 16 }
 0x3be   : > { %v12381_v11 = vadd.f32 %v12380_v6, %v15414_v17  ;;  %v5646_v42 = vshll.u32 %v10565_v10, 16  ;;  %v11265_v40 = vpop.f32.mrb[216].mxu0  ;;  %v5794_v29 = vld [vmem:[#allocation2 + $0xac] sm:$0x1]  ;;  %v5797_v61 = vld [vmem:[#allocation2 + $0xb0] sm:$0xf] }
 0x3bf   : > { %v12398_v7 = vadd.f32 %v15378_v53, %v11264_v39  ;;  %v5640_v51 = vor.u32 %v5638_v19, %v5637_v48  ;;  %v5641_v59 = vrot.slane %v5637_v48, 4  ;;  %v5645_v35 = vrot.slane %v5643_v44, 7  ;;  %v11266_v34 = vpop.f32.mrb[217].mxu0 }
 0x3c0   : > { %v5500_v26 = vmax.f32 %v12381_v11, 0.0  ;;  %v11267_v22 = vadd.f32 %v11266_v34, %v11265_v40  ;;  %v11268_v1 = vpop.f32.mrb[218].mxu0 }
 0x3c1   : > { %v12399_v41 = vadd.f32 %v12398_v7, %v15420_v32  ;;  %v5780_v17 = vsel %vm14173_vm6, %v5640_v51, %v5779_v63  ;;  %v5783_v5 = vsel %vm14048_vm2, %v5641_v59, %v5782_v50  ;;  %v5648_v55 = vor.u32 %v5646_v42, %v5645_v35  ;;  %v11269_v12 = vpop.f32.mrb[219].mxu0  ;;  %v5803_v59 = vld [vmem:[#allocation2 + $0xc8] sm:$0xf] }
 0x3c2   : > { %v5649_v53 = vrot.slane %v5645_v35, 4  ;;  %5781 = vst [vmem:[#allocation2 + $0x98] sm:$0xf] %v5780_v17  ;;  %5784 = vst [vmem:[#allocation2 + $0x9c] sm:$0x1] %v5783_v5  ;;  %v10566_v13 = vpack.c.bf16 %v5500_v26, %v5500_v26  ;;  %v12425_v38 = vadd.f32 %v15381_v2, %v11267_v22  ;;  %v11270_v57 = vadd.f32 %v11269_v12, %v11268_v1 }
 0x3c3   : > { %v5501_v56 = vmax.f32 %v12399_v41, 0.0  ;;  %v5786_v32 = vsel %vm14173_vm6, %v5648_v55, %v5785_v33  ;;  %v5806_v35 = vld [vmem:[#allocation2 + $0xcc] sm:$0x1]  ;;  %v5809_v22 = vld [vmem:[#allocation2 + $0xd0] sm:$0xf] }
 0x3c4   : > { %v5789_v54 = vsel %vm14048_vm2, %v5649_v53, %v5788_v14  ;;  %5787 = vst [vmem:[#allocation2 + $0xa0] sm:$0xf] %v5786_v32  ;;  %v5651_v31 = vshrl.u32 %v10566_v13, 16  ;;  %v12426_v43 = vadd.f32 %v12425_v38, %v15432_v24  ;;  %v12443_v45 = vadd.f32 %v15384_v18, %v11270_v57  ;;  %v5800_v24 = vld [vmem:[#allocation2 + $0xb4] sm:$0x1] }
 0x3c5   : > { %5790 = vst [vmem:[#allocation2 + $0xa4] sm:$0x1] %v5789_v54  ;;  %v10567_v27 = vpack.c.bf16 %v5501_v56, %v5501_v56  ;;  %v5654_v58 = vshll.u32 %v10566_v13, 16  ;;  %v5812_v1 = vld [vmem:[#allocation2 + $0xd4] sm:$0x1] }
 0x3c6   : > { %v5653_v46 = vrot.slane %v5651_v31, 7  ;;  %v5502_v15 = vmax.f32 %v12426_v43, 0.0  ;;  %v11271_v2 = vpop.f32.mrb[220].mxu0  ;;  %v12444_v25 = vadd.f32 %v12443_v45, %v15437_v20  ;;  %v5815_v31 = vld [vmem:[#allocation2 + $0xd8] sm:$0xf] }
 0x3c7   : > { %v5659_v52 = vshrl.u32 %v10567_v27, 16  ;;  %v5662_v28 = vshll.u32 %v10567_v27, 16  ;;  %v11272_v37 = vpop.f32.mrb[221].mxu0  ;;  %v5818_v27 = vld [vmem:[#allocation2 + $0xdc] sm:$0x1] }
 0x3c8   : > { %v5656_v3 = vor.u32 %v5654_v58, %v5653_v46  ;;  %v5657_v47 = vrot.slane %v5653_v46, 4  ;;  %v10568_v62 = vpack.c.bf16 %v5502_v15, %v5502_v15  ;;  %v11274_v0 = vpop.f32.mrb[222].mxu0  ;;  %v5503_v16 = vmax.f32 %v12444_v25, 0.0  ;;  %v5824_v15 = vld [vmem:[#allocation2 + $0xe4] sm:$0x1] }
 0x3c9   : > { %v5661_v30 = vrot.slane %v5659_v52, 7  ;;  %v11273_v18 = vadd.f32 %v11272_v37, %v11271_v2  ;;  %v11275_v8 = vpop.f32.mrb[223].mxu0  ;;  %v5821_v52 = vld [vmem:[#allocation2 + $0xe0] sm:$0xf] }
 0x3ca   : > { %v5792_v10 = vsel %vm14173_vm6, %v5656_v3, %v5791_v9  ;;  %v5795_v6 = vsel %vm14048_vm2, %v5657_v47, %v5794_v29  ;;  %v5667_v20 = vshrl.u32 %v10568_v62, 16  ;;  %v10569_v19 = vpack.c.bf16 %v5503_v16, %v5503_v16  ;;  %v5831_v3 = vld [vmem:[#allocation2 + $0x38] sm:$0xf] (!%p10212_p1)  ;;  %v5834_v47 = vld [vmem:[#allocation2 + $0x3c] sm:$0x1] (!%p10212_p1) }
 0x3cb   : > { %v5664_v39 = vor.u32 %v5662_v28, %v5661_v30  ;;  %v5665_v48 = vrot.slane %v5661_v30, 4  ;;  %5793 = vst [vmem:[#allocation2 + $0xa8] sm:$0xf] %v5792_v10  ;;  %5796 = vst [vmem:[#allocation2 + $0xac] sm:$0x1] %v5795_v6  ;;  %v12416_v44 = vadd.f32 %v15387_v36, %v11273_v18  ;;  %v11276_v50 = vadd.f32 %v11275_v8, %v11274_v0 }
 0x3cc   : > { %v5669_v42 = vrot.slane %v5667_v20, 7  ;;  %v5670_v7 = vshll.u32 %v10568_v62, 16  ;;  %v5675_v40 = vshrl.u32 %v10569_v19, 16  ;;  %v5678_v26 = vshll.u32 %v10569_v19, 16  ;;  %v5837_v30 = vld [vmem:[#allocation2 + $0x40] sm:$0xf] (!%p10212_p1) }
 0x3cd   : > { %v5798_v11 = vsel %vm14173_vm6, %v5664_v39, %v5797_v61  ;;  %v5801_v63 = vsel %vm14048_vm2, %v5665_v48, %v5800_v24  ;;  %v12417_v51 = vadd.f32 %v12416_v44, %v15430_v21  ;;  %v12434_v34 = vadd.f32 %v15390_v23, %v11276_v50  ;;  %v5840_v16 = vld [vmem:[#allocation2 + $0x44] sm:$0x1] (!%p10212_p1)  ;;  %v5843_v18 = vld [vmem:[#allocation2 + $0x48] sm:$0xf] (!%p10212_p1)  ;;  %v5846_v8 = vld [vmem:[#allocation2 + $0x4c] sm:$0x1] (!%p10212_p1) }
 0x3ce   : > { %5799 = vst [vmem:[#allocation2 + $0xb0] sm:$0xf] %v5798_v11  ;;  %5802 = vst [vmem:[#allocation2 + $0xb4] sm:$0x1] %v5801_v63  ;;  %v5672_v36 = vor.u32 %v5670_v7, %v5669_v42  ;;  %v5673_v33 = vrot.slane %v5669_v42, 4  ;;  %v5677_v14 = vrot.slane %v5675_v40, 7 }
 0x3cf   : > { %v5504_v41 = vmax.f32 %v12417_v51, 0.0  ;;  %v12435_v17 = vadd.f32 %v12434_v34, %v15435_v60  ;;  %v5832_v0 = vsel (!%p10212_p1), %vm14173_vm6, 0, %v5831_v3  ;;  %v5835_v24 = vsel (!%p10212_p1), %vm14048_vm2, 0, %v5834_v47  ;;  %v5849_v39 = vld [vmem:[#allocation2 + $0x50] sm:$0xf] (!%p10212_p1) }
 0x3d0   : > { %v5804_v5 = vsel %vm14173_vm6, %v5672_v36, %v5803_v59  ;;  %v5807_v55 = vsel %vm14048_vm2, %v5673_v33, %v5806_v35  ;;  %v5680_v21 = vor.u32 %v5678_v26, %v5677_v14  ;;  %v5681_v53 = vrot.slane %v5677_v14, 4  ;;  %5833 = vst [vmem:[#allocation2 + $0x38] sm:$0xf] (!%p10212_p1), %v5832_v0  ;;  %5836 = vst [vmem:[#allocation2 + $0x3c] sm:$0x1] (!%p10212_p1), %v5835_v24 }
 0x3d1   : > { %5805 = vst [vmem:[#allocation2 + $0xc8] sm:$0xf] %v5804_v5  ;;  %5808 = vst [vmem:[#allocation2 + $0xcc] sm:$0x1] %v5807_v55  ;;  %v10570_v12 = vpack.c.bf16 %v5504_v41, %v5504_v41  ;;  %v5505_v23 = vmax.f32 %v12435_v17, 0.0  ;;  %v5838_v49 = vsel (!%p10212_p1), %vm14173_vm6, 0, %v5837_v30 }
 0x3d2   : > { %v5810_v13 = vsel %vm14173_vm6, %v5680_v21, %v5809_v22  ;;  %v5813_v56 = vsel %vm14048_vm2, %v5681_v53, %v5812_v1  ;;  %5839 = vst [vmem:[#allocation2 + $0x40] sm:$0xf] (!%p10212_p1), %v5838_v49  ;;  %v5841_v4 = vsel (!%p10212_p1), %vm14048_vm2, 0, %v5840_v16  ;;  %v5844_v10 = vsel (!%p10212_p1), %vm14173_vm6, 0, %v5843_v18  ;;  %v5852_v48 = vld [vmem:[#allocation2 + $0x54] sm:$0x1] (!%p10212_p1) }
 0x3d3   : > { %5811 = vst [vmem:[#allocation2 + $0xd0] sm:$0xf] %v5810_v13  ;;  %5814 = vst [vmem:[#allocation2 + $0xd4] sm:$0x1] %v5813_v56  ;;  %v5683_v60 = vshrl.u32 %v10570_v12, 16  ;;  %v10571_v38 = vpack.c.bf16 %v5505_v23, %v5505_v23  ;;  %v5686_v32 = vshll.u32 %v10570_v12, 16 }
 0x3d4   : > { %5842 = vst [vmem:[#allocation2 + $0x44] sm:$0x1] (!%p10212_p1), %v5841_v4  ;;  %v5847_v6 = vsel (!%p10212_p1), %vm14048_vm2, 0, %v5846_v8  ;;  %5845 = vst [vmem:[#allocation2 + $0x48] sm:$0xf] (!%p10212_p1), %v5844_v10  ;;  %v5850_v20 = vsel (!%p10212_p1), %vm14173_vm6, 0, %v5849_v39 }
 0x3d5   : > { %v5685_v57 = vrot.slane %v5683_v60, 7  ;;  %v5691_v54 = vshrl.u32 %v10571_v38, 16  ;;  %v5694_v58 = vshll.u32 %v10571_v38, 16  ;;  %5848 = vst [vmem:[#allocation2 + $0x4c] sm:$0x1] (!%p10212_p1), %v5847_v6  ;;  %v5853_v19 = vsel (!%p10212_p1), %vm14048_vm2, 0, %v5852_v48 }
 0x3d6   : > { %5830 = sbr.rel (%p10212_p1) target bundleno = 989 (0x3dd), region = 77  ;;  %5851 = vst [vmem:[#allocation2 + $0x50] sm:$0xf] (!%p10212_p1), %v5850_v20  ;;  %5854 = vst [vmem:[#allocation2 + $0x54] sm:$0x1] (!%p10212_p1), %v5853_v19 }
 0x3d7   : > { %v5688_v43 = vor.u32 %v5686_v32, %v5685_v57  ;;  %v5689_v45 = vrot.slane %v5685_v57, 4  ;;  %v5693_v46 = vrot.slane %v5691_v54, 7 }
 0x3d9   : > { %v5816_v2 = vsel %vm14173_vm6, %v5688_v43, %v5815_v31  ;;  %v5819_v9 = vsel %vm14048_vm2, %v5689_v45, %v5818_v27  ;;  %v5696_v29 = vor.u32 %v5694_v58, %v5693_v46  ;;  %v5697_v28 = vrot.slane %v5693_v46, 4 }
 0x3da   : > { %5817 = vst [vmem:[#allocation2 + $0xd8] sm:$0xf] %v5816_v2  ;;  %5820 = vst [vmem:[#allocation2 + $0xdc] sm:$0x1] %v5819_v9 }
 0x3db   : > { %v5822_v25 = vsel %vm14173_vm6, %v5696_v29, %v5821_v52  ;;  %v5825_v37 = vsel %vm14048_vm2, %v5697_v28, %v5824_v15 }
 0x3dc   : > { %5823 = vst [vmem:[#allocation2 + $0xe0] sm:$0xf] %v5822_v25  ;;  %5826 = vst [vmem:[#allocation2 + $0xe4] sm:$0x1] %v5825_v37 }
 0x3dd PF: > { %p10213_p3 = scmp.ne.s32.totalorder %s13736_s27, 1 }
 0x3de   : > { %v5860_v44 = vld [vmem:[#allocation2 + $0xc8] sm:$0xf] (!%p10213_p3)  ;;  %v5863_v11 = vld [vmem:[#allocation2 + $0xcc] sm:$0x1] (!%p10213_p3)  ;;  %v5866_v63 = vld [vmem:[#allocation2 + $0xd0] sm:$0xf] (!%p10213_p3) }
 0x3df   : > { %5858 = sbr.rel (%p10213_p3) target bundleno = 998 (0x3e6), region = 81  ;;  %v5861_v42 = vsel (!%p10213_p3), %vm14173_vm6, 0, %v5860_v44  ;;  %v5864_v40 = vsel (!%p10213_p3), %vm14048_vm2, 0, %v5863_v11  ;;  %v5867_v51 = vsel (!%p10213_p3), %vm14173_vm6, 0, %v5866_v63  ;;  %v5869_v59 = vld [vmem:[#allocation2 + $0xd4] sm:$0x1] (!%p10213_p3) }
 0x3e0   : > { %5862 = vst [vmem:[#allocation2 + $0xc8] sm:$0xf] (!%p10213_p3), %v5861_v42  ;;  %5865 = vst [vmem:[#allocation2 + $0xcc] sm:$0x1] (!%p10213_p3), %v5864_v40  ;;  %v5870_v35 = vsel (!%p10213_p3), %vm14048_vm2, 0, %v5869_v59 }
 0x3e1   : > { %5868 = vst [vmem:[#allocation2 + $0xd0] sm:$0xf] (!%p10213_p3), %v5867_v51  ;;  %v5872_v26 = vld [vmem:[#allocation2 + $0xd8] sm:$0xf] (!%p10213_p3)  ;;  %v5875_v34 = vld [vmem:[#allocation2 + $0xdc] sm:$0x1] (!%p10213_p3) }
 0x3e2   : > { %5871 = vst [vmem:[#allocation2 + $0xd4] sm:$0x1] (!%p10213_p3), %v5870_v35  ;;  %v5873_v36 = vsel (!%p10213_p3), %vm14173_vm6, 0, %v5872_v26  ;;  %v5876_v33 = vsel (!%p10213_p3), %vm14048_vm2, 0, %v5875_v34 }
 0x3e3   : > { %v5878_v14 = vld [vmem:[#allocation2 + $0xe0] sm:$0xf] (!%p10213_p3)  ;;  %v5881_v41 = vld [vmem:[#allocation2 + $0xe4] sm:$0x1] (!%p10213_p3)  ;;  %5874 = vst [vmem:[#allocation2 + $0xd8] sm:$0xf] (!%p10213_p3), %v5873_v36 }
 0x3e4   : > { %5877 = vst [vmem:[#allocation2 + $0xdc] sm:$0x1] (!%p10213_p3), %v5876_v33  ;;  %v5879_v22 = vsel (!%p10213_p3), %vm14173_vm6, 0, %v5878_v14  ;;  %v5882_v1 = vsel (!%p10213_p3), %vm14048_vm2, 0, %v5881_v41 }
 0x3e5   : > { %5880 = vst [vmem:[#allocation2 + $0xe0] sm:$0xf] (!%p10213_p3), %v5879_v22  ;;  %5883 = vst [vmem:[#allocation2 + $0xe4] sm:$0x1] (!%p10213_p3), %v5882_v1 }
 0x3e6 PF: > { %v13156_v17 = vld [vmem:[#allocation9 + $0x40] sm:$0xff]   ;;  %v13159_v21 = vld [vmem:[#allocation9 + $0x48] sm:$0xff]   ;;  %v13162_v23 = vld [vmem:[#allocation9 + $0x50] sm:$0xff]   ;;  %s10551_s4 = sshll.u32 %s13740_s28, 4  ;;  %s9667_s14 = sshll.u32 %s14155_s20, 4  ;;  %s15952_s14 = int_to_ptr.vmem [resolvable:$true] %s9667_s14 }
 0x3e7   : > { %v13157_v5 = vld [vmem:[#allocation9 + $0x80] sm:$0xff]   ;;  %11293 = vmatprep.subr.bf16.mxu1 %v13156_v17  ;;  %v13160_v53 = vld [vmem:[#allocation9 + $0x88] sm:$0xff]   ;;  %v13163_v13 = vld [vmem:[#allocation9 + $0x90] sm:$0xff]   ;;  %s9664_s26 = sadd.s32 %s10555_s13, %s10551_s4  ;;  %s15959_s11 = scalar_lea.sflag [#allocation6], %s324_s19 }
 0x3e8   : > { %v13158_v55 = vld [vmem:[#allocation9] sm:$0xff]   ;;  %12061 = vmatprep.subr.bf16.mxu0 %v13157_v5  ;;  %v13161_v12 = vld [vmem:[#allocation9 + $0x8] sm:$0xff]   ;;  %v13164_v56 = vld [vmem:[#allocation9 + $0x10] sm:$0xff]   ;;  %s10552_s18 = sshll.u32 %s9664_s26, 7  ;;  %s13640_s10 = scalar_lea.vmem %s15952_s14, 1024 }
 0x3e9   : > { %11294 = vmatpush3.bf16.msra.mxu1 %v13158_v55  ;;  %12062 = vmatpush3.bf16.msra.mxu0 %v13157_v5  ;;  %v13165_v60 = vld [vmem:[#allocation9 + $0x58] sm:$0xff]   ;;  %v13168_v32 = vld [vmem:[#allocation9 + $0x60] sm:$0xff]   ;;  %v13171_v27 = vld [vmem:[#allocation9 + $0x68] sm:$0xff]   ;;  %s15950_s13 = scalar_lea.hbm %s16018_s7, %s10552_s18  ;;  %p13641_p0 = scmp.ne.s32.totalorder %s15952_s14, %s13640_s10 }
 0x3ea   : > { %11295 = vmatprep.subr.bf16.mxu1 %v13159_v21  ;;  %12063 = vmatprep.subr.bf16.mxu0 %v13160_v53  ;;  %v13166_v38 = vld [vmem:[#allocation9 + $0x98] sm:$0xff]   ;;  %v13169_v54 = vld [vmem:[#allocation9 + $0xa0] sm:$0xff]   ;;  %v13172_v43 = vld [vmem:[#allocation9 + $0xa8] sm:$0xff]   ;;  %p16208_p2 = scmp.ne.s32.totalorder %s16095_s15, 0  ;;  %s13764_s17 = smov [#allocation15]  }
 0x3eb   : > { %v13167_v57 = vld [vmem:[#allocation9 + $0x18] sm:$0xff]   ;;  %v13170_v31 = vld [vmem:[#allocation9 + $0x20] sm:$0xff]   ;;  %v13173_v45 = vld [vmem:[#allocation9 + $0x28] sm:$0xff]   ;;  %s13644_s9 = sshll.u32 %s13764_s17, 4  ;;  %s13645_s9 = int_to_ptr.vmem [resolvable:$false] %s13644_s9 }
 0x3ec   : > { %v13174_v46 = vld [vmem:[#allocation9 + $0x70] sm:$0xff]   ;;  %v13177_v15 = vld [vmem:[#allocation9 + $0x78] sm:$0xff]   ;;  %v13186_v8 = vld [vmem:[#allocation9 + $0x100] sm:$0xff]   ;;  %p13642_p8 = pnand %p13641_p0, %p16208_p2  ;;  %s13646_s12 = scalar_lea.vmem %s13645_s9, 2048 }
 0x3ed   : > { %11296 = vmatpush3.bf16.msra.mxu1 %v13161_v12  ;;  %12064 = vmatpush3.bf16.msra.mxu0 %v13160_v53  ;;  %v13175_v58 = vld [vmem:[#allocation9 + $0xb0] sm:$0xff]   ;;  %v13178_v2 = vld [vmem:[#allocation9 + $0xb8] sm:$0xff]   ;;  %v15537_v39 = vld [vmem:[#allocation2 + $0x48] sm:$0xf]  ;;  %p13647_p12 = scmp.lt.s32.totalorder %s15952_s14, %s13645_s9  ;;  %p13648_p4 = scmp.lt.s32.totalorder %s13646_s12, %s13640_s10 }
 0x3ee   : > { %11297 = vmatprep.subr.bf16.mxu1 %v13162_v23  ;;  %12065 = vmatprep.subr.bf16.mxu0 %v13163_v13  ;;  %v13176_v52 = vld [vmem:[#allocation9 + $0x30] sm:$0xff]   ;;  %v5910_v25 = vld [vmem:[#allocation2 + $0x3c] sm:$0x1]  ;;  %v15533_v0 = vld [vmem:[#allocation2 + $0x40] sm:$0xf]  ;;  %p13643_p10 = pneg %p13642_p8 }
 0x3ef   : > { %v5885_v9 = vld [vmem:[#allocation2 + $0x30] sm:$0xf]  ;;  %v15530_v29 = vld [vmem:[#allocation2 + $0x38] sm:$0xf]  ;;  %v5909_v28 = vld [vmem:[#allocation2 + $0x34] sm:$0x1]  ;;  %p13649_p5 = por %p13648_p4, %p13647_p12 }
 0x3f0   : > { %v5933_v37 = vld [vmem:[#allocation2 + $0x30] sm:$0xe]  ;;  %v10214_v3 = vcombine.low %v5885_v9, %v5909_v28  ;;  %v10215_v47 = vcombine.low %v15530_v29, %v5910_v25  ;;  %v5934_v30 = vld [vmem:[#allocation2 + $0x38] sm:$0xe]  ;;  %v5911_v48 = vld [vmem:[#allocation2 + $0x44] sm:$0x1]  ;;  %v10263_v26 = vcombine.low %v5885_v9, %v15530_v29 }
 0x3f1   : > { %11298 = vmatpush3.bf16.msra.mxu1 %v13164_v56  ;;  %12066 = vmatpush3.bf16.msra.mxu0 %v13163_v13  ;;  %v10238_v62 = vcombine.low %v5933_v37, %v5909_v28  ;;  %v10239_v61 = vcombine.low %v5934_v30, %v5910_v25  ;;  %v13179_v24 = vld [vmem:[#allocation9 + $0x38] sm:$0xff]   ;;  %v13187_v44 = vld [vmem:[#allocation9 + $0x140] sm:$0xff]   ;;  %v5912_v11 = vld [vmem:[#allocation2 + $0x4c] sm:$0x1]  ;;  %v10216_v7 = vcombine.low %v15533_v0, %v5911_v48  ;;  %p13650_p6 = pnand %p13649_p5, %p13643_p10 }
 0x3f2   : > { %11299 = vmatprep.subr.bf16.mxu1 %v13165_v60  ;;  %12067 = vmatprep.subr.bf16.mxu0 %v13166_v38  ;;  %v6078_v49 = vshrl.u32 %v10214_v3, 16  ;;  %v6080_v16 = vshll.u32 %v10214_v3, 16  ;;  %v6085_v4 = vshrl.u32 %v10215_v47, 16  ;;  %v6087_v18 = vshll.u32 %v10215_v47, 16  ;;  %v5935_v50 = vld [vmem:[#allocation2 + $0x40] sm:$0xe] }
 0x3f3   : > { %v6317_v10 = vrot.slane %v10238_v62, 1  ;;  %v15535_v6 = vrot.slane %v10239_v61, 1  ;;  %v5936_v42 = vld [vmem:[#allocation2 + $0x48] sm:$0xe]  ;;  %v10217_v40 = vcombine.low %v15537_v39, %v5912_v11  ;;  %v10240_v35 = vcombine.low %v5935_v50, %v5911_v48  ;;  %v13198_v60 = vld [vmem:[#allocation9 + $0x110] sm:$0xff]   ;;  %v13203_v9 = vld [vmem:[#allocation9 + $0xd8] sm:$0xff]  }
 0x3f4   : > { %v6082_v20 = vrot.slane %v6080_v16, 1  ;;  %v6089_v19 = vrot.slane %v6087_v18, 1  ;;  %v10241_v34 = vcombine.low %v5936_v42, %v5912_v11  ;;  %v13193_v14 = vld [vmem:[#allocation9 + $0xc0] sm:$0xff]   ;;  %v13194_v22 = vld [vmem:[#allocation9 + $0x108] sm:$0xff]   ;;  %v6092_v1 = vshrl.u32 %v10216_v7, 16 }
 0x3f5   : > { %11300 = vmatpush3.bf16.msra.mxu1 %v13167_v57  ;;  %12068 = vmatpush3.bf16.msra.mxu0 %v13166_v38  ;;  %v10265_v63 = vcombine.low %v6317_v10, %v15535_v6  ;;  %v15546_v33 = vrot.slane %v10240_v35, 1  ;;  %v6094_v17 = vshll.u32 %v10216_v7, 16  ;;  %v6099_v5 = vshrl.u32 %v10217_v40, 16  ;;  %v13195_v53 = vld [vmem:[#allocation9 + $0x148] sm:$0xff]   ;;  %v13199_v57 = vld [vmem:[#allocation9 + $0x150] sm:$0xff]   ;;  %v13207_v47 = vld [vmem:[#allocation9 + $0x120] sm:$0xff]  }
 0x3f6   : > { %11301 = vmatprep.subr.bf16.mxu1 %v13168_v32  ;;  %12069 = vmatprep.subr.bf16.mxu0 %v13169_v54  ;;  %v6083_v51 = vor.u32 %v6082_v20, %v6078_v49  ;;  %v15542_v59 = vor.u32 %v6089_v19, %v6085_v4  ;;  %v15548_v41 = vrot.slane %v10241_v34, 1  ;;  %v6101_v55 = vshll.u32 %v10217_v40, 16  ;;  %v13196_v23 = vld [vmem:[#allocation9 + $0xc8] sm:$0xff]   ;;  %v13208_v61 = vld [vmem:[#allocation9 + $0x160] sm:$0xff]   ;;  %v5917_v48 = vld [vmem:[#allocation2 + $0x74] sm:$0x1] }
 0x3f7   : > { %12077 = vmatprep.mubr.bf16.mxu0 %v10265_v63  ;;  %v6096_v12 = vrot.slane %v6094_v17, 1  ;;  %v15561_v32 = vcombine.low %v15533_v0, %v15537_v39  ;;  %v13210_v4 = vld [vmem:[#allocation9 + $0x128] sm:$0xff]   ;;  %v5918_v20 = vld [vmem:[#allocation2 + $0x7c] sm:$0x1]  ;;  %v5939_v19 = vld [vmem:[#allocation2 + $0x60] sm:$0xe] }
 0x3f8   : > { %v10264_v36 = vcombine.low %v6083_v51, %v15542_v59  ;;  %v15552_v21 = vcombine.low %v15546_v33, %v15548_v41  ;;  %v6103_v13 = vrot.slane %v6101_v55, 1  ;;  %v15574_v18 = vld [vmem:[#allocation2 + $0x70] sm:$0xf]  ;;  %v5940_v50 = vld [vmem:[#allocation2 + $0x68] sm:$0xe] }
 0x3f9   : > { %11302 = vmatpush3.bf16.msra.mxu1 %v13170_v31  ;;  %12070 = vmatpush3.bf16.msra.mxu0 %v13169_v54  ;;  %v15555_v56 = vor.u32 %v6096_v12, %v6092_v1  ;;  %v13200_v54 = vld [vmem:[#allocation9 + $0xd0] sm:$0xff]   ;;  %v10222_v11 = vcombine.low %v15574_v18, %v5917_v48  ;;  %v13211_v7 = vld [vmem:[#allocation9 + $0x168] sm:$0xff]  }
 0x3fa   : > { %11303 = vmatprep.subr.bf16.mxu1 %v13171_v27  ;;  %12071 = vmatprep.subr.bf16.mxu0 %v13172_v43  ;;  %v15557_v38 = vor.u32 %v6103_v13, %v6099_v5  ;;  %v13201_v27 = vld [vmem:[#allocation9 + $0x118] sm:$0xff]   ;;  %v5913_v51 = vld [vmem:[#allocation2 + $0x54] sm:$0x1]  ;;  %v5937_v35 = vld [vmem:[#allocation2 + $0x50] sm:$0xe] }
 0x3fb   : > { %6612 = vmatprep.mubr.bf16.mxu1 %v10264_v36  ;;  %v6134_v34 = vshrl.u32 %v10222_v11, 16  ;;  %v6136_v36 = vshll.u32 %v10222_v11, 16  ;;  %v13218_v1 = vld [vmem:[#allocation9 + $0x130] sm:$0xff]  }
 0x3fc   : > { %v15565_v31 = vcombine.low %v15555_v56, %v15557_v38  ;;  %v5941_v55 = vld [vmem:[#allocation2 + $0x70] sm:$0xe] }
 0x3fd   : > { %11304 = vmatpush3.bf16.msra.mxu1 %v13173_v45  ;;  %12072 = vmatpush3.bf16.msra.mxu0 %v13172_v43  ;;  %v5891_v43 = vld [vmem:[#allocation2 + $0x60] sm:$0xf]  ;;  %v15567_v45 = vld [vmem:[#allocation2 + $0x68] sm:$0xf]  ;;  %v6138_v12 = vrot.slane %v6136_v36, 1  ;;  %v10246_v13 = vcombine.low %v5941_v55, %v5917_v48 }
 0x3fe   : > { %11305 = vmatprep.subr.bf16.mxu1 %v13174_v46  ;;  %12073 = vmatprep.subr.bf16.mxu0 %v13175_v58  ;;  %v5915_v46 = vld [vmem:[#allocation2 + $0x64] sm:$0x1]  ;;  %v15579_v10 = vcombine.low %v5891_v43, %v15567_v45  ;;  %v13230_v48 = vld [vmem:[#allocation9 + $0x208] sm:$0xff]   ;;  %v15637_v36 = vld [vmem:[#allocation2 + $0x80] sm:$0xf] }
 0x3ff   : > { %v10244_v42 = vcombine.low %v5939_v19, %v5915_v46 }
 0x401   : > { %11306 = vmatpush3.bf16.msra.mxu1 %v13176_v52  ;;  %12074 = vmatpush3.bf16.msra.mxu0 %v13175_v58  ;;  %v5916_v58 = vld [vmem:[#allocation2 + $0x6c] sm:$0x1]  ;;  %v13202_v52 = vld [vmem:[#allocation9 + $0x158] sm:$0xff]   ;;  %v6323_v17 = vrot.slane %v10244_v42, 1 }
 0x402   : > { %11307 = vmatprep.subr.bf16.mxu1 %v13177_v15  ;;  %12075 = vmatprep.subr.bf16.mxu0 %v13178_v2  ;;  %v10220_v15 = vcombine.low %v5891_v43, %v5915_v46  ;;  %v10245_v40 = vcombine.low %v5940_v50, %v5916_v58  ;;  %v6325_v46 = vrot.slane %v10246_v13, 1  ;;  %v13235_v50 = vld [vmem:[#allocation9 + $0x210] sm:$0xff]  }
 0x404   : > { %v6120_v28 = vshrl.u32 %v10220_v15, 16  ;;  %v6122_v25 = vshll.u32 %v10220_v15, 16  ;;  %v6324_v5 = vrot.slane %v10245_v40, 1  ;;  %v13236_v40 = vld [vmem:[#allocation9 + $0x190] sm:$0xff]  }
 0x405   : > { %11308 = vmatpush3.bf16.msra.mxu1 %v13179_v24  ;;  %12076 = vmatpush3.bf16.msra.mxu0 %v13178_v2  ;;  %v10221_v2 = vcombine.low %v15567_v45, %v5916_v58  ;;  %v13209_v24 = vld [vmem:[#allocation9 + $0xe0] sm:$0xff]  }
 0x406   : > { %11345 = vmatprep.subr.bf16.mxu1 %v13186_v8  ;;  %12085 = vmatprep.subr.bf16.mxu0 %v13187_v44  ;;  %v6124_v30 = vrot.slane %v6122_v25, 1  ;;  %v15576_v8 = vld [vmem:[#allocation2 + $0x78] sm:$0xf]  ;;  %v15624_v11 = vcombine.low %v6324_v5, %v6325_v46 }
 0x407   : > { %v6127_v37 = vshrl.u32 %v10221_v2, 16  ;;  %v6129_v3 = vshll.u32 %v10221_v2, 16  ;;  %v10223_v63 = vcombine.low %v15576_v8, %v5918_v20  ;;  %v15598_v15 = vcombine.low %v15574_v18, %v15576_v8  ;;  %v13222_v2 = vld [vmem:[#allocation9 + $0xf0] sm:$0xff]  }
 0x408   : > { %6613 = vmatmul.mubr.bf16.vlgmr.msra.gmra.mrb[80].mxu1 %v10263_v26  ;;  %12078 = vmatmul.mubr.bf16.vlgmr.msra.gmra.mrb[224].mxu0 %v15552_v21  ;;  %v6125_v49 = vor.u32 %v6124_v30, %v6120_v28  ;;  %v13212_v26 = vld [vmem:[#allocation9 + $0xe8] sm:$0xff]  }
 0x409   : > { %11346 = vmatpush3.bf16.msra.mxu1 %v13193_v14  ;;  %12086 = vmatpush3.bf16.msra.mxu0 %v13187_v44  ;;  %v6131_v62 = vrot.slane %v6129_v3, 1  ;;  %v6141_v14 = vshrl.u32 %v10223_v63, 16  ;;  %v13224_v3 = vld [vmem:[#allocation9 + $0x178] sm:$0xff]  }
 0x40a   : > { %11347 = vmatprep.subr.bf16.mxu1 %v13194_v22  ;;  %12087 = vmatprep.subr.bf16.mxu0 %v13195_v53  ;;  %v6143_v22 = vshll.u32 %v10223_v63, 16 }
 0x40b   : > { %6620 = vmatprep.mubr.bf16.mxu1 %v15565_v31  ;;  %v15572_v16 = vor.u32 %v6131_v62, %v6127_v37  ;;  %v13223_v37 = vld [vmem:[#allocation9 + $0x138] sm:$0xff]   ;;  %v13227_v62 = vld [vmem:[#allocation9 + $0x200] sm:$0xff]  }
 0x40d   : > { %11348 = vmatpush3.bf16.msra.mxu1 %v13196_v23  ;;  %12088 = vmatpush3.bf16.msra.mxu0 %v13195_v53  ;;  %v15582_v44 = vcombine.low %v6125_v49, %v15572_v16  ;;  %v5942_v53 = vld [vmem:[#allocation2 + $0x78] sm:$0xe]  ;;  %v6145_v23 = vrot.slane %v6143_v22, 1  ;;  %v13228_v49 = vld [vmem:[#allocation9 + $0x180] sm:$0xff]  }
 0x40e   : > { %11349 = vmatprep.subr.bf16.mxu1 %v13198_v60  ;;  %12089 = vmatprep.subr.bf16.mxu0 %v13199_v57  ;;  %v10247_v60 = vcombine.low %v5942_v53, %v5918_v20  ;;  %v13242_v22 = vld [vmem:[#allocation9 + $0x220] sm:$0xff]   ;;  %v15643_v53 = vcombine.low %v15567_v45, %v15574_v18  ;;  %v13249_v45 = vld [vmem:[#allocation9 + $0x1f0] sm:$0xff]   ;;  %v5914_v18 = vld [vmem:[#allocation2 + $0x5c] sm:$0x1] }
 0x40f   : > { %v15592_v43 = vor.u32 %v6145_v23, %v6141_v14  ;;  %v13245_v23 = vld [vmem:[#allocation9 + $0x228] sm:$0xff]  }
 0x410   : > { %6621 = vmatmul.mubr.bf16.gmra.mrb[84].mxu1 %v15561_v32  ;;  %v15594_v58 = vrot.slane %v10247_v60, 1 }
 0x411   : > { %11350 = vmatpush3.bf16.msra.mxu1 %v13200_v54  ;;  %12090 = vmatpush3.bf16.msra.mxu0 %v13199_v57  ;;  %v15588_v57 = vcombine.low %v6323_v17, %v6324_v5  ;;  %v13219_v54 = vld [vmem:[#allocation9 + $0x170] sm:$0xff]   ;;  %v13243_v17 = vld [vmem:[#allocation9 + $0x1a0] sm:$0xff]  }
 0x412   : > { %11351 = vmatprep.subr.bf16.mxu1 %v13201_v27  ;;  %12091 = vmatprep.subr.bf16.mxu0 %v13202_v52  ;;  %v15590_v27 = vor.u32 %v6138_v12, %v6134_v34  ;;  %v15608_v25 = vcombine.low %v6325_v46, %v15594_v58  ;;  %v13244_v12 = vld [vmem:[#allocation9 + $0x1e8] sm:$0xff]  }
 0x413   : > { %6628 = vmatprep.mubr.bf16.mxu1 %v15582_v44  ;;  %12081 = vmatprep.mubr.bf16.mxu0 %v15588_v57 }
 0x414   : > { %v15605_v28 = vcombine.low %v15590_v27, %v15592_v43  ;;  %12082 = vmatmul.mubr.bf16.gmra.mrb[228].mxu0 %v15608_v25  ;;  %v15635_v34 = vcombine.low %v15572_v16, %v15590_v27 }
 0x415   : > { %11352 = vmatpush3.bf16.msra.mxu1 %v13203_v9  ;;  %12092 = vmatpush3.bf16.msra.mxu0 %v13202_v52  ;;  %v10242_v52 = vcombine.low %v5937_v35, %v5913_v51  ;;  %v10301_v9 = vcombine.low %v15535_v6, %v15546_v33  ;;  %v13225_v6 = vld [vmem:[#allocation9 + $0xf8] sm:$0xff]   ;;  %v13226_v33 = vld [vmem:[#allocation9 + $0x1c0] sm:$0xff]  }
 0x416   : > { %11353 = vmatprep.subr.bf16.mxu1 %v13207_v47  ;;  %12093 = vmatprep.subr.bf16.mxu0 %v13208_v61  ;;  %v10300_v47 = vcombine.low %v15542_v59, %v15555_v56  ;;  %v13238_v35 = vld [vmem:[#allocation9 + $0x218] sm:$0xff]  }
 0x417   : > { %v15614_v30 = vrot.slane %v10242_v52, 1  ;;  %12101 = vmatprep.mubr.bf16.mxu0 %v10301_v9  ;;  %v13250_v9 = vld [vmem:[#allocation9 + $0x230] sm:$0xff]  }
 0x418   : > { %6629 = vmatmul.mubr.bf16.gmra.mrb[88].mxu1 %v15579_v10 }
 0x419   : > { %11354 = vmatpush3.bf16.msra.mxu1 %v13209_v24  ;;  %12094 = vmatpush3.bf16.msra.mxu0 %v13208_v61  ;;  %v15617_v61 = vld [vmem:[#allocation2 + $0x50] sm:$0xf]  ;;  %v10299_v24 = vcombine.low %v15530_v29, %v15533_v0  ;;  %v10304_v59 = vcombine.low %v15548_v41, %v15614_v30 }
 0x41a   : > { %11355 = vmatprep.subr.bf16.mxu1 %v13210_v4  ;;  %12095 = vmatprep.subr.bf16.mxu0 %v13211_v7  ;;  %v10218_v56 = vcombine.low %v15617_v61, %v5913_v51  ;;  %v13229_v4 = vld [vmem:[#allocation9 + $0x1c8] sm:$0xff]   ;;  %v13234_v41 = vld [vmem:[#allocation9 + $0x1d0] sm:$0xff]   ;;  %v13237_v51 = vld [vmem:[#allocation9 + $0x1d8] sm:$0xff]  }
 0x41b   : > { %6636 = vmatprep.mubr.bf16.mxu1 %v15605_v28  ;;  %v13231_v29 = vld [vmem:[#allocation9 + $0x188] sm:$0xff]  }
 0x41c   : > { %v6106_v20 = vshrl.u32 %v10218_v56, 16  ;;  %v6108_v19 = vshll.u32 %v10218_v56, 16 }
 0x41d   : > { %11356 = vmatpush3.bf16.msra.mxu1 %v13212_v26  ;;  %12096 = vmatpush3.bf16.msra.mxu0 %v13211_v7  ;;  %v10302_v7 = vcombine.low %v15537_v39, %v15617_v61  ;;  %v13239_v26 = vld [vmem:[#allocation9 + $0x198] sm:$0xff]   ;;  %v13241_v39 = vld [vmem:[#allocation9 + $0x1e0] sm:$0xff]  }
 0x41e   : > { %11357 = vmatprep.subr.bf16.mxu1 %v13218_v1  ;;  %12097 = vmatprep.subr.bf16.mxu0 %v13219_v54  ;;  %v6110_v63 = vrot.slane %v6108_v19, 1  ;;  %v5943_v1 = vld [vmem:[#allocation2 + $0x80] sm:$0xe]  ;;  %v13260_v19 = vld [vmem:[#allocation9 + $0x288] sm:$0xff]  }
 0x420   : > { %6637 = vmatmul.mubr.bf16.gmra.mrb[92].mxu1 %v15598_v15  ;;  %v15626_v0 = vor.u32 %v6110_v63, %v6106_v20  ;;  %v13261_v63 = vld [vmem:[#allocation9 + $0x2c8] sm:$0xff]  }
 0x421   : > { %11358 = vmatpush3.bf16.msra.mxu1 %v13222_v2  ;;  %12098 = vmatpush3.bf16.msra.mxu0 %v13219_v54  ;;  %v13246_v54 = vld [vmem:[#allocation9 + $0x1a8] sm:$0xff]   ;;  %v5938_v2 = vld [vmem:[#allocation2 + $0x58] sm:$0xe] }
 0x422   : > { %11359 = vmatprep.subr.bf16.mxu1 %v13223_v37  ;;  %12099 = vmatprep.subr.bf16.mxu0 %v13224_v3  ;;  %v10303_v42 = vcombine.low %v15557_v38, %v15626_v0  ;;  %v5919_v38 = vld [vmem:[#allocation2 + $0x84] sm:$0x1]  ;;  %v13252_v37 = vld [vmem:[#allocation9 + $0x1b0] sm:$0xff]  }
 0x423   : > { %6963 = vmatprep.mubr.bf16.mxu1 %v10300_v47  ;;  %v10224_v14 = vcombine.low %v15637_v36, %v5919_v38  ;;  %v10248_v16 = vcombine.low %v5943_v1, %v5919_v38  ;;  %v5890_v47 = vld [vmem:[#allocation2 + $0x58] sm:$0xf] }
 0x425   : > { %11360 = vmatpush3.bf16.msra.mxu1 %v13225_v6  ;;  %12100 = vmatpush3.bf16.msra.mxu0 %v13224_v3  ;;  %v6148_v5 = vshrl.u32 %v10224_v14, 16  ;;  %v6150_v55 = vshll.u32 %v10224_v14, 16  ;;  %v15645_v60 = vrot.slane %v10248_v16, 1  ;;  %v10243_v3 = vcombine.low %v5938_v2, %v5914_v18  ;;  %v13254_v6 = vld [vmem:[#allocation9 + $0x238] sm:$0xff]   ;;  %v13273_v16 = vld [vmem:[#allocation9 + $0x260] sm:$0xff]  }
 0x426   : > { %11397 = vmatprep.subr.bf16.mxu1 %v13226_v33  ;;  %12109 = vmatprep.subr.bf16.mxu0 %v13227_v62  ;;  %v10219_v33 = vcombine.low %v5890_v47, %v5914_v18  ;;  %v13283_v2 = vld [vmem:[#allocation9 + $0x2b8] sm:$0xff]  }
 0x427   : > { %v6152_v13 = vrot.slane %v6150_v55, 1  ;;  %v15651_v46 = vcombine.low %v15594_v58, %v15645_v60  ;;  %v15662_v58 = vcombine.low %v15576_v8, %v15637_v36 }
 0x428   : > { %6964 = vmatmul.mubr.bf16.vlgmr.msra.gmra.mrb[96].mxu1 %v10299_v24  ;;  %12102 = vmatmul.mubr.bf16.vlgmr.msra.gmra.mrb[224].mxu0 %v10304_v59  ;;  %v13256_v24 = vld [vmem:[#allocation9 + $0x280] sm:$0xff]   ;;  %v6322_v59 = vrot.slane %v10243_v3, 1  ;;  %v6113_v56 = vshrl.u32 %v10219_v33, 16  ;;  %v6115_v8 = vshll.u32 %v10219_v33, 16  ;;  %v5922_v3 = vld [vmem:[#allocation2 + $0x9c] sm:$0x1] }
 0x429   : > { %11398 = vmatpush3.bf16.msra.mxu1 %v13228_v49  ;;  %12110 = vmatpush3.bf16.msra.mxu0 %v13227_v62  ;;  %v15647_v27 = vor.u32 %v6152_v13, %v6148_v5  ;;  %v13255_v62 = vld [vmem:[#allocation9 + $0x1b8] sm:$0xff]   ;;  %v13272_v5 = vld [vmem:[#allocation9 + $0x2e0] sm:$0xff]  }
 0x42a   : > { %11399 = vmatprep.subr.bf16.mxu1 %v13229_v4  ;;  %12111 = vmatprep.subr.bf16.mxu0 %v13230_v48  ;;  %v6117_v49 = vrot.slane %v6115_v8, 1  ;;  %v10337_v4 = vcombine.low %v15614_v30, %v6322_v59  ;;  %v5920_v30 = vld [vmem:[#allocation2 + $0x8c] sm:$0x1]  ;;  %v13286_v33 = vld [vmem:[#allocation9 + $0x340] sm:$0xff]  }
 0x42b   : > { %12105 = vmatprep.mubr.bf16.mxu0 %v15624_v11  ;;  %6971 = vmatprep.mubr.bf16.mxu1 %v10303_v42  ;;  %v15656_v52 = vcombine.low %v15592_v43, %v15647_v27  ;;  %v13253_v43 = vld [vmem:[#allocation9 + $0x1f8] sm:$0xff]   ;;  %v5896_v42 = vld [vmem:[#allocation2 + $0x88] sm:$0xf] }
 0x42c   : > { %v6118_v20 = vor.u32 %v6117_v49, %v6113_v56  ;;  %v15684_v18 = vcombine.low %v15637_v36, %v5896_v42  ;;  %v13285_v36 = vld [vmem:[#allocation9 + $0x278] sm:$0xff]   ;;  %v13288_v56 = vld [vmem:[#allocation9 + $0x300] sm:$0xff]   ;;  %v13289_v8 = vld [vmem:[#allocation9 + $0x348] sm:$0xff]  }
 0x42d   : > { %11400 = vmatpush3.bf16.msra.mxu1 %v13231_v29  ;;  %12112 = vmatpush3.bf16.msra.mxu0 %v13230_v48  ;;  %v13259_v48 = vld [vmem:[#allocation9 + $0x240] sm:$0xff]   ;;  %v13262_v29 = vld [vmem:[#allocation9 + $0x248] sm:$0xff]  }
 0x42e   : > { %11401 = vmatprep.subr.bf16.mxu1 %v13234_v41  ;;  %12113 = vmatprep.subr.bf16.mxu0 %v13235_v50  ;;  %v10336_v41 = vcombine.low %v15626_v0, %v6118_v20  ;;  %v13269_v0 = vld [vmem:[#allocation9 + $0x2d8] sm:$0xff]   ;;  %v15696_v20 = vld [vmem:[#allocation2 + $0xa8] sm:$0xf] }
 0x430   : > { %6972 = vmatmul.mubr.bf16.gmra.mrb[100].mxu1 %v10302_v7  ;;  %12106 = vmatmul.mubr.bf16.gmra.mrb[228].mxu0 %v15651_v46  ;;  %v10225_v7 = vcombine.low %v5896_v42, %v5920_v30 }
 0x431   : > { %11402 = vmatpush3.bf16.msra.mxu1 %v13236_v40  ;;  %12114 = vmatpush3.bf16.msra.mxu0 %v13235_v50  ;;  %v13265_v50 = vld [vmem:[#allocation9 + $0x290] sm:$0xff]   ;;  %v10335_v40 = vcombine.low %v15617_v61, %v5890_v47 }
 0x432   : > { %11403 = vmatprep.subr.bf16.mxu1 %v13237_v51  ;;  %12115 = vmatprep.subr.bf16.mxu0 %v13238_v35  ;;  %v13267_v51 = vld [vmem:[#allocation9 + $0x250] sm:$0xff]   ;;  %v6155_v14 = vshrl.u32 %v10225_v7, 16 }
 0x433   : > { %6979 = vmatprep.mubr.bf16.mxu1 %v15635_v34  ;;  %12125 = vmatprep.mubr.bf16.mxu0 %v15552_v21  ;;  %v13257_v21 = vld [vmem:[#allocation9 + $0x2c0] sm:$0xff]  }
 0x435   : > { %11404 = vmatpush3.bf16.msra.mxu1 %v13239_v26  ;;  %12116 = vmatpush3.bf16.msra.mxu0 %v13238_v35  ;;  %v5944_v35 = vld [vmem:[#allocation2 + $0x88] sm:$0xe]  ;;  %v6157_v26 = vshll.u32 %v10225_v7, 16 }
 0x436   : > { %11405 = vmatprep.subr.bf16.mxu1 %v13241_v39  ;;  %12117 = vmatprep.subr.bf16.mxu0 %v13242_v22  ;;  %v10249_v38 = vcombine.low %v5944_v35, %v5920_v30  ;;  %v13270_v39 = vld [vmem:[#allocation9 + $0x258] sm:$0xff]   ;;  %v13293_v35 = vld [vmem:[#allocation9 + $0x390] sm:$0xff]  }
 0x438   : > { %6980 = vmatmul.mubr.bf16.gmra.mrb[104].mxu1 %v15643_v53  ;;  %v6328_v1 = vrot.slane %v10249_v38, 1 }
 0x439   : > { %11406 = vmatpush3.bf16.msra.mxu1 %v13243_v17  ;;  %12118 = vmatpush3.bf16.msra.mxu0 %v13242_v22  ;;  %v6159_v22 = vrot.slane %v6157_v26, 1  ;;  %v13271_v17 = vld [vmem:[#allocation9 + $0x2a0] sm:$0xff]  }
 0x43a   : > { %11407 = vmatprep.subr.bf16.mxu1 %v13244_v12  ;;  %12119 = vmatprep.subr.bf16.mxu0 %v13245_v23  ;;  %v15673_v61 = vcombine.low %v15645_v60, %v6328_v1  ;;  %v13274_v12 = vld [vmem:[#allocation9 + $0x2a8] sm:$0xff]   ;;  %v5947_v26 = vld [vmem:[#allocation2 + $0xa0] sm:$0xe] }
 0x43b   : > { %6987 = vmatprep.mubr.bf16.mxu1 %v15656_v52  ;;  %v6160_v55 = vor.u32 %v6159_v22, %v6155_v14  ;;  %v13276_v60 = vld [vmem:[#allocation9 + $0x268] sm:$0xff]  }
 0x43c   : > { %v5948_v14 = vld [vmem:[#allocation2 + $0xa8] sm:$0xe] }
 0x43d   : > { %11408 = vmatpush3.bf16.msra.mxu1 %v13246_v54  ;;  %12120 = vmatpush3.bf16.msra.mxu0 %v13245_v23  ;;  %v13275_v23 = vld [vmem:[#allocation9 + $0x2e8] sm:$0xff]   ;;  %v15679_v13 = vcombine.low %v15647_v27, %v6160_v55  ;;  %v13279_v54 = vld [vmem:[#allocation9 + $0x2b0] sm:$0xff]  }
 0x43e   : > { %11409 = vmatprep.subr.bf16.mxu1 %v13249_v45  ;;  %12121 = vmatprep.subr.bf16.mxu0 %v13250_v9  ;;  %v13280_v45 = vld [vmem:[#allocation9 + $0x2f0] sm:$0xff]  }
 0x43f   : > { %v15688_v27 = vld [vmem:[#allocation2 + $0x98] sm:$0xf] }
 0x440   : > { %6988 = vmatmul.mubr.bf16.gmra.mrb[108].mxu1 %v15662_v58 }
 0x441   : > { %11410 = vmatpush3.bf16.msra.mxu1 %v13252_v37  ;;  %12122 = vmatpush3.bf16.msra.mxu0 %v13250_v9  ;;  %v15686_v9 = vld [vmem:[#allocation2 + $0x90] sm:$0xf]  ;;  %v5921_v37 = vld [vmem:[#allocation2 + $0x94] sm:$0x1] }
 0x442   : > { %11411 = vmatprep.subr.bf16.mxu1 %v13253_v43  ;;  %12123 = vmatprep.subr.bf16.mxu0 %v13254_v6  ;;  %v13284_v43 = vld [vmem:[#allocation9 + $0x2f8] sm:$0xff]   ;;  %v10226_v47 = vcombine.low %v15686_v9, %v5921_v37 }
 0x443   : > { %7310 = vmatprep.mubr.bf16.mxu1 %v15565_v31  ;;  %v13266_v31 = vld [vmem:[#allocation9 + $0x2d0] sm:$0xff]  }
 0x444   : > { %v6162_v49 = vshrl.u32 %v10226_v47, 16 }
 0x445   : > { %11412 = vmatpush3.bf16.msra.mxu1 %v13255_v62  ;;  %12124 = vmatpush3.bf16.msra.mxu0 %v13254_v6  ;;  %v10227_v6 = vcombine.low %v15688_v27, %v5922_v3  ;;  %v13287_v62 = vld [vmem:[#allocation9 + $0x380] sm:$0xff]  }
 0x446   : > { %11449 = vmatprep.subr.bf16.mxu1 %v13256_v24  ;;  %12133 = vmatprep.subr.bf16.mxu0 %v13257_v21  ;;  %v6164_v24 = vshll.u32 %v10226_v47, 16  ;;  %v13301_v47 = vld [vmem:[#allocation9 + $0x360] sm:$0xff]  }
 0x447   : > { %v6171_v59 = vshll.u32 %v10227_v6, 16 }
 0x448   : > { %7311 = vmatmul.mubr.bf16.vlgmr.msra.gmra.mrb[112].mxu1 %v15561_v32  ;;  %12126 = vmatmul.mubr.bf16.vlgmr.msra.gmra.mrb[224].mxu0 %v10337_v4  ;;  %v13268_v32 = vld [vmem:[#allocation9 + $0x298] sm:$0xff]   ;;  %v6169_v4 = vshrl.u32 %v10227_v6, 16  ;;  %v13302_v6 = vld [vmem:[#allocation9 + $0x3a0] sm:$0xff]  }
 0x449   : > { %11450 = vmatpush3.bf16.msra.mxu1 %v13259_v48  ;;  %12134 = vmatpush3.bf16.msra.mxu0 %v13257_v21  ;;  %v13290_v21 = vld [vmem:[#allocation9 + $0x388] sm:$0xff]   ;;  %v15694_v48 = vld [vmem:[#allocation2 + $0xa0] sm:$0xf]  ;;  %v6173_v42 = vrot.slane %v6171_v59, 1 }
 0x44a   : > { %11451 = vmatprep.subr.bf16.mxu1 %v13260_v19  ;;  %12135 = vmatprep.subr.bf16.mxu0 %v13261_v63  ;;  %v5923_v19 = vld [vmem:[#allocation2 + $0xa4] sm:$0x1]  ;;  %v13304_v59 = vld [vmem:[#allocation9 + $0x368] sm:$0xff]  }
 0x44b   : > { %7318 = vmatprep.mubr.bf16.mxu1 %v10336_v41  ;;  %12129 = vmatprep.mubr.bf16.mxu0 %v15608_v25  ;;  %v10252_v22 = vcombine.low %v5947_v26, %v5923_v19 }
 0x44d   : > { %11452 = vmatpush3.bf16.msra.mxu1 %v13262_v29  ;;  %12136 = vmatpush3.bf16.msra.mxu0 %v13261_v63  ;;  %v5924_v63 = vld [vmem:[#allocation2 + $0xac] sm:$0x1]  ;;  %v10228_v29 = vcombine.low %v15694_v48, %v5923_v19  ;;  %v13317_v19 = vld [vmem:[#allocation9 + $0x378] sm:$0xff]  }
 0x44e   : > { %11453 = vmatprep.subr.bf16.mxu1 %v13265_v50  ;;  %12137 = vmatprep.subr.bf16.mxu0 %v13266_v31  ;;  %v10229_v41 = vcombine.low %v15696_v20, %v5924_v63  ;;  %v5946_v50 = vld [vmem:[#allocation2 + $0x98] sm:$0xe]  ;;  %v10253_v55 = vcombine.low %v5948_v14, %v5924_v63 }
 0x44f   : > { %v10251_v7 = vcombine.low %v5946_v50, %v5922_v3  ;;  %v6178_v38 = vshll.u32 %v10228_v29, 16  ;;  %v13318_v63 = vld [vmem:[#allocation9 + $0x3b8] sm:$0xff]   ;;  %v13322_v50 = vld [vmem:[#allocation9 + $0x3c0] sm:$0xff]  }
 0x450   : > { %7319 = vmatmul.mubr.bf16.gmra.mrb[116].mxu1 %v10335_v40  ;;  %12130 = vmatmul.mubr.bf16.gmra.mrb[228].mxu0 %v15673_v61  ;;  %v13291_v40 = vld [vmem:[#allocation9 + $0x308] sm:$0xff]  }
 0x451   : > { %11454 = vmatpush3.bf16.msra.mxu1 %v13267_v51  ;;  %12138 = vmatpush3.bf16.msra.mxu0 %v13266_v31  ;;  %v6166_v31 = vrot.slane %v6164_v24, 1  ;;  %v13292_v51 = vld [vmem:[#allocation9 + $0x350] sm:$0xff]   ;;  %v13303_v24 = vld [vmem:[#allocation9 + $0x320] sm:$0xff]  }
 0x452   : > { %11455 = vmatprep.subr.bf16.mxu1 %v13268_v32  ;;  %12139 = vmatprep.subr.bf16.mxu0 %v13269_v0 }
 0x453   : > { %7326 = vmatprep.mubr.bf16.mxu1 %v15605_v28  ;;  %12149 = vmatprep.mubr.bf16.mxu0 %v15588_v57  ;;  %v13282_v57 = vld [vmem:[#allocation9 + $0x270] sm:$0xff]   ;;  %v6167_v1 = vor.u32 %v6166_v31, %v6162_v49 }
 0x454   : > { %v13313_v49 = vld [vmem:[#allocation9 + $0x3b0] sm:$0xff]  }
 0x455   : > { %11456 = vmatpush3.bf16.msra.mxu1 %v13270_v39  ;;  %12140 = vmatpush3.bf16.msra.mxu0 %v13269_v0  ;;  %v15702_v0 = vrot.slane %v10251_v7, 1  ;;  %v6185_v39 = vshll.u32 %v10229_v41, 16  ;;  %v5925_v31 = vld [vmem:[#allocation2 + $0xb4] sm:$0x1] }
 0x456   : > { %11457 = vmatprep.subr.bf16.mxu1 %v13271_v17  ;;  %12141 = vmatprep.subr.bf16.mxu0 %v13272_v5  ;;  %v15705_v17 = vor.u32 %v6173_v42, %v6169_v4  ;;  %v13316_v4 = vld [vmem:[#allocation9 + $0x330] sm:$0xff]  }
 0x457   : > { %v5949_v42 = vld [vmem:[#allocation2 + $0xb0] sm:$0xe] }
 0x458   : > { %7327 = vmatmul.mubr.bf16.gmra.mrb[120].mxu1 %v15598_v15  ;;  %v10254_v7 = vcombine.low %v5949_v42, %v5925_v31 }
 0x459   : > { %11458 = vmatpush3.bf16.msra.mxu1 %v13273_v16  ;;  %12142 = vmatpush3.bf16.msra.mxu0 %v13272_v5  ;;  %v13295_v16 = vld [vmem:[#allocation9 + $0x358] sm:$0xff]  }
 0x45a   : > { %11459 = vmatprep.subr.bf16.mxu1 %v13274_v12  ;;  %12143 = vmatprep.subr.bf16.mxu0 %v13275_v23  ;;  %v15710_v12 = vrot.slane %v10252_v22, 1  ;;  %v15755_v26 = vrot.slane %v10254_v7, 1  ;;  %v13330_v22 = vld [vmem:[#allocation9 + $0x458] sm:$0xff]   ;;  %v13360_v7 = vld [vmem:[#allocation9 + $0x4e0] sm:$0xff]  }
 0x45b   : > { %7334 = vmatprep.mubr.bf16.mxu1 %v15679_v13 }
 0x45d   : > { %11460 = vmatpush3.bf16.msra.mxu1 %v13276_v60  ;;  %12144 = vmatpush3.bf16.msra.mxu0 %v13275_v23  ;;  %v13296_v23 = vld [vmem:[#allocation9 + $0x398] sm:$0xff]   ;;  %v15712_v60 = vrot.slane %v10253_v55, 1 }
 0x45e   : > { %11461 = vmatprep.subr.bf16.mxu1 %v13279_v54  ;;  %12145 = vmatprep.subr.bf16.mxu0 %v13280_v45  ;;  %v6176_v54 = vshrl.u32 %v10228_v29, 16  ;;  %v13319_v29 = vld [vmem:[#allocation9 + $0x338] sm:$0xff]  }
 0x45f   : > { %v15720_v3 = vcombine.low %v15710_v12, %v15712_v60  ;;  %v13331_v55 = vld [vmem:[#allocation9 + $0x3d8] sm:$0xff]  }
 0x460   : > { %7335 = vmatmul.mubr.bf16.gmra.mrb[124].mxu1 %v15684_v18 }
 0x461   : > { %11462 = vmatpush3.bf16.msra.mxu1 %v13282_v57  ;;  %12146 = vmatpush3.bf16.msra.mxu0 %v13280_v45  ;;  %v6183_v45 = vshrl.u32 %v10229_v41, 16  ;;  %v15715_v57 = vcombine.low %v6167_v1, %v15705_v17  ;;  %v13320_v41 = vld [vmem:[#allocation9 + $0x400] sm:$0xff]  }
 0x462   : > { %11463 = vmatprep.subr.bf16.mxu1 %v13283_v2  ;;  %12147 = vmatprep.subr.bf16.mxu0 %v13284_v43  ;;  %v6180_v2 = vrot.slane %v6178_v38, 1  ;;  %v13326_v38 = vld [vmem:[#allocation9 + $0x410] sm:$0xff]  }
 0x463   : > { %7661 = vmatprep.mubr.bf16.mxu1 %v15582_v44  ;;  %v5945_v44 = vld [vmem:[#allocation2 + $0x90] sm:$0xe] }
 0x464   : > { %v10250_v30 = vcombine.low %v5945_v44, %v5921_v37  ;;  %v6187_v37 = vrot.slane %v6185_v39, 1  ;;  %v13321_v44 = vld [vmem:[#allocation9 + $0x440] sm:$0xff]   ;;  %v13327_v39 = vld [vmem:[#allocation9 + $0x450] sm:$0xff]  }
 0x465   : > { %11464 = vmatpush3.bf16.msra.mxu1 %v13285_v36  ;;  %12148 = vmatpush3.bf16.msra.mxu0 %v13284_v43  ;;  %v13297_v43 = vld [vmem:[#allocation9 + $0x318] sm:$0xff]   ;;  %v15724_v36 = vor.u32 %v6180_v2, %v6176_v54  ;;  %v13337_v54 = vld [vmem:[#allocation9 + $0x468] sm:$0xff]   ;;  %v13341_v2 = vld [vmem:[#allocation9 + $0x430] sm:$0xff]  }
 0x466   : > { %11501 = vmatprep.subr.bf16.mxu1 %v13286_v33  ;;  %12157 = vmatprep.subr.bf16.mxu0 %v13287_v62  ;;  %v6329_v32 = vrot.slane %v10250_v30, 1  ;;  %v15726_v33 = vor.u32 %v6187_v37, %v6183_v45  ;;  %v15746_v30 = vld [vmem:[#allocation2 + $0xb0] sm:$0xf] }
 0x467   : > { %v13344_v37 = vld [vmem:[#allocation9 + $0x3f0] sm:$0xff]  }
 0x468   : > { %7662 = vmatmul.mubr.bf16.vlgmr.msra.gmra.mrb[128].mxu1 %v15579_v10  ;;  %12150 = vmatmul.mubr.bf16.vlgmr.msra.gmra.mrb[224].mxu0 %v15608_v25  ;;  %v13294_v10 = vld [vmem:[#allocation9 + $0x310] sm:$0xff]   ;;  %v15708_v5 = vcombine.low %v6329_v32, %v15702_v0  ;;  %v15751_v32 = vcombine.low %v15702_v0, %v15710_v12  ;;  %v13334_v12 = vld [vmem:[#allocation9 + $0x460] sm:$0xff]  }
 0x469   : > { %11502 = vmatpush3.bf16.msra.mxu1 %v13288_v56  ;;  %12158 = vmatpush3.bf16.msra.mxu0 %v13287_v62  ;;  %v15731_v62 = vcombine.low %v15686_v9, %v15688_v27  ;;  %v13305_v56 = vld [vmem:[#allocation9 + $0x3a8] sm:$0xff]   ;;  %v13312_v9 = vld [vmem:[#allocation9 + $0x370] sm:$0xff]  }
 0x46a   : > { %11503 = vmatprep.subr.bf16.mxu1 %v13289_v8  ;;  %12159 = vmatprep.subr.bf16.mxu0 %v13290_v21  ;;  %v15736_v8 = vcombine.low %v15724_v36, %v15726_v33  ;;  %v13328_v0 = vld [vmem:[#allocation9 + $0x3d0] sm:$0xff]  }
 0x46b   : > { %7669 = vmatprep.mubr.bf16.mxu1 %v15605_v28  ;;  %12153 = vmatprep.mubr.bf16.mxu0 %v15708_v5 }
 0x46d   : > { %11504 = vmatpush3.bf16.msra.mxu1 %v13291_v40  ;;  %12160 = vmatpush3.bf16.msra.mxu0 %v13290_v21  ;;  %v13306_v21 = vld [vmem:[#allocation9 + $0x328] sm:$0xff]  }
 0x46e   : > { %11505 = vmatprep.subr.bf16.mxu1 %v13292_v51  ;;  %12161 = vmatprep.subr.bf16.mxu0 %v13293_v35  ;;  %v13323_v40 = vld [vmem:[#allocation9 + $0x408] sm:$0xff]  }
 0x46f   : > { %v13324_v51 = vld [vmem:[#allocation9 + $0x448] sm:$0xff]  }
 0x470   : > { %7670 = vmatmul.mubr.bf16.gmra.mrb[132].mxu1 %v15598_v15  ;;  %12154 = vmatmul.mubr.bf16.gmra.mrb[228].mxu0 %v15720_v3 }
 0x471   : > { %11506 = vmatpush3.bf16.msra.mxu1 %v13294_v10  ;;  %12162 = vmatpush3.bf16.msra.mxu0 %v13293_v35  ;;  %v10230_v35 = vcombine.low %v15746_v30, %v5925_v31  ;;  %v15765_v10 = vcombine.low %v15705_v17, %v15724_v36  ;;  %v15775_v17 = vcombine.low %v15688_v27, %v15694_v48  ;;  %v13342_v27 = vld [vmem:[#allocation9 + $0x470] sm:$0xff]   ;;  %v13348_v36 = vld [vmem:[#allocation9 + $0x4c0] sm:$0xff]  }
 0x472   : > { %11507 = vmatprep.subr.bf16.mxu1 %v13295_v16  ;;  %12163 = vmatprep.subr.bf16.mxu0 %v13296_v23  ;;  %v13333_v16 = vld [vmem:[#allocation9 + $0x420] sm:$0xff]  }
 0x473   : > { %7677 = vmatprep.mubr.bf16.mxu1 %v15715_v57  ;;  %12173 = vmatprep.mubr.bf16.mxu0 %v15624_v11  ;;  %v15742_v11 = vcombine.low %v15694_v48, %v15696_v20  ;;  %v6192_v14 = vshll.u32 %v10230_v35, 16  ;;  %v6190_v1 = vshrl.u32 %v10230_v35, 16  ;;  %v15785_v48 = vcombine.low %v15696_v20, %v15746_v30  ;;  %v13350_v20 = vld [vmem:[#allocation9 + $0x480] sm:$0xff]  }
 0x474   : > { %v13362_v35 = vld [vmem:[#allocation9 + $0x4a0] sm:$0xff]  }
 0x475   : > { %11508 = vmatpush3.bf16.msra.mxu1 %v13297_v43  ;;  %12164 = vmatpush3.bf16.msra.mxu0 %v13296_v23  ;;  %v13345_v43 = vld [vmem:[#allocation9 + $0x438] sm:$0xff]  }
 0x476   : > { %11509 = vmatprep.subr.bf16.mxu1 %v13301_v47  ;;  %12165 = vmatprep.subr.bf16.mxu0 %v13302_v6  ;;  %v13346_v47 = vld [vmem:[#allocation9 + $0x478] sm:$0xff]  }
 0x478   : > { %7678 = vmatmul.mubr.bf16.gmra.mrb[136].mxu1 %v15731_v62 }
 0x479   : > { %11510 = vmatpush3.bf16.msra.mxu1 %v13303_v24  ;;  %12166 = vmatpush3.bf16.msra.mxu0 %v13302_v6  ;;  %v13347_v6 = vld [vmem:[#allocation9 + $0x3f8] sm:$0xff]   ;;  %v13349_v24 = vld [vmem:[#allocation9 + $0x500] sm:$0xff]  }
 0x47a   : > { %11511 = vmatprep.subr.bf16.mxu1 %v13304_v59  ;;  %12167 = vmatprep.subr.bf16.mxu0 %v13305_v56  ;;  %v5926_v59 = vld [vmem:[#allocation2 + $0xbc] sm:$0x1] }
 0x47b   : > { %7685 = vmatprep.mubr.bf16.mxu1 %v15736_v8 }
 0x47d   : > { %11512 = vmatpush3.bf16.msra.mxu1 %v13306_v21  ;;  %12168 = vmatpush3.bf16.msra.mxu0 %v13305_v56  ;;  %v15789_v56 = vld [vmem:[#allocation2 + $0xb8] sm:$0xf] }
 0x47e   : > { %11513 = vmatprep.subr.bf16.mxu1 %v13312_v9  ;;  %12169 = vmatprep.subr.bf16.mxu0 %v13313_v49  ;;  %v13351_v9 = vld [vmem:[#allocation9 + $0x4c8] sm:$0xff]  }
 0x480   : > { %7686 = vmatmul.mubr.bf16.gmra.mrb[140].mxu1 %v15742_v11 }
 0x481   : > { %11514 = vmatpush3.bf16.msra.mxu1 %v13316_v4  ;;  %12170 = vmatpush3.bf16.msra.mxu0 %v13313_v49  ;;  %v13352_v49 = vld [vmem:[#allocation9 + $0x508] sm:$0xff]   ;;  %v10231_v4 = vcombine.low %v15789_v56, %v5926_v59 }
 0x482   : > { %11515 = vmatprep.subr.bf16.mxu1 %v13317_v19  ;;  %12171 = vmatprep.subr.bf16.mxu0 %v13318_v63  ;;  %v13353_v19 = vld [vmem:[#allocation9 + $0x488] sm:$0xff]  }
 0x483   : > { %8006 = vmatprep.mubr.bf16.mxu1 %v15635_v34  ;;  %v13325_v34 = vld [vmem:[#allocation9 + $0x3c8] sm:$0xff]   ;;  %v6197_v31 = vshrl.u32 %v10231_v4, 16 }
 0x485   : > { %11516 = vmatpush3.bf16.msra.mxu1 %v13319_v29  ;;  %12172 = vmatpush3.bf16.msra.mxu0 %v13318_v63  ;;  %v13355_v29 = vld [vmem:[#allocation9 + $0x510] sm:$0xff]  }
 0x486   : > { %11553 = vmatprep.subr.bf16.mxu1 %v13320_v41  ;;  %12181 = vmatprep.subr.bf16.mxu0 %v13321_v44  ;;  %v6199_v41 = vshll.u32 %v10231_v4, 16 }
 0x488   : > { %8007 = vmatmul.mubr.bf16.vlgmr.msra.gmra.mrb[144].mxu1 %v15643_v53  ;;  %12174 = vmatmul.mubr.bf16.vlgmr.msra.gmra.mrb[224].mxu0 %v15651_v46  ;;  %v15761_v53 = vcombine.low %v15712_v60, %v15755_v26  ;;  %v13329_v46 = vld [vmem:[#allocation9 + $0x418] sm:$0xff]   ;;  %v13336_v60 = vld [vmem:[#allocation9 + $0x428] sm:$0xff]   ;;  %v6201_v42 = vrot.slane %v6199_v41, 1 }
 0x489   : > { %11554 = vmatpush3.bf16.msra.mxu1 %v13322_v50  ;;  %12182 = vmatpush3.bf16.msra.mxu0 %v13321_v44  ;;  %v13358_v50 = vld [vmem:[#allocation9 + $0x518] sm:$0xff]   ;;  %v13380_v41 = vld [vmem:[#allocation9 + $0x548] sm:$0xff]  }
 0x48a   : > { %11555 = vmatprep.subr.bf16.mxu1 %v13323_v40  ;;  %12183 = vmatprep.subr.bf16.mxu0 %v13324_v51  ;;  %v13361_v40 = vld [vmem:[#allocation9 + $0x520] sm:$0xff]  }
 0x48b   : > { %8014 = vmatprep.mubr.bf16.mxu1 %v15656_v52  ;;  %12177 = vmatprep.mubr.bf16.mxu0 %v15751_v32  ;;  %v6194_v52 = vrot.slane %v6192_v14, 1  ;;  %v5927_v14 = vld [vmem:[#allocation2 + $0xc4] sm:$0x1] }
 0x48d   : > { %11556 = vmatpush3.bf16.msra.mxu1 %v13325_v34  ;;  %12184 = vmatpush3.bf16.msra.mxu0 %v13324_v51  ;;  %v15770_v23 = vor.u32 %v6194_v52, %v6190_v1  ;;  %v6202_v51 = vor.u32 %v6201_v42, %v6197_v31  ;;  %v13363_v34 = vld [vmem:[#allocation9 + $0x4e8] sm:$0xff]   ;;  %v13371_v1 = vld [vmem:[#allocation9 + $0x4b0] sm:$0xff]  }
 0x48e   : > { %11557 = vmatprep.subr.bf16.mxu1 %v13326_v38  ;;  %12185 = vmatprep.subr.bf16.mxu0 %v13327_v39  ;;  %v15805_v38 = vld [vmem:[#allocation2 + $0xc8] sm:$0xf] }
 0x48f   : > { %v15779_v45 = vcombine.low %v15726_v33, %v15770_v23  ;;  %v5950_v33 = vld [vmem:[#allocation2 + $0xb8] sm:$0xe] }
 0x490   : > { %8015 = vmatmul.mubr.bf16.gmra.mrb[148].mxu1 %v15662_v58  ;;  %12178 = vmatmul.mubr.bf16.gmra.mrb[228].mxu0 %v15761_v53  ;;  %v13335_v58 = vld [vmem:[#allocation9 + $0x3e0] sm:$0xff]   ;;  %v10255_v21 = vcombine.low %v5950_v33, %v5926_v59  ;;  %v15819_v33 = vld [vmem:[#allocation2 + $0xd0] sm:$0xf] }
 0x491   : > { %11558 = vmatpush3.bf16.msra.mxu1 %v13328_v0  ;;  %12186 = vmatpush3.bf16.msra.mxu0 %v13327_v39  ;;  %v15808_v39 = vcombine.low %v15770_v23, %v6202_v51  ;;  %v5928_v0 = vld [vmem:[#allocation2 + $0xcc] sm:$0x1]  ;;  %v5952_v23 = vld [vmem:[#allocation2 + $0xc8] sm:$0xe] }
 0x492   : > { %11559 = vmatprep.subr.bf16.mxu1 %v13329_v46  ;;  %12187 = vmatprep.subr.bf16.mxu0 %v13330_v22  ;;  %v6334_v63 = vrot.slane %v10255_v21, 1  ;;  %v13368_v46 = vld [vmem:[#allocation9 + $0x4f0] sm:$0xff]   ;;  %v13378_v21 = vld [vmem:[#allocation9 + $0x588] sm:$0xff]  }
 0x493   : > { %8022 = vmatprep.mubr.bf16.mxu1 %v15765_v10  ;;  %12197 = vmatprep.mubr.bf16.mxu0 %v15608_v25  ;;  %v13338_v25 = vld [vmem:[#allocation9 + $0x3e8] sm:$0xff]  }
 0x494   : > { %v15797_v44 = vcombine.low %v15755_v26, %v6334_v63  ;;  %v15803_v26 = vld [vmem:[#allocation2 + $0xc0] sm:$0xf] }
 0x495   : > { %11560 = vmatpush3.bf16.msra.mxu1 %v13331_v55  ;;  %12188 = vmatpush3.bf16.msra.mxu0 %v13330_v22  ;;  %v13369_v22 = vld [vmem:[#allocation9 + $0x530] sm:$0xff]   ;;  %v10232_v52 = vcombine.low %v15803_v26, %v5927_v14  ;;  %v10233_v55 = vcombine.low %v15805_v38, %v5928_v0 }
 0x496   : > { %11561 = vmatprep.subr.bf16.mxu1 %v13333_v16  ;;  %12189 = vmatprep.subr.bf16.mxu0 %v13334_v12  ;;  %v5951_v16 = vld [vmem:[#allocation2 + $0xc0] sm:$0xe] }
 0x497   : > { %v6204_v63 = vshrl.u32 %v10232_v52, 16 }
 0x498   : > { %8023 = vmatmul.mubr.bf16.gmra.mrb[152].mxu1 %v15775_v17 }
 0x499   : > { %11562 = vmatpush3.bf16.msra.mxu1 %v13335_v58  ;;  %12190 = vmatpush3.bf16.msra.mxu0 %v13334_v12  ;;  %v15816_v12 = vcombine.low %v15746_v30, %v15789_v56  ;;  %v13372_v58 = vld [vmem:[#allocation9 + $0x4f8] sm:$0xff]   ;;  %v5929_v30 = vld [vmem:[#allocation2 + $0xd4] sm:$0x1] }
 0x49a   : > { %11563 = vmatprep.subr.bf16.mxu1 %v13336_v60  ;;  %12191 = vmatprep.subr.bf16.mxu0 %v13337_v54  ;;  %v13373_v60 = vld [vmem:[#allocation9 + $0x538] sm:$0xff]  }
 0x49b   : > { %8030 = vmatprep.mubr.bf16.mxu1 %v15779_v45 }
 0x49d   : > { %11564 = vmatpush3.bf16.msra.mxu1 %v13338_v25  ;;  %12192 = vmatpush3.bf16.msra.mxu0 %v13337_v54  ;;  %v13374_v54 = vld [vmem:[#allocation9 + $0x4b8] sm:$0xff]   ;;  %v6206_v25 = vshll.u32 %v10232_v52, 16 }
 0x49e   : > { %11565 = vmatprep.subr.bf16.mxu1 %v13341_v2  ;;  %12193 = vmatprep.subr.bf16.mxu0 %v13342_v27  ;;  %v6213_v2 = vshll.u32 %v10233_v55, 16 }
 0x4a0   : > { %8031 = vmatmul.mubr.bf16.gmra.mrb[156].mxu1 %v15785_v48 }
 0x4a1   : > { %11566 = vmatpush3.bf16.msra.mxu1 %v13344_v37  ;;  %12194 = vmatpush3.bf16.msra.mxu0 %v13342_v27  ;;  %v10256_v27 = vcombine.low %v5951_v16, %v5927_v14  ;;  %v10257_v37 = vcombine.low %v5952_v23, %v5928_v0  ;;  %v13385_v0 = vld [vmem:[#allocation9 + $0x5d8] sm:$0xff]   ;;  %v13390_v16 = vld [vmem:[#allocation9 + $0x5a0] sm:$0xff]  }
 0x4a2   : > { %11567 = vmatprep.subr.bf16.mxu1 %v13345_v43  ;;  %12195 = vmatprep.subr.bf16.mxu0 %v13346_v47  ;;  %v13375_v43 = vld [vmem:[#allocation9 + $0x580] sm:$0xff]  }
 0x4a3   : > { %8345 = vmatprep.mubr.bf16.mxu1 %v15605_v28  ;;  %v13354_v28 = vld [vmem:[#allocation9 + $0x4d0] sm:$0xff]   ;;  %v6335_v59 = vrot.slane %v10256_v27, 1  ;;  %v15822_v56 = vrot.slane %v10257_v37, 1  ;;  %v13391_v23 = vld [vmem:[#allocation9 + $0x5e0] sm:$0xff]   ;;  %v13394_v27 = vld [vmem:[#allocation9 + $0x5e8] sm:$0xff]  }
 0x4a5   : > { %11568 = vmatpush3.bf16.msra.mxu1 %v13347_v6  ;;  %12196 = vmatpush3.bf16.msra.mxu0 %v13346_v47  ;;  %v13376_v47 = vld [vmem:[#allocation9 + $0x5c0] sm:$0xff]   ;;  %v5953_v6 = vld [vmem:[#allocation2 + $0xd0] sm:$0xe] }
 0x4a6   : > { %11605 = vmatprep.subr.bf16.mxu1 %v13348_v36  ;;  %12205 = vmatprep.subr.bf16.mxu0 %v13349_v24  ;;  %v5954_v36 = vld [vmem:[#allocation2 + $0xd8] sm:$0xe] }
 0x4a8   : > { %8346 = vmatmul.mubr.bf16.vlgmr.msra.gmra.mrb[160].mxu1 %v15598_v15  ;;  %12198 = vmatmul.mubr.bf16.vlgmr.msra.gmra.mrb[224].mxu0 %v15673_v61  ;;  %v13356_v15 = vld [vmem:[#allocation9 + $0x490] sm:$0xff]   ;;  %v13357_v61 = vld [vmem:[#allocation9 + $0x4d8] sm:$0xff]  }
 0x4a9   : > { %11606 = vmatpush3.bf16.msra.mxu1 %v13350_v20  ;;  %12206 = vmatpush3.bf16.msra.mxu0 %v13349_v24  ;;  %v5930_v24 = vld [vmem:[#allocation2 + $0xdc] sm:$0x1]  ;;  %v13377_v20 = vld [vmem:[#allocation9 + $0x540] sm:$0xff]  }
 0x4aa   : > { %11607 = vmatprep.subr.bf16.mxu1 %v13351_v9  ;;  %12207 = vmatprep.subr.bf16.mxu0 %v13352_v49  ;;  %v15824_v9 = vld [vmem:[#allocation2 + $0xd8] sm:$0xf]  ;;  %v10259_v4 = vcombine.low %v5954_v36, %v5930_v24 }
 0x4ab   : > { %8353 = vmatprep.mubr.bf16.mxu1 %v15679_v13  ;;  %12201 = vmatprep.mubr.bf16.mxu0 %v15720_v3  ;;  %v13359_v13 = vld [vmem:[#allocation9 + $0x498] sm:$0xff]  }
 0x4ac   : > { %v15833_v42 = vrot.slane %v10259_v4, 1  ;;  %v13407_v4 = vld [vmem:[#allocation9 + $0x5f8] sm:$0xff]  }
 0x4ad   : > { %11608 = vmatpush3.bf16.msra.mxu1 %v13353_v19  ;;  %12208 = vmatpush3.bf16.msra.mxu0 %v13352_v49  ;;  %v10258_v49 = vcombine.low %v5953_v6, %v5929_v30  ;;  %v13379_v19 = vld [vmem:[#allocation9 + $0x5c8] sm:$0xff]  }
 0x4ae   : > { %11609 = vmatprep.subr.bf16.mxu1 %v13354_v28  ;;  %12209 = vmatprep.subr.bf16.mxu0 %v13355_v29  ;;  %v6208_v28 = vrot.slane %v6206_v25, 1  ;;  %v13392_v25 = vld [vmem:[#allocation9 + $0x560] sm:$0xff]  }
 0x4af   : > { %v15831_v31 = vrot.slane %v10258_v49, 1 }
 0x4b0   : > { %8354 = vmatmul.mubr.bf16.gmra.mrb[164].mxu1 %v15684_v18  ;;  %12202 = vmatmul.mubr.bf16.gmra.mrb[228].mxu0 %v15797_v44  ;;  %v13364_v18 = vld [vmem:[#allocation9 + $0x528] sm:$0xff]   ;;  %v6209_v51 = vor.u32 %v6208_v28, %v6204_v63  ;;  %v13408_v63 = vld [vmem:[#allocation9 + $0x578] sm:$0xff]  }
 0x4b1   : > { %11610 = vmatpush3.bf16.msra.mxu1 %v13356_v15  ;;  %12210 = vmatpush3.bf16.msra.mxu0 %v13355_v29  ;;  %v6211_v29 = vshrl.u32 %v10233_v55, 16  ;;  %v6215_v15 = vrot.slane %v6213_v2, 1  ;;  %v15840_v14 = vcombine.low %v15831_v31, %v15833_v42  ;;  %v13386_v55 = vld [vmem:[#allocation9 + $0x558] sm:$0xff]   ;;  %v13393_v2 = vld [vmem:[#allocation9 + $0x5a8] sm:$0xff]  }
 0x4b2   : > { %11611 = vmatprep.subr.bf16.mxu1 %v13357_v61  ;;  %12211 = vmatprep.subr.bf16.mxu0 %v13358_v50  ;;  %v10235_v61 = vcombine.low %v15824_v9, %v5930_v24  ;;  %v13405_v24 = vld [vmem:[#allocation9 + $0x570] sm:$0xff]   ;;  %v5955_v28 = vld [vmem:[#allocation2 + $0xe0] sm:$0xe] }
 0x4b3   : > { %8361 = vmatprep.mubr.bf16.mxu1 %v15736_v8  ;;  %12221 = vmatprep.mubr.bf16.mxu0 %v15708_v5  ;;  %v13365_v5 = vld [vmem:[#allocation9 + $0x4a8] sm:$0xff]  }
 0x4b5   : > { %11612 = vmatpush3.bf16.msra.mxu1 %v13359_v13  ;;  %12212 = vmatpush3.bf16.msra.mxu0 %v13358_v50  ;;  %v10454_v50 = vcombine.low %v6335_v59, %v15822_v56  ;;  %v13381_v13 = vld [vmem:[#allocation9 + $0x590] sm:$0xff]   ;;  %v15861_v59 = vcombine.low %v15819_v33, %v15824_v9 }
 0x4b6   : > { %11613 = vmatprep.subr.bf16.mxu1 %v13360_v7  ;;  %12213 = vmatprep.subr.bf16.mxu0 %v13361_v40  ;;  %v13382_v7 = vld [vmem:[#allocation9 + $0x5d0] sm:$0xff]  }
 0x4b8   : > { %8362 = vmatmul.mubr.bf16.gmra.mrb[168].mxu1 %v15742_v11 }
 0x4b9   : > { %11614 = vmatpush3.bf16.msra.mxu1 %v13362_v35  ;;  %12214 = vmatpush3.bf16.msra.mxu0 %v13361_v40  ;;  %v13383_v40 = vld [vmem:[#allocation9 + $0x550] sm:$0xff]   ;;  %v15836_v35 = vor.u32 %v6215_v15, %v6211_v29  ;;  %v13410_v15 = vld [vmem:[#allocation9 + $0x680] sm:$0xff]  }
 0x4ba   : > { %11615 = vmatprep.subr.bf16.mxu1 %v13363_v34  ;;  %12215 = vmatprep.subr.bf16.mxu0 %v13364_v18 }
 0x4bb   : > { %8369 = vmatprep.mubr.bf16.mxu1 %v15808_v39 }
 0x4bd   : > { %11616 = vmatpush3.bf16.msra.mxu1 %v13365_v5  ;;  %12216 = vmatpush3.bf16.msra.mxu0 %v13364_v18  ;;  %v13384_v18 = vld [vmem:[#allocation9 + $0x598] sm:$0xff]  }
 0x4be   : > { %11617 = vmatprep.subr.bf16.mxu1 %v13368_v46  ;;  %12217 = vmatprep.subr.bf16.mxu0 %v13369_v22  ;;  %v6225_v46 = vshrl.u32 %v10235_v61, 16 }
 0x4c0   : > { %8370 = vmatmul.mubr.bf16.gmra.mrb[172].mxu1 %v15816_v12 }
 0x4c1   : > { %11618 = vmatpush3.bf16.msra.mxu1 %v13371_v1  ;;  %12218 = vmatpush3.bf16.msra.mxu0 %v13369_v22  ;;  %v10453_v22 = vcombine.low %v6209_v51, %v15836_v35 }
 0x4c2   : > { %11619 = vmatprep.subr.bf16.mxu1 %v13372_v58  ;;  %12219 = vmatprep.subr.bf16.mxu0 %v13373_v60 }
 0x4c3   : > { %8696 = vmatprep.mubr.bf16.mxu1 %v15715_v57  ;;  %v10234_v57 = vcombine.low %v15819_v33, %v5929_v30 }
 0x4c5   : > { %11620 = vmatpush3.bf16.msra.mxu1 %v13374_v54  ;;  %12220 = vmatpush3.bf16.msra.mxu0 %v13373_v60  ;;  %v6220_v34 = vshll.u32 %v10234_v57, 16  ;;  %v6218_v5 = vshrl.u32 %v10234_v57, 16  ;;  %v10452_v54 = vcombine.low %v15803_v26, %v15805_v38  ;;  %v13402_v26 = vld [vmem:[#allocation9 + $0x5f0] sm:$0xff]  }
 0x4c6   : > { %11657 = vmatprep.subr.bf16.mxu1 %v13375_v43  ;;  %12229 = vmatprep.subr.bf16.mxu0 %v13376_v47 }
 0x4c7   : > { %v6222_v1 = vrot.slane %v6220_v34, 1  ;;  %v13411_v34 = vld [vmem:[#allocation9 + $0x600] sm:$0xff]  }
 0x4c8   : > { %8697 = vmatmul.mubr.bf16.vlgmr.msra.gmra.mrb[176].mxu1 %v15731_v62  ;;  %12222 = vmatmul.mubr.bf16.vlgmr.msra.gmra.mrb[224].mxu0 %v15720_v3  ;;  %v6227_v62 = vshll.u32 %v10235_v61, 16 }
 0x4c9   : > { %11658 = vmatpush3.bf16.msra.mxu1 %v13377_v20  ;;  %12230 = vmatpush3.bf16.msra.mxu0 %v13376_v47  ;;  %v15845_v58 = vor.u32 %v6222_v1, %v6218_v5  ;;  %v13395_v47 = vld [vmem:[#allocation9 + $0x568] sm:$0xff]   ;;  %v10484_v5 = vcombine.low %v15822_v56, %v15831_v31  ;;  %v13416_v1 = vld [vmem:[#allocation9 + $0x690] sm:$0xff]  }
 0x4ca   : > { %11659 = vmatprep.subr.bf16.mxu1 %v13378_v21  ;;  %12231 = vmatprep.subr.bf16.mxu0 %v13379_v19  ;;  %v6229_v52 = vrot.slane %v6227_v62, 1  ;;  %v13406_v21 = vld [vmem:[#allocation9 + $0x5b8] sm:$0xff]   ;;  %v13412_v62 = vld [vmem:[#allocation9 + $0x648] sm:$0xff]   ;;  %v13417_v31 = vld [vmem:[#allocation9 + $0x610] sm:$0xff]  }
 0x4cb   : > { %8704 = vmatprep.mubr.bf16.mxu1 %v15736_v8  ;;  %12225 = vmatprep.mubr.bf16.mxu0 %v10454_v50  ;;  %v5931_v50 = vld [vmem:[#allocation2 + $0xe4] sm:$0x1] }
 0x4cc   : > { %v15847_v60 = vor.u32 %v6229_v52, %v6225_v46  ;;  %v13414_v46 = vld [vmem:[#allocation9 + $0x608] sm:$0xff]  }
 0x4cd   : > { %11660 = vmatpush3.bf16.msra.mxu1 %v13380_v41  ;;  %12232 = vmatpush3.bf16.msra.mxu0 %v13379_v19  ;;  %v13409_v41 = vld [vmem:[#allocation9 + $0x640] sm:$0xff]  }
 0x4ce   : > { %11661 = vmatprep.subr.bf16.mxu1 %v13381_v13  ;;  %12233 = vmatprep.subr.bf16.mxu0 %v13382_v7  ;;  %v15854_v37 = vcombine.low %v15845_v58, %v15847_v60 }
 0x4d0   : > { %8705 = vmatmul.mubr.bf16.gmra.mrb[180].mxu1 %v15742_v11  ;;  %12226 = vmatmul.mubr.bf16.gmra.mrb[228].mxu0 %v15840_v14 }
 0x4d1   : > { %11662 = vmatpush3.bf16.msra.mxu1 %v13383_v40  ;;  %12234 = vmatpush3.bf16.msra.mxu0 %v13382_v7  ;;  %v15869_v7 = vld [vmem:[#allocation2 + $0xe0] sm:$0xf]  ;;  %v10260_v40 = vcombine.low %v5955_v28, %v5931_v50  ;;  %v13432_v28 = vld [vmem:[#allocation9 + $0x6b0] sm:$0xff]  }
 0x4d2   : > { %11663 = vmatprep.subr.bf16.mxu1 %v13384_v18  ;;  %12235 = vmatprep.subr.bf16.mxu0 %v13385_v0  ;;  %v13413_v18 = vld [vmem:[#allocation9 + $0x688] sm:$0xff]  }
 0x4d3   : > { %8712 = vmatprep.mubr.bf16.mxu1 %v10453_v22  ;;  %12245 = vmatprep.mubr.bf16.mxu0 %v15751_v32  ;;  %v13401_v32 = vld [vmem:[#allocation9 + $0x5b0] sm:$0xff]  }
 0x4d4   : > { %v13415_v22 = vld [vmem:[#allocation9 + $0x650] sm:$0xff]  }
 0x4d5   : > { %11664 = vmatpush3.bf16.msra.mxu1 %v13386_v55  ;;  %12236 = vmatpush3.bf16.msra.mxu0 %v13385_v0  ;;  %v10236_v0 = vcombine.low %v15869_v7, %v5931_v50 }
 0x4d6   : > { %11665 = vmatprep.subr.bf16.mxu1 %v13390_v16  ;;  %12237 = vmatprep.subr.bf16.mxu0 %v13391_v23 }
 0x4d7   : > { %v6234_v55 = vshll.u32 %v10236_v0, 16 }
 0x4d8   : > { %8713 = vmatmul.mubr.bf16.gmra.mrb[184].mxu1 %v10452_v54  ;;  %v13418_v54 = vld [vmem:[#allocation9 + $0x658] sm:$0xff]  }
 0x4d9   : > { %11666 = vmatpush3.bf16.msra.mxu1 %v13392_v25  ;;  %12238 = vmatpush3.bf16.msra.mxu0 %v13391_v23  ;;  %v13419_v25 = vld [vmem:[#allocation9 + $0x698] sm:$0xff]  }
 0x4da   : > { %11667 = vmatprep.subr.bf16.mxu1 %v13393_v2  ;;  %12239 = vmatprep.subr.bf16.mxu0 %v13394_v27 }
 0x4db   : > { %v11309_v43 = vpop.f32.mrb[80].mxu1  ;;  %8720 = vmatprep.mubr.bf16.mxu1 %v15854_v37 }
 0x4dc   : > { %v11310_v6 = vpop.f32.mrb[81].mxu1 }
 0x4dd   : > { %v15856_v30 = vadd.f32 %v11310_v6, %v11309_v43  ;;  %v11312_v36 = vpop.f32.mrb[82].mxu1  ;;  %11668 = vmatpush3.bf16.msra.mxu1 %v13395_v47  ;;  %12240 = vmatpush3.bf16.msra.mxu0 %v13394_v27  ;;  %v6232_v27 = vshrl.u32 %v10236_v0, 16  ;;  %v6236_v43 = vrot.slane %v6234_v55, 1  ;;  %v13422_v47 = vld [vmem:[#allocation9 + $0x660] sm:$0xff]  }
 0x4de   : > { %v11313_v20 = vpop.f32.mrb[83].mxu1  ;;  %11669 = vmatprep.subr.bf16.mxu1 %v13401_v32  ;;  %12241 = vmatprep.subr.bf16.mxu0 %v13402_v26  ;;  %v13423_v32 = vld [vmem:[#allocation9 + $0x6a0] sm:$0xff]  }
 0x4df   : > { %v15863_v49 = vadd.f32 %v11313_v20, %v11312_v36 }
 0x4e0   : > { %8721 = vmatmul.mubr.bf16.gmra.mrb[188].mxu1 %v15861_v59 }
 0x4e1   : > { %11670 = vmatpush3.bf16.msra.mxu1 %v13405_v24  ;;  %12242 = vmatpush3.bf16.msra.mxu0 %v13402_v26  ;;  %v15890_v26 = vor.u32 %v6236_v43, %v6232_v27  ;;  %v13424_v24 = vld [vmem:[#allocation9 + $0x620] sm:$0xff]  }
 0x4e2   : > { %11671 = vmatprep.subr.bf16.mxu1 %v13406_v21  ;;  %12243 = vmatprep.subr.bf16.mxu0 %v13407_v4  ;;  %v13425_v21 = vld [vmem:[#allocation9 + $0x668] sm:$0xff]  }
 0x4e3   : > { %v11315_v19 = vpop.f32.mrb[84].mxu1  ;;  %9041 = vmatprep.mubr.bf16.mxu1 %v15765_v10  ;;  %v15878_v10 = vrot.slane %v10260_v40, 1 }
 0x4e4   : > { %v11316_v29 = vpop.f32.mrb[85].mxu1 }
 0x4e5   : > { %v15866_v57 = vadd.f32 %v11316_v29, %v11315_v19  ;;  %v11318_v61 = vpop.f32.mrb[86].mxu1  ;;  %11672 = vmatpush3.bf16.msra.mxu1 %v13408_v63  ;;  %12244 = vmatpush3.bf16.msra.mxu0 %v13407_v4  ;;  %v13426_v4 = vld [vmem:[#allocation9 + $0x6a8] sm:$0xff]   ;;  %v13431_v63 = vld [vmem:[#allocation9 + $0x670] sm:$0xff]  }
 0x4e6   : > { %v11319_v13 = vpop.f32.mrb[87].mxu1  ;;  %11709 = vmatprep.subr.bf16.mxu1 %v13409_v41  ;;  %12253 = vmatprep.subr.bf16.mxu0 %v13410_v15 }
 0x4e7   : > { %v15871_v51 = vadd.f32 %v11319_v13, %v11318_v61  ;;  %v13433_v13 = vld [vmem:[#allocation9 + $0x630] sm:$0xff]  }
 0x4e8   : > { %9042 = vmatmul.mubr.bf16.vlgmr.msra.gmra.mrb[192].mxu1 %v15775_v17  ;;  %12246 = vmatmul.mubr.bf16.vlgmr.msra.gmra.mrb[224].mxu0 %v15761_v53  ;;  %v10487_v17 = vcombine.low %v15833_v42, %v15878_v10  ;;  %v13420_v42 = vld [vmem:[#allocation9 + $0x618] sm:$0xff]  }
 0x4e9   : > { %11710 = vmatpush3.bf16.msra.mxu1 %v13411_v34  ;;  %12254 = vmatpush3.bf16.msra.mxu0 %v13410_v15  ;;  %v10485_v15 = vcombine.low %v15824_v9, %v15869_v7  ;;  %v13434_v34 = vld [vmem:[#allocation9 + $0x678] sm:$0xff]  }
 0x4ea   : > { %11711 = vmatprep.subr.bf16.mxu1 %v13412_v62  ;;  %12255 = vmatprep.subr.bf16.mxu0 %v13413_v18  ;;  %v13435_v62 = vld [vmem:[#allocation9 + $0x6b8] sm:$0xff]  }
 0x4eb   : > { %v11321_v52 = vpop.f32.mrb[88].mxu1  ;;  %9049 = vmatprep.mubr.bf16.mxu1 %v15779_v45  ;;  %12249 = vmatprep.mubr.bf16.mxu0 %v10484_v5  ;;  %v10483_v45 = vcombine.low %v15836_v35, %v15845_v58  ;;  %v10482_v35 = vcombine.low %v15805_v38, %v15819_v33  ;;  %v13427_v38 = vld [vmem:[#allocation9 + $0x628] sm:$0xff]   ;;  %v15901_v33 = vld [vmem:[#allocation10] ss:$0 sm:$0xff] }
 0x4ec   : > { %v11322_v16 = vpop.f32.mrb[89].mxu1  ;;  %v6615_v61 = vadd.f32 %v15856_v30, %v15901_v33  ;;  %v13436_v30 = vld [vmem:[#allocation9 + $0x638] sm:$0xff]  }
 0x4ed   : > { %v15883_v56 = vadd.f32 %v11322_v16, %v11321_v52  ;;  %v11324_v53 = vpop.f32.mrb[90].mxu1  ;;  %11712 = vmatpush3.bf16.msra.mxu1 %v13414_v46  ;;  %12256 = vmatpush3.bf16.msra.mxu0 %v13413_v18  ;;  %v6618_v18 = vadd.f32 %v15863_v49, %v15901_v33  ;;  %v5932_v46 = vld [vmem:[#allocation2 + $0xec] sm:$0x1]  ;;  %v6623_v49 = vadd.f32 %v15866_v57, %v15901_v33 }
 0x4ee   : > { %v11325_v23 = vpop.f32.mrb[91].mxu1  ;;  %11713 = vmatprep.subr.bf16.mxu1 %v13415_v22  ;;  %12257 = vmatprep.subr.bf16.mxu0 %v13416_v1  ;;  %v5956_v22 = vld [vmem:[#allocation2 + $0xe8] sm:$0xe] }
 0x4ef   : > { %v15885_v2 = vadd.f32 %v11325_v23, %v11324_v53  ;;  %v10261_v16 = vcombine.low %v5956_v22, %v5932_v46 }
 0x4f0   : > { %9050 = vmatmul.mubr.bf16.gmra.mrb[196].mxu1 %v15785_v48  ;;  %12250 = vmatmul.mubr.bf16.gmra.mrb[228].mxu0 %v10487_v17 }
 0x4f1   : > { %11714 = vmatpush3.bf16.msra.mxu1 %v13417_v31  ;;  %12258 = vmatpush3.bf16.msra.mxu0 %v13416_v1  ;;  %v5908_v1 = vld [vmem:[#allocation2 + $0xe8] sm:$0xf] }
 0x4f2   : > { %11715 = vmatprep.subr.bf16.mxu1 %v13418_v54  ;;  %12259 = vmatprep.subr.bf16.mxu0 %v13419_v25  ;;  %v10237_v31 = vcombine.low %v5908_v1, %v5932_v46  ;;  %v6626_v54 = vadd.f32 %v15871_v51, %v15901_v33  ;;  %v6631_v51 = vadd.f32 %v15883_v56, %v15901_v33 }
 0x4f3   : > { %v11327_v6 = vpop.f32.mrb[92].mxu1  ;;  %9057 = vmatprep.mubr.bf16.mxu1 %v10483_v45  ;;  %12269 = vmatprep.mubr.bf16.mxu0 %v15720_v3  ;;  %v10486_v3 = vcombine.low %v15847_v60, %v15890_v26 }
 0x4f4   : > { %v11328_v36 = vpop.f32.mrb[93].mxu1  ;;  %v6241_v57 = vshll.u32 %v10237_v31, 16 }
 0x4f5   : > { %v15895_v58 = vadd.f32 %v11328_v36, %v11327_v6  ;;  %v11330_v48 = vpop.f32.mrb[94].mxu1  ;;  %11716 = vmatpush3.bf16.msra.mxu1 %v13420_v42  ;;  %12260 = vmatpush3.bf16.msra.mxu0 %v13419_v25  ;;  %v6239_v36 = vshrl.u32 %v10237_v31, 16 }
 0x4f6   : > { %v11331_v20 = vpop.f32.mrb[95].mxu1  ;;  %11717 = vmatprep.subr.bf16.mxu1 %v13422_v47  ;;  %12261 = vmatprep.subr.bf16.mxu0 %v13423_v32 }
 0x4f7   : > { %v15897_v19 = vadd.f32 %v11331_v20, %v11330_v48  ;;  %v6639_v56 = vadd.f32 %v15895_v58, %v15901_v33 }
 0x4f8   : > { %9058 = vmatmul.mubr.bf16.gmra.mrb[200].mxu1 %v10482_v35 }
 0x4f9   : > { %11718 = vmatpush3.bf16.msra.mxu1 %v13424_v24  ;;  %12262 = vmatpush3.bf16.msra.mxu0 %v13423_v32 }
 0x4fa   : > { %11719 = vmatprep.subr.bf16.mxu1 %v13425_v21  ;;  %12263 = vmatprep.subr.bf16.mxu0 %v13426_v4 }
 0x4fb   : > { %v11361_v29 = vpop.f32.mrb[96].mxu1  ;;  %9065 = vmatprep.mubr.bf16.mxu1 %v10486_v3 }
 0x4fc   : > { %v11362_v41 = vpop.f32.mrb[97].mxu1 }
 0x4fd   : > { %v11363_v60 = vadd.f32 %v11362_v41, %v11361_v29  ;;  %v11364_v50 = vpop.f32.mrb[98].mxu1  ;;  %11720 = vmatpush3.bf16.msra.mxu1 %v13427_v38  ;;  %12264 = vmatpush3.bf16.msra.mxu0 %v13426_v4  ;;  %v10512_v41 = vcombine.low %v15869_v7, %v5908_v1 }
 0x4fe   : > { %v11365_v40 = vpop.f32.mrb[99].mxu1  ;;  %11721 = vmatprep.subr.bf16.mxu1 %v13431_v63  ;;  %12265 = vmatprep.subr.bf16.mxu0 %v13432_v28 }
 0x4ff   : > { %v15909_v0 = vadd.f32 %v11363_v60, %v6615_v61  ;;  %v11366_v5 = vadd.f32 %v11365_v40, %v11364_v50 }
 0x500   : > { %9066 = vmatmul.mubr.bf16.gmra.mrb[204].mxu1 %v10485_v15 }
 0x501   : > { %v15911_v9 = vadd.f32 %v11366_v5, %v6618_v18  ;;  %11722 = vmatpush3.bf16.msra.mxu1 %v13433_v13  ;;  %12266 = vmatpush3.bf16.msra.mxu0 %v13432_v28 }
 0x502   : > { %11723 = vmatprep.subr.bf16.mxu1 %v13434_v34  ;;  %12267 = vmatprep.subr.bf16.mxu0 %v13435_v62 }
 0x503   : > { %v11367_v52 = vpop.f32.mrb[100].mxu1  ;;  %9380 = vmatprep.mubr.bf16.mxu1 %v15736_v8  ;;  %v6340_v8 = vrot.slane %v10261_v16, 1 }
 0x504   : > { %v11368_v55 = vpop.f32.mrb[101].mxu1 }
 0x505   : > { %v11369_v17 = vadd.f32 %v11368_v55, %v11367_v52  ;;  %v11370_v53 = vpop.f32.mrb[102].mxu1  ;;  %11724 = vmatpush3.bf16.msra.mxu1 %v13436_v30  ;;  %12268 = vmatpush3.bf16.msra.mxu0 %v13435_v62  ;;  %v10514_v47 = vcombine.low %v15878_v10, %v6340_v8 }
 0x506   : > { %v11371_v23 = vpop.f32.mrb[103].mxu1 }
 0x507   : > { %v12445_v25 = vadd.f32 %v11369_v17, %v6623_v49  ;;  %v11372_v45 = vadd.f32 %v11371_v23, %v11370_v53 }
 0x508   : > { %9381 = vmatmul.mubr.bf16.vlgmr.msra.gmra.mrb[208].mxu1 %v15742_v11  ;;  %12270 = vmatmul.mubr.bf16.vlgmr.msra.gmra.mrb[224].mxu0 %v15797_v44  ;;  %v6243_v11 = vrot.slane %v6241_v57, 1  ;;  %v6634_v44 = vadd.f32 %v15885_v2, %v15901_v33  ;;  %v6642_v2 = vadd.f32 %v15897_v19, %v15901_v33 }
 0x509   : > { %v12463_v27 = vadd.f32 %v11372_v45, %v6626_v54  ;;  %9388 = vmatprep.mubr.bf16.mxu1 %v15808_v39  ;;  %12273 = vmatprep.mubr.bf16.mxu0 %v15840_v14 }
 0x50a   : > { %v6244_v10 = vor.u32 %v6243_v11, %v6239_v36 }
 0x50b   : > { %v11373_v43 = vpop.f32.mrb[104].mxu1 }
 0x50c   : > { %v11374_v42 = vpop.f32.mrb[105].mxu1  ;;  %v10513_v3 = vcombine.low %v15890_v26, %v6244_v10 }
 0x50d   : > { %v11375_v32 = vadd.f32 %v11374_v42, %v11373_v43  ;;  %v11376_v6 = vpop.f32.mrb[106].mxu1 }
 0x50e   : > { %v11377_v35 = vpop.f32.mrb[107].mxu1 }
 0x50f   : > { %v12490_v48 = vadd.f32 %v11375_v32, %v6631_v51  ;;  %v11378_v39 = vadd.f32 %v11377_v35, %v11376_v6 }
 0x510   : > { %9389 = vmatmul.mubr.bf16.gmra.mrb[212].mxu1 %v15816_v12  ;;  %12274 = vmatmul.mubr.bf16.gmra.mrb[228].mxu0 %v10514_v47 }
 0x511   : > { %v12508_v14 = vadd.f32 %v11378_v39, %v6634_v44  ;;  %9396 = vmatprep.mubr.bf16.mxu1 %v15854_v37 }
 0x513   : > { %v11379_v24 = vpop.f32.mrb[108].mxu1 }
 0x514   : > { %v11380_v20 = vpop.f32.mrb[109].mxu1 }
 0x515   : > { %v11381_v21 = vadd.f32 %v11380_v20, %v11379_v24  ;;  %v11382_v4 = vpop.f32.mrb[110].mxu1 }
 0x516   : > { %v11383_v38 = vpop.f32.mrb[111].mxu1 }
 0x517   : > { %v12481_v63 = vadd.f32 %v11381_v21, %v6639_v56  ;;  %v11384_v12 = vadd.f32 %v11383_v38, %v11382_v4  ;;  %v13440_v21 = vld [vmem:[#allocation12] sm:$0xff]   ;;  %v13441_v38 = vld [vmem:[#allocation12 + $0x8] sm:$0xff]  }
 0x518   : > { %9397 = vmatmul.mubr.bf16.gmra.mrb[216].mxu1 %v15861_v59  ;;  %12277 = vmatprep.subr.bf16.mxu1 %v13440_v21 }
 0x519   : > { %v12499_v28 = vadd.f32 %v11384_v12, %v6642_v2  ;;  %9404 = vmatprep.mubr.bf16.mxu1 %v10513_v3  ;;  %12278 = vmatpush3.bf16.msra.mxu1 %v13440_v21 }
 0x51a   : > { %12279 = vmatprep.subr.bf16.mxu1 %v13441_v38 }
 0x51b   : > { %v11413_v37 = vpop.f32.mrb[112].mxu1 }
 0x51c   : > { %v11414_v29 = vpop.f32.mrb[113].mxu1 }
 0x51d   : > { %v11415_v15 = vadd.f32 %v11414_v29, %v11413_v37  ;;  %v11416_v58 = vpop.f32.mrb[114].mxu1  ;;  %12280 = vmatpush3.bf16.msra.mxu1 %v13441_v38 }
 0x51e   : > { %v11417_v61 = vpop.f32.mrb[115].mxu1 }
 0x51f   : > { %v12455_v60 = vadd.f32 %v15909_v0, %v11415_v15  ;;  %v11418_v26 = vadd.f32 %v11417_v61, %v11416_v58  ;;  %v13443_v61 = vld [vmem:[#allocation12 + $0x18] sm:$0xff]  }
 0x520   : > { %9405 = vmatmul.mubr.bf16.gmra.mrb[220].mxu1 %v10512_v41  ;;  %v13442_v41 = vld [vmem:[#allocation12 + $0x10] sm:$0xff]  }
 0x521   : > { %v12473_v50 = vadd.f32 %v15911_v9, %v11418_v26  ;;  %12281 = vmatprep.subr.bf16.mxu1 %v13442_v41 }
 0x522   : > { %12282 = vmatpush3.bf16.msra.mxu1 %v13442_v41 }
 0x523   : > { %v11419_v19 = vpop.f32.mrb[116].mxu1  ;;  %12283 = vmatprep.subr.bf16.mxu1 %v13443_v61 }
 0x524   : > { %v11420_v33 = vpop.f32.mrb[117].mxu1 }
 0x525   : > { %v11421_v13 = vadd.f32 %v11420_v33, %v11419_v19  ;;  %v11422_v40 = vpop.f32.mrb[118].mxu1 }
 0x526   : > { %v11423_v59 = vpop.f32.mrb[119].mxu1  ;;  %12284 = vmatpush3.bf16.msra.mxu1 %v13443_v61 }
 0x527   : > { %v12446_v34 = vadd.f32 %v12445_v25, %v11421_v13  ;;  %v11424_v62 = vadd.f32 %v11423_v59, %v11422_v40  ;;  %v13444_v40 = vld [vmem:[#allocation12 + $0x20] sm:$0xff]  }
 0x528   : > { %12285 = vmatprep.subr.bf16.mxu1 %v13444_v40 }
 0x529   : > { %v12464_v18 = vadd.f32 %v12463_v27, %v11424_v62  ;;  %v13445_v62 = vld [vmem:[#allocation12 + $0x28] sm:$0xff]  }
 0x52a   : > { %12286 = vmatpush3.bf16.msra.mxu1 %v13444_v40 }
 0x52b   : > { %v11425_v5 = vpop.f32.mrb[120].mxu1  ;;  %12287 = vmatprep.subr.bf16.mxu1 %v13445_v62 }
 0x52c   : > { %v11426_v30 = vpop.f32.mrb[121].mxu1 }
 0x52d   : > { %v11427_v7 = vadd.f32 %v11426_v30, %v11425_v5  ;;  %v11428_v46 = vpop.f32.mrb[122].mxu1 }
 0x52e   : > { %v11429_v22 = vpop.f32.mrb[123].mxu1  ;;  %12288 = vmatpush3.bf16.msra.mxu1 %v13445_v62 }
 0x52f   : > { %v12491_v1 = vadd.f32 %v12490_v48, %v11427_v7  ;;  %v11430_v52 = vadd.f32 %v11429_v22, %v11428_v46 }
 0x531   : > { %v12509_v0 = vadd.f32 %v12508_v14, %v11430_v52 }
 0x533   : > { %v11431_v55 = vpop.f32.mrb[124].mxu1 }
 0x534   : > { %v11432_v16 = vpop.f32.mrb[125].mxu1 }
 0x535   : > { %v11433_v49 = vadd.f32 %v11432_v16, %v11431_v55  ;;  %v11434_v9 = vpop.f32.mrb[126].mxu1  ;;  %v13447_v55 = vld [vmem:[#allocation12 + $0x38] sm:$0xff]  }
 0x536   : > { %v11435_v17 = vpop.f32.mrb[127].mxu1 }
 0x537   : > { %v12482_v53 = vadd.f32 %v12481_v63, %v11433_v49  ;;  %v11436_v31 = vadd.f32 %v11435_v17, %v11434_v9 }
 0x539   : > { %v12500_v23 = vadd.f32 %v12499_v28, %v11436_v31 }
 0x53b   : > { %v11465_v54 = vpop.f32.mrb[128].mxu1 }
 0x53c   : > { %v11466_v25 = vpop.f32.mrb[129].mxu1 }
 0x53d   : > { %v11467_v45 = vadd.f32 %v11466_v25, %v11465_v54  ;;  %v11468_v8 = vpop.f32.mrb[130].mxu1 }
 0x53e   : > { %v11469_v27 = vpop.f32.mrb[131].mxu1 }
 0x53f   : > { %v12456_v57 = vadd.f32 %v12455_v60, %v11467_v45  ;;  %v11470_v43 = vadd.f32 %v11469_v27, %v11468_v8 }
 0x541   : > { %v12474_v42 = vadd.f32 %v12473_v50, %v11470_v43 }
 0x543   : > { %v11471_v47 = vpop.f32.mrb[132].mxu1 }
 0x544   : > { %v11472_v51 = vpop.f32.mrb[133].mxu1 }
 0x545   : > { %v11473_v32 = vadd.f32 %v11472_v51, %v11471_v47  ;;  %v11474_v6 = vpop.f32.mrb[134].mxu1 }
 0x546   : > { %v11475_v36 = vpop.f32.mrb[135].mxu1 }
 0x547   : > { %v12447_v11 = vadd.f32 %v12446_v34, %v11473_v32  ;;  %v11476_v35 = vadd.f32 %v11475_v36, %v11474_v6 }
 0x549   : > { %v12465_v44 = vadd.f32 %v12464_v18, %v11476_v35 }
 0x54b   : > { %v11477_v48 = vpop.f32.mrb[136].mxu1 }
 0x54c   : > { %v11478_v39 = vpop.f32.mrb[137].mxu1 }
 0x54d   : > { %v11479_v14 = vadd.f32 %v11478_v39, %v11477_v48  ;;  %v11480_v10 = vpop.f32.mrb[138].mxu1 }
 0x54e   : > { %v11481_v24 = vpop.f32.mrb[139].mxu1 }
 0x54f   : > { %v12492_v20 = vadd.f32 %v12491_v1, %v11479_v14  ;;  %v11482_v56 = vadd.f32 %v11481_v24, %v11480_v10  ;;  %v13446_v1 = vld [vmem:[#allocation12 + $0x30] sm:$0xff]  }
 0x550   : > { %12289 = vmatprep.subr.bf16.mxu1 %v13446_v1 }
 0x551   : > { %v12510_v4 = vadd.f32 %v12509_v0, %v11482_v56  ;;  %12290 = vmatpush3.bf16.msra.mxu1 %v13446_v1 }
 0x552   : > { %12291 = vmatprep.subr.bf16.mxu1 %v13447_v55 }
 0x553   : > { %v11483_v3 = vpop.f32.mrb[140].mxu1 }
 0x554   : > { %v11484_v2 = vpop.f32.mrb[141].mxu1 }
 0x555   : > { %v11485_v63 = vadd.f32 %v11484_v2, %v11483_v3  ;;  %v11486_v12 = vpop.f32.mrb[142].mxu1  ;;  %12292 = vmatpush3.bf16.msra.mxu1 %v13447_v55 }
 0x556   : > { %v11487_v28 = vpop.f32.mrb[143].mxu1 }
 0x557   : > { %v12483_v37 = vadd.f32 %v12482_v53, %v11485_v63  ;;  %v11488_v29 = vadd.f32 %v11487_v28, %v11486_v12 }
 0x559   : > { %v12501_v15 = vadd.f32 %v12500_v23, %v11488_v29 }
 0x55b   : > { %v11517_v58 = vpop.f32.mrb[144].mxu1 }
 0x55c   : > { %v11518_v60 = vpop.f32.mrb[145].mxu1 }
 0x55d   : > { %v11519_v26 = vadd.f32 %v11518_v60, %v11517_v58  ;;  %v11520_v50 = vpop.f32.mrb[146].mxu1 }
 0x55e   : > { %v11521_v19 = vpop.f32.mrb[147].mxu1 }
 0x55f   : > { %v12457_v33 = vadd.f32 %v12456_v57, %v11519_v26  ;;  %v11522_v13 = vadd.f32 %v11521_v19, %v11520_v50 }
 0x561   : > { %v12475_v59 = vadd.f32 %v12474_v42, %v11522_v13 }
 0x563   : > { %v11523_v34 = vpop.f32.mrb[148].mxu1 }
 0x564   : > { %v11524_v18 = vpop.f32.mrb[149].mxu1 }
 0x565   : > { %v11525_v5 = vadd.f32 %v11524_v18, %v11523_v34  ;;  %v11526_v30 = vpop.f32.mrb[150].mxu1 }
 0x566   : > { %v11527_v7 = vpop.f32.mrb[151].mxu1 }
 0x567   : > { %v12448_v46 = vadd.f32 %v12447_v11, %v11525_v5  ;;  %v11528_v22 = vadd.f32 %v11527_v7, %v11526_v30 }
 0x569   : > { %v12466_v52 = vadd.f32 %v12465_v44, %v11528_v22 }
 0x56b   : > { %v11529_v0 = vpop.f32.mrb[152].mxu1 }
 0x56c   : > { %v11530_v16 = vpop.f32.mrb[153].mxu1 }
 0x56d   : > { %v11531_v49 = vadd.f32 %v11530_v16, %v11529_v0  ;;  %v11532_v9 = vpop.f32.mrb[154].mxu1 }
 0x56e   : > { %v11533_v17 = vpop.f32.mrb[155].mxu1 }
 0x56f   : > { %v12493_v53 = vadd.f32 %v12492_v20, %v11531_v49  ;;  %v11534_v31 = vadd.f32 %v11533_v17, %v11532_v9 }
 0x571   : > { %v12511_v23 = vadd.f32 %v12510_v4, %v11534_v31 }
 0x573   : > { %v11535_v54 = vpop.f32.mrb[156].mxu1 }
 0x574   : > { %v11536_v25 = vpop.f32.mrb[157].mxu1 }
 0x575   : > { %v11537_v45 = vadd.f32 %v11536_v25, %v11535_v54  ;;  %v11538_v8 = vpop.f32.mrb[158].mxu1 }
 0x576   : > { %v11539_v27 = vpop.f32.mrb[159].mxu1 }
 0x577   : > { %v12484_v57 = vadd.f32 %v12483_v37, %v11537_v45  ;;  %v11540_v43 = vadd.f32 %v11539_v27, %v11538_v8 }
 0x579   : > { %v12502_v42 = vadd.f32 %v12501_v15, %v11540_v43 }
 0x57b   : > { %v11569_v47 = vpop.f32.mrb[160].mxu1 }
 0x57c   : > { %v11570_v51 = vpop.f32.mrb[161].mxu1 }
 0x57d   : > { %v11571_v32 = vadd.f32 %v11570_v51, %v11569_v47  ;;  %v11572_v6 = vpop.f32.mrb[162].mxu1 }
 0x57e   : > { %v11573_v36 = vpop.f32.mrb[163].mxu1 }
 0x57f   : > { %v12458_v11 = vadd.f32 %v12457_v33, %v11571_v32  ;;  %v11574_v35 = vadd.f32 %v11573_v36, %v11572_v6 }
 0x581   : > { %v12476_v44 = vadd.f32 %v12475_v59, %v11574_v35 }
 0x583   : > { %v11575_v48 = vpop.f32.mrb[164].mxu1 }
 0x584   : > { %v11576_v39 = vpop.f32.mrb[165].mxu1 }
 0x585   : > { %v11577_v14 = vadd.f32 %v11576_v39, %v11575_v48  ;;  %v11578_v10 = vpop.f32.mrb[166].mxu1 }
 0x586   : > { %v11579_v24 = vpop.f32.mrb[167].mxu1 }
 0x587   : > { %v12449_v20 = vadd.f32 %v12448_v46, %v11577_v14  ;;  %v11580_v56 = vadd.f32 %v11579_v24, %v11578_v10 }
 0x589   : > { %v12467_v21 = vadd.f32 %v12466_v52, %v11580_v56 }
 0x58b   : > { %v11581_v4 = vpop.f32.mrb[168].mxu1 }
 0x58c   : > { %v11582_v3 = vpop.f32.mrb[169].mxu1 }
 0x58d   : > { %v11583_v38 = vadd.f32 %v11582_v3, %v11581_v4  ;;  %v11584_v2 = vpop.f32.mrb[170].mxu1 }
 0x58e   : > { %v11585_v63 = vpop.f32.mrb[171].mxu1 }
 0x58f   : > { %v12494_v12 = vadd.f32 %v12493_v53, %v11583_v38  ;;  %v11586_v28 = vadd.f32 %v11585_v63, %v11584_v2 }
 0x591   : > { %v12512_v37 = vadd.f32 %v12511_v23, %v11586_v28 }
 0x593   : > { %v11587_v29 = vpop.f32.mrb[172].mxu1 }
 0x594   : > { %v11588_v41 = vpop.f32.mrb[173].mxu1 }
 0x595   : > { %v11589_v15 = vadd.f32 %v11588_v41, %v11587_v29  ;;  %v11590_v58 = vpop.f32.mrb[174].mxu1 }
 0x596   : > { %v11591_v61 = vpop.f32.mrb[175].mxu1 }
 0x597   : > { %v12485_v60 = vadd.f32 %v12484_v57, %v11589_v15  ;;  %v11592_v26 = vadd.f32 %v11591_v61, %v11590_v58 }
 0x599   : > { %v12503_v50 = vadd.f32 %v12502_v42, %v11592_v26 }
 0x59b   : > { %v11621_v19 = vpop.f32.mrb[176].mxu1 }
 0x59c   : > { %v11622_v33 = vpop.f32.mrb[177].mxu1 }
 0x59d   : > { %v11623_v13 = vadd.f32 %v11622_v33, %v11621_v19  ;;  %v11624_v40 = vpop.f32.mrb[178].mxu1 }
 0x59e   : > { %v11625_v59 = vpop.f32.mrb[179].mxu1 }
 0x59f   : > { %v12459_v34 = vadd.f32 %v12458_v11, %v11623_v13  ;;  %v11626_v62 = vadd.f32 %v11625_v59, %v11624_v40 }
 0x5a1   : > { %v12477_v18 = vadd.f32 %v12476_v44, %v11626_v62 }
 0x5a3   : > { %v11627_v5 = vpop.f32.mrb[180].mxu1 }
 0x5a4   : > { %v11628_v30 = vpop.f32.mrb[181].mxu1 }
 0x5a5   : > { %v11629_v7 = vadd.f32 %v11628_v30, %v11627_v5  ;;  %v11630_v46 = vpop.f32.mrb[182].mxu1 }
 0x5a6   : > { %v11631_v22 = vpop.f32.mrb[183].mxu1 }
 0x5a7   : > { %v12450_v1 = vadd.f32 %v12449_v20, %v11629_v7  ;;  %v11632_v52 = vadd.f32 %v11631_v22, %v11630_v46 }
 0x5a9   : > { %v12468_v0 = vadd.f32 %v12467_v21, %v11632_v52 }
 0x5ab   : > { %v11633_v55 = vpop.f32.mrb[184].mxu1 }
 0x5ac   : > { %v11634_v16 = vpop.f32.mrb[185].mxu1 }
 0x5ad   : > { %v11635_v49 = vadd.f32 %v11634_v16, %v11633_v55  ;;  %v11636_v9 = vpop.f32.mrb[186].mxu1 }
 0x5ae   : > { %v11637_v17 = vpop.f32.mrb[187].mxu1 }
 0x5af   : > { %v12495_v53 = vadd.f32 %v12494_v12, %v11635_v49  ;;  %v11638_v31 = vadd.f32 %v11637_v17, %v11636_v9 }
 0x5b1   : > { %v12513_v23 = vadd.f32 %v12512_v37, %v11638_v31 }
 0x5b3   : > { %v11639_v54 = vpop.f32.mrb[188].mxu1 }
 0x5b4   : > { %v11640_v25 = vpop.f32.mrb[189].mxu1 }
 0x5b5   : > { %v11641_v45 = vadd.f32 %v11640_v25, %v11639_v54  ;;  %v11642_v8 = vpop.f32.mrb[190].mxu1 }
 0x5b6   : > { %v11643_v27 = vpop.f32.mrb[191].mxu1 }
 0x5b7   : > { %v12486_v57 = vadd.f32 %v12485_v60, %v11641_v45  ;;  %v11644_v43 = vadd.f32 %v11643_v27, %v11642_v8 }
 0x5b9   : > { %v12504_v42 = vadd.f32 %v12503_v50, %v11644_v43 }
 0x5bb   : > { %v11673_v47 = vpop.f32.mrb[192].mxu1 }
 0x5bc   : > { %v11674_v51 = vpop.f32.mrb[193].mxu1 }
 0x5bd   : > { %v11675_v32 = vadd.f32 %v11674_v51, %v11673_v47  ;;  %v11676_v6 = vpop.f32.mrb[194].mxu1 }
 0x5be   : > { %v11677_v36 = vpop.f32.mrb[195].mxu1 }
 0x5bf   : > { %v12460_v11 = vadd.f32 %v12459_v34, %v11675_v32  ;;  %v11678_v35 = vadd.f32 %v11677_v36, %v11676_v6 }
 0x5c1   : > { %v12478_v44 = vadd.f32 %v12477_v18, %v11678_v35 }
 0x5c3   : > { %v11679_v48 = vpop.f32.mrb[196].mxu1 }
 0x5c4   : > { %v11680_v39 = vpop.f32.mrb[197].mxu1 }
 0x5c5   : > { %v11681_v14 = vadd.f32 %v11680_v39, %v11679_v48  ;;  %v11682_v10 = vpop.f32.mrb[198].mxu1 }
 0x5c6   : > { %v11683_v24 = vpop.f32.mrb[199].mxu1 }
 0x5c7   : > { %v12451_v20 = vadd.f32 %v12450_v1, %v11681_v14  ;;  %v11684_v56 = vadd.f32 %v11683_v24, %v11682_v10 }
 0x5c9   : > { %v12469_v21 = vadd.f32 %v12468_v0, %v11684_v56 }
 0x5cb   : > { %v11685_v4 = vpop.f32.mrb[200].mxu1 }
 0x5cc   : > { %v11686_v3 = vpop.f32.mrb[201].mxu1 }
 0x5cd   : > { %v11687_v38 = vadd.f32 %v11686_v3, %v11685_v4  ;;  %v11688_v2 = vpop.f32.mrb[202].mxu1 }
 0x5ce   : > { %v11689_v63 = vpop.f32.mrb[203].mxu1 }
 0x5cf   : > { %v12496_v12 = vadd.f32 %v12495_v53, %v11687_v38  ;;  %v11690_v28 = vadd.f32 %v11689_v63, %v11688_v2 }
 0x5d1   : > { %v12514_v37 = vadd.f32 %v12513_v23, %v11690_v28 }
 0x5d3   : > { %v11691_v29 = vpop.f32.mrb[204].mxu1 }
 0x5d4   : > { %v11692_v41 = vpop.f32.mrb[205].mxu1 }
 0x5d5   : > { %v11693_v15 = vadd.f32 %v11692_v41, %v11691_v29  ;;  %v11694_v58 = vpop.f32.mrb[206].mxu1 }
 0x5d6   : > { %v11695_v61 = vpop.f32.mrb[207].mxu1 }
 0x5d7   : > { %v12487_v60 = vadd.f32 %v12486_v57, %v11693_v15  ;;  %v11696_v26 = vadd.f32 %v11695_v61, %v11694_v58  ;;  %v10539_v61 = vld [vmem:[#allocation13] ss:$0 sm:$0xff] }
 0x5d9   : > { %v12505_v50 = vadd.f32 %v12504_v42, %v11696_v26 }
 0x5db   : > { %v11725_v19 = vpop.f32.mrb[208].mxu1  ;;  %v12271_v33 = vpop.f32.mrb[224].mxu0 }
 0x5dc   : > { %v11726_v13 = vpop.f32.mrb[209].mxu1  ;;  %v9447_v40 = vpop.f32.mrb[225].mxu0 }
 0x5dd   : > { %v11727_v59 = vadd.f32 %v11726_v13, %v11725_v19  ;;  %v11728_v34 = vpop.f32.mrb[210].mxu1  ;;  %v12272_v62 = vpop.f32.mrb[226].mxu0 }
 0x5de   : > { %v11729_v18 = vpop.f32.mrb[211].mxu1  ;;  %v9450_v5 = vpop.f32.mrb[227].mxu0 }
 0x5df   : > { %v12461_v30 = vadd.f32 %v12460_v11, %v11727_v59  ;;  %v11730_v7 = vadd.f32 %v11729_v18, %v11728_v34 }
 0x5e1   : > { %v12462_v46 = vadd.f32 %v12461_v30, %v9447_v40  ;;  %v12479_v22 = vadd.f32 %v12478_v44, %v11730_v7 }
 0x5e3   : > { %v12480_v1 = vadd.f32 %v12479_v22, %v9450_v5  ;;  %v11731_v52 = vpop.f32.mrb[212].mxu1  ;;  %v12275_v0 = vpop.f32.mrb[228].mxu0  ;;  %v9486_v49 = vmax.f32 %v12462_v46, 0.0 }
 0x5e4   : > { %v11732_v55 = vpop.f32.mrb[213].mxu1  ;;  %v9463_v16 = vpop.f32.mrb[229].mxu0 }
 0x5e5   : > { %v9487_v9 = vmax.f32 %v12480_v1, 0.0  ;;  %v11733_v17 = vadd.f32 %v11732_v55, %v11731_v52  ;;  %v11734_v53 = vpop.f32.mrb[214].mxu1  ;;  %v12276_v31 = vpop.f32.mrb[230].mxu0 }
 0x5e6   : > { %v11735_v23 = vpop.f32.mrb[215].mxu1  ;;  %v9466_v54 = vpop.f32.mrb[231].mxu0 }
 0x5e7   : > { %v9494_v25 = vpack.c.bf16 %v9487_v9, %v9486_v49  ;;  %v12452_v45 = vadd.f32 %v12451_v20, %v11733_v17  ;;  %v11736_v8 = vadd.f32 %v11735_v23, %v11734_v53 }
 0x5e9   : > { %v12453_v27 = vadd.f32 %v12452_v45, %v12271_v33  ;;  %v12470_v57 = vadd.f32 %v12469_v21, %v11736_v8  ;;  %12293 = vmatprep.mubr.bf16.mxu1 %v9494_v25 }
 0x5eb   : > { %v12471_v43 = vadd.f32 %v12470_v57, %v12272_v62  ;;  %v11737_v42 = vpop.f32.mrb[216].mxu1  ;;  %v9488_v51 = vmax.f32 %v12453_v27, 0.0 }
 0x5ec   : > { %v11738_v47 = vpop.f32.mrb[217].mxu1 }
 0x5ed   : > { %v9489_v32 = vmax.f32 %v12471_v43, 0.0  ;;  %v11739_v6 = vadd.f32 %v11738_v47, %v11737_v42  ;;  %v11740_v36 = vpop.f32.mrb[218].mxu1 }
 0x5ee   : > { %v11741_v11 = vpop.f32.mrb[219].mxu1 }
 0x5ef   : > { %v9495_v35 = vpack.c.bf16 %v9489_v32, %v9488_v51  ;;  %v12497_v44 = vadd.f32 %v12496_v12, %v11739_v6  ;;  %v11742_v48 = vadd.f32 %v11741_v11, %v11740_v36 }
 0x5f1   : > { %v12498_v39 = vadd.f32 %v12497_v44, %v9463_v16  ;;  %v12515_v14 = vadd.f32 %v12514_v37, %v11742_v48  ;;  %12294 = vmatmul.mubr.bf16.vlgmr.msra.gmra.mrb[224].mxu1 %v9495_v35 }
 0x5f3   : > { %v12516_v10 = vadd.f32 %v12515_v14, %v9466_v54  ;;  %v11743_v24 = vpop.f32.mrb[220].mxu1  ;;  %v9490_v56 = vmax.f32 %v12498_v39, 0.0 }
 0x5f4   : > { %v11744_v20 = vpop.f32.mrb[221].mxu1 }
 0x5f5   : > { %v9491_v21 = vmax.f32 %v12516_v10, 0.0  ;;  %v11745_v4 = vadd.f32 %v11744_v20, %v11743_v24  ;;  %v11746_v3 = vpop.f32.mrb[222].mxu1 }
 0x5f6   : > { %v11747_v38 = vpop.f32.mrb[223].mxu1 }
 0x5f7   : > { %v12488_v2 = vadd.f32 %v12487_v60, %v11745_v4  ;;  %v11748_v63 = vadd.f32 %v11747_v38, %v11746_v3  ;;  %v9496_v28 = vpack.c.bf16 %v9491_v21, %v9490_v56 }
 0x5f9   : > { %v12489_v29 = vadd.f32 %v12488_v2, %v12275_v0  ;;  %v12506_v41 = vadd.f32 %v12505_v50, %v11748_v63  ;;  %12297 = vmatprep.mubr.bf16.mxu1 %v9496_v28 }
 0x5fb   : > { %v12507_v15 = vadd.f32 %v12506_v41, %v12276_v31  ;;  %v9492_v12 = vmax.f32 %v12489_v29, 0.0 }
 0x5fd   : > { %v9493_v58 = vmax.f32 %v12507_v15, 0.0 }
 0x5ff   : > { %v9497_v37 = vpack.c.bf16 %v9493_v58, %v9492_v12 }
 0x601   : > { %12298 = vmatmul.mubr.bf16.gmra.mrb[228].mxu1 %v9497_v37 }
 0x6c4   : > { %v12295_v26 = vpop.f32.mrb[224].mxu1 }
 0x6c5   : > { %v9612_v19 = vadd.f32 %v12295_v26, %v10539_v61  ;;  %v9603_v60 = vpop.f32.mrb[225].mxu1 }
 0x6c6   : > { %v9604_v33 = vadd.f32 %v10539_v61, %v9603_v60  ;;  %v12296_v13 = vpop.f32.mrb[226].mxu1 }
 0x6c7   : > { %v9636_v40 = vmax.f32 %v9612_v19, 0.0  ;;  %v9615_v50 = vadd.f32 %v12296_v13, %v10539_v61  ;;  %v9606_v59 = vpop.f32.mrb[227].mxu1 }
 0x6c8   : > { %v9634_v34 = vmax.f32 %v9604_v33, 0.0  ;;  %v9607_v62 = vadd.f32 %v10539_v61, %v9606_v59 }
 0x6c9   : > { %9644 = vst [vmem:[%s14155_s20 + $0x10] sm:$0xff] %v9636_v40  ;;  %v9637_v18 = vmax.f32 %v9615_v50, 0.0 }
 0x6ca   : > { %9642 = vst [vmem:[%s14155_s20] sm:$0xff] %v9634_v34  ;;  %v9635_v5 = vmax.f32 %v9607_v62, 0.0 }
 0x6cb   : > { %9645 = vst [vmem:[%s14155_s20 + $0x18] sm:$0xff] %v9637_v18 }
 0x6cc   : > { %9643 = vst [vmem:[%s14155_s20 + $0x8] sm:$0xff] %v9635_v5 }
 0x6d4   : > { %v12299_v30 = vpop.f32.mrb[228].mxu1 }
 0x6d5   : > { %v9628_v7 = vadd.f32 %v12299_v30, %v10539_v61  ;;  %v9619_v46 = vpop.f32.mrb[229].mxu1 }
 0x6d6   : > { %v9620_v22 = vadd.f32 %v10539_v61, %v9619_v46  ;;  %v12300_v1 = vpop.f32.mrb[230].mxu1 }
 0x6d7   : > { %v9640_v52 = vmax.f32 %v9628_v7, 0.0  ;;  %v9631_v0 = vadd.f32 %v12300_v1, %v10539_v61  ;;  %v9622_v55 = vpop.f32.mrb[231].mxu1 }
 0x6d8   : > { %v9638_v16 = vmax.f32 %v9620_v22, 0.0  ;;  %v9623_v49 = vadd.f32 %v10539_v61, %v9622_v55 }
 0x6d9   : > { %9648 = vst [vmem:[%s14155_s20 + $0x30] sm:$0xff] %v9640_v52  ;;  %v9641_v9 = vmax.f32 %v9631_v0, 0.0 }
 0x6da   : > { %9646 = vst [vmem:[%s14155_s20 + $0x20] sm:$0xff] %v9638_v16  ;;  %v9639_v17 = vmax.f32 %v9623_v49, 0.0 }
 0x6db   : > { %9649 = vst [vmem:[%s14155_s20 + $0x38] sm:$0xff] %v9641_v9 }
 0x6dc   : > { %9647 = vst [vmem:[%s14155_s20 + $0x28] sm:$0xff] %v9639_v17 }
 0x6dd   : > { %13653 = shalt.err (!%p13650_p6)
}
 0x6de   : > { %s13654_s19 = scalar_lea.hbm %s15950_s13, 1024  ;;  %s13658_s2 = scalar_lea.hbm %s16018_s7, 4096 }
 0x6df   : > { %p13655_p7 = scmp.ne.s32.totalorder %s15950_s13, %s13654_s19  ;;  %p13659_p13 = scmp.lt.u32.totalorder %s15950_s13, %s16018_s7 }
 0x6e0   : > { %p13660_p1 = scmp.lt.u32.totalorder %s13658_s2, %s13654_s19  ;;  %p13662_p0 = scmp.lt.u32.totalorder %s13654_s19, %s15950_s13 }
 0x6e1   : > { %p13656_p9 = pnand %p13655_p7, %p16208_p2 }
 0x6e2   : > { %p13661_p3 = por %p13660_p1, %p13659_p13 }
 0x6e3   : > { %p13657_p11 = pneg %p13656_p9 }
 0x6e4   : > { %p13663_p8 = por %p13662_p0, %p13661_p3 }
 0x6e6   : > { %p13664_p10 = pnand %p13663_p8, %p13657_p11 }
 0x6e8   : > { %13667 = shalt.err (!%p13664_p10)
}
 0x6e9   : > { %s13765_s29 = smov 128   ;;  %s13766_s22 = smov 8  }
 0x6ea   : > { %12733 = dma.vmem_to_hbm [thread:$0]  (%p16208_p2), %s15952_s14, 1024, %s15950_s13, %s15959_s11, %s13765_s29, %s13765_s29, %s13766_s22  }
 0x6eb PF: > { %p12770_p12 = scmp.ge.s32.totalorder %s13752_s8, 2  ;;  %s9682_s4 = sand.u32 1, %s13724_s24  }
 0x6ec   : > { %p16209_p4 = scmp.ne.s32.totalorder %s16097_s16, 0  ;;  %s9683_s26 = scalar_lea.sflag [#allocation6], %s9682_s4 }
 0x6ee   : > { %p12755_p5 = pnand %p12770_p12, %p16209_p4 }
 0x6f0   : > { %13719 = dma.done.wait (!%p12755_p5), %s9683_s26, 1024  }
 0x6f1   : > { %13721 = vsyncadd (!%p12755_p5), %s9683_s26, 4294966272  ;;  %s24_s8 = sadd.s32 1, %s13752_s8   ;;  %s16210_s18 = sld [smem:[#allocation27_spill]] }
 0x6f2   : > { %p21_p6 = scmp.ge.s32.totalorder %s24_s8, 6   ;;  %s16211_s26 = sld [smem:[#allocation32_spill]] }
 0x6f3   : > { %s16212_s27 = sld [smem:[#allocation28_spill]]  ;;  %s16213_s28 = sld [smem:[#allocation29_spill]] }
 0x6f4   : > { %s16214_s29 = sld [smem:[#allocation30_spill]]  ;;  %s16215_s30 = sld [smem:[#allocation31_spill]] }
 0x6f5   : > { %s16216_s24 = smov %s13728_s25  ;;  %23 = sbr.rel (!%p21_p6) target bundleno = 12 (0xc), region = 136 }
 0x6f7   : > { %s16217_s25 = smov %s16210_s18 }
 0x6fc   :  { %9688 = vsyncpa [#allocation5], 1 }
 0x6fd   :  { %9690 = vsyncpa [#allocation5 + $0x1], 1 }
 0x6fe   :  { %9691 = vsyncpa [#allocation8], 1 }
 0x6ff   :  { %9692 = vsyncpa [#allocation11], 1 }
 0x700   :  { %9693 = vsyncpa [#allocation14], 1 }
 0x701   :  { %9694 = vsyncpa [#allocation6], 1 }
 0x702   :  { %9696 = vsyncpa [#allocation6 + $0x1], 1 }

</bundles_post_ra>
